<compile_context>
chip_gen: v5e
topology: v5e:2x2
jax: 0.10.0
libtpu: 0.0.40
codegen_flags: <defaults>
</compile_context>

<pallas_src>
import jax
import jax.numpy as jnp
from jax.experimental import pallas as pl
from jax.experimental.pallas import tpu as pltpu

_TIME_CHUNK_CAP = 16                    # time steps per grid iteration (multiple of 8)
_FUSE_VMEM_BUDGET = 40 * 1024 * 1024    # fuse all layers into one call if it fits


def _round_up(x, m):
    return (x + m - 1) // m * m


def _vmem_bytes_estimate(B, TC, in_dims, H, itemsize=4):
    """Rough VMEM budget: resident weights/bias (x2 buffers, conservative) +
    double-buffered x/out chunks + inter-layer slab + h/c carries."""
    num_layers = len(in_dims)
    w = sum((d + H) * 4 * H * itemsize for d in in_dims)
    b = num_layers * 4 * H * itemsize
    x_chunk = B * TC * in_dims[0] * itemsize
    o_chunk = B * TC * H * itemsize
    slab = B * TC * H * 4 if num_layers > 1 else 0
    carry = num_layers * 2 * B * H * 4
    return 2 * (w + b) + 2 * x_chunk + 2 * o_chunk + slab + carry


def _make_kernel(num_layers, B, TC, H, in_dims):
    """Kernel over one chunk of TC time steps, running `num_layers` stacked layers.

    Ref order: x, (w_0, b_0), ..., (w_{L-1}, b_{L-1}), out,
               [inter-layer slab scratch if L > 1], (h_0, c_0), ..., (h_{L-1}, c_{L-1}).
    """
    del in_dims  # shapes come from the refs themselves

    def kernel(*refs):
        it = iter(refs)
        x_ref = next(it)
        wb = [(next(it), next(it)) for _ in range(num_layers)]
        o_ref = next(it)
        slab_ref = next(it) if num_layers > 1 else None
        hc = [(next(it), next(it)) for _ in range(num_layers)]

        chunk = pl.program_id(0)

        @pl.when(chunk == 0)
        def _init():
            for h_ref, c_ref in hc:
                h_ref[...] = jnp.zeros_like(h_ref)
                c_ref[...] = jnp.zeros_like(c_ref)

        for layer in range(num_layers):
            w_ref, b_ref = wb[layer]
            h_ref, c_ref = hc[layer]
            src = x_ref if layer == 0 else slab_ref                 # (B, TC, d_in)
            dst = o_ref if layer == num_layers - 1 else slab_ref    # (B, TC, H)

            w = w_ref[...]                                          # (d_in + H, 4H) resident
            # Hoisted out of the time loop: broadcast_in_dim is not CSE'd by JAX.
            bias = jnp.broadcast_to(b_ref[...].astype(jnp.float32), (B, 4 * H))

            def step(s, carry, src=src, dst=dst, w=w, bias=bias):
                h, c = carry
                x_t = src[:, s, :].astype(jnp.float32)              # (B, d_in)
                # Single fused MXU matmul: [x_t, h_prev] @ [W_ih; W_hh]
                z = jnp.concatenate([x_t, h], axis=-1)              # (B, d_in + H)
                gates = jnp.dot(z, w, preferred_element_type=jnp.float32) + bias
                i_g = jax.nn.sigmoid(gates[:, 0 * H:1 * H])
                f_g = jax.nn.sigmoid(gates[:, 1 * H:2 * H])
                g_g = jnp.tanh(gates[:, 2 * H:3 * H])
                o_g = jax.nn.sigmoid(gates[:, 3 * H:4 * H])
                c_new = f_g * c + i_g * g_g
                h_new = o_g * jnp.tanh(c_new)
                dst[:, s, :] = h_new.astype(dst.dtype)
                return (h_new, c_new)

            # Fully unrolled inner time loop over the chunk (TC <= 16).
            h_fin, c_fin = jax.lax.fori_loop(
                0, TC, step, (h_ref[...], c_ref[...]), unroll=True)
            h_ref[...] = h_fin
            c_ref[...] = c_fin

    return kernel


def _lstm_stack_pallas(x, layer_params, time_chunk):
    """x: (B, T_pad, D_in) with T_pad % time_chunk == 0. Runs len(layer_params)
    stacked LSTM layers in a single pallas_call; returns (B, T_pad, H)."""
    B, T_pad, D0 = x.shape
    num_layers = len(layer_params)
    H = layer_params[0][0].shape[1] // 4
    in_dims = [D0] + [H] * (num_layers - 1)
    TC = time_chunk
    assert T_pad % TC == 0
    num_chunks = T_pad // TC

    kernel = _make_kernel(num_layers, B, TC, H, tuple(in_dims))

    in_specs = [pl.BlockSpec((B, TC, D0), lambda c: (0, c, 0))]       # x chunk
    inputs = [x]
    for layer, (w, b) in enumerate(layer_params):
        dk = in_dims[layer] + H
        in_specs.append(pl.BlockSpec((dk, 4 * H), lambda c: (0, 0)))  # fused W, resident
        in_specs.append(pl.BlockSpec((1, 4 * H), lambda c: (0, 0)))   # bias, resident
        inputs += [w, b]

    scratch_shapes = []
    if num_layers > 1:
        scratch_shapes.append(pltpu.VMEM((B, TC, H), jnp.float32))    # inter-layer slab
    for _ in range(num_layers):
        scratch_shapes.append(pltpu.VMEM((B, H), jnp.float32))        # h carry
        scratch_shapes.append(pltpu.VMEM((B, H), jnp.float32))        # c carry

    est = _vmem_bytes_estimate(B, TC, in_dims, H)
    vmem_limit = int(min(max(2 * est, 32 * 1024 * 1024), 48 * 1024 * 1024))

    return pl.pallas_call(
        kernel,
        out_shape=jax.ShapeDtypeStruct((B, T_pad, H), x.dtype),
        grid_spec=pltpu.PrefetchScalarGridSpec(
            num_scalar_prefetch=0,
            grid=(num_chunks,),
            in_specs=in_specs,
            out_specs=pl.BlockSpec((B, TC, H), lambda c: (0, c, 0)),
            scratch_shapes=scratch_shapes,
        ),
        compiler_params=pltpu.CompilerParams(
            dimension_semantics=("arbitrary",),   # time chunks are sequential
            vmem_limit_bytes=vmem_limit,
        ),
    )(*inputs)


@jax.jit
def lstm_clip_forward(x, params):
    """x: (B, T, D_in) batch_first. params: list of (W[(D_l + H), 4H], b[1, 4H])
    with W = [W_ih^T; W_hh^T] and b = b_ih + b_hh (PyTorch gate order i, f, g, o).
    Matches nn.LSTM(batch_first=True) with zero initial state; returns (B, T, H)."""
    B, T, _ = x.shape
    H = params[0][0].shape[1] // 4
    num_layers = len(params)

    TC = min(_round_up(T, 8), _TIME_CHUNK_CAP)
    T_pad = _round_up(T, TC)
    if T_pad != T:
        # Pad at the END of the sequence: padded steps only affect discarded outputs.
        x = jnp.pad(x, ((0, 0), (0, T_pad - T), (0, 0)))

    in_dims = [x.shape[-1]] + [H] * (num_layers - 1)
    if _vmem_bytes_estimate(B, TC, in_dims, H) <= _FUSE_VMEM_BUDGET:
        out = _lstm_stack_pallas(x, params, TC)       # all layers fused, one call
    else:
        # TODO(synk): for very large H also tile the 4H gate (N) dimension.
        out = x
        for p in params:
            out = _lstm_stack_pallas(out, [p], TC)    # per-layer fallback
    return out[:, :T, :]


def lstm_clip_reference(x, params):
    """Pure-JAX reference (lax.scan), identical math, for correctness check."""
    out = x
    for w, b in params:
        B = out.shape[0]
        H = w.shape[1] // 4

        def step(carry, x_t):
            h, c = carry
            gates = jnp.concatenate([x_t, h], axis=-1) @ w + b[0]
            i_g = jax.nn.sigmoid(gates[:, 0 * H:1 * H])
            f_g = jax.nn.sigmoid(gates[:, 1 * H:2 * H])
            g_g = jnp.tanh(gates[:, 2 * H:3 * H])
            o_g = jax.nn.sigmoid(gates[:, 3 * H:4 * H])
            c = f_g * c + i_g * g_g
            h = o_g * jnp.tanh(c)
            return (h, c), h

        init = (jnp.zeros((B, H), jnp.float32), jnp.zeros((B, H), jnp.float32))
        _, ys = jax.lax.scan(step, init, jnp.transpose(out, (1, 0, 2)))
        out = jnp.transpose(ys, (1, 0, 2))
    return out


def init_lstm_params(key, input_size, hidden_size, num_layers):
    """PyTorch-style uniform(-1/sqrt(H), 1/sqrt(H)) init, stored fused & pre-transposed:
    W = concat([W_ih^T, W_hh^T], axis=0) -> (D_in + H, 4H), b = (b_ih + b_hh) -> (1, 4H)."""
    H = hidden_size
    bound = 1.0 / float(H) ** 0.5
    params = []
    d_in = input_size
    for _ in range(num_layers):
        key, k1, k2, k3, k4 = jax.random.split(key, 5)
        w_ih = jax.random.uniform(k1, (d_in, 4 * H), jnp.float32, -bound, bound)
        w_hh = jax.random.uniform(k2, (H, 4 * H), jnp.float32, -bound, bound)
        b_ih = jax.random.uniform(k3, (4 * H,), jnp.float32, -bound, bound)
        b_hh = jax.random.uniform(k4, (4 * H,), jnp.float32, -bound, bound)
        w = jnp.concatenate([w_ih, w_hh], axis=0)        # (d_in + H, 4H)
        b = (b_ih + b_hh).reshape(1, 4 * H)
        params.append((w, b))
        d_in = H
    return params


if __name__ == "__main__":
    # Small shapes consistent with LSTM_clip(input_size, hidden_size, num_layers).
    # seq=24 with TC=16 exercises multi-chunk carry AND end-of-sequence padding.
    batch, seq, input_size, hidden_size, num_layers = 8, 24, 16, 32, 2

    key = jax.random.PRNGKey(0)
    key, xk = jax.random.split(key)
    x = jax.random.normal(xk, (batch, seq, input_size), jnp.float32)
    params = init_lstm_params(key, input_size, hidden_size, num_layers)

    out = jax.block_until_ready(lstm_clip_forward(x, params))
    ref = lstm_clip_reference(x, params)

    assert out.shape == (batch, seq, hidden_size), out.shape
    assert jnp.allclose(out, ref, atol=1e-4, rtol=1e-4), float(jnp.max(jnp.abs(out - ref)))

    print("KERNEL_OK")
</pallas_src>

<mosaic_0001>
module attributes {stable_mosaic.version = 11 : i64} {
  func.func @kernel(%arg0: i32, %arg1: memref<8x16x16xf32, #tpu.memory_space<vmem>>, %arg2: memref<48x128xf32, #tpu.memory_space<vmem>>, %arg3: memref<1x128xf32, #tpu.memory_space<vmem>>, %arg4: memref<64x128xf32, #tpu.memory_space<vmem>>, %arg5: memref<1x128xf32, #tpu.memory_space<vmem>>, %arg6: memref<8x16x32xf32, #tpu.memory_space<vmem>>, %arg7: memref<8x16x32xf32, #tpu.memory_space<vmem>>, %arg8: memref<8x32xf32, #tpu.memory_space<vmem>>, %arg9: memref<8x32xf32, #tpu.memory_space<vmem>>, %arg10: memref<8x32xf32, #tpu.memory_space<vmem>>, %arg11: memref<8x32xf32, #tpu.memory_space<vmem>>) attributes {dimension_semantics = [#tpu.dimension_semantics<arbitrary>], iteration_bounds = array<i64: 2>, scalar_prefetch = 0 : i64, scratch_operands = 5 : i64, tpu.core_type = #tpu.core_type<tc>, window_params = [{transform_indices = @transform_0, window_bounds = array<i64: 8, 16, 16>}, {pipeline_mode = #tpu.pipeline_mode<synchronous>, transform_indices = @transform_1, window_bounds = array<i64: 48, 128>}, {pipeline_mode = #tpu.pipeline_mode<synchronous>, transform_indices = @transform_2, window_bounds = array<i64: 1, 128>}, {pipeline_mode = #tpu.pipeline_mode<synchronous>, transform_indices = @transform_3, window_bounds = array<i64: 64, 128>}, {pipeline_mode = #tpu.pipeline_mode<synchronous>, transform_indices = @transform_4, window_bounds = array<i64: 1, 128>}, {transform_indices = @transform_5, window_bounds = array<i64: 8, 16, 32>}]} {
    %c0_i32 = arith.constant 0 : i32
    %0 = arith.cmpi eq, %arg0, %c0_i32 : i32
    %1 = arith.extui %0 : i1 to i32
    %c0_i32_0 = arith.constant 0 : i32
    %2 = arith.cmpi ne, %1, %c0_i32_0 : i32
    scf.if %2 {
      %cst_297 = arith.constant 0.000000e+00 : f32
      %1139 = vector.broadcast %cst_297 : f32 to vector<8x32xf32>
      %c0_298 = arith.constant 0 : index
      %c0_299 = arith.constant 0 : index
      %1140 = vector.load %arg8[%c0_298, %c0_299] : memref<8x32xf32, #tpu.memory_space<vmem>>, vector<8x32xf32>
      tpu.vector_store %arg8[%c0_298, %c0_299], %1139 {strides = array<i32>} : memref<8x32xf32, #tpu.memory_space<vmem>>, vector<8x32xf32>,
      %cst_300 = arith.constant 0.000000e+00 : f32
      %1141 = vector.broadcast %cst_300 : f32 to vector<8x32xf32>
      %c0_301 = arith.constant 0 : index
      %c0_302 = arith.constant 0 : index
      %1142 = vector.load %arg9[%c0_301, %c0_302] : memref<8x32xf32, #tpu.memory_space<vmem>>, vector<8x32xf32>
      tpu.vector_store %arg9[%c0_301, %c0_302], %1141 {strides = array<i32>} : memref<8x32xf32, #tpu.memory_space<vmem>>, vector<8x32xf32>,
      %cst_303 = arith.constant 0.000000e+00 : f32
      %1143 = vector.broadcast %cst_303 : f32 to vector<8x32xf32>
      %c0_304 = arith.constant 0 : index
      %c0_305 = arith.constant 0 : index
      %1144 = vector.load %arg10[%c0_304, %c0_305] : memref<8x32xf32, #tpu.memory_space<vmem>>, vector<8x32xf32>
      tpu.vector_store %arg10[%c0_304, %c0_305], %1143 {strides = array<i32>} : memref<8x32xf32, #tpu.memory_space<vmem>>, vector<8x32xf32>,
      %cst_306 = arith.constant 0.000000e+00 : f32
      %1145 = vector.broadcast %cst_306 : f32 to vector<8x32xf32>
      %c0_307 = arith.constant 0 : index
      %c0_308 = arith.constant 0 : index
      %1146 = vector.load %arg11[%c0_307, %c0_308] : memref<8x32xf32, #tpu.memory_space<vmem>>, vector<8x32xf32>
      tpu.vector_store %arg11[%c0_307, %c0_308], %1145 {strides = array<i32>} : memref<8x32xf32, #tpu.memory_space<vmem>>, vector<8x32xf32>,
    } else {
    }
    %c0 = arith.constant 0 : index
    %c0_1 = arith.constant 0 : index
    %3 = vector.load %arg2[%c0, %c0_1] : memref<48x128xf32, #tpu.memory_space<vmem>>, vector<48x128xf32>
    %c0_2 = arith.constant 0 : index
    %c0_3 = arith.constant 0 : index
    %4 = vector.load %arg3[%c0_2, %c0_3] : memref<1x128xf32, #tpu.memory_space<vmem>>, vector<1x128xf32>
    %5 = vector.shape_cast %4 : vector<1x128xf32> to vector<1x128xf32>
    %6 = vector.broadcast %5 : vector<1x128xf32> to vector<8x128xf32>
    %c0_4 = arith.constant 0 : index
    %c0_5 = arith.constant 0 : index
    %7 = vector.load %arg8[%c0_4, %c0_5] : memref<8x32xf32, #tpu.memory_space<vmem>>, vector<8x32xf32>
    %c0_6 = arith.constant 0 : index
    %c0_7 = arith.constant 0 : index
    %8 = vector.load %arg9[%c0_6, %c0_7] : memref<8x32xf32, #tpu.memory_space<vmem>>, vector<8x32xf32>
    %c0_i32_8 = arith.constant 0 : i32
    %c0_9 = arith.constant 0 : index
    %9 = arith.index_cast %c0_i32_8 : i32 to index
    %c0_10 = arith.constant 0 : index
    %10 = vector.load %arg1[%c0_9, %9, %c0_10] : memref<8x16x16xf32, #tpu.memory_space<vmem>>, vector<8x1x16xf32>
    %11 = vector.shape_cast %10 : vector<8x1x16xf32> to vector<8x16xf32>
    %12 = tpu.concatenate %11, %7 in 1 : vector<8x16xf32>, vector<8x32xf32> -> vector<8x48xf32>
    %cst = arith.constant dense<0.000000e+00> : vector<8x128xf32>
    %13 = tpu.matmul %12, %3, %cst {dimension_numbers = #tpu.dot_dimension_numbers<[1], [0], [0], [1], [0, 0, 1, 1], [], []>} : vector<8x48xf32>, vector<48x128xf32>, vector<8x128xf32> -> vector<8x128xf32>
    %14 = arith.addf %13, %6 : vector<8x128xf32>
    %15 = vector.extract_strided_slice %14 {offsets = [0, 0], sizes = [8, 32], strides = [1, 1]} : vector<8x128xf32> to vector<8x32xf32>
    %16 = arith.negf %15 : vector<8x32xf32>
    %17 = math.exp %16 : vector<8x32xf32>
    %cst_11 = arith.constant 1.000000e+00 : f32
    %18 = vector.broadcast %cst_11 : f32 to vector<8x32xf32>
    %19 = arith.addf %18, %17 : vector<8x32xf32>
    %20 = arith.divf %18, %19 : vector<8x32xf32>
    %21 = vector.extract_strided_slice %14 {offsets = [0, 32], sizes = [8, 32], strides = [1, 1]} : vector<8x128xf32> to vector<8x32xf32>
    %22 = arith.negf %21 : vector<8x32xf32>
    %23 = math.exp %22 : vector<8x32xf32>
    %cst_12 = arith.constant 1.000000e+00 : f32
    %24 = vector.broadcast %cst_12 : f32 to vector<8x32xf32>
    %25 = arith.addf %24, %23 : vector<8x32xf32>
    %26 = arith.divf %24, %25 : vector<8x32xf32>
    %27 = vector.extract_strided_slice %14 {offsets = [0, 64], sizes = [8, 32], strides = [1, 1]} : vector<8x128xf32> to vector<8x32xf32>
    %28 = math.tanh %27 : vector<8x32xf32>
    %29 = vector.extract_strided_slice %14 {offsets = [0, 96], sizes = [8, 32], strides = [1, 1]} : vector<8x128xf32> to vector<8x32xf32>
    %30 = arith.negf %29 : vector<8x32xf32>
    %31 = math.exp %30 : vector<8x32xf32>
    %cst_13 = arith.constant 1.000000e+00 : f32
    %32 = vector.broadcast %cst_13 : f32 to vector<8x32xf32>
    %33 = arith.addf %32, %31 : vector<8x32xf32>
    %34 = arith.divf %32, %33 : vector<8x32xf32>
    %35 = arith.mulf %26, %8 : vector<8x32xf32>
    %36 = arith.mulf %20, %28 : vector<8x32xf32>
    %37 = arith.addf %35, %36 : vector<8x32xf32>
    %38 = math.tanh %37 : vector<8x32xf32>
    %39 = arith.mulf %34, %38 : vector<8x32xf32>
    %c0_14 = arith.constant 0 : index
    %40 = arith.index_cast %c0_i32_8 : i32 to index
    %c0_15 = arith.constant 0 : index
    %41 = vector.load %arg7[%c0_14, %40, %c0_15] : memref<8x16x32xf32, #tpu.memory_space<vmem>>, vector<8x1x32xf32>
    %42 = vector.shape_cast %41 : vector<8x1x32xf32> to vector<8x32xf32>
    %43 = vector.shape_cast %39 : vector<8x32xf32> to vector<8x1x32xf32>
    tpu.vector_store %arg7[%c0_14, %40, %c0_15], %43 {strides = array<i32>} : memref<8x16x32xf32, #tpu.memory_space<vmem>>, vector<8x1x32xf32>,
    %c1_i32 = arith.constant 1 : i32
    %c0_16 = arith.constant 0 : index
    %44 = arith.index_cast %c1_i32 : i32 to index
    %c0_17 = arith.constant 0 : index
    %45 = vector.load %arg1[%c0_16, %44, %c0_17] : memref<8x16x16xf32, #tpu.memory_space<vmem>>, vector<8x1x16xf32>
    %46 = vector.shape_cast %45 : vector<8x1x16xf32> to vector<8x16xf32>
    %47 = tpu.concatenate %46, %39 in 1 : vector<8x16xf32>, vector<8x32xf32> -> vector<8x48xf32>
    %cst_18 = arith.constant dense<0.000000e+00> : vector<8x128xf32>
    %48 = tpu.matmul %47, %3, %cst_18 {dimension_numbers = #tpu.dot_dimension_numbers<[1], [0], [0], [1], [0, 0, 1, 1], [], []>} : vector<8x48xf32>, vector<48x128xf32>, vector<8x128xf32> -> vector<8x128xf32>
    %49 = arith.addf %48, %6 : vector<8x128xf32>
    %50 = vector.extract_strided_slice %49 {offsets = [0, 0], sizes = [8, 32], strides = [1, 1]} : vector<8x128xf32> to vector<8x32xf32>
    %51 = arith.negf %50 : vector<8x32xf32>
    %52 = math.exp %51 : vector<8x32xf32>
    %cst_19 = arith.constant 1.000000e+00 : f32
    %53 = vector.broadcast %cst_19 : f32 to vector<8x32xf32>
    %54 = arith.addf %53, %52 : vector<8x32xf32>
    %55 = arith.divf %53, %54 : vector<8x32xf32>
    %56 = vector.extract_strided_slice %49 {offsets = [0, 32], sizes = [8, 32], strides = [1, 1]} : vector<8x128xf32> to vector<8x32xf32>
    %57 = arith.negf %56 : vector<8x32xf32>
    %58 = math.exp %57 : vector<8x32xf32>
    %cst_20 = arith.constant 1.000000e+00 : f32
    %59 = vector.broadcast %cst_20 : f32 to vector<8x32xf32>
    %60 = arith.addf %59, %58 : vector<8x32xf32>
    %61 = arith.divf %59, %60 : vector<8x32xf32>
    %62 = vector.extract_strided_slice %49 {offsets = [0, 64], sizes = [8, 32], strides = [1, 1]} : vector<8x128xf32> to vector<8x32xf32>
    %63 = math.tanh %62 : vector<8x32xf32>
    %64 = vector.extract_strided_slice %49 {offsets = [0, 96], sizes = [8, 32], strides = [1, 1]} : vector<8x128xf32> to vector<8x32xf32>
    %65 = arith.negf %64 : vector<8x32xf32>
    %66 = math.exp %65 : vector<8x32xf32>
    %cst_21 = arith.constant 1.000000e+00 : f32
    %67 = vector.broadcast %cst_21 : f32 to vector<8x32xf32>
    %68 = arith.addf %67, %66 : vector<8x32xf32>
    %69 = arith.divf %67, %68 : vector<8x32xf32>
    %70 = arith.mulf %61, %37 : vector<8x32xf32>
    %71 = arith.mulf %55, %63 : vector<8x32xf32>
    %72 = arith.addf %70, %71 : vector<8x32xf32>
    %73 = math.tanh %72 : vector<8x32xf32>
    %74 = arith.mulf %69, %73 : vector<8x32xf32>
    %c0_22 = arith.constant 0 : index
    %75 = arith.index_cast %c1_i32 : i32 to index
    %c0_23 = arith.constant 0 : index
    %76 = vector.load %arg7[%c0_22, %75, %c0_23] : memref<8x16x32xf32, #tpu.memory_space<vmem>>, vector<8x1x32xf32>
    %77 = vector.shape_cast %76 : vector<8x1x32xf32> to vector<8x32xf32>
    %78 = vector.shape_cast %74 : vector<8x32xf32> to vector<8x1x32xf32>
    tpu.vector_store %arg7[%c0_22, %75, %c0_23], %78 {strides = array<i32>} : memref<8x16x32xf32, #tpu.memory_space<vmem>>, vector<8x1x32xf32>,
    %c2_i32 = arith.constant 2 : i32
    %c0_24 = arith.constant 0 : index
    %79 = arith.index_cast %c2_i32 : i32 to index
    %c0_25 = arith.constant 0 : index
    %80 = vector.load %arg1[%c0_24, %79, %c0_25] : memref<8x16x16xf32, #tpu.memory_space<vmem>>, vector<8x1x16xf32>
    %81 = vector.shape_cast %80 : vector<8x1x16xf32> to vector<8x16xf32>
    %82 = tpu.concatenate %81, %74 in 1 : vector<8x16xf32>, vector<8x32xf32> -> vector<8x48xf32>
    %cst_26 = arith.constant dense<0.000000e+00> : vector<8x128xf32>
    %83 = tpu.matmul %82, %3, %cst_26 {dimension_numbers = #tpu.dot_dimension_numbers<[1], [0], [0], [1], [0, 0, 1, 1], [], []>} : vector<8x48xf32>, vector<48x128xf32>, vector<8x128xf32> -> vector<8x128xf32>
    %84 = arith.addf %83, %6 : vector<8x128xf32>
    %85 = vector.extract_strided_slice %84 {offsets = [0, 0], sizes = [8, 32], strides = [1, 1]} : vector<8x128xf32> to vector<8x32xf32>
    %86 = arith.negf %85 : vector<8x32xf32>
    %87 = math.exp %86 : vector<8x32xf32>
    %cst_27 = arith.constant 1.000000e+00 : f32
    %88 = vector.broadcast %cst_27 : f32 to vector<8x32xf32>
    %89 = arith.addf %88, %87 : vector<8x32xf32>
    %90 = arith.divf %88, %89 : vector<8x32xf32>
    %91 = vector.extract_strided_slice %84 {offsets = [0, 32], sizes = [8, 32], strides = [1, 1]} : vector<8x128xf32> to vector<8x32xf32>
    %92 = arith.negf %91 : vector<8x32xf32>
    %93 = math.exp %92 : vector<8x32xf32>
    %cst_28 = arith.constant 1.000000e+00 : f32
    %94 = vector.broadcast %cst_28 : f32 to vector<8x32xf32>
    %95 = arith.addf %94, %93 : vector<8x32xf32>
    %96 = arith.divf %94, %95 : vector<8x32xf32>
    %97 = vector.extract_strided_slice %84 {offsets = [0, 64], sizes = [8, 32], strides = [1, 1]} : vector<8x128xf32> to vector<8x32xf32>
    %98 = math.tanh %97 : vector<8x32xf32>
    %99 = vector.extract_strided_slice %84 {offsets = [0, 96], sizes = [8, 32], strides = [1, 1]} : vector<8x128xf32> to vector<8x32xf32>
    %100 = arith.negf %99 : vector<8x32xf32>
    %101 = math.exp %100 : vector<8x32xf32>
    %cst_29 = arith.constant 1.000000e+00 : f32
    %102 = vector.broadcast %cst_29 : f32 to vector<8x32xf32>
    %103 = arith.addf %102, %101 : vector<8x32xf32>
    %104 = arith.divf %102, %103 : vector<8x32xf32>
    %105 = arith.mulf %96, %72 : vector<8x32xf32>
    %106 = arith.mulf %90, %98 : vector<8x32xf32>
    %107 = arith.addf %105, %106 : vector<8x32xf32>
    %108 = math.tanh %107 : vector<8x32xf32>
    %109 = arith.mulf %104, %108 : vector<8x32xf32>
    %c0_30 = arith.constant 0 : index
    %110 = arith.index_cast %c2_i32 : i32 to index
    %c0_31 = arith.constant 0 : index
    %111 = vector.load %arg7[%c0_30, %110, %c0_31] : memref<8x16x32xf32, #tpu.memory_space<vmem>>, vector<8x1x32xf32>
    %112 = vector.shape_cast %111 : vector<8x1x32xf32> to vector<8x32xf32>
    %113 = vector.shape_cast %109 : vector<8x32xf32> to vector<8x1x32xf32>
    tpu.vector_store %arg7[%c0_30, %110, %c0_31], %113 {strides = array<i32>} : memref<8x16x32xf32, #tpu.memory_space<vmem>>, vector<8x1x32xf32>,
    %c3_i32 = arith.constant 3 : i32
    %c0_32 = arith.constant 0 : index
    %114 = arith.index_cast %c3_i32 : i32 to index
    %c0_33 = arith.constant 0 : index
    %115 = vector.load %arg1[%c0_32, %114, %c0_33] : memref<8x16x16xf32, #tpu.memory_space<vmem>>, vector<8x1x16xf32>
    %116 = vector.shape_cast %115 : vector<8x1x16xf32> to vector<8x16xf32>
    %117 = tpu.concatenate %116, %109 in 1 : vector<8x16xf32>, vector<8x32xf32> -> vector<8x48xf32>
    %cst_34 = arith.constant dense<0.000000e+00> : vector<8x128xf32>
    %118 = tpu.matmul %117, %3, %cst_34 {dimension_numbers = #tpu.dot_dimension_numbers<[1], [0], [0], [1], [0, 0, 1, 1], [], []>} : vector<8x48xf32>, vector<48x128xf32>, vector<8x128xf32> -> vector<8x128xf32>
    %119 = arith.addf %118, %6 : vector<8x128xf32>
    %120 = vector.extract_strided_slice %119 {offsets = [0, 0], sizes = [8, 32], strides = [1, 1]} : vector<8x128xf32> to vector<8x32xf32>
    %121 = arith.negf %120 : vector<8x32xf32>
    %122 = math.exp %121 : vector<8x32xf32>
    %cst_35 = arith.constant 1.000000e+00 : f32
    %123 = vector.broadcast %cst_35 : f32 to vector<8x32xf32>
    %124 = arith.addf %123, %122 : vector<8x32xf32>
    %125 = arith.divf %123, %124 : vector<8x32xf32>
    %126 = vector.extract_strided_slice %119 {offsets = [0, 32], sizes = [8, 32], strides = [1, 1]} : vector<8x128xf32> to vector<8x32xf32>
    %127 = arith.negf %126 : vector<8x32xf32>
    %128 = math.exp %127 : vector<8x32xf32>
    %cst_36 = arith.constant 1.000000e+00 : f32
    %129 = vector.broadcast %cst_36 : f32 to vector<8x32xf32>
    %130 = arith.addf %129, %128 : vector<8x32xf32>
    %131 = arith.divf %129, %130 : vector<8x32xf32>
    %132 = vector.extract_strided_slice %119 {offsets = [0, 64], sizes = [8, 32], strides = [1, 1]} : vector<8x128xf32> to vector<8x32xf32>
    %133 = math.tanh %132 : vector<8x32xf32>
    %134 = vector.extract_strided_slice %119 {offsets = [0, 96], sizes = [8, 32], strides = [1, 1]} : vector<8x128xf32> to vector<8x32xf32>
    %135 = arith.negf %134 : vector<8x32xf32>
    %136 = math.exp %135 : vector<8x32xf32>
    %cst_37 = arith.constant 1.000000e+00 : f32
    %137 = vector.broadcast %cst_37 : f32 to vector<8x32xf32>
    %138 = arith.addf %137, %136 : vector<8x32xf32>
    %139 = arith.divf %137, %138 : vector<8x32xf32>
    %140 = arith.mulf %131, %107 : vector<8x32xf32>
    %141 = arith.mulf %125, %133 : vector<8x32xf32>
    %142 = arith.addf %140, %141 : vector<8x32xf32>
    %143 = math.tanh %142 : vector<8x32xf32>
    %144 = arith.mulf %139, %143 : vector<8x32xf32>
    %c0_38 = arith.constant 0 : index
    %145 = arith.index_cast %c3_i32 : i32 to index
    %c0_39 = arith.constant 0 : index
    %146 = vector.load %arg7[%c0_38, %145, %c0_39] : memref<8x16x32xf32, #tpu.memory_space<vmem>>, vector<8x1x32xf32>
    %147 = vector.shape_cast %146 : vector<8x1x32xf32> to vector<8x32xf32>
    %148 = vector.shape_cast %144 : vector<8x32xf32> to vector<8x1x32xf32>
    tpu.vector_store %arg7[%c0_38, %145, %c0_39], %148 {strides = array<i32>} : memref<8x16x32xf32, #tpu.memory_space<vmem>>, vector<8x1x32xf32>,
    %c4_i32 = arith.constant 4 : i32
    %c0_40 = arith.constant 0 : index
    %149 = arith.index_cast %c4_i32 : i32 to index
    %c0_41 = arith.constant 0 : index
    %150 = vector.load %arg1[%c0_40, %149, %c0_41] : memref<8x16x16xf32, #tpu.memory_space<vmem>>, vector<8x1x16xf32>
    %151 = vector.shape_cast %150 : vector<8x1x16xf32> to vector<8x16xf32>
    %152 = tpu.concatenate %151, %144 in 1 : vector<8x16xf32>, vector<8x32xf32> -> vector<8x48xf32>
    %cst_42 = arith.constant dense<0.000000e+00> : vector<8x128xf32>
    %153 = tpu.matmul %152, %3, %cst_42 {dimension_numbers = #tpu.dot_dimension_numbers<[1], [0], [0], [1], [0, 0, 1, 1], [], []>} : vector<8x48xf32>, vector<48x128xf32>, vector<8x128xf32> -> vector<8x128xf32>
    %154 = arith.addf %153, %6 : vector<8x128xf32>
    %155 = vector.extract_strided_slice %154 {offsets = [0, 0], sizes = [8, 32], strides = [1, 1]} : vector<8x128xf32> to vector<8x32xf32>
    %156 = arith.negf %155 : vector<8x32xf32>
    %157 = math.exp %156 : vector<8x32xf32>
    %cst_43 = arith.constant 1.000000e+00 : f32
    %158 = vector.broadcast %cst_43 : f32 to vector<8x32xf32>
    %159 = arith.addf %158, %157 : vector<8x32xf32>
    %160 = arith.divf %158, %159 : vector<8x32xf32>
    %161 = vector.extract_strided_slice %154 {offsets = [0, 32], sizes = [8, 32], strides = [1, 1]} : vector<8x128xf32> to vector<8x32xf32>
    %162 = arith.negf %161 : vector<8x32xf32>
    %163 = math.exp %162 : vector<8x32xf32>
    %cst_44 = arith.constant 1.000000e+00 : f32
    %164 = vector.broadcast %cst_44 : f32 to vector<8x32xf32>
    %165 = arith.addf %164, %163 : vector<8x32xf32>
    %166 = arith.divf %164, %165 : vector<8x32xf32>
    %167 = vector.extract_strided_slice %154 {offsets = [0, 64], sizes = [8, 32], strides = [1, 1]} : vector<8x128xf32> to vector<8x32xf32>
    %168 = math.tanh %167 : vector<8x32xf32>
    %169 = vector.extract_strided_slice %154 {offsets = [0, 96], sizes = [8, 32], strides = [1, 1]} : vector<8x128xf32> to vector<8x32xf32>
    %170 = arith.negf %169 : vector<8x32xf32>
    %171 = math.exp %170 : vector<8x32xf32>
    %cst_45 = arith.constant 1.000000e+00 : f32
    %172 = vector.broadcast %cst_45 : f32 to vector<8x32xf32>
    %173 = arith.addf %172, %171 : vector<8x32xf32>
    %174 = arith.divf %172, %173 : vector<8x32xf32>
    %175 = arith.mulf %166, %142 : vector<8x32xf32>
    %176 = arith.mulf %160, %168 : vector<8x32xf32>
    %177 = arith.addf %175, %176 : vector<8x32xf32>
    %178 = math.tanh %177 : vector<8x32xf32>
    %179 = arith.mulf %174, %178 : vector<8x32xf32>
    %c0_46 = arith.constant 0 : index
    %180 = arith.index_cast %c4_i32 : i32 to index
    %c0_47 = arith.constant 0 : index
    %181 = vector.load %arg7[%c0_46, %180, %c0_47] : memref<8x16x32xf32, #tpu.memory_space<vmem>>, vector<8x1x32xf32>
    %182 = vector.shape_cast %181 : vector<8x1x32xf32> to vector<8x32xf32>
    %183 = vector.shape_cast %179 : vector<8x32xf32> to vector<8x1x32xf32>
    tpu.vector_store %arg7[%c0_46, %180, %c0_47], %183 {strides = array<i32>} : memref<8x16x32xf32, #tpu.memory_space<vmem>>, vector<8x1x32xf32>,
    %c5_i32 = arith.constant 5 : i32
    %c0_48 = arith.constant 0 : index
    %184 = arith.index_cast %c5_i32 : i32 to index
    %c0_49 = arith.constant 0 : index
    %185 = vector.load %arg1[%c0_48, %184, %c0_49] : memref<8x16x16xf32, #tpu.memory_space<vmem>>, vector<8x1x16xf32>
    %186 = vector.shape_cast %185 : vector<8x1x16xf32> to vector<8x16xf32>
    %187 = tpu.concatenate %186, %179 in 1 : vector<8x16xf32>, vector<8x32xf32> -> vector<8x48xf32>
    %cst_50 = arith.constant dense<0.000000e+00> : vector<8x128xf32>
    %188 = tpu.matmul %187, %3, %cst_50 {dimension_numbers = #tpu.dot_dimension_numbers<[1], [0], [0], [1], [0, 0, 1, 1], [], []>} : vector<8x48xf32>, vector<48x128xf32>, vector<8x128xf32> -> vector<8x128xf32>
    %189 = arith.addf %188, %6 : vector<8x128xf32>
    %190 = vector.extract_strided_slice %189 {offsets = [0, 0], sizes = [8, 32], strides = [1, 1]} : vector<8x128xf32> to vector<8x32xf32>
    %191 = arith.negf %190 : vector<8x32xf32>
    %192 = math.exp %191 : vector<8x32xf32>
    %cst_51 = arith.constant 1.000000e+00 : f32
    %193 = vector.broadcast %cst_51 : f32 to vector<8x32xf32>
    %194 = arith.addf %193, %192 : vector<8x32xf32>
    %195 = arith.divf %193, %194 : vector<8x32xf32>
    %196 = vector.extract_strided_slice %189 {offsets = [0, 32], sizes = [8, 32], strides = [1, 1]} : vector<8x128xf32> to vector<8x32xf32>
    %197 = arith.negf %196 : vector<8x32xf32>
    %198 = math.exp %197 : vector<8x32xf32>
    %cst_52 = arith.constant 1.000000e+00 : f32
    %199 = vector.broadcast %cst_52 : f32 to vector<8x32xf32>
    %200 = arith.addf %199, %198 : vector<8x32xf32>
    %201 = arith.divf %199, %200 : vector<8x32xf32>
    %202 = vector.extract_strided_slice %189 {offsets = [0, 64], sizes = [8, 32], strides = [1, 1]} : vector<8x128xf32> to vector<8x32xf32>
    %203 = math.tanh %202 : vector<8x32xf32>
    %204 = vector.extract_strided_slice %189 {offsets = [0, 96], sizes = [8, 32], strides = [1, 1]} : vector<8x128xf32> to vector<8x32xf32>
    %205 = arith.negf %204 : vector<8x32xf32>
    %206 = math.exp %205 : vector<8x32xf32>
    %cst_53 = arith.constant 1.000000e+00 : f32
    %207 = vector.broadcast %cst_53 : f32 to vector<8x32xf32>
    %208 = arith.addf %207, %206 : vector<8x32xf32>
    %209 = arith.divf %207, %208 : vector<8x32xf32>
    %210 = arith.mulf %201, %177 : vector<8x32xf32>
    %211 = arith.mulf %195, %203 : vector<8x32xf32>
    %212 = arith.addf %210, %211 : vector<8x32xf32>
    %213 = math.tanh %212 : vector<8x32xf32>
    %214 = arith.mulf %209, %213 : vector<8x32xf32>
    %c0_54 = arith.constant 0 : index
    %215 = arith.index_cast %c5_i32 : i32 to index
    %c0_55 = arith.constant 0 : index
    %216 = vector.load %arg7[%c0_54, %215, %c0_55] : memref<8x16x32xf32, #tpu.memory_space<vmem>>, vector<8x1x32xf32>
    %217 = vector.shape_cast %216 : vector<8x1x32xf32> to vector<8x32xf32>
    %218 = vector.shape_cast %214 : vector<8x32xf32> to vector<8x1x32xf32>
    tpu.vector_store %arg7[%c0_54, %215, %c0_55], %218 {strides = array<i32>} : memref<8x16x32xf32, #tpu.memory_space<vmem>>, vector<8x1x32xf32>,
    %c6_i32 = arith.constant 6 : i32
    %c0_56 = arith.constant 0 : index
    %219 = arith.index_cast %c6_i32 : i32 to index
    %c0_57 = arith.constant 0 : index
    %220 = vector.load %arg1[%c0_56, %219, %c0_57] : memref<8x16x16xf32, #tpu.memory_space<vmem>>, vector<8x1x16xf32>
    %221 = vector.shape_cast %220 : vector<8x1x16xf32> to vector<8x16xf32>
    %222 = tpu.concatenate %221, %214 in 1 : vector<8x16xf32>, vector<8x32xf32> -> vector<8x48xf32>
    %cst_58 = arith.constant dense<0.000000e+00> : vector<8x128xf32>
    %223 = tpu.matmul %222, %3, %cst_58 {dimension_numbers = #tpu.dot_dimension_numbers<[1], [0], [0], [1], [0, 0, 1, 1], [], []>} : vector<8x48xf32>, vector<48x128xf32>, vector<8x128xf32> -> vector<8x128xf32>
    %224 = arith.addf %223, %6 : vector<8x128xf32>
    %225 = vector.extract_strided_slice %224 {offsets = [0, 0], sizes = [8, 32], strides = [1, 1]} : vector<8x128xf32> to vector<8x32xf32>
    %226 = arith.negf %225 : vector<8x32xf32>
    %227 = math.exp %226 : vector<8x32xf32>
    %cst_59 = arith.constant 1.000000e+00 : f32
    %228 = vector.broadcast %cst_59 : f32 to vector<8x32xf32>
    %229 = arith.addf %228, %227 : vector<8x32xf32>
    %230 = arith.divf %228, %229 : vector<8x32xf32>
    %231 = vector.extract_strided_slice %224 {offsets = [0, 32], sizes = [8, 32], strides = [1, 1]} : vector<8x128xf32> to vector<8x32xf32>
    %232 = arith.negf %231 : vector<8x32xf32>
    %233 = math.exp %232 : vector<8x32xf32>
    %cst_60 = arith.constant 1.000000e+00 : f32
    %234 = vector.broadcast %cst_60 : f32 to vector<8x32xf32>
    %235 = arith.addf %234, %233 : vector<8x32xf32>
    %236 = arith.divf %234, %235 : vector<8x32xf32>
    %237 = vector.extract_strided_slice %224 {offsets = [0, 64], sizes = [8, 32], strides = [1, 1]} : vector<8x128xf32> to vector<8x32xf32>
    %238 = math.tanh %237 : vector<8x32xf32>
    %239 = vector.extract_strided_slice %224 {offsets = [0, 96], sizes = [8, 32], strides = [1, 1]} : vector<8x128xf32> to vector<8x32xf32>
    %240 = arith.negf %239 : vector<8x32xf32>
    %241 = math.exp %240 : vector<8x32xf32>
    %cst_61 = arith.constant 1.000000e+00 : f32
    %242 = vector.broadcast %cst_61 : f32 to vector<8x32xf32>
    %243 = arith.addf %242, %241 : vector<8x32xf32>
    %244 = arith.divf %242, %243 : vector<8x32xf32>
    %245 = arith.mulf %236, %212 : vector<8x32xf32>
    %246 = arith.mulf %230, %238 : vector<8x32xf32>
    %247 = arith.addf %245, %246 : vector<8x32xf32>
    %248 = math.tanh %247 : vector<8x32xf32>
    %249 = arith.mulf %244, %248 : vector<8x32xf32>
    %c0_62 = arith.constant 0 : index
    %250 = arith.index_cast %c6_i32 : i32 to index
    %c0_63 = arith.constant 0 : index
    %251 = vector.load %arg7[%c0_62, %250, %c0_63] : memref<8x16x32xf32, #tpu.memory_space<vmem>>, vector<8x1x32xf32>
    %252 = vector.shape_cast %251 : vector<8x1x32xf32> to vector<8x32xf32>
    %253 = vector.shape_cast %249 : vector<8x32xf32> to vector<8x1x32xf32>
    tpu.vector_store %arg7[%c0_62, %250, %c0_63], %253 {strides = array<i32>} : memref<8x16x32xf32, #tpu.memory_space<vmem>>, vector<8x1x32xf32>,
    %c7_i32 = arith.constant 7 : i32
    %c0_64 = arith.constant 0 : index
    %254 = arith.index_cast %c7_i32 : i32 to index
    %c0_65 = arith.constant 0 : index
    %255 = vector.load %arg1[%c0_64, %254, %c0_65] : memref<8x16x16xf32, #tpu.memory_space<vmem>>, vector<8x1x16xf32>
    %256 = vector.shape_cast %255 : vector<8x1x16xf32> to vector<8x16xf32>
    %257 = tpu.concatenate %256, %249 in 1 : vector<8x16xf32>, vector<8x32xf32> -> vector<8x48xf32>
    %cst_66 = arith.constant dense<0.000000e+00> : vector<8x128xf32>
    %258 = tpu.matmul %257, %3, %cst_66 {dimension_numbers = #tpu.dot_dimension_numbers<[1], [0], [0], [1], [0, 0, 1, 1], [], []>} : vector<8x48xf32>, vector<48x128xf32>, vector<8x128xf32> -> vector<8x128xf32>
    %259 = arith.addf %258, %6 : vector<8x128xf32>
    %260 = vector.extract_strided_slice %259 {offsets = [0, 0], sizes = [8, 32], strides = [1, 1]} : vector<8x128xf32> to vector<8x32xf32>
    %261 = arith.negf %260 : vector<8x32xf32>
    %262 = math.exp %261 : vector<8x32xf32>
    %cst_67 = arith.constant 1.000000e+00 : f32
    %263 = vector.broadcast %cst_67 : f32 to vector<8x32xf32>
    %264 = arith.addf %263, %262 : vector<8x32xf32>
    %265 = arith.divf %263, %264 : vector<8x32xf32>
    %266 = vector.extract_strided_slice %259 {offsets = [0, 32], sizes = [8, 32], strides = [1, 1]} : vector<8x128xf32> to vector<8x32xf32>
    %267 = arith.negf %266 : vector<8x32xf32>
    %268 = math.exp %267 : vector<8x32xf32>
    %cst_68 = arith.constant 1.000000e+00 : f32
    %269 = vector.broadcast %cst_68 : f32 to vector<8x32xf32>
    %270 = arith.addf %269, %268 : vector<8x32xf32>
    %271 = arith.divf %269, %270 : vector<8x32xf32>
    %272 = vector.extract_strided_slice %259 {offsets = [0, 64], sizes = [8, 32], strides = [1, 1]} : vector<8x128xf32> to vector<8x32xf32>
    %273 = math.tanh %272 : vector<8x32xf32>
    %274 = vector.extract_strided_slice %259 {offsets = [0, 96], sizes = [8, 32], strides = [1, 1]} : vector<8x128xf32> to vector<8x32xf32>
    %275 = arith.negf %274 : vector<8x32xf32>
    %276 = math.exp %275 : vector<8x32xf32>
    %cst_69 = arith.constant 1.000000e+00 : f32
    %277 = vector.broadcast %cst_69 : f32 to vector<8x32xf32>
    %278 = arith.addf %277, %276 : vector<8x32xf32>
    %279 = arith.divf %277, %278 : vector<8x32xf32>
    %280 = arith.mulf %271, %247 : vector<8x32xf32>
    %281 = arith.mulf %265, %273 : vector<8x32xf32>
    %282 = arith.addf %280, %281 : vector<8x32xf32>
    %283 = math.tanh %282 : vector<8x32xf32>
    %284 = arith.mulf %279, %283 : vector<8x32xf32>
    %c0_70 = arith.constant 0 : index
    %285 = arith.index_cast %c7_i32 : i32 to index
    %c0_71 = arith.constant 0 : index
    %286 = vector.load %arg7[%c0_70, %285, %c0_71] : memref<8x16x32xf32, #tpu.memory_space<vmem>>, vector<8x1x32xf32>
    %287 = vector.shape_cast %286 : vector<8x1x32xf32> to vector<8x32xf32>
    %288 = vector.shape_cast %284 : vector<8x32xf32> to vector<8x1x32xf32>
    tpu.vector_store %arg7[%c0_70, %285, %c0_71], %288 {strides = array<i32>} : memref<8x16x32xf32, #tpu.memory_space<vmem>>, vector<8x1x32xf32>,
    %c8_i32 = arith.constant 8 : i32
    %c0_72 = arith.constant 0 : index
    %289 = arith.index_cast %c8_i32 : i32 to index
    %c0_73 = arith.constant 0 : index
    %290 = vector.load %arg1[%c0_72, %289, %c0_73] : memref<8x16x16xf32, #tpu.memory_space<vmem>>, vector<8x1x16xf32>
    %291 = vector.shape_cast %290 : vector<8x1x16xf32> to vector<8x16xf32>
    %292 = tpu.concatenate %291, %284 in 1 : vector<8x16xf32>, vector<8x32xf32> -> vector<8x48xf32>
    %cst_74 = arith.constant dense<0.000000e+00> : vector<8x128xf32>
    %293 = tpu.matmul %292, %3, %cst_74 {dimension_numbers = #tpu.dot_dimension_numbers<[1], [0], [0], [1], [0, 0, 1, 1], [], []>} : vector<8x48xf32>, vector<48x128xf32>, vector<8x128xf32> -> vector<8x128xf32>
    %294 = arith.addf %293, %6 : vector<8x128xf32>
    %295 = vector.extract_strided_slice %294 {offsets = [0, 0], sizes = [8, 32], strides = [1, 1]} : vector<8x128xf32> to vector<8x32xf32>
    %296 = arith.negf %295 : vector<8x32xf32>
    %297 = math.exp %296 : vector<8x32xf32>
    %cst_75 = arith.constant 1.000000e+00 : f32
    %298 = vector.broadcast %cst_75 : f32 to vector<8x32xf32>
    %299 = arith.addf %298, %297 : vector<8x32xf32>
    %300 = arith.divf %298, %299 : vector<8x32xf32>
    %301 = vector.extract_strided_slice %294 {offsets = [0, 32], sizes = [8, 32], strides = [1, 1]} : vector<8x128xf32> to vector<8x32xf32>
    %302 = arith.negf %301 : vector<8x32xf32>
    %303 = math.exp %302 : vector<8x32xf32>
    %cst_76 = arith.constant 1.000000e+00 : f32
    %304 = vector.broadcast %cst_76 : f32 to vector<8x32xf32>
    %305 = arith.addf %304, %303 : vector<8x32xf32>
    %306 = arith.divf %304, %305 : vector<8x32xf32>
    %307 = vector.extract_strided_slice %294 {offsets = [0, 64], sizes = [8, 32], strides = [1, 1]} : vector<8x128xf32> to vector<8x32xf32>
    %308 = math.tanh %307 : vector<8x32xf32>
    %309 = vector.extract_strided_slice %294 {offsets = [0, 96], sizes = [8, 32], strides = [1, 1]} : vector<8x128xf32> to vector<8x32xf32>
    %310 = arith.negf %309 : vector<8x32xf32>
    %311 = math.exp %310 : vector<8x32xf32>
    %cst_77 = arith.constant 1.000000e+00 : f32
    %312 = vector.broadcast %cst_77 : f32 to vector<8x32xf32>
    %313 = arith.addf %312, %311 : vector<8x32xf32>
    %314 = arith.divf %312, %313 : vector<8x32xf32>
    %315 = arith.mulf %306, %282 : vector<8x32xf32>
    %316 = arith.mulf %300, %308 : vector<8x32xf32>
    %317 = arith.addf %315, %316 : vector<8x32xf32>
    %318 = math.tanh %317 : vector<8x32xf32>
    %319 = arith.mulf %314, %318 : vector<8x32xf32>
    %c0_78 = arith.constant 0 : index
    %320 = arith.index_cast %c8_i32 : i32 to index
    %c0_79 = arith.constant 0 : index
    %321 = vector.load %arg7[%c0_78, %320, %c0_79] : memref<8x16x32xf32, #tpu.memory_space<vmem>>, vector<8x1x32xf32>
    %322 = vector.shape_cast %321 : vector<8x1x32xf32> to vector<8x32xf32>
    %323 = vector.shape_cast %319 : vector<8x32xf32> to vector<8x1x32xf32>
    tpu.vector_store %arg7[%c0_78, %320, %c0_79], %323 {strides = array<i32>} : memref<8x16x32xf32, #tpu.memory_space<vmem>>, vector<8x1x32xf32>,
    %c9_i32 = arith.constant 9 : i32
    %c0_80 = arith.constant 0 : index
    %324 = arith.index_cast %c9_i32 : i32 to index
    %c0_81 = arith.constant 0 : index
    %325 = vector.load %arg1[%c0_80, %324, %c0_81] : memref<8x16x16xf32, #tpu.memory_space<vmem>>, vector<8x1x16xf32>
    %326 = vector.shape_cast %325 : vector<8x1x16xf32> to vector<8x16xf32>
    %327 = tpu.concatenate %326, %319 in 1 : vector<8x16xf32>, vector<8x32xf32> -> vector<8x48xf32>
    %cst_82 = arith.constant dense<0.000000e+00> : vector<8x128xf32>
    %328 = tpu.matmul %327, %3, %cst_82 {dimension_numbers = #tpu.dot_dimension_numbers<[1], [0], [0], [1], [0, 0, 1, 1], [], []>} : vector<8x48xf32>, vector<48x128xf32>, vector<8x128xf32> -> vector<8x128xf32>
    %329 = arith.addf %328, %6 : vector<8x128xf32>
    %330 = vector.extract_strided_slice %329 {offsets = [0, 0], sizes = [8, 32], strides = [1, 1]} : vector<8x128xf32> to vector<8x32xf32>
    %331 = arith.negf %330 : vector<8x32xf32>
    %332 = math.exp %331 : vector<8x32xf32>
    %cst_83 = arith.constant 1.000000e+00 : f32
    %333 = vector.broadcast %cst_83 : f32 to vector<8x32xf32>
    %334 = arith.addf %333, %332 : vector<8x32xf32>
    %335 = arith.divf %333, %334 : vector<8x32xf32>
    %336 = vector.extract_strided_slice %329 {offsets = [0, 32], sizes = [8, 32], strides = [1, 1]} : vector<8x128xf32> to vector<8x32xf32>
    %337 = arith.negf %336 : vector<8x32xf32>
    %338 = math.exp %337 : vector<8x32xf32>
    %cst_84 = arith.constant 1.000000e+00 : f32
    %339 = vector.broadcast %cst_84 : f32 to vector<8x32xf32>
    %340 = arith.addf %339, %338 : vector<8x32xf32>
    %341 = arith.divf %339, %340 : vector<8x32xf32>
    %342 = vector.extract_strided_slice %329 {offsets = [0, 64], sizes = [8, 32], strides = [1, 1]} : vector<8x128xf32> to vector<8x32xf32>
    %343 = math.tanh %342 : vector<8x32xf32>
    %344 = vector.extract_strided_slice %329 {offsets = [0, 96], sizes = [8, 32], strides = [1, 1]} : vector<8x128xf32> to vector<8x32xf32>
    %345 = arith.negf %344 : vector<8x32xf32>
    %346 = math.exp %345 : vector<8x32xf32>
    %cst_85 = arith.constant 1.000000e+00 : f32
    %347 = vector.broadcast %cst_85 : f32 to vector<8x32xf32>
    %348 = arith.addf %347, %346 : vector<8x32xf32>
    %349 = arith.divf %347, %348 : vector<8x32xf32>
    %350 = arith.mulf %341, %317 : vector<8x32xf32>
    %351 = arith.mulf %335, %343 : vector<8x32xf32>
    %352 = arith.addf %350, %351 : vector<8x32xf32>
    %353 = math.tanh %352 : vector<8x32xf32>
    %354 = arith.mulf %349, %353 : vector<8x32xf32>
    %c0_86 = arith.constant 0 : index
    %355 = arith.index_cast %c9_i32 : i32 to index
    %c0_87 = arith.constant 0 : index
    %356 = vector.load %arg7[%c0_86, %355, %c0_87] : memref<8x16x32xf32, #tpu.memory_space<vmem>>, vector<8x1x32xf32>
    %357 = vector.shape_cast %356 : vector<8x1x32xf32> to vector<8x32xf32>
    %358 = vector.shape_cast %354 : vector<8x32xf32> to vector<8x1x32xf32>
    tpu.vector_store %arg7[%c0_86, %355, %c0_87], %358 {strides = array<i32>} : memref<8x16x32xf32, #tpu.memory_space<vmem>>, vector<8x1x32xf32>,
    %c10_i32 = arith.constant 10 : i32
    %c0_88 = arith.constant 0 : index
    %359 = arith.index_cast %c10_i32 : i32 to index
    %c0_89 = arith.constant 0 : index
    %360 = vector.load %arg1[%c0_88, %359, %c0_89] : memref<8x16x16xf32, #tpu.memory_space<vmem>>, vector<8x1x16xf32>
    %361 = vector.shape_cast %360 : vector<8x1x16xf32> to vector<8x16xf32>
    %362 = tpu.concatenate %361, %354 in 1 : vector<8x16xf32>, vector<8x32xf32> -> vector<8x48xf32>
    %cst_90 = arith.constant dense<0.000000e+00> : vector<8x128xf32>
    %363 = tpu.matmul %362, %3, %cst_90 {dimension_numbers = #tpu.dot_dimension_numbers<[1], [0], [0], [1], [0, 0, 1, 1], [], []>} : vector<8x48xf32>, vector<48x128xf32>, vector<8x128xf32> -> vector<8x128xf32>
    %364 = arith.addf %363, %6 : vector<8x128xf32>
    %365 = vector.extract_strided_slice %364 {offsets = [0, 0], sizes = [8, 32], strides = [1, 1]} : vector<8x128xf32> to vector<8x32xf32>
    %366 = arith.negf %365 : vector<8x32xf32>
    %367 = math.exp %366 : vector<8x32xf32>
    %cst_91 = arith.constant 1.000000e+00 : f32
    %368 = vector.broadcast %cst_91 : f32 to vector<8x32xf32>
    %369 = arith.addf %368, %367 : vector<8x32xf32>
    %370 = arith.divf %368, %369 : vector<8x32xf32>
    %371 = vector.extract_strided_slice %364 {offsets = [0, 32], sizes = [8, 32], strides = [1, 1]} : vector<8x128xf32> to vector<8x32xf32>
    %372 = arith.negf %371 : vector<8x32xf32>
    %373 = math.exp %372 : vector<8x32xf32>
    %cst_92 = arith.constant 1.000000e+00 : f32
    %374 = vector.broadcast %cst_92 : f32 to vector<8x32xf32>
    %375 = arith.addf %374, %373 : vector<8x32xf32>
    %376 = arith.divf %374, %375 : vector<8x32xf32>
    %377 = vector.extract_strided_slice %364 {offsets = [0, 64], sizes = [8, 32], strides = [1, 1]} : vector<8x128xf32> to vector<8x32xf32>
    %378 = math.tanh %377 : vector<8x32xf32>
    %379 = vector.extract_strided_slice %364 {offsets = [0, 96], sizes = [8, 32], strides = [1, 1]} : vector<8x128xf32> to vector<8x32xf32>
    %380 = arith.negf %379 : vector<8x32xf32>
    %381 = math.exp %380 : vector<8x32xf32>
    %cst_93 = arith.constant 1.000000e+00 : f32
    %382 = vector.broadcast %cst_93 : f32 to vector<8x32xf32>
    %383 = arith.addf %382, %381 : vector<8x32xf32>
    %384 = arith.divf %382, %383 : vector<8x32xf32>
    %385 = arith.mulf %376, %352 : vector<8x32xf32>
    %386 = arith.mulf %370, %378 : vector<8x32xf32>
    %387 = arith.addf %385, %386 : vector<8x32xf32>
    %388 = math.tanh %387 : vector<8x32xf32>
    %389 = arith.mulf %384, %388 : vector<8x32xf32>
    %c0_94 = arith.constant 0 : index
    %390 = arith.index_cast %c10_i32 : i32 to index
    %c0_95 = arith.constant 0 : index
    %391 = vector.load %arg7[%c0_94, %390, %c0_95] : memref<8x16x32xf32, #tpu.memory_space<vmem>>, vector<8x1x32xf32>
    %392 = vector.shape_cast %391 : vector<8x1x32xf32> to vector<8x32xf32>
    %393 = vector.shape_cast %389 : vector<8x32xf32> to vector<8x1x32xf32>
    tpu.vector_store %arg7[%c0_94, %390, %c0_95], %393 {strides = array<i32>} : memref<8x16x32xf32, #tpu.memory_space<vmem>>, vector<8x1x32xf32>,
    %c11_i32 = arith.constant 11 : i32
    %c0_96 = arith.constant 0 : index
    %394 = arith.index_cast %c11_i32 : i32 to index
    %c0_97 = arith.constant 0 : index
    %395 = vector.load %arg1[%c0_96, %394, %c0_97] : memref<8x16x16xf32, #tpu.memory_space<vmem>>, vector<8x1x16xf32>
    %396 = vector.shape_cast %395 : vector<8x1x16xf32> to vector<8x16xf32>
    %397 = tpu.concatenate %396, %389 in 1 : vector<8x16xf32>, vector<8x32xf32> -> vector<8x48xf32>
    %cst_98 = arith.constant dense<0.000000e+00> : vector<8x128xf32>
    %398 = tpu.matmul %397, %3, %cst_98 {dimension_numbers = #tpu.dot_dimension_numbers<[1], [0], [0], [1], [0, 0, 1, 1], [], []>} : vector<8x48xf32>, vector<48x128xf32>, vector<8x128xf32> -> vector<8x128xf32>
    %399 = arith.addf %398, %6 : vector<8x128xf32>
    %400 = vector.extract_strided_slice %399 {offsets = [0, 0], sizes = [8, 32], strides = [1, 1]} : vector<8x128xf32> to vector<8x32xf32>
    %401 = arith.negf %400 : vector<8x32xf32>
    %402 = math.exp %401 : vector<8x32xf32>
    %cst_99 = arith.constant 1.000000e+00 : f32
    %403 = vector.broadcast %cst_99 : f32 to vector<8x32xf32>
    %404 = arith.addf %403, %402 : vector<8x32xf32>
    %405 = arith.divf %403, %404 : vector<8x32xf32>
    %406 = vector.extract_strided_slice %399 {offsets = [0, 32], sizes = [8, 32], strides = [1, 1]} : vector<8x128xf32> to vector<8x32xf32>
    %407 = arith.negf %406 : vector<8x32xf32>
    %408 = math.exp %407 : vector<8x32xf32>
    %cst_100 = arith.constant 1.000000e+00 : f32
    %409 = vector.broadcast %cst_100 : f32 to vector<8x32xf32>
    %410 = arith.addf %409, %408 : vector<8x32xf32>
    %411 = arith.divf %409, %410 : vector<8x32xf32>
    %412 = vector.extract_strided_slice %399 {offsets = [0, 64], sizes = [8, 32], strides = [1, 1]} : vector<8x128xf32> to vector<8x32xf32>
    %413 = math.tanh %412 : vector<8x32xf32>
    %414 = vector.extract_strided_slice %399 {offsets = [0, 96], sizes = [8, 32], strides = [1, 1]} : vector<8x128xf32> to vector<8x32xf32>
    %415 = arith.negf %414 : vector<8x32xf32>
    %416 = math.exp %415 : vector<8x32xf32>
    %cst_101 = arith.constant 1.000000e+00 : f32
    %417 = vector.broadcast %cst_101 : f32 to vector<8x32xf32>
    %418 = arith.addf %417, %416 : vector<8x32xf32>
    %419 = arith.divf %417, %418 : vector<8x32xf32>
    %420 = arith.mulf %411, %387 : vector<8x32xf32>
    %421 = arith.mulf %405, %413 : vector<8x32xf32>
    %422 = arith.addf %420, %421 : vector<8x32xf32>
    %423 = math.tanh %422 : vector<8x32xf32>
    %424 = arith.mulf %419, %423 : vector<8x32xf32>
    %c0_102 = arith.constant 0 : index
    %425 = arith.index_cast %c11_i32 : i32 to index
    %c0_103 = arith.constant 0 : index
    %426 = vector.load %arg7[%c0_102, %425, %c0_103] : memref<8x16x32xf32, #tpu.memory_space<vmem>>, vector<8x1x32xf32>
    %427 = vector.shape_cast %426 : vector<8x1x32xf32> to vector<8x32xf32>
    %428 = vector.shape_cast %424 : vector<8x32xf32> to vector<8x1x32xf32>
    tpu.vector_store %arg7[%c0_102, %425, %c0_103], %428 {strides = array<i32>} : memref<8x16x32xf32, #tpu.memory_space<vmem>>, vector<8x1x32xf32>,
    %c12_i32 = arith.constant 12 : i32
    %c0_104 = arith.constant 0 : index
    %429 = arith.index_cast %c12_i32 : i32 to index
    %c0_105 = arith.constant 0 : index
    %430 = vector.load %arg1[%c0_104, %429, %c0_105] : memref<8x16x16xf32, #tpu.memory_space<vmem>>, vector<8x1x16xf32>
    %431 = vector.shape_cast %430 : vector<8x1x16xf32> to vector<8x16xf32>
    %432 = tpu.concatenate %431, %424 in 1 : vector<8x16xf32>, vector<8x32xf32> -> vector<8x48xf32>
    %cst_106 = arith.constant dense<0.000000e+00> : vector<8x128xf32>
    %433 = tpu.matmul %432, %3, %cst_106 {dimension_numbers = #tpu.dot_dimension_numbers<[1], [0], [0], [1], [0, 0, 1, 1], [], []>} : vector<8x48xf32>, vector<48x128xf32>, vector<8x128xf32> -> vector<8x128xf32>
    %434 = arith.addf %433, %6 : vector<8x128xf32>
    %435 = vector.extract_strided_slice %434 {offsets = [0, 0], sizes = [8, 32], strides = [1, 1]} : vector<8x128xf32> to vector<8x32xf32>
    %436 = arith.negf %435 : vector<8x32xf32>
    %437 = math.exp %436 : vector<8x32xf32>
    %cst_107 = arith.constant 1.000000e+00 : f32
    %438 = vector.broadcast %cst_107 : f32 to vector<8x32xf32>
    %439 = arith.addf %438, %437 : vector<8x32xf32>
    %440 = arith.divf %438, %439 : vector<8x32xf32>
    %441 = vector.extract_strided_slice %434 {offsets = [0, 32], sizes = [8, 32], strides = [1, 1]} : vector<8x128xf32> to vector<8x32xf32>
    %442 = arith.negf %441 : vector<8x32xf32>
    %443 = math.exp %442 : vector<8x32xf32>
    %cst_108 = arith.constant 1.000000e+00 : f32
    %444 = vector.broadcast %cst_108 : f32 to vector<8x32xf32>
    %445 = arith.addf %444, %443 : vector<8x32xf32>
    %446 = arith.divf %444, %445 : vector<8x32xf32>
    %447 = vector.extract_strided_slice %434 {offsets = [0, 64], sizes = [8, 32], strides = [1, 1]} : vector<8x128xf32> to vector<8x32xf32>
    %448 = math.tanh %447 : vector<8x32xf32>
    %449 = vector.extract_strided_slice %434 {offsets = [0, 96], sizes = [8, 32], strides = [1, 1]} : vector<8x128xf32> to vector<8x32xf32>
    %450 = arith.negf %449 : vector<8x32xf32>
    %451 = math.exp %450 : vector<8x32xf32>
    %cst_109 = arith.constant 1.000000e+00 : f32
    %452 = vector.broadcast %cst_109 : f32 to vector<8x32xf32>
    %453 = arith.addf %452, %451 : vector<8x32xf32>
    %454 = arith.divf %452, %453 : vector<8x32xf32>
    %455 = arith.mulf %446, %422 : vector<8x32xf32>
    %456 = arith.mulf %440, %448 : vector<8x32xf32>
    %457 = arith.addf %455, %456 : vector<8x32xf32>
    %458 = math.tanh %457 : vector<8x32xf32>
    %459 = arith.mulf %454, %458 : vector<8x32xf32>
    %c0_110 = arith.constant 0 : index
    %460 = arith.index_cast %c12_i32 : i32 to index
    %c0_111 = arith.constant 0 : index
    %461 = vector.load %arg7[%c0_110, %460, %c0_111] : memref<8x16x32xf32, #tpu.memory_space<vmem>>, vector<8x1x32xf32>
    %462 = vector.shape_cast %461 : vector<8x1x32xf32> to vector<8x32xf32>
    %463 = vector.shape_cast %459 : vector<8x32xf32> to vector<8x1x32xf32>
    tpu.vector_store %arg7[%c0_110, %460, %c0_111], %463 {strides = array<i32>} : memref<8x16x32xf32, #tpu.memory_space<vmem>>, vector<8x1x32xf32>,
    %c13_i32 = arith.constant 13 : i32
    %c0_112 = arith.constant 0 : index
    %464 = arith.index_cast %c13_i32 : i32 to index
    %c0_113 = arith.constant 0 : index
    %465 = vector.load %arg1[%c0_112, %464, %c0_113] : memref<8x16x16xf32, #tpu.memory_space<vmem>>, vector<8x1x16xf32>
    %466 = vector.shape_cast %465 : vector<8x1x16xf32> to vector<8x16xf32>
    %467 = tpu.concatenate %466, %459 in 1 : vector<8x16xf32>, vector<8x32xf32> -> vector<8x48xf32>
    %cst_114 = arith.constant dense<0.000000e+00> : vector<8x128xf32>
    %468 = tpu.matmul %467, %3, %cst_114 {dimension_numbers = #tpu.dot_dimension_numbers<[1], [0], [0], [1], [0, 0, 1, 1], [], []>} : vector<8x48xf32>, vector<48x128xf32>, vector<8x128xf32> -> vector<8x128xf32>
    %469 = arith.addf %468, %6 : vector<8x128xf32>
    %470 = vector.extract_strided_slice %469 {offsets = [0, 0], sizes = [8, 32], strides = [1, 1]} : vector<8x128xf32> to vector<8x32xf32>
    %471 = arith.negf %470 : vector<8x32xf32>
    %472 = math.exp %471 : vector<8x32xf32>
    %cst_115 = arith.constant 1.000000e+00 : f32
    %473 = vector.broadcast %cst_115 : f32 to vector<8x32xf32>
    %474 = arith.addf %473, %472 : vector<8x32xf32>
    %475 = arith.divf %473, %474 : vector<8x32xf32>
    %476 = vector.extract_strided_slice %469 {offsets = [0, 32], sizes = [8, 32], strides = [1, 1]} : vector<8x128xf32> to vector<8x32xf32>
    %477 = arith.negf %476 : vector<8x32xf32>
    %478 = math.exp %477 : vector<8x32xf32>
    %cst_116 = arith.constant 1.000000e+00 : f32
    %479 = vector.broadcast %cst_116 : f32 to vector<8x32xf32>
    %480 = arith.addf %479, %478 : vector<8x32xf32>
    %481 = arith.divf %479, %480 : vector<8x32xf32>
    %482 = vector.extract_strided_slice %469 {offsets = [0, 64], sizes = [8, 32], strides = [1, 1]} : vector<8x128xf32> to vector<8x32xf32>
    %483 = math.tanh %482 : vector<8x32xf32>
    %484 = vector.extract_strided_slice %469 {offsets = [0, 96], sizes = [8, 32], strides = [1, 1]} : vector<8x128xf32> to vector<8x32xf32>
    %485 = arith.negf %484 : vector<8x32xf32>
    %486 = math.exp %485 : vector<8x32xf32>
    %cst_117 = arith.constant 1.000000e+00 : f32
    %487 = vector.broadcast %cst_117 : f32 to vector<8x32xf32>
    %488 = arith.addf %487, %486 : vector<8x32xf32>
    %489 = arith.divf %487, %488 : vector<8x32xf32>
    %490 = arith.mulf %481, %457 : vector<8x32xf32>
    %491 = arith.mulf %475, %483 : vector<8x32xf32>
    %492 = arith.addf %490, %491 : vector<8x32xf32>
    %493 = math.tanh %492 : vector<8x32xf32>
    %494 = arith.mulf %489, %493 : vector<8x32xf32>
    %c0_118 = arith.constant 0 : index
    %495 = arith.index_cast %c13_i32 : i32 to index
    %c0_119 = arith.constant 0 : index
    %496 = vector.load %arg7[%c0_118, %495, %c0_119] : memref<8x16x32xf32, #tpu.memory_space<vmem>>, vector<8x1x32xf32>
    %497 = vector.shape_cast %496 : vector<8x1x32xf32> to vector<8x32xf32>
    %498 = vector.shape_cast %494 : vector<8x32xf32> to vector<8x1x32xf32>
    tpu.vector_store %arg7[%c0_118, %495, %c0_119], %498 {strides = array<i32>} : memref<8x16x32xf32, #tpu.memory_space<vmem>>, vector<8x1x32xf32>,
    %c14_i32 = arith.constant 14 : i32
    %c0_120 = arith.constant 0 : index
    %499 = arith.index_cast %c14_i32 : i32 to index
    %c0_121 = arith.constant 0 : index
    %500 = vector.load %arg1[%c0_120, %499, %c0_121] : memref<8x16x16xf32, #tpu.memory_space<vmem>>, vector<8x1x16xf32>
    %501 = vector.shape_cast %500 : vector<8x1x16xf32> to vector<8x16xf32>
    %502 = tpu.concatenate %501, %494 in 1 : vector<8x16xf32>, vector<8x32xf32> -> vector<8x48xf32>
    %cst_122 = arith.constant dense<0.000000e+00> : vector<8x128xf32>
    %503 = tpu.matmul %502, %3, %cst_122 {dimension_numbers = #tpu.dot_dimension_numbers<[1], [0], [0], [1], [0, 0, 1, 1], [], []>} : vector<8x48xf32>, vector<48x128xf32>, vector<8x128xf32> -> vector<8x128xf32>
    %504 = arith.addf %503, %6 : vector<8x128xf32>
    %505 = vector.extract_strided_slice %504 {offsets = [0, 0], sizes = [8, 32], strides = [1, 1]} : vector<8x128xf32> to vector<8x32xf32>
    %506 = arith.negf %505 : vector<8x32xf32>
    %507 = math.exp %506 : vector<8x32xf32>
    %cst_123 = arith.constant 1.000000e+00 : f32
    %508 = vector.broadcast %cst_123 : f32 to vector<8x32xf32>
    %509 = arith.addf %508, %507 : vector<8x32xf32>
    %510 = arith.divf %508, %509 : vector<8x32xf32>
    %511 = vector.extract_strided_slice %504 {offsets = [0, 32], sizes = [8, 32], strides = [1, 1]} : vector<8x128xf32> to vector<8x32xf32>
    %512 = arith.negf %511 : vector<8x32xf32>
    %513 = math.exp %512 : vector<8x32xf32>
    %cst_124 = arith.constant 1.000000e+00 : f32
    %514 = vector.broadcast %cst_124 : f32 to vector<8x32xf32>
    %515 = arith.addf %514, %513 : vector<8x32xf32>
    %516 = arith.divf %514, %515 : vector<8x32xf32>
    %517 = vector.extract_strided_slice %504 {offsets = [0, 64], sizes = [8, 32], strides = [1, 1]} : vector<8x128xf32> to vector<8x32xf32>
    %518 = math.tanh %517 : vector<8x32xf32>
    %519 = vector.extract_strided_slice %504 {offsets = [0, 96], sizes = [8, 32], strides = [1, 1]} : vector<8x128xf32> to vector<8x32xf32>
    %520 = arith.negf %519 : vector<8x32xf32>
    %521 = math.exp %520 : vector<8x32xf32>
    %cst_125 = arith.constant 1.000000e+00 : f32
    %522 = vector.broadcast %cst_125 : f32 to vector<8x32xf32>
    %523 = arith.addf %522, %521 : vector<8x32xf32>
    %524 = arith.divf %522, %523 : vector<8x32xf32>
    %525 = arith.mulf %516, %492 : vector<8x32xf32>
    %526 = arith.mulf %510, %518 : vector<8x32xf32>
    %527 = arith.addf %525, %526 : vector<8x32xf32>
    %528 = math.tanh %527 : vector<8x32xf32>
    %529 = arith.mulf %524, %528 : vector<8x32xf32>
    %c0_126 = arith.constant 0 : index
    %530 = arith.index_cast %c14_i32 : i32 to index
    %c0_127 = arith.constant 0 : index
    %531 = vector.load %arg7[%c0_126, %530, %c0_127] : memref<8x16x32xf32, #tpu.memory_space<vmem>>, vector<8x1x32xf32>
    %532 = vector.shape_cast %531 : vector<8x1x32xf32> to vector<8x32xf32>
    %533 = vector.shape_cast %529 : vector<8x32xf32> to vector<8x1x32xf32>
    tpu.vector_store %arg7[%c0_126, %530, %c0_127], %533 {strides = array<i32>} : memref<8x16x32xf32, #tpu.memory_space<vmem>>, vector<8x1x32xf32>,
    %c15_i32 = arith.constant 15 : i32
    %c0_128 = arith.constant 0 : index
    %534 = arith.index_cast %c15_i32 : i32 to index
    %c0_129 = arith.constant 0 : index
    %535 = vector.load %arg1[%c0_128, %534, %c0_129] : memref<8x16x16xf32, #tpu.memory_space<vmem>>, vector<8x1x16xf32>
    %536 = vector.shape_cast %535 : vector<8x1x16xf32> to vector<8x16xf32>
    %537 = tpu.concatenate %536, %529 in 1 : vector<8x16xf32>, vector<8x32xf32> -> vector<8x48xf32>
    %cst_130 = arith.constant dense<0.000000e+00> : vector<8x128xf32>
    %538 = tpu.matmul %537, %3, %cst_130 {dimension_numbers = #tpu.dot_dimension_numbers<[1], [0], [0], [1], [0, 0, 1, 1], [], []>} : vector<8x48xf32>, vector<48x128xf32>, vector<8x128xf32> -> vector<8x128xf32>
    %539 = arith.addf %538, %6 : vector<8x128xf32>
    %540 = vector.extract_strided_slice %539 {offsets = [0, 0], sizes = [8, 32], strides = [1, 1]} : vector<8x128xf32> to vector<8x32xf32>
    %541 = arith.negf %540 : vector<8x32xf32>
    %542 = math.exp %541 : vector<8x32xf32>
    %cst_131 = arith.constant 1.000000e+00 : f32
    %543 = vector.broadcast %cst_131 : f32 to vector<8x32xf32>
    %544 = arith.addf %543, %542 : vector<8x32xf32>
    %545 = arith.divf %543, %544 : vector<8x32xf32>
    %546 = vector.extract_strided_slice %539 {offsets = [0, 32], sizes = [8, 32], strides = [1, 1]} : vector<8x128xf32> to vector<8x32xf32>
    %547 = arith.negf %546 : vector<8x32xf32>
    %548 = math.exp %547 : vector<8x32xf32>
    %cst_132 = arith.constant 1.000000e+00 : f32
    %549 = vector.broadcast %cst_132 : f32 to vector<8x32xf32>
    %550 = arith.addf %549, %548 : vector<8x32xf32>
    %551 = arith.divf %549, %550 : vector<8x32xf32>
    %552 = vector.extract_strided_slice %539 {offsets = [0, 64], sizes = [8, 32], strides = [1, 1]} : vector<8x128xf32> to vector<8x32xf32>
    %553 = math.tanh %552 : vector<8x32xf32>
    %554 = vector.extract_strided_slice %539 {offsets = [0, 96], sizes = [8, 32], strides = [1, 1]} : vector<8x128xf32> to vector<8x32xf32>
    %555 = arith.negf %554 : vector<8x32xf32>
    %556 = math.exp %555 : vector<8x32xf32>
    %cst_133 = arith.constant 1.000000e+00 : f32
    %557 = vector.broadcast %cst_133 : f32 to vector<8x32xf32>
    %558 = arith.addf %557, %556 : vector<8x32xf32>
    %559 = arith.divf %557, %558 : vector<8x32xf32>
    %560 = arith.mulf %551, %527 : vector<8x32xf32>
    %561 = arith.mulf %545, %553 : vector<8x32xf32>
    %562 = arith.addf %560, %561 : vector<8x32xf32>
    %563 = math.tanh %562 : vector<8x32xf32>
    %564 = arith.mulf %559, %563 : vector<8x32xf32>
    %c0_134 = arith.constant 0 : index
    %565 = arith.index_cast %c15_i32 : i32 to index
    %c0_135 = arith.constant 0 : index
    %566 = vector.load %arg7[%c0_134, %565, %c0_135] : memref<8x16x32xf32, #tpu.memory_space<vmem>>, vector<8x1x32xf32>
    %567 = vector.shape_cast %566 : vector<8x1x32xf32> to vector<8x32xf32>
    %568 = vector.shape_cast %564 : vector<8x32xf32> to vector<8x1x32xf32>
    tpu.vector_store %arg7[%c0_134, %565, %c0_135], %568 {strides = array<i32>} : memref<8x16x32xf32, #tpu.memory_space<vmem>>, vector<8x1x32xf32>,
    %c16_i32 = arith.constant 16 : i32
    %c0_136 = arith.constant 0 : index
    %c0_137 = arith.constant 0 : index
    %569 = vector.load %arg8[%c0_136, %c0_137] : memref<8x32xf32, #tpu.memory_space<vmem>>, vector<8x32xf32>
    tpu.vector_store %arg8[%c0_136, %c0_137], %564 {strides = array<i32>} : memref<8x32xf32, #tpu.memory_space<vmem>>, vector<8x32xf32>,
    %c0_138 = arith.constant 0 : index
    %c0_139 = arith.constant 0 : index
    %570 = vector.load %arg9[%c0_138, %c0_139] : memref<8x32xf32, #tpu.memory_space<vmem>>, vector<8x32xf32>
    tpu.vector_store %arg9[%c0_138, %c0_139], %562 {strides = array<i32>} : memref<8x32xf32, #tpu.memory_space<vmem>>, vector<8x32xf32>,
    %c0_140 = arith.constant 0 : index
    %c0_141 = arith.constant 0 : index
    %571 = vector.load %arg4[%c0_140, %c0_141] : memref<64x128xf32, #tpu.memory_space<vmem>>, vector<64x128xf32>
    %c0_142 = arith.constant 0 : index
    %c0_143 = arith.constant 0 : index
    %572 = vector.load %arg5[%c0_142, %c0_143] : memref<1x128xf32, #tpu.memory_space<vmem>>, vector<1x128xf32>
    %573 = vector.shape_cast %572 : vector<1x128xf32> to vector<1x128xf32>
    %574 = vector.broadcast %573 : vector<1x128xf32> to vector<8x128xf32>
    %c0_144 = arith.constant 0 : index
    %c0_145 = arith.constant 0 : index
    %575 = vector.load %arg10[%c0_144, %c0_145] : memref<8x32xf32, #tpu.memory_space<vmem>>, vector<8x32xf32>
    %c0_146 = arith.constant 0 : index
    %c0_147 = arith.constant 0 : index
    %576 = vector.load %arg11[%c0_146, %c0_147] : memref<8x32xf32, #tpu.memory_space<vmem>>, vector<8x32xf32>
    %c0_i32_148 = arith.constant 0 : i32
    %c0_149 = arith.constant 0 : index
    %577 = arith.index_cast %c0_i32_148 : i32 to index
    %c0_150 = arith.constant 0 : index
    %578 = vector.load %arg7[%c0_149, %577, %c0_150] : memref<8x16x32xf32, #tpu.memory_space<vmem>>, vector<8x1x32xf32>
    %579 = vector.shape_cast %578 : vector<8x1x32xf32> to vector<8x32xf32>
    %580 = tpu.concatenate %579, %575 in 1 : vector<8x32xf32>, vector<8x32xf32> -> vector<8x64xf32>
    %cst_151 = arith.constant dense<0.000000e+00> : vector<8x128xf32>
    %581 = tpu.matmul %580, %571, %cst_151 {dimension_numbers = #tpu.dot_dimension_numbers<[1], [0], [0], [1], [0, 0, 1, 1], [], []>} : vector<8x64xf32>, vector<64x128xf32>, vector<8x128xf32> -> vector<8x128xf32>
    %582 = arith.addf %581, %574 : vector<8x128xf32>
    %583 = vector.extract_strided_slice %582 {offsets = [0, 0], sizes = [8, 32], strides = [1, 1]} : vector<8x128xf32> to vector<8x32xf32>
    %584 = arith.negf %583 : vector<8x32xf32>
    %585 = math.exp %584 : vector<8x32xf32>
    %cst_152 = arith.constant 1.000000e+00 : f32
    %586 = vector.broadcast %cst_152 : f32 to vector<8x32xf32>
    %587 = arith.addf %586, %585 : vector<8x32xf32>
    %588 = arith.divf %586, %587 : vector<8x32xf32>
    %589 = vector.extract_strided_slice %582 {offsets = [0, 32], sizes = [8, 32], strides = [1, 1]} : vector<8x128xf32> to vector<8x32xf32>
    %590 = arith.negf %589 : vector<8x32xf32>
    %591 = math.exp %590 : vector<8x32xf32>
    %cst_153 = arith.constant 1.000000e+00 : f32
    %592 = vector.broadcast %cst_153 : f32 to vector<8x32xf32>
    %593 = arith.addf %592, %591 : vector<8x32xf32>
    %594 = arith.divf %592, %593 : vector<8x32xf32>
    %595 = vector.extract_strided_slice %582 {offsets = [0, 64], sizes = [8, 32], strides = [1, 1]} : vector<8x128xf32> to vector<8x32xf32>
    %596 = math.tanh %595 : vector<8x32xf32>
    %597 = vector.extract_strided_slice %582 {offsets = [0, 96], sizes = [8, 32], strides = [1, 1]} : vector<8x128xf32> to vector<8x32xf32>
    %598 = arith.negf %597 : vector<8x32xf32>
    %599 = math.exp %598 : vector<8x32xf32>
    %cst_154 = arith.constant 1.000000e+00 : f32
    %600 = vector.broadcast %cst_154 : f32 to vector<8x32xf32>
    %601 = arith.addf %600, %599 : vector<8x32xf32>
    %602 = arith.divf %600, %601 : vector<8x32xf32>
    %603 = arith.mulf %594, %576 : vector<8x32xf32>
    %604 = arith.mulf %588, %596 : vector<8x32xf32>
    %605 = arith.addf %603, %604 : vector<8x32xf32>
    %606 = math.tanh %605 : vector<8x32xf32>
    %607 = arith.mulf %602, %606 : vector<8x32xf32>
    %c0_155 = arith.constant 0 : index
    %608 = arith.index_cast %c0_i32_148 : i32 to index
    %c0_156 = arith.constant 0 : index
    %609 = vector.load %arg6[%c0_155, %608, %c0_156] : memref<8x16x32xf32, #tpu.memory_space<vmem>>, vector<8x1x32xf32>
    %610 = vector.shape_cast %609 : vector<8x1x32xf32> to vector<8x32xf32>
    %611 = vector.shape_cast %607 : vector<8x32xf32> to vector<8x1x32xf32>
    tpu.vector_store %arg6[%c0_155, %608, %c0_156], %611 {strides = array<i32>} : memref<8x16x32xf32, #tpu.memory_space<vmem>>, vector<8x1x32xf32>,
    %c1_i32_157 = arith.constant 1 : i32
    %c0_158 = arith.constant 0 : index
    %612 = arith.index_cast %c1_i32_157 : i32 to index
    %c0_159 = arith.constant 0 : index
    %613 = vector.load %arg7[%c0_158, %612, %c0_159] : memref<8x16x32xf32, #tpu.memory_space<vmem>>, vector<8x1x32xf32>
    %614 = vector.shape_cast %613 : vector<8x1x32xf32> to vector<8x32xf32>
    %615 = tpu.concatenate %614, %607 in 1 : vector<8x32xf32>, vector<8x32xf32> -> vector<8x64xf32>
    %cst_160 = arith.constant dense<0.000000e+00> : vector<8x128xf32>
    %616 = tpu.matmul %615, %571, %cst_160 {dimension_numbers = #tpu.dot_dimension_numbers<[1], [0], [0], [1], [0, 0, 1, 1], [], []>} : vector<8x64xf32>, vector<64x128xf32>, vector<8x128xf32> -> vector<8x128xf32>
    %617 = arith.addf %616, %574 : vector<8x128xf32>
    %618 = vector.extract_strided_slice %617 {offsets = [0, 0], sizes = [8, 32], strides = [1, 1]} : vector<8x128xf32> to vector<8x32xf32>
    %619 = arith.negf %618 : vector<8x32xf32>
    %620 = math.exp %619 : vector<8x32xf32>
    %cst_161 = arith.constant 1.000000e+00 : f32
    %621 = vector.broadcast %cst_161 : f32 to vector<8x32xf32>
    %622 = arith.addf %621, %620 : vector<8x32xf32>
    %623 = arith.divf %621, %622 : vector<8x32xf32>
    %624 = vector.extract_strided_slice %617 {offsets = [0, 32], sizes = [8, 32], strides = [1, 1]} : vector<8x128xf32> to vector<8x32xf32>
    %625 = arith.negf %624 : vector<8x32xf32>
    %626 = math.exp %625 : vector<8x32xf32>
    %cst_162 = arith.constant 1.000000e+00 : f32
    %627 = vector.broadcast %cst_162 : f32 to vector<8x32xf32>
    %628 = arith.addf %627, %626 : vector<8x32xf32>
    %629 = arith.divf %627, %628 : vector<8x32xf32>
    %630 = vector.extract_strided_slice %617 {offsets = [0, 64], sizes = [8, 32], strides = [1, 1]} : vector<8x128xf32> to vector<8x32xf32>
    %631 = math.tanh %630 : vector<8x32xf32>
    %632 = vector.extract_strided_slice %617 {offsets = [0, 96], sizes = [8, 32], strides = [1, 1]} : vector<8x128xf32> to vector<8x32xf32>
    %633 = arith.negf %632 : vector<8x32xf32>
    %634 = math.exp %633 : vector<8x32xf32>
    %cst_163 = arith.constant 1.000000e+00 : f32
    %635 = vector.broadcast %cst_163 : f32 to vector<8x32xf32>
    %636 = arith.addf %635, %634 : vector<8x32xf32>
    %637 = arith.divf %635, %636 : vector<8x32xf32>
    %638 = arith.mulf %629, %605 : vector<8x32xf32>
    %639 = arith.mulf %623, %631 : vector<8x32xf32>
    %640 = arith.addf %638, %639 : vector<8x32xf32>
    %641 = math.tanh %640 : vector<8x32xf32>
    %642 = arith.mulf %637, %641 : vector<8x32xf32>
    %c0_164 = arith.constant 0 : index
    %643 = arith.index_cast %c1_i32_157 : i32 to index
    %c0_165 = arith.constant 0 : index
    %644 = vector.load %arg6[%c0_164, %643, %c0_165] : memref<8x16x32xf32, #tpu.memory_space<vmem>>, vector<8x1x32xf32>
    %645 = vector.shape_cast %644 : vector<8x1x32xf32> to vector<8x32xf32>
    %646 = vector.shape_cast %642 : vector<8x32xf32> to vector<8x1x32xf32>
    tpu.vector_store %arg6[%c0_164, %643, %c0_165], %646 {strides = array<i32>} : memref<8x16x32xf32, #tpu.memory_space<vmem>>, vector<8x1x32xf32>,
    %c2_i32_166 = arith.constant 2 : i32
    %c0_167 = arith.constant 0 : index
    %647 = arith.index_cast %c2_i32_166 : i32 to index
    %c0_168 = arith.constant 0 : index
    %648 = vector.load %arg7[%c0_167, %647, %c0_168] : memref<8x16x32xf32, #tpu.memory_space<vmem>>, vector<8x1x32xf32>
    %649 = vector.shape_cast %648 : vector<8x1x32xf32> to vector<8x32xf32>
    %650 = tpu.concatenate %649, %642 in 1 : vector<8x32xf32>, vector<8x32xf32> -> vector<8x64xf32>
    %cst_169 = arith.constant dense<0.000000e+00> : vector<8x128xf32>
    %651 = tpu.matmul %650, %571, %cst_169 {dimension_numbers = #tpu.dot_dimension_numbers<[1], [0], [0], [1], [0, 0, 1, 1], [], []>} : vector<8x64xf32>, vector<64x128xf32>, vector<8x128xf32> -> vector<8x128xf32>
    %652 = arith.addf %651, %574 : vector<8x128xf32>
    %653 = vector.extract_strided_slice %652 {offsets = [0, 0], sizes = [8, 32], strides = [1, 1]} : vector<8x128xf32> to vector<8x32xf32>
    %654 = arith.negf %653 : vector<8x32xf32>
    %655 = math.exp %654 : vector<8x32xf32>
    %cst_170 = arith.constant 1.000000e+00 : f32
    %656 = vector.broadcast %cst_170 : f32 to vector<8x32xf32>
    %657 = arith.addf %656, %655 : vector<8x32xf32>
    %658 = arith.divf %656, %657 : vector<8x32xf32>
    %659 = vector.extract_strided_slice %652 {offsets = [0, 32], sizes = [8, 32], strides = [1, 1]} : vector<8x128xf32> to vector<8x32xf32>
    %660 = arith.negf %659 : vector<8x32xf32>
    %661 = math.exp %660 : vector<8x32xf32>
    %cst_171 = arith.constant 1.000000e+00 : f32
    %662 = vector.broadcast %cst_171 : f32 to vector<8x32xf32>
    %663 = arith.addf %662, %661 : vector<8x32xf32>
    %664 = arith.divf %662, %663 : vector<8x32xf32>
    %665 = vector.extract_strided_slice %652 {offsets = [0, 64], sizes = [8, 32], strides = [1, 1]} : vector<8x128xf32> to vector<8x32xf32>
    %666 = math.tanh %665 : vector<8x32xf32>
    %667 = vector.extract_strided_slice %652 {offsets = [0, 96], sizes = [8, 32], strides = [1, 1]} : vector<8x128xf32> to vector<8x32xf32>
    %668 = arith.negf %667 : vector<8x32xf32>
    %669 = math.exp %668 : vector<8x32xf32>
    %cst_172 = arith.constant 1.000000e+00 : f32
    %670 = vector.broadcast %cst_172 : f32 to vector<8x32xf32>
    %671 = arith.addf %670, %669 : vector<8x32xf32>
    %672 = arith.divf %670, %671 : vector<8x32xf32>
    %673 = arith.mulf %664, %640 : vector<8x32xf32>
    %674 = arith.mulf %658, %666 : vector<8x32xf32>
    %675 = arith.addf %673, %674 : vector<8x32xf32>
    %676 = math.tanh %675 : vector<8x32xf32>
    %677 = arith.mulf %672, %676 : vector<8x32xf32>
    %c0_173 = arith.constant 0 : index
    %678 = arith.index_cast %c2_i32_166 : i32 to index
    %c0_174 = arith.constant 0 : index
    %679 = vector.load %arg6[%c0_173, %678, %c0_174] : memref<8x16x32xf32, #tpu.memory_space<vmem>>, vector<8x1x32xf32>
    %680 = vector.shape_cast %679 : vector<8x1x32xf32> to vector<8x32xf32>
    %681 = vector.shape_cast %677 : vector<8x32xf32> to vector<8x1x32xf32>
    tpu.vector_store %arg6[%c0_173, %678, %c0_174], %681 {strides = array<i32>} : memref<8x16x32xf32, #tpu.memory_space<vmem>>, vector<8x1x32xf32>,
    %c3_i32_175 = arith.constant 3 : i32
    %c0_176 = arith.constant 0 : index
    %682 = arith.index_cast %c3_i32_175 : i32 to index
    %c0_177 = arith.constant 0 : index
    %683 = vector.load %arg7[%c0_176, %682, %c0_177] : memref<8x16x32xf32, #tpu.memory_space<vmem>>, vector<8x1x32xf32>
    %684 = vector.shape_cast %683 : vector<8x1x32xf32> to vector<8x32xf32>
    %685 = tpu.concatenate %684, %677 in 1 : vector<8x32xf32>, vector<8x32xf32> -> vector<8x64xf32>
    %cst_178 = arith.constant dense<0.000000e+00> : vector<8x128xf32>
    %686 = tpu.matmul %685, %571, %cst_178 {dimension_numbers = #tpu.dot_dimension_numbers<[1], [0], [0], [1], [0, 0, 1, 1], [], []>} : vector<8x64xf32>, vector<64x128xf32>, vector<8x128xf32> -> vector<8x128xf32>
    %687 = arith.addf %686, %574 : vector<8x128xf32>
    %688 = vector.extract_strided_slice %687 {offsets = [0, 0], sizes = [8, 32], strides = [1, 1]} : vector<8x128xf32> to vector<8x32xf32>
    %689 = arith.negf %688 : vector<8x32xf32>
    %690 = math.exp %689 : vector<8x32xf32>
    %cst_179 = arith.constant 1.000000e+00 : f32
    %691 = vector.broadcast %cst_179 : f32 to vector<8x32xf32>
    %692 = arith.addf %691, %690 : vector<8x32xf32>
    %693 = arith.divf %691, %692 : vector<8x32xf32>
    %694 = vector.extract_strided_slice %687 {offsets = [0, 32], sizes = [8, 32], strides = [1, 1]} : vector<8x128xf32> to vector<8x32xf32>
    %695 = arith.negf %694 : vector<8x32xf32>
    %696 = math.exp %695 : vector<8x32xf32>
    %cst_180 = arith.constant 1.000000e+00 : f32
    %697 = vector.broadcast %cst_180 : f32 to vector<8x32xf32>
    %698 = arith.addf %697, %696 : vector<8x32xf32>
    %699 = arith.divf %697, %698 : vector<8x32xf32>
    %700 = vector.extract_strided_slice %687 {offsets = [0, 64], sizes = [8, 32], strides = [1, 1]} : vector<8x128xf32> to vector<8x32xf32>
    %701 = math.tanh %700 : vector<8x32xf32>
    %702 = vector.extract_strided_slice %687 {offsets = [0, 96], sizes = [8, 32], strides = [1, 1]} : vector<8x128xf32> to vector<8x32xf32>
    %703 = arith.negf %702 : vector<8x32xf32>
    %704 = math.exp %703 : vector<8x32xf32>
    %cst_181 = arith.constant 1.000000e+00 : f32
    %705 = vector.broadcast %cst_181 : f32 to vector<8x32xf32>
    %706 = arith.addf %705, %704 : vector<8x32xf32>
    %707 = arith.divf %705, %706 : vector<8x32xf32>
    %708 = arith.mulf %699, %675 : vector<8x32xf32>
    %709 = arith.mulf %693, %701 : vector<8x32xf32>
    %710 = arith.addf %708, %709 : vector<8x32xf32>
    %711 = math.tanh %710 : vector<8x32xf32>
    %712 = arith.mulf %707, %711 : vector<8x32xf32>
    %c0_182 = arith.constant 0 : index
    %713 = arith.index_cast %c3_i32_175 : i32 to index
    %c0_183 = arith.constant 0 : index
    %714 = vector.load %arg6[%c0_182, %713, %c0_183] : memref<8x16x32xf32, #tpu.memory_space<vmem>>, vector<8x1x32xf32>
    %715 = vector.shape_cast %714 : vector<8x1x32xf32> to vector<8x32xf32>
    %716 = vector.shape_cast %712 : vector<8x32xf32> to vector<8x1x32xf32>
    tpu.vector_store %arg6[%c0_182, %713, %c0_183], %716 {strides = array<i32>} : memref<8x16x32xf32, #tpu.memory_space<vmem>>, vector<8x1x32xf32>,
    %c4_i32_184 = arith.constant 4 : i32
    %c0_185 = arith.constant 0 : index
    %717 = arith.index_cast %c4_i32_184 : i32 to index
    %c0_186 = arith.constant 0 : index
    %718 = vector.load %arg7[%c0_185, %717, %c0_186] : memref<8x16x32xf32, #tpu.memory_space<vmem>>, vector<8x1x32xf32>
    %719 = vector.shape_cast %718 : vector<8x1x32xf32> to vector<8x32xf32>
    %720 = tpu.concatenate %719, %712 in 1 : vector<8x32xf32>, vector<8x32xf32> -> vector<8x64xf32>
    %cst_187 = arith.constant dense<0.000000e+00> : vector<8x128xf32>
    %721 = tpu.matmul %720, %571, %cst_187 {dimension_numbers = #tpu.dot_dimension_numbers<[1], [0], [0], [1], [0, 0, 1, 1], [], []>} : vector<8x64xf32>, vector<64x128xf32>, vector<8x128xf32> -> vector<8x128xf32>
    %722 = arith.addf %721, %574 : vector<8x128xf32>
    %723 = vector.extract_strided_slice %722 {offsets = [0, 0], sizes = [8, 32], strides = [1, 1]} : vector<8x128xf32> to vector<8x32xf32>
    %724 = arith.negf %723 : vector<8x32xf32>
    %725 = math.exp %724 : vector<8x32xf32>
    %cst_188 = arith.constant 1.000000e+00 : f32
    %726 = vector.broadcast %cst_188 : f32 to vector<8x32xf32>
    %727 = arith.addf %726, %725 : vector<8x32xf32>
    %728 = arith.divf %726, %727 : vector<8x32xf32>
    %729 = vector.extract_strided_slice %722 {offsets = [0, 32], sizes = [8, 32], strides = [1, 1]} : vector<8x128xf32> to vector<8x32xf32>
    %730 = arith.negf %729 : vector<8x32xf32>
    %731 = math.exp %730 : vector<8x32xf32>
    %cst_189 = arith.constant 1.000000e+00 : f32
    %732 = vector.broadcast %cst_189 : f32 to vector<8x32xf32>
    %733 = arith.addf %732, %731 : vector<8x32xf32>
    %734 = arith.divf %732, %733 : vector<8x32xf32>
    %735 = vector.extract_strided_slice %722 {offsets = [0, 64], sizes = [8, 32], strides = [1, 1]} : vector<8x128xf32> to vector<8x32xf32>
    %736 = math.tanh %735 : vector<8x32xf32>
    %737 = vector.extract_strided_slice %722 {offsets = [0, 96], sizes = [8, 32], strides = [1, 1]} : vector<8x128xf32> to vector<8x32xf32>
    %738 = arith.negf %737 : vector<8x32xf32>
    %739 = math.exp %738 : vector<8x32xf32>
    %cst_190 = arith.constant 1.000000e+00 : f32
    %740 = vector.broadcast %cst_190 : f32 to vector<8x32xf32>
    %741 = arith.addf %740, %739 : vector<8x32xf32>
    %742 = arith.divf %740, %741 : vector<8x32xf32>
    %743 = arith.mulf %734, %710 : vector<8x32xf32>
    %744 = arith.mulf %728, %736 : vector<8x32xf32>
    %745 = arith.addf %743, %744 : vector<8x32xf32>
    %746 = math.tanh %745 : vector<8x32xf32>
    %747 = arith.mulf %742, %746 : vector<8x32xf32>
    %c0_191 = arith.constant 0 : index
    %748 = arith.index_cast %c4_i32_184 : i32 to index
    %c0_192 = arith.constant 0 : index
    %749 = vector.load %arg6[%c0_191, %748, %c0_192] : memref<8x16x32xf32, #tpu.memory_space<vmem>>, vector<8x1x32xf32>
    %750 = vector.shape_cast %749 : vector<8x1x32xf32> to vector<8x32xf32>
    %751 = vector.shape_cast %747 : vector<8x32xf32> to vector<8x1x32xf32>
    tpu.vector_store %arg6[%c0_191, %748, %c0_192], %751 {strides = array<i32>} : memref<8x16x32xf32, #tpu.memory_space<vmem>>, vector<8x1x32xf32>,
    %c5_i32_193 = arith.constant 5 : i32
    %c0_194 = arith.constant 0 : index
    %752 = arith.index_cast %c5_i32_193 : i32 to index
    %c0_195 = arith.constant 0 : index
    %753 = vector.load %arg7[%c0_194, %752, %c0_195] : memref<8x16x32xf32, #tpu.memory_space<vmem>>, vector<8x1x32xf32>
    %754 = vector.shape_cast %753 : vector<8x1x32xf32> to vector<8x32xf32>
    %755 = tpu.concatenate %754, %747 in 1 : vector<8x32xf32>, vector<8x32xf32> -> vector<8x64xf32>
    %cst_196 = arith.constant dense<0.000000e+00> : vector<8x128xf32>
    %756 = tpu.matmul %755, %571, %cst_196 {dimension_numbers = #tpu.dot_dimension_numbers<[1], [0], [0], [1], [0, 0, 1, 1], [], []>} : vector<8x64xf32>, vector<64x128xf32>, vector<8x128xf32> -> vector<8x128xf32>
    %757 = arith.addf %756, %574 : vector<8x128xf32>
    %758 = vector.extract_strided_slice %757 {offsets = [0, 0], sizes = [8, 32], strides = [1, 1]} : vector<8x128xf32> to vector<8x32xf32>
    %759 = arith.negf %758 : vector<8x32xf32>
    %760 = math.exp %759 : vector<8x32xf32>
    %cst_197 = arith.constant 1.000000e+00 : f32
    %761 = vector.broadcast %cst_197 : f32 to vector<8x32xf32>
    %762 = arith.addf %761, %760 : vector<8x32xf32>
    %763 = arith.divf %761, %762 : vector<8x32xf32>
    %764 = vector.extract_strided_slice %757 {offsets = [0, 32], sizes = [8, 32], strides = [1, 1]} : vector<8x128xf32> to vector<8x32xf32>
    %765 = arith.negf %764 : vector<8x32xf32>
    %766 = math.exp %765 : vector<8x32xf32>
    %cst_198 = arith.constant 1.000000e+00 : f32
    %767 = vector.broadcast %cst_198 : f32 to vector<8x32xf32>
    %768 = arith.addf %767, %766 : vector<8x32xf32>
    %769 = arith.divf %767, %768 : vector<8x32xf32>
    %770 = vector.extract_strided_slice %757 {offsets = [0, 64], sizes = [8, 32], strides = [1, 1]} : vector<8x128xf32> to vector<8x32xf32>
    %771 = math.tanh %770 : vector<8x32xf32>
    %772 = vector.extract_strided_slice %757 {offsets = [0, 96], sizes = [8, 32], strides = [1, 1]} : vector<8x128xf32> to vector<8x32xf32>
    %773 = arith.negf %772 : vector<8x32xf32>
    %774 = math.exp %773 : vector<8x32xf32>
    %cst_199 = arith.constant 1.000000e+00 : f32
    %775 = vector.broadcast %cst_199 : f32 to vector<8x32xf32>
    %776 = arith.addf %775, %774 : vector<8x32xf32>
    %777 = arith.divf %775, %776 : vector<8x32xf32>
    %778 = arith.mulf %769, %745 : vector<8x32xf32>
    %779 = arith.mulf %763, %771 : vector<8x32xf32>
    %780 = arith.addf %778, %779 : vector<8x32xf32>
    %781 = math.tanh %780 : vector<8x32xf32>
    %782 = arith.mulf %777, %781 : vector<8x32xf32>
    %c0_200 = arith.constant 0 : index
    %783 = arith.index_cast %c5_i32_193 : i32 to index
    %c0_201 = arith.constant 0 : index
    %784 = vector.load %arg6[%c0_200, %783, %c0_201] : memref<8x16x32xf32, #tpu.memory_space<vmem>>, vector<8x1x32xf32>
    %785 = vector.shape_cast %784 : vector<8x1x32xf32> to vector<8x32xf32>
    %786 = vector.shape_cast %782 : vector<8x32xf32> to vector<8x1x32xf32>
    tpu.vector_store %arg6[%c0_200, %783, %c0_201], %786 {strides = array<i32>} : memref<8x16x32xf32, #tpu.memory_space<vmem>>, vector<8x1x32xf32>,
    %c6_i32_202 = arith.constant 6 : i32
    %c0_203 = arith.constant 0 : index
    %787 = arith.index_cast %c6_i32_202 : i32 to index
    %c0_204 = arith.constant 0 : index
    %788 = vector.load %arg7[%c0_203, %787, %c0_204] : memref<8x16x32xf32, #tpu.memory_space<vmem>>, vector<8x1x32xf32>
    %789 = vector.shape_cast %788 : vector<8x1x32xf32> to vector<8x32xf32>
    %790 = tpu.concatenate %789, %782 in 1 : vector<8x32xf32>, vector<8x32xf32> -> vector<8x64xf32>
    %cst_205 = arith.constant dense<0.000000e+00> : vector<8x128xf32>
    %791 = tpu.matmul %790, %571, %cst_205 {dimension_numbers = #tpu.dot_dimension_numbers<[1], [0], [0], [1], [0, 0, 1, 1], [], []>} : vector<8x64xf32>, vector<64x128xf32>, vector<8x128xf32> -> vector<8x128xf32>
    %792 = arith.addf %791, %574 : vector<8x128xf32>
    %793 = vector.extract_strided_slice %792 {offsets = [0, 0], sizes = [8, 32], strides = [1, 1]} : vector<8x128xf32> to vector<8x32xf32>
    %794 = arith.negf %793 : vector<8x32xf32>
    %795 = math.exp %794 : vector<8x32xf32>
    %cst_206 = arith.constant 1.000000e+00 : f32
    %796 = vector.broadcast %cst_206 : f32 to vector<8x32xf32>
    %797 = arith.addf %796, %795 : vector<8x32xf32>
    %798 = arith.divf %796, %797 : vector<8x32xf32>
    %799 = vector.extract_strided_slice %792 {offsets = [0, 32], sizes = [8, 32], strides = [1, 1]} : vector<8x128xf32> to vector<8x32xf32>
    %800 = arith.negf %799 : vector<8x32xf32>
    %801 = math.exp %800 : vector<8x32xf32>
    %cst_207 = arith.constant 1.000000e+00 : f32
    %802 = vector.broadcast %cst_207 : f32 to vector<8x32xf32>
    %803 = arith.addf %802, %801 : vector<8x32xf32>
    %804 = arith.divf %802, %803 : vector<8x32xf32>
    %805 = vector.extract_strided_slice %792 {offsets = [0, 64], sizes = [8, 32], strides = [1, 1]} : vector<8x128xf32> to vector<8x32xf32>
    %806 = math.tanh %805 : vector<8x32xf32>
    %807 = vector.extract_strided_slice %792 {offsets = [0, 96], sizes = [8, 32], strides = [1, 1]} : vector<8x128xf32> to vector<8x32xf32>
    %808 = arith.negf %807 : vector<8x32xf32>
    %809 = math.exp %808 : vector<8x32xf32>
    %cst_208 = arith.constant 1.000000e+00 : f32
    %810 = vector.broadcast %cst_208 : f32 to vector<8x32xf32>
    %811 = arith.addf %810, %809 : vector<8x32xf32>
    %812 = arith.divf %810, %811 : vector<8x32xf32>
    %813 = arith.mulf %804, %780 : vector<8x32xf32>
    %814 = arith.mulf %798, %806 : vector<8x32xf32>
    %815 = arith.addf %813, %814 : vector<8x32xf32>
    %816 = math.tanh %815 : vector<8x32xf32>
    %817 = arith.mulf %812, %816 : vector<8x32xf32>
    %c0_209 = arith.constant 0 : index
    %818 = arith.index_cast %c6_i32_202 : i32 to index
    %c0_210 = arith.constant 0 : index
    %819 = vector.load %arg6[%c0_209, %818, %c0_210] : memref<8x16x32xf32, #tpu.memory_space<vmem>>, vector<8x1x32xf32>
    %820 = vector.shape_cast %819 : vector<8x1x32xf32> to vector<8x32xf32>
    %821 = vector.shape_cast %817 : vector<8x32xf32> to vector<8x1x32xf32>
    tpu.vector_store %arg6[%c0_209, %818, %c0_210], %821 {strides = array<i32>} : memref<8x16x32xf32, #tpu.memory_space<vmem>>, vector<8x1x32xf32>,
    %c7_i32_211 = arith.constant 7 : i32
    %c0_212 = arith.constant 0 : index
    %822 = arith.index_cast %c7_i32_211 : i32 to index
    %c0_213 = arith.constant 0 : index
    %823 = vector.load %arg7[%c0_212, %822, %c0_213] : memref<8x16x32xf32, #tpu.memory_space<vmem>>, vector<8x1x32xf32>
    %824 = vector.shape_cast %823 : vector<8x1x32xf32> to vector<8x32xf32>
    %825 = tpu.concatenate %824, %817 in 1 : vector<8x32xf32>, vector<8x32xf32> -> vector<8x64xf32>
    %cst_214 = arith.constant dense<0.000000e+00> : vector<8x128xf32>
    %826 = tpu.matmul %825, %571, %cst_214 {dimension_numbers = #tpu.dot_dimension_numbers<[1], [0], [0], [1], [0, 0, 1, 1], [], []>} : vector<8x64xf32>, vector<64x128xf32>, vector<8x128xf32> -> vector<8x128xf32>
    %827 = arith.addf %826, %574 : vector<8x128xf32>
    %828 = vector.extract_strided_slice %827 {offsets = [0, 0], sizes = [8, 32], strides = [1, 1]} : vector<8x128xf32> to vector<8x32xf32>
    %829 = arith.negf %828 : vector<8x32xf32>
    %830 = math.exp %829 : vector<8x32xf32>
    %cst_215 = arith.constant 1.000000e+00 : f32
    %831 = vector.broadcast %cst_215 : f32 to vector<8x32xf32>
    %832 = arith.addf %831, %830 : vector<8x32xf32>
    %833 = arith.divf %831, %832 : vector<8x32xf32>
    %834 = vector.extract_strided_slice %827 {offsets = [0, 32], sizes = [8, 32], strides = [1, 1]} : vector<8x128xf32> to vector<8x32xf32>
    %835 = arith.negf %834 : vector<8x32xf32>
    %836 = math.exp %835 : vector<8x32xf32>
    %cst_216 = arith.constant 1.000000e+00 : f32
    %837 = vector.broadcast %cst_216 : f32 to vector<8x32xf32>
    %838 = arith.addf %837, %836 : vector<8x32xf32>
    %839 = arith.divf %837, %838 : vector<8x32xf32>
    %840 = vector.extract_strided_slice %827 {offsets = [0, 64], sizes = [8, 32], strides = [1, 1]} : vector<8x128xf32> to vector<8x32xf32>
    %841 = math.tanh %840 : vector<8x32xf32>
    %842 = vector.extract_strided_slice %827 {offsets = [0, 96], sizes = [8, 32], strides = [1, 1]} : vector<8x128xf32> to vector<8x32xf32>
    %843 = arith.negf %842 : vector<8x32xf32>
    %844 = math.exp %843 : vector<8x32xf32>
    %cst_217 = arith.constant 1.000000e+00 : f32
    %845 = vector.broadcast %cst_217 : f32 to vector<8x32xf32>
    %846 = arith.addf %845, %844 : vector<8x32xf32>
    %847 = arith.divf %845, %846 : vector<8x32xf32>
    %848 = arith.mulf %839, %815 : vector<8x32xf32>
    %849 = arith.mulf %833, %841 : vector<8x32xf32>
    %850 = arith.addf %848, %849 : vector<8x32xf32>
    %851 = math.tanh %850 : vector<8x32xf32>
    %852 = arith.mulf %847, %851 : vector<8x32xf32>
    %c0_218 = arith.constant 0 : index
    %853 = arith.index_cast %c7_i32_211 : i32 to index
    %c0_219 = arith.constant 0 : index
    %854 = vector.load %arg6[%c0_218, %853, %c0_219] : memref<8x16x32xf32, #tpu.memory_space<vmem>>, vector<8x1x32xf32>
    %855 = vector.shape_cast %854 : vector<8x1x32xf32> to vector<8x32xf32>
    %856 = vector.shape_cast %852 : vector<8x32xf32> to vector<8x1x32xf32>
    tpu.vector_store %arg6[%c0_218, %853, %c0_219], %856 {strides = array<i32>} : memref<8x16x32xf32, #tpu.memory_space<vmem>>, vector<8x1x32xf32>,
    %c8_i32_220 = arith.constant 8 : i32
    %c0_221 = arith.constant 0 : index
    %857 = arith.index_cast %c8_i32_220 : i32 to index
    %c0_222 = arith.constant 0 : index
    %858 = vector.load %arg7[%c0_221, %857, %c0_222] : memref<8x16x32xf32, #tpu.memory_space<vmem>>, vector<8x1x32xf32>
    %859 = vector.shape_cast %858 : vector<8x1x32xf32> to vector<8x32xf32>
    %860 = tpu.concatenate %859, %852 in 1 : vector<8x32xf32>, vector<8x32xf32> -> vector<8x64xf32>
    %cst_223 = arith.constant dense<0.000000e+00> : vector<8x128xf32>
    %861 = tpu.matmul %860, %571, %cst_223 {dimension_numbers = #tpu.dot_dimension_numbers<[1], [0], [0], [1], [0, 0, 1, 1], [], []>} : vector<8x64xf32>, vector<64x128xf32>, vector<8x128xf32> -> vector<8x128xf32>
    %862 = arith.addf %861, %574 : vector<8x128xf32>
    %863 = vector.extract_strided_slice %862 {offsets = [0, 0], sizes = [8, 32], strides = [1, 1]} : vector<8x128xf32> to vector<8x32xf32>
    %864 = arith.negf %863 : vector<8x32xf32>
    %865 = math.exp %864 : vector<8x32xf32>
    %cst_224 = arith.constant 1.000000e+00 : f32
    %866 = vector.broadcast %cst_224 : f32 to vector<8x32xf32>
    %867 = arith.addf %866, %865 : vector<8x32xf32>
    %868 = arith.divf %866, %867 : vector<8x32xf32>
    %869 = vector.extract_strided_slice %862 {offsets = [0, 32], sizes = [8, 32], strides = [1, 1]} : vector<8x128xf32> to vector<8x32xf32>
    %870 = arith.negf %869 : vector<8x32xf32>
    %871 = math.exp %870 : vector<8x32xf32>
    %cst_225 = arith.constant 1.000000e+00 : f32
    %872 = vector.broadcast %cst_225 : f32 to vector<8x32xf32>
    %873 = arith.addf %872, %871 : vector<8x32xf32>
    %874 = arith.divf %872, %873 : vector<8x32xf32>
    %875 = vector.extract_strided_slice %862 {offsets = [0, 64], sizes = [8, 32], strides = [1, 1]} : vector<8x128xf32> to vector<8x32xf32>
    %876 = math.tanh %875 : vector<8x32xf32>
    %877 = vector.extract_strided_slice %862 {offsets = [0, 96], sizes = [8, 32], strides = [1, 1]} : vector<8x128xf32> to vector<8x32xf32>
    %878 = arith.negf %877 : vector<8x32xf32>
    %879 = math.exp %878 : vector<8x32xf32>
    %cst_226 = arith.constant 1.000000e+00 : f32
    %880 = vector.broadcast %cst_226 : f32 to vector<8x32xf32>
    %881 = arith.addf %880, %879 : vector<8x32xf32>
    %882 = arith.divf %880, %881 : vector<8x32xf32>
    %883 = arith.mulf %874, %850 : vector<8x32xf32>
    %884 = arith.mulf %868, %876 : vector<8x32xf32>
    %885 = arith.addf %883, %884 : vector<8x32xf32>
    %886 = math.tanh %885 : vector<8x32xf32>
    %887 = arith.mulf %882, %886 : vector<8x32xf32>
    %c0_227 = arith.constant 0 : index
    %888 = arith.index_cast %c8_i32_220 : i32 to index
    %c0_228 = arith.constant 0 : index
    %889 = vector.load %arg6[%c0_227, %888, %c0_228] : memref<8x16x32xf32, #tpu.memory_space<vmem>>, vector<8x1x32xf32>
    %890 = vector.shape_cast %889 : vector<8x1x32xf32> to vector<8x32xf32>
    %891 = vector.shape_cast %887 : vector<8x32xf32> to vector<8x1x32xf32>
    tpu.vector_store %arg6[%c0_227, %888, %c0_228], %891 {strides = array<i32>} : memref<8x16x32xf32, #tpu.memory_space<vmem>>, vector<8x1x32xf32>,
    %c9_i32_229 = arith.constant 9 : i32
    %c0_230 = arith.constant 0 : index
    %892 = arith.index_cast %c9_i32_229 : i32 to index
    %c0_231 = arith.constant 0 : index
    %893 = vector.load %arg7[%c0_230, %892, %c0_231] : memref<8x16x32xf32, #tpu.memory_space<vmem>>, vector<8x1x32xf32>
    %894 = vector.shape_cast %893 : vector<8x1x32xf32> to vector<8x32xf32>
    %895 = tpu.concatenate %894, %887 in 1 : vector<8x32xf32>, vector<8x32xf32> -> vector<8x64xf32>
    %cst_232 = arith.constant dense<0.000000e+00> : vector<8x128xf32>
    %896 = tpu.matmul %895, %571, %cst_232 {dimension_numbers = #tpu.dot_dimension_numbers<[1], [0], [0], [1], [0, 0, 1, 1], [], []>} : vector<8x64xf32>, vector<64x128xf32>, vector<8x128xf32> -> vector<8x128xf32>
    %897 = arith.addf %896, %574 : vector<8x128xf32>
    %898 = vector.extract_strided_slice %897 {offsets = [0, 0], sizes = [8, 32], strides = [1, 1]} : vector<8x128xf32> to vector<8x32xf32>
    %899 = arith.negf %898 : vector<8x32xf32>
    %900 = math.exp %899 : vector<8x32xf32>
    %cst_233 = arith.constant 1.000000e+00 : f32
    %901 = vector.broadcast %cst_233 : f32 to vector<8x32xf32>
    %902 = arith.addf %901, %900 : vector<8x32xf32>
    %903 = arith.divf %901, %902 : vector<8x32xf32>
    %904 = vector.extract_strided_slice %897 {offsets = [0, 32], sizes = [8, 32], strides = [1, 1]} : vector<8x128xf32> to vector<8x32xf32>
    %905 = arith.negf %904 : vector<8x32xf32>
    %906 = math.exp %905 : vector<8x32xf32>
    %cst_234 = arith.constant 1.000000e+00 : f32
    %907 = vector.broadcast %cst_234 : f32 to vector<8x32xf32>
    %908 = arith.addf %907, %906 : vector<8x32xf32>
    %909 = arith.divf %907, %908 : vector<8x32xf32>
    %910 = vector.extract_strided_slice %897 {offsets = [0, 64], sizes = [8, 32], strides = [1, 1]} : vector<8x128xf32> to vector<8x32xf32>
    %911 = math.tanh %910 : vector<8x32xf32>
    %912 = vector.extract_strided_slice %897 {offsets = [0, 96], sizes = [8, 32], strides = [1, 1]} : vector<8x128xf32> to vector<8x32xf32>
    %913 = arith.negf %912 : vector<8x32xf32>
    %914 = math.exp %913 : vector<8x32xf32>
    %cst_235 = arith.constant 1.000000e+00 : f32
    %915 = vector.broadcast %cst_235 : f32 to vector<8x32xf32>
    %916 = arith.addf %915, %914 : vector<8x32xf32>
    %917 = arith.divf %915, %916 : vector<8x32xf32>
    %918 = arith.mulf %909, %885 : vector<8x32xf32>
    %919 = arith.mulf %903, %911 : vector<8x32xf32>
    %920 = arith.addf %918, %919 : vector<8x32xf32>
    %921 = math.tanh %920 : vector<8x32xf32>
    %922 = arith.mulf %917, %921 : vector<8x32xf32>
    %c0_236 = arith.constant 0 : index
    %923 = arith.index_cast %c9_i32_229 : i32 to index
    %c0_237 = arith.constant 0 : index
    %924 = vector.load %arg6[%c0_236, %923, %c0_237] : memref<8x16x32xf32, #tpu.memory_space<vmem>>, vector<8x1x32xf32>
    %925 = vector.shape_cast %924 : vector<8x1x32xf32> to vector<8x32xf32>
    %926 = vector.shape_cast %922 : vector<8x32xf32> to vector<8x1x32xf32>
    tpu.vector_store %arg6[%c0_236, %923, %c0_237], %926 {strides = array<i32>} : memref<8x16x32xf32, #tpu.memory_space<vmem>>, vector<8x1x32xf32>,
    %c10_i32_238 = arith.constant 10 : i32
    %c0_239 = arith.constant 0 : index
    %927 = arith.index_cast %c10_i32_238 : i32 to index
    %c0_240 = arith.constant 0 : index
    %928 = vector.load %arg7[%c0_239, %927, %c0_240] : memref<8x16x32xf32, #tpu.memory_space<vmem>>, vector<8x1x32xf32>
    %929 = vector.shape_cast %928 : vector<8x1x32xf32> to vector<8x32xf32>
    %930 = tpu.concatenate %929, %922 in 1 : vector<8x32xf32>, vector<8x32xf32> -> vector<8x64xf32>
    %cst_241 = arith.constant dense<0.000000e+00> : vector<8x128xf32>
    %931 = tpu.matmul %930, %571, %cst_241 {dimension_numbers = #tpu.dot_dimension_numbers<[1], [0], [0], [1], [0, 0, 1, 1], [], []>} : vector<8x64xf32>, vector<64x128xf32>, vector<8x128xf32> -> vector<8x128xf32>
    %932 = arith.addf %931, %574 : vector<8x128xf32>
    %933 = vector.extract_strided_slice %932 {offsets = [0, 0], sizes = [8, 32], strides = [1, 1]} : vector<8x128xf32> to vector<8x32xf32>
    %934 = arith.negf %933 : vector<8x32xf32>
    %935 = math.exp %934 : vector<8x32xf32>
    %cst_242 = arith.constant 1.000000e+00 : f32
    %936 = vector.broadcast %cst_242 : f32 to vector<8x32xf32>
    %937 = arith.addf %936, %935 : vector<8x32xf32>
    %938 = arith.divf %936, %937 : vector<8x32xf32>
    %939 = vector.extract_strided_slice %932 {offsets = [0, 32], sizes = [8, 32], strides = [1, 1]} : vector<8x128xf32> to vector<8x32xf32>
    %940 = arith.negf %939 : vector<8x32xf32>
    %941 = math.exp %940 : vector<8x32xf32>
    %cst_243 = arith.constant 1.000000e+00 : f32
    %942 = vector.broadcast %cst_243 : f32 to vector<8x32xf32>
    %943 = arith.addf %942, %941 : vector<8x32xf32>
    %944 = arith.divf %942, %943 : vector<8x32xf32>
    %945 = vector.extract_strided_slice %932 {offsets = [0, 64], sizes = [8, 32], strides = [1, 1]} : vector<8x128xf32> to vector<8x32xf32>
    %946 = math.tanh %945 : vector<8x32xf32>
    %947 = vector.extract_strided_slice %932 {offsets = [0, 96], sizes = [8, 32], strides = [1, 1]} : vector<8x128xf32> to vector<8x32xf32>
    %948 = arith.negf %947 : vector<8x32xf32>
    %949 = math.exp %948 : vector<8x32xf32>
    %cst_244 = arith.constant 1.000000e+00 : f32
    %950 = vector.broadcast %cst_244 : f32 to vector<8x32xf32>
    %951 = arith.addf %950, %949 : vector<8x32xf32>
    %952 = arith.divf %950, %951 : vector<8x32xf32>
    %953 = arith.mulf %944, %920 : vector<8x32xf32>
    %954 = arith.mulf %938, %946 : vector<8x32xf32>
    %955 = arith.addf %953, %954 : vector<8x32xf32>
    %956 = math.tanh %955 : vector<8x32xf32>
    %957 = arith.mulf %952, %956 : vector<8x32xf32>
    %c0_245 = arith.constant 0 : index
    %958 = arith.index_cast %c10_i32_238 : i32 to index
    %c0_246 = arith.constant 0 : index
    %959 = vector.load %arg6[%c0_245, %958, %c0_246] : memref<8x16x32xf32, #tpu.memory_space<vmem>>, vector<8x1x32xf32>
    %960 = vector.shape_cast %959 : vector<8x1x32xf32> to vector<8x32xf32>
    %961 = vector.shape_cast %957 : vector<8x32xf32> to vector<8x1x32xf32>
    tpu.vector_store %arg6[%c0_245, %958, %c0_246], %961 {strides = array<i32>} : memref<8x16x32xf32, #tpu.memory_space<vmem>>, vector<8x1x32xf32>,
    %c11_i32_247 = arith.constant 11 : i32
    %c0_248 = arith.constant 0 : index
    %962 = arith.index_cast %c11_i32_247 : i32 to index
    %c0_249 = arith.constant 0 : index
    %963 = vector.load %arg7[%c0_248, %962, %c0_249] : memref<8x16x32xf32, #tpu.memory_space<vmem>>, vector<8x1x32xf32>
    %964 = vector.shape_cast %963 : vector<8x1x32xf32> to vector<8x32xf32>
    %965 = tpu.concatenate %964, %957 in 1 : vector<8x32xf32>, vector<8x32xf32> -> vector<8x64xf32>
    %cst_250 = arith.constant dense<0.000000e+00> : vector<8x128xf32>
    %966 = tpu.matmul %965, %571, %cst_250 {dimension_numbers = #tpu.dot_dimension_numbers<[1], [0], [0], [1], [0, 0, 1, 1], [], []>} : vector<8x64xf32>, vector<64x128xf32>, vector<8x128xf32> -> vector<8x128xf32>
    %967 = arith.addf %966, %574 : vector<8x128xf32>
    %968 = vector.extract_strided_slice %967 {offsets = [0, 0], sizes = [8, 32], strides = [1, 1]} : vector<8x128xf32> to vector<8x32xf32>
    %969 = arith.negf %968 : vector<8x32xf32>
    %970 = math.exp %969 : vector<8x32xf32>
    %cst_251 = arith.constant 1.000000e+00 : f32
    %971 = vector.broadcast %cst_251 : f32 to vector<8x32xf32>
    %972 = arith.addf %971, %970 : vector<8x32xf32>
    %973 = arith.divf %971, %972 : vector<8x32xf32>
    %974 = vector.extract_strided_slice %967 {offsets = [0, 32], sizes = [8, 32], strides = [1, 1]} : vector<8x128xf32> to vector<8x32xf32>
    %975 = arith.negf %974 : vector<8x32xf32>
    %976 = math.exp %975 : vector<8x32xf32>
    %cst_252 = arith.constant 1.000000e+00 : f32
    %977 = vector.broadcast %cst_252 : f32 to vector<8x32xf32>
    %978 = arith.addf %977, %976 : vector<8x32xf32>
    %979 = arith.divf %977, %978 : vector<8x32xf32>
    %980 = vector.extract_strided_slice %967 {offsets = [0, 64], sizes = [8, 32], strides = [1, 1]} : vector<8x128xf32> to vector<8x32xf32>
    %981 = math.tanh %980 : vector<8x32xf32>
    %982 = vector.extract_strided_slice %967 {offsets = [0, 96], sizes = [8, 32], strides = [1, 1]} : vector<8x128xf32> to vector<8x32xf32>
    %983 = arith.negf %982 : vector<8x32xf32>
    %984 = math.exp %983 : vector<8x32xf32>
    %cst_253 = arith.constant 1.000000e+00 : f32
    %985 = vector.broadcast %cst_253 : f32 to vector<8x32xf32>
    %986 = arith.addf %985, %984 : vector<8x32xf32>
    %987 = arith.divf %985, %986 : vector<8x32xf32>
    %988 = arith.mulf %979, %955 : vector<8x32xf32>
    %989 = arith.mulf %973, %981 : vector<8x32xf32>
    %990 = arith.addf %988, %989 : vector<8x32xf32>
    %991 = math.tanh %990 : vector<8x32xf32>
    %992 = arith.mulf %987, %991 : vector<8x32xf32>
    %c0_254 = arith.constant 0 : index
    %993 = arith.index_cast %c11_i32_247 : i32 to index
    %c0_255 = arith.constant 0 : index
    %994 = vector.load %arg6[%c0_254, %993, %c0_255] : memref<8x16x32xf32, #tpu.memory_space<vmem>>, vector<8x1x32xf32>
    %995 = vector.shape_cast %994 : vector<8x1x32xf32> to vector<8x32xf32>
    %996 = vector.shape_cast %992 : vector<8x32xf32> to vector<8x1x32xf32>
    tpu.vector_store %arg6[%c0_254, %993, %c0_255], %996 {strides = array<i32>} : memref<8x16x32xf32, #tpu.memory_space<vmem>>, vector<8x1x32xf32>,
    %c12_i32_256 = arith.constant 12 : i32
    %c0_257 = arith.constant 0 : index
    %997 = arith.index_cast %c12_i32_256 : i32 to index
    %c0_258 = arith.constant 0 : index
    %998 = vector.load %arg7[%c0_257, %997, %c0_258] : memref<8x16x32xf32, #tpu.memory_space<vmem>>, vector<8x1x32xf32>
    %999 = vector.shape_cast %998 : vector<8x1x32xf32> to vector<8x32xf32>
    %1000 = tpu.concatenate %999, %992 in 1 : vector<8x32xf32>, vector<8x32xf32> -> vector<8x64xf32>
    %cst_259 = arith.constant dense<0.000000e+00> : vector<8x128xf32>
    %1001 = tpu.matmul %1000, %571, %cst_259 {dimension_numbers = #tpu.dot_dimension_numbers<[1], [0], [0], [1], [0, 0, 1, 1], [], []>} : vector<8x64xf32>, vector<64x128xf32>, vector<8x128xf32> -> vector<8x128xf32>
    %1002 = arith.addf %1001, %574 : vector<8x128xf32>
    %1003 = vector.extract_strided_slice %1002 {offsets = [0, 0], sizes = [8, 32], strides = [1, 1]} : vector<8x128xf32> to vector<8x32xf32>
    %1004 = arith.negf %1003 : vector<8x32xf32>
    %1005 = math.exp %1004 : vector<8x32xf32>
    %cst_260 = arith.constant 1.000000e+00 : f32
    %1006 = vector.broadcast %cst_260 : f32 to vector<8x32xf32>
    %1007 = arith.addf %1006, %1005 : vector<8x32xf32>
    %1008 = arith.divf %1006, %1007 : vector<8x32xf32>
    %1009 = vector.extract_strided_slice %1002 {offsets = [0, 32], sizes = [8, 32], strides = [1, 1]} : vector<8x128xf32> to vector<8x32xf32>
    %1010 = arith.negf %1009 : vector<8x32xf32>
    %1011 = math.exp %1010 : vector<8x32xf32>
    %cst_261 = arith.constant 1.000000e+00 : f32
    %1012 = vector.broadcast %cst_261 : f32 to vector<8x32xf32>
    %1013 = arith.addf %1012, %1011 : vector<8x32xf32>
    %1014 = arith.divf %1012, %1013 : vector<8x32xf32>
    %1015 = vector.extract_strided_slice %1002 {offsets = [0, 64], sizes = [8, 32], strides = [1, 1]} : vector<8x128xf32> to vector<8x32xf32>
    %1016 = math.tanh %1015 : vector<8x32xf32>
    %1017 = vector.extract_strided_slice %1002 {offsets = [0, 96], sizes = [8, 32], strides = [1, 1]} : vector<8x128xf32> to vector<8x32xf32>
    %1018 = arith.negf %1017 : vector<8x32xf32>
    %1019 = math.exp %1018 : vector<8x32xf32>
    %cst_262 = arith.constant 1.000000e+00 : f32
    %1020 = vector.broadcast %cst_262 : f32 to vector<8x32xf32>
    %1021 = arith.addf %1020, %1019 : vector<8x32xf32>
    %1022 = arith.divf %1020, %1021 : vector<8x32xf32>
    %1023 = arith.mulf %1014, %990 : vector<8x32xf32>
    %1024 = arith.mulf %1008, %1016 : vector<8x32xf32>
    %1025 = arith.addf %1023, %1024 : vector<8x32xf32>
    %1026 = math.tanh %1025 : vector<8x32xf32>
    %1027 = arith.mulf %1022, %1026 : vector<8x32xf32>
    %c0_263 = arith.constant 0 : index
    %1028 = arith.index_cast %c12_i32_256 : i32 to index
    %c0_264 = arith.constant 0 : index
    %1029 = vector.load %arg6[%c0_263, %1028, %c0_264] : memref<8x16x32xf32, #tpu.memory_space<vmem>>, vector<8x1x32xf32>
    %1030 = vector.shape_cast %1029 : vector<8x1x32xf32> to vector<8x32xf32>
    %1031 = vector.shape_cast %1027 : vector<8x32xf32> to vector<8x1x32xf32>
    tpu.vector_store %arg6[%c0_263, %1028, %c0_264], %1031 {strides = array<i32>} : memref<8x16x32xf32, #tpu.memory_space<vmem>>, vector<8x1x32xf32>,
    %c13_i32_265 = arith.constant 13 : i32
    %c0_266 = arith.constant 0 : index
    %1032 = arith.index_cast %c13_i32_265 : i32 to index
    %c0_267 = arith.constant 0 : index
    %1033 = vector.load %arg7[%c0_266, %1032, %c0_267] : memref<8x16x32xf32, #tpu.memory_space<vmem>>, vector<8x1x32xf32>
    %1034 = vector.shape_cast %1033 : vector<8x1x32xf32> to vector<8x32xf32>
    %1035 = tpu.concatenate %1034, %1027 in 1 : vector<8x32xf32>, vector<8x32xf32> -> vector<8x64xf32>
    %cst_268 = arith.constant dense<0.000000e+00> : vector<8x128xf32>
    %1036 = tpu.matmul %1035, %571, %cst_268 {dimension_numbers = #tpu.dot_dimension_numbers<[1], [0], [0], [1], [0, 0, 1, 1], [], []>} : vector<8x64xf32>, vector<64x128xf32>, vector<8x128xf32> -> vector<8x128xf32>
    %1037 = arith.addf %1036, %574 : vector<8x128xf32>
    %1038 = vector.extract_strided_slice %1037 {offsets = [0, 0], sizes = [8, 32], strides = [1, 1]} : vector<8x128xf32> to vector<8x32xf32>
    %1039 = arith.negf %1038 : vector<8x32xf32>
    %1040 = math.exp %1039 : vector<8x32xf32>
    %cst_269 = arith.constant 1.000000e+00 : f32
    %1041 = vector.broadcast %cst_269 : f32 to vector<8x32xf32>
    %1042 = arith.addf %1041, %1040 : vector<8x32xf32>
    %1043 = arith.divf %1041, %1042 : vector<8x32xf32>
    %1044 = vector.extract_strided_slice %1037 {offsets = [0, 32], sizes = [8, 32], strides = [1, 1]} : vector<8x128xf32> to vector<8x32xf32>
    %1045 = arith.negf %1044 : vector<8x32xf32>
    %1046 = math.exp %1045 : vector<8x32xf32>
    %cst_270 = arith.constant 1.000000e+00 : f32
    %1047 = vector.broadcast %cst_270 : f32 to vector<8x32xf32>
    %1048 = arith.addf %1047, %1046 : vector<8x32xf32>
    %1049 = arith.divf %1047, %1048 : vector<8x32xf32>
    %1050 = vector.extract_strided_slice %1037 {offsets = [0, 64], sizes = [8, 32], strides = [1, 1]} : vector<8x128xf32> to vector<8x32xf32>
    %1051 = math.tanh %1050 : vector<8x32xf32>
    %1052 = vector.extract_strided_slice %1037 {offsets = [0, 96], sizes = [8, 32], strides = [1, 1]} : vector<8x128xf32> to vector<8x32xf32>
    %1053 = arith.negf %1052 : vector<8x32xf32>
    %1054 = math.exp %1053 : vector<8x32xf32>
    %cst_271 = arith.constant 1.000000e+00 : f32
    %1055 = vector.broadcast %cst_271 : f32 to vector<8x32xf32>
    %1056 = arith.addf %1055, %1054 : vector<8x32xf32>
    %1057 = arith.divf %1055, %1056 : vector<8x32xf32>
    %1058 = arith.mulf %1049, %1025 : vector<8x32xf32>
    %1059 = arith.mulf %1043, %1051 : vector<8x32xf32>
    %1060 = arith.addf %1058, %1059 : vector<8x32xf32>
    %1061 = math.tanh %1060 : vector<8x32xf32>
    %1062 = arith.mulf %1057, %1061 : vector<8x32xf32>
    %c0_272 = arith.constant 0 : index
    %1063 = arith.index_cast %c13_i32_265 : i32 to index
    %c0_273 = arith.constant 0 : index
    %1064 = vector.load %arg6[%c0_272, %1063, %c0_273] : memref<8x16x32xf32, #tpu.memory_space<vmem>>, vector<8x1x32xf32>
    %1065 = vector.shape_cast %1064 : vector<8x1x32xf32> to vector<8x32xf32>
    %1066 = vector.shape_cast %1062 : vector<8x32xf32> to vector<8x1x32xf32>
    tpu.vector_store %arg6[%c0_272, %1063, %c0_273], %1066 {strides = array<i32>} : memref<8x16x32xf32, #tpu.memory_space<vmem>>, vector<8x1x32xf32>,
    %c14_i32_274 = arith.constant 14 : i32
    %c0_275 = arith.constant 0 : index
    %1067 = arith.index_cast %c14_i32_274 : i32 to index
    %c0_276 = arith.constant 0 : index
    %1068 = vector.load %arg7[%c0_275, %1067, %c0_276] : memref<8x16x32xf32, #tpu.memory_space<vmem>>, vector<8x1x32xf32>
    %1069 = vector.shape_cast %1068 : vector<8x1x32xf32> to vector<8x32xf32>
    %1070 = tpu.concatenate %1069, %1062 in 1 : vector<8x32xf32>, vector<8x32xf32> -> vector<8x64xf32>
    %cst_277 = arith.constant dense<0.000000e+00> : vector<8x128xf32>
    %1071 = tpu.matmul %1070, %571, %cst_277 {dimension_numbers = #tpu.dot_dimension_numbers<[1], [0], [0], [1], [0, 0, 1, 1], [], []>} : vector<8x64xf32>, vector<64x128xf32>, vector<8x128xf32> -> vector<8x128xf32>
    %1072 = arith.addf %1071, %574 : vector<8x128xf32>
    %1073 = vector.extract_strided_slice %1072 {offsets = [0, 0], sizes = [8, 32], strides = [1, 1]} : vector<8x128xf32> to vector<8x32xf32>
    %1074 = arith.negf %1073 : vector<8x32xf32>
    %1075 = math.exp %1074 : vector<8x32xf32>
    %cst_278 = arith.constant 1.000000e+00 : f32
    %1076 = vector.broadcast %cst_278 : f32 to vector<8x32xf32>
    %1077 = arith.addf %1076, %1075 : vector<8x32xf32>
    %1078 = arith.divf %1076, %1077 : vector<8x32xf32>
    %1079 = vector.extract_strided_slice %1072 {offsets = [0, 32], sizes = [8, 32], strides = [1, 1]} : vector<8x128xf32> to vector<8x32xf32>
    %1080 = arith.negf %1079 : vector<8x32xf32>
    %1081 = math.exp %1080 : vector<8x32xf32>
    %cst_279 = arith.constant 1.000000e+00 : f32
    %1082 = vector.broadcast %cst_279 : f32 to vector<8x32xf32>
    %1083 = arith.addf %1082, %1081 : vector<8x32xf32>
    %1084 = arith.divf %1082, %1083 : vector<8x32xf32>
    %1085 = vector.extract_strided_slice %1072 {offsets = [0, 64], sizes = [8, 32], strides = [1, 1]} : vector<8x128xf32> to vector<8x32xf32>
    %1086 = math.tanh %1085 : vector<8x32xf32>
    %1087 = vector.extract_strided_slice %1072 {offsets = [0, 96], sizes = [8, 32], strides = [1, 1]} : vector<8x128xf32> to vector<8x32xf32>
    %1088 = arith.negf %1087 : vector<8x32xf32>
    %1089 = math.exp %1088 : vector<8x32xf32>
    %cst_280 = arith.constant 1.000000e+00 : f32
    %1090 = vector.broadcast %cst_280 : f32 to vector<8x32xf32>
    %1091 = arith.addf %1090, %1089 : vector<8x32xf32>
    %1092 = arith.divf %1090, %1091 : vector<8x32xf32>
    %1093 = arith.mulf %1084, %1060 : vector<8x32xf32>
    %1094 = arith.mulf %1078, %1086 : vector<8x32xf32>
    %1095 = arith.addf %1093, %1094 : vector<8x32xf32>
    %1096 = math.tanh %1095 : vector<8x32xf32>
    %1097 = arith.mulf %1092, %1096 : vector<8x32xf32>
    %c0_281 = arith.constant 0 : index
    %1098 = arith.index_cast %c14_i32_274 : i32 to index
    %c0_282 = arith.constant 0 : index
    %1099 = vector.load %arg6[%c0_281, %1098, %c0_282] : memref<8x16x32xf32, #tpu.memory_space<vmem>>, vector<8x1x32xf32>
    %1100 = vector.shape_cast %1099 : vector<8x1x32xf32> to vector<8x32xf32>
    %1101 = vector.shape_cast %1097 : vector<8x32xf32> to vector<8x1x32xf32>
    tpu.vector_store %arg6[%c0_281, %1098, %c0_282], %1101 {strides = array<i32>} : memref<8x16x32xf32, #tpu.memory_space<vmem>>, vector<8x1x32xf32>,
    %c15_i32_283 = arith.constant 15 : i32
    %c0_284 = arith.constant 0 : index
    %1102 = arith.index_cast %c15_i32_283 : i32 to index
    %c0_285 = arith.constant 0 : index
    %1103 = vector.load %arg7[%c0_284, %1102, %c0_285] : memref<8x16x32xf32, #tpu.memory_space<vmem>>, vector<8x1x32xf32>
    %1104 = vector.shape_cast %1103 : vector<8x1x32xf32> to vector<8x32xf32>
    %1105 = tpu.concatenate %1104, %1097 in 1 : vector<8x32xf32>, vector<8x32xf32> -> vector<8x64xf32>
    %cst_286 = arith.constant dense<0.000000e+00> : vector<8x128xf32>
    %1106 = tpu.matmul %1105, %571, %cst_286 {dimension_numbers = #tpu.dot_dimension_numbers<[1], [0], [0], [1], [0, 0, 1, 1], [], []>} : vector<8x64xf32>, vector<64x128xf32>, vector<8x128xf32> -> vector<8x128xf32>
    %1107 = arith.addf %1106, %574 : vector<8x128xf32>
    %1108 = vector.extract_strided_slice %1107 {offsets = [0, 0], sizes = [8, 32], strides = [1, 1]} : vector<8x128xf32> to vector<8x32xf32>
    %1109 = arith.negf %1108 : vector<8x32xf32>
    %1110 = math.exp %1109 : vector<8x32xf32>
    %cst_287 = arith.constant 1.000000e+00 : f32
    %1111 = vector.broadcast %cst_287 : f32 to vector<8x32xf32>
    %1112 = arith.addf %1111, %1110 : vector<8x32xf32>
    %1113 = arith.divf %1111, %1112 : vector<8x32xf32>
    %1114 = vector.extract_strided_slice %1107 {offsets = [0, 32], sizes = [8, 32], strides = [1, 1]} : vector<8x128xf32> to vector<8x32xf32>
    %1115 = arith.negf %1114 : vector<8x32xf32>
    %1116 = math.exp %1115 : vector<8x32xf32>
    %cst_288 = arith.constant 1.000000e+00 : f32
    %1117 = vector.broadcast %cst_288 : f32 to vector<8x32xf32>
    %1118 = arith.addf %1117, %1116 : vector<8x32xf32>
    %1119 = arith.divf %1117, %1118 : vector<8x32xf32>
    %1120 = vector.extract_strided_slice %1107 {offsets = [0, 64], sizes = [8, 32], strides = [1, 1]} : vector<8x128xf32> to vector<8x32xf32>
    %1121 = math.tanh %1120 : vector<8x32xf32>
    %1122 = vector.extract_strided_slice %1107 {offsets = [0, 96], sizes = [8, 32], strides = [1, 1]} : vector<8x128xf32> to vector<8x32xf32>
    %1123 = arith.negf %1122 : vector<8x32xf32>
    %1124 = math.exp %1123 : vector<8x32xf32>
    %cst_289 = arith.constant 1.000000e+00 : f32
    %1125 = vector.broadcast %cst_289 : f32 to vector<8x32xf32>
    %1126 = arith.addf %1125, %1124 : vector<8x32xf32>
    %1127 = arith.divf %1125, %1126 : vector<8x32xf32>
    %1128 = arith.mulf %1119, %1095 : vector<8x32xf32>
    %1129 = arith.mulf %1113, %1121 : vector<8x32xf32>
    %1130 = arith.addf %1128, %1129 : vector<8x32xf32>
    %1131 = math.tanh %1130 : vector<8x32xf32>
    %1132 = arith.mulf %1127, %1131 : vector<8x32xf32>
    %c0_290 = arith.constant 0 : index
    %1133 = arith.index_cast %c15_i32_283 : i32 to index
    %c0_291 = arith.constant 0 : index
    %1134 = vector.load %arg6[%c0_290, %1133, %c0_291] : memref<8x16x32xf32, #tpu.memory_space<vmem>>, vector<8x1x32xf32>
    %1135 = vector.shape_cast %1134 : vector<8x1x32xf32> to vector<8x32xf32>
    %1136 = vector.shape_cast %1132 : vector<8x32xf32> to vector<8x1x32xf32>
    tpu.vector_store %arg6[%c0_290, %1133, %c0_291], %1136 {strides = array<i32>} : memref<8x16x32xf32, #tpu.memory_space<vmem>>, vector<8x1x32xf32>,
    %c16_i32_292 = arith.constant 16 : i32
    %c0_293 = arith.constant 0 : index
    %c0_294 = arith.constant 0 : index
    %1137 = vector.load %arg10[%c0_293, %c0_294] : memref<8x32xf32, #tpu.memory_space<vmem>>, vector<8x32xf32>
    tpu.vector_store %arg10[%c0_293, %c0_294], %1132 {strides = array<i32>} : memref<8x32xf32, #tpu.memory_space<vmem>>, vector<8x32xf32>,
    %c0_295 = arith.constant 0 : index
    %c0_296 = arith.constant 0 : index
    %1138 = vector.load %arg11[%c0_295, %c0_296] : memref<8x32xf32, #tpu.memory_space<vmem>>, vector<8x32xf32>
    tpu.vector_store %arg11[%c0_295, %c0_296], %1130 {strides = array<i32>} : memref<8x32xf32, #tpu.memory_space<vmem>>, vector<8x32xf32>,
    return
  }
  func.func @transform_0(%arg0: i32) -> (i32, i32, i32) {
    %c0_i32 = arith.constant 0 : i32
    %c0_i32_0 = arith.constant 0 : i32
    %c0_i32_1 = arith.constant 0 : i32
    return %c0_i32, %arg0, %c0_i32_0 : i32, i32, i32
  }
  func.func @transform_1(%arg0: i32) -> (i32, i32) {
    %c0_i32 = arith.constant 0 : i32
    %c0_i32_0 = arith.constant 0 : i32
    %c0_i32_1 = arith.constant 0 : i32
    return %c0_i32, %c0_i32_0 : i32, i32
  }
  func.func @transform_2(%arg0: i32) -> (i32, i32) {
    %c0_i32 = arith.constant 0 : i32
    %c0_i32_0 = arith.constant 0 : i32
    %c0_i32_1 = arith.constant 0 : i32
    return %c0_i32, %c0_i32_0 : i32, i32
  }
  func.func @transform_3(%arg0: i32) -> (i32, i32) {
    %c0_i32 = arith.constant 0 : i32
    %c0_i32_0 = arith.constant 0 : i32
    %c0_i32_1 = arith.constant 0 : i32
    return %c0_i32, %c0_i32_0 : i32, i32
  }
  func.func @transform_4(%arg0: i32) -> (i32, i32) {
    %c0_i32 = arith.constant 0 : i32
    %c0_i32_0 = arith.constant 0 : i32
    %c0_i32_1 = arith.constant 0 : i32
    return %c0_i32, %c0_i32_0 : i32, i32
  }
  func.func @transform_5(%arg0: i32) -> (i32, i32, i32) {
    %c0_i32 = arith.constant 0 : i32
    %c0_i32_0 = arith.constant 0 : i32
    %c0_i32_1 = arith.constant 0 : i32
    return %c0_i32, %arg0, %c0_i32_0 : i32, i32, i32
  }
}

</mosaic_0001>

<bundles_post_ra>
// kernel: lstm_clip_forward.1
= control target key start
LH: loop header
LB: loop body
LE: loop exit
PB: predicated region body
PF: predicated region fallthrough
CT: control target
= control target key end

     0   :  { %s5578_s18 = smov 0   ;;  %s5580_s19 = smov 0   ;;  %s7754_s0 = inlined_call_operand.vmem [shape: f32[8,32,16], index: 0, kind: input, shape index: {}]   ;;  %s7755_s1 = inlined_call_operand.vmem [shape: f32[48,128], index: 1, kind: input, shape index: {}]   ;;  %s7756_s2 = inlined_call_operand.vmem [shape: f32[1,128], index: 2, kind: input, shape index: {}]   ;;  %s7757_s3 = inlined_call_operand.vmem [shape: f32[64,128], index: 3, kind: input, shape index: {}]   ;;  %s7758_s4 = inlined_call_operand.vmem [shape: f32[1,128], index: 4, kind: input, shape index: {}]   ;;  %s7759_s5 = inlined_call_operand.vmem [shape: f32[8,32,32], index: 5, kind: output, shape index: {}]  }
   0x1   :  { %s5582_s20 = smov 0  }
   0x2 LB: > { %s5594_s21 = sadd.s32 4294967295, %s5540_s20   ;;  %s5597_s22 = sadd.s32 1, %s5540_s20   ;;  %s5540_s20 = sphi %s5582_s20, %s7804_s20   ;;  %s5536_s19 = sphi %s5580_s19, %s7803_s19   ;;  %s5532_s18 = sphi %s5578_s18, %s7802_s18  }
   0x3   : > { %s19_s23 = ssub.s32 %s5540_s20, %s5597_s22  ;;  %s22_s24 = sadd.s32 1, %s5536_s19 }
   0x4   : > { %p20_p0 = scmp.eq.s32.totalorder %s19_s23, 0  ;;  %p29_p1 = scmp.ne.s32.totalorder %s5536_s19, %s5532_s18 }
   0x5   : > { %p30_p2 = scmp.eq.s32.totalorder %s5540_s20, 0  ;;  %p143_p3 = scmp.eq.s32.totalorder %s5594_s21, 1 }
   0x6   : > { %s5607_s25 = scalar_select %p20_p0, %s5536_s19, %s22_s24  }
   0x7   : > { %p31_p4 = por %p30_p2, %p29_p1  ;;  %p5609_p5 = por %p143_p3, %p29_p1 }
   0x8   : > { %p5130_p6 = scmp.ge.s32.totalorder %s5540_s20, 2 }
   0xa   : > { %177 = sbr.rel (%p5130_p6) target bundleno = 35 (0x23), region = 32 }
   0xf   : > { %180 = sbr.rel (!%p31_p4) target bundleno = 35 (0x23), region = 36  ;;  %s182_s27 = sand.u32 (%p31_p4), 1, %s5536_s19  }
  0x10   : > { %s5207_s28 = sshll.u32 (%p31_p4), %s5540_s20, 4  ;;  %s5131_s29 = sshll.u32 (%p31_p4), %s182_s27, 7 }
  0x11   : > { %s5619_s7 = scalar_lea.vmem (%p31_p4), %s7754_s0, %s5207_s28  ;;  %s184_s8 = scalar_lea.vmem (%p31_p4), [#allocation7], %s5131_s29 }
  0x12   : > { %v246_v0 = vld [vmem:[%s5619_s7] sm:$0xff] (%p31_p4)  ;;  %v248_v1 = vld [vmem:[%s5619_s7 + $0x8] sm:$0xff] (%p31_p4) }
  0x13   : > { %v250_v2 = vld [vmem:[%s5619_s7 + $0x20] sm:$0xff] (%p31_p4)  ;;  %247 = vst [vmem:[%s184_s8] sm:$0xff] (%p31_p4), %v246_v0  ;;  %v252_v3 = vld [vmem:[%s5619_s7 + $0x28] sm:$0xff] (%p31_p4) }
  0x14   : > { %249 = vst [vmem:[%s184_s8 + $0x8] sm:$0xff] %v248_v1  ;;  %v254_v4 = vld [vmem:[%s5619_s7 + $0x40] sm:$0xff]  ;;  %v256_v5 = vld [vmem:[%s5619_s7 + $0x48] sm:$0xff] }
  0x15   : > { %251 = vst [vmem:[%s184_s8 + $0x10] sm:$0xff] %v250_v2  ;;  %v258_v6 = vld [vmem:[%s5619_s7 + $0x60] sm:$0xff]  ;;  %v260_v7 = vld [vmem:[%s5619_s7 + $0x68] sm:$0xff] }
  0x16   : > { %253 = vst [vmem:[%s184_s8 + $0x18] sm:$0xff] %v252_v3  ;;  %v262_v8 = vld [vmem:[%s5619_s7 + $0x80] sm:$0xff]  ;;  %v264_v9 = vld [vmem:[%s5619_s7 + $0x88] sm:$0xff] }
  0x17   : > { %255 = vst [vmem:[%s184_s8 + $0x20] sm:$0xff] %v254_v4  ;;  %v266_v10 = vld [vmem:[%s5619_s7 + $0xa0] sm:$0xff]  ;;  %v268_v11 = vld [vmem:[%s5619_s7 + $0xa8] sm:$0xff] }
  0x18   : > { %257 = vst [vmem:[%s184_s8 + $0x28] sm:$0xff] %v256_v5  ;;  %v270_v12 = vld [vmem:[%s5619_s7 + $0xc0] sm:$0xff]  ;;  %v272_v13 = vld [vmem:[%s5619_s7 + $0xc8] sm:$0xff] }
  0x19   : > { %259 = vst [vmem:[%s184_s8 + $0x30] sm:$0xff] %v258_v6  ;;  %v274_v14 = vld [vmem:[%s5619_s7 + $0xe0] sm:$0xff]  ;;  %v276_v15 = vld [vmem:[%s5619_s7 + $0xe8] sm:$0xff] }
  0x1a   : > { %261 = vst [vmem:[%s184_s8 + $0x38] sm:$0xff] %v260_v7 }
  0x1b   : > { %263 = vst [vmem:[%s184_s8 + $0x40] sm:$0xff] %v262_v8 }
  0x1c   : > { %265 = vst [vmem:[%s184_s8 + $0x48] sm:$0xff] %v264_v9 }
  0x1d   : > { %267 = vst [vmem:[%s184_s8 + $0x50] sm:$0xff] %v266_v10 }
  0x1e   : > { %269 = vst [vmem:[%s184_s8 + $0x58] sm:$0xff] %v268_v11 }
  0x1f   : > { %271 = vst [vmem:[%s184_s8 + $0x60] sm:$0xff] %v270_v12 }
  0x20   : > { %273 = vst [vmem:[%s184_s8 + $0x68] sm:$0xff] %v272_v13 }
  0x21   : > { %275 = vst [vmem:[%s184_s8 + $0x70] sm:$0xff] %v274_v14 }
  0x22   : > { %277 = vst [vmem:[%s184_s8 + $0x78] sm:$0xff] %v276_v15 }
  0x23 PF: > { %p5134_p7 = scmp.ge.s32.totalorder %s5540_s20, 1  ;;  %p282_p8 = scmp.lt.s32.totalorder %s5540_s20, 3 }
  0x25   : > { %p283_p9 = pnand %p5134_p7, %p282_p8 }
  0x26   : > { %s289_s9 = sand.u32 (!%p283_p9), 1, %s5532_s18   ;;  %p5137_p10 = scmp.ne.s32.totalorder (!%p283_p9), %s5594_s21, 0 }
  0x27   : > { %286 = sbr.rel (%p283_p9) target bundleno = 16291 (0x3fa3), region = 74  ;;  %s5135_s10 = sshll.u32 (!%p283_p9), %s289_s9, 7 }
  0x28   : > { %s5640_s11 = scalar_lea.vmem (!%p283_p9), [#allocation7], %s5135_s10  ;;  %s5642_s12 = scalar_lea.vmem (!%p283_p9), [#allocation8], %s5135_s10 }
  0x2c   : > { %320 = sbr.rel (%p5137_p10) target bundleno = 54 (0x36), region = 82 }
  0x31   : > { %vm321_vm0 = vcmask 261120   ;;  %v5542_v16 = vmov 0.0  }
  0x32   : > { %322 = vst.msk [vmem:[#allocation3] sm:$0xff] %vm321_vm0, %v5542_v16 }
  0x33   : > { %323 = vst.msk [vmem:[#allocation4] sm:$0xff] %vm321_vm0, %v5542_v16 }
  0x34   : > { %324 = vst.msk [vmem:[#allocation5] sm:$0xff] %vm321_vm0, %v5542_v16 }
  0x35   : > { %325 = vst.msk [vmem:[#allocation6] sm:$0xff] %vm321_vm0, %v5542_v16 }
  0x36 PF: > { %v5648_v18 = vld [vmem:[%s7755_s1 + $0x28] sm:$0xff]  ;;  %v5653_v19 = vld [vmem:[%s7755_s1 + $0x20] sm:$0xff]  ;;  %s5543_s17 = smov 16   ;;  %v5659_v20 = vld [vmem:[%s7755_s1 + $0x18] sm:$0xff]  ;;  %s5544_s6 = smov 32   ;;  %vm355_vm1 = vcmask 1041409  }
  0x37   : > { %396 = vmatpush.msra.mxu0 %v5648_v18  ;;  %544 = vmatpush.msra.mxu1 %v5648_v18  ;;  %v5668_v21 = vld [vmem:[%s7755_s1 + $0x10] sm:$0xff]  ;;  %v5677_v22 = vld [vmem:[%s7755_s1 + $0x8] sm:$0xff]  ;;  %v5693_v23 = vld [vmem:[%s7755_s1] sm:$0xff]  ;;  %vm358_vm2 = vcmask 1042434   ;;  %vm361_vm3 = vcmask 1043459   ;;  %vm364_vm4 = vcmask 1044484  }
  0x38   : > { %687 = vmatpush.msra.mxu2 %v5648_v18  ;;  %830 = vmatpush.msra.mxu3 %v5648_v18  ;;  %v339_v25 = vld [vmem:[%s5640_s11 + $0x10] sm:$0x1]  ;;  %v340_v26 = vld [vmem:[%s5640_s11 + $0x20] sm:$0x1]  ;;  %vm367_vm5 = vcmask 1045509   ;;  %vm370_vm6 = vcmask 1046534  }
  0x39   : > { %v336_v17 = vld [vmem:[#allocation3] sm:$0xff]  ;;  %397 = vmatpush.msra.mxu0 %v5653_v19  ;;  %545 = vmatpush.msra.mxu1 %v5653_v19  ;;  %v354_v27 = vrot.slane %v339_v25, 7  ;;  %v341_v29 = vld [vmem:[%s5640_s11 + $0x30] sm:$0x1]  ;;  %v357_v30 = vrot.slane %v340_v26, 6  ;;  %vm373_vm7 = vcmask 1047559  }
  0x3a   : > { %377 = vrot.lane.b32.xlu0 %v336_v17, %s5543_s17  ;;  %688 = vmatpush.msra.mxu2 %v5653_v19  ;;  %v337_v24 = vld [vmem:[#allocation4] sm:$0xff]  ;;  %v338_v28 = vld [vmem:[%s5640_s11] sm:$0x1]  ;;  %v360_v33 = vrot.slane %v341_v29, 5  ;;  %v343_v35 = vld [vmem:[%s5640_s11 + $0x50] sm:$0x1] }
  0x3b   : > { %398 = vmatpush.msra.mxu0 %v5659_v20  ;;  %831 = vmatpush.msra.mxu3 %v5653_v19  ;;  %v356_v31 = vsel %vm355_vm1, %v354_v27, %v338_v28  ;;  %v342_v32 = vld [vmem:[%s5640_s11 + $0x40] sm:$0x1]  ;;  %v366_v39 = vrot.slane %v343_v35, 3  ;;  %v345_v41 = vld [vmem:[%s5640_s11 + $0x70] sm:$0x1]  ;;  %vm7763_vm8 = vcmask 130048  }
  0x3c   : > { %546 = vmatpush.msra.mxu1 %v5659_v20  ;;  %689 = vmatpush.msra.mxu2 %v5659_v20  ;;  %v359_v34 = vsel %vm358_vm2, %v357_v30, %v356_v31  ;;  %v363_v36 = vrot.slane %v342_v32, 4  ;;  %v344_v38 = vld [vmem:[%s5640_s11 + $0x60] sm:$0x1]  ;;  %v372_v44 = vrot.slane %v345_v41, 1  ;;  %vm7762_vm9 = vcmask 392192   ;;  %s5545_s9 = smov 64  }
  0x3d   : > { %399 = vmatpush.msra.mxu0 %v5668_v21  ;;  %832 = vmatpush.msra.mxu3 %v5659_v20  ;;  %v362_v37 = vsel %vm361_vm3, %v360_v33, %v359_v34  ;;  %v369_v42 = vrot.slane %v344_v38, 2  ;;  %v5750_v49 = vld [vmem:[%s7756_s2] ss:$0 sm:$0xff]  ;;  %s5546_s10 = smov 48   ;;  %v497_v11 = vld [vmem:[%s5640_s11 + $0x11] sm:$0x1] }
  0x3e   : > { %547 = vmatpush.msra.mxu1 %v5668_v21  ;;  %690 = vmatpush.msra.mxu2 %v5668_v21  ;;  %v365_v40 = vsel %vm364_vm4, %v363_v36, %v362_v37  ;;  %v498_v12 = vld [vmem:[%s5640_s11 + $0x21] sm:$0x1]  ;;  %v512_v13 = vrot.slane %v497_v11, 7  ;;  %v499_v15 = vld [vmem:[%s5640_s11 + $0x31] sm:$0x1]  ;;  %s5547_s27 = smov 96  }
  0x3f   : > { %400 = vmatpush.msra.mxu0 %v5677_v22  ;;  %833 = vmatpush.msra.mxu3 %v5668_v21  ;;  %v368_v43 = vsel %vm367_vm5, %v366_v39, %v365_v40  ;;  %v496_v14 = vld [vmem:[%s5640_s11 + $0x1] sm:$0x1]  ;;  %v514_v16 = vrot.slane %v498_v12, 6  ;;  %v516_v25 = vrot.slane %v499_v15, 5  ;;  %v501_v27 = vld [vmem:[%s5640_s11 + $0x51] sm:$0x1] }
  0x40   : > { %548 = vmatpush.msra.mxu1 %v5677_v22  ;;  %691 = vmatpush.msra.mxu2 %v5677_v22  ;;  %v371_v45 = vsel %vm370_vm6, %v369_v42, %v368_v43  ;;  %v513_v17 = vsel %vm355_vm1, %v512_v13, %v496_v14  ;;  %v502_v30 = vld [vmem:[%s5640_s11 + $0x61] sm:$0x1]  ;;  %v520_v31 = vrot.slane %v501_v27, 3  ;;  %v503_v33 = vld [vmem:[%s5640_s11 + $0x71] sm:$0x1] }
  0x41   : > { %834 = vmatpush.msra.mxu3 %v5677_v22  ;;  %401 = vmatpush.msra.mxu0 %v5693_v23  ;;  %v374_v46 = vsel %vm373_vm7, %v372_v44, %v371_v45  ;;  %v515_v26 = vsel %vm358_vm2, %v514_v16, %v513_v17  ;;  %v522_v34 = vrot.slane %v502_v30, 2  ;;  %v524_v36 = vrot.slane %v503_v33, 1  ;;  %v644_v13 = vld [vmem:[%s5640_s11 + $0x52] sm:$0x1]  ;;  %v645_v16 = vld [vmem:[%s5640_s11 + $0x62] sm:$0x1] }
  0x42   : > { %549 = vmatpush.msra.mxu1 %v5693_v23  ;;  %692 = vmatpush.msra.mxu2 %v5693_v23  ;;  %v517_v29 = vsel %vm361_vm3, %v516_v25, %v515_v26  ;;  %v663_v17 = vrot.slane %v644_v13, 3  ;;  %v646_v25 = vld [vmem:[%s5640_s11 + $0x72] sm:$0x1]  ;;  %v665_v26 = vrot.slane %v645_v16, 2 }
  0x43   : > { %835 = vmatpush.msra.mxu3 %v5693_v23  ;;  %427 = vrot.lane.b32.xlu1 %v337_v24, %s5544_s6  ;;  %v500_v24 = vld [vmem:[%s5640_s11 + $0x41] sm:$0x1] }
  0x44   : > { %973 = vmatpush.msrb.mxu0 %v5648_v18  ;;  %1116 = vmatpush.msrb.mxu1 %v5648_v18  ;;  %v518_v28 = vrot.slane %v500_v24, 4 }
  0x45   : > { %1259 = vmatpush.msrb.mxu2 %v5648_v18  ;;  %1402 = vmatpush.msrb.mxu3 %v5648_v18 }
  0x46   : > { %974 = vmatpush.msrb.mxu0 %v5653_v19  ;;  %1117 = vmatpush.msrb.mxu1 %v5653_v19  ;;  %v519_v32 = vsel %vm364_vm4, %v518_v28, %v517_v29  ;;  %v667_v28 = vrot.slane %v646_v25, 1 }
  0x47   : > { %1260 = vmatpush.msrb.mxu2 %v5653_v19  ;;  %1403 = vmatpush.msrb.mxu3 %v5653_v19  ;;  %v521_v35 = vsel %vm367_vm5, %v520_v31, %v519_v32 }
  0x48   : > { %975 = vmatpush.msrb.mxu0 %v5659_v20  ;;  %1118 = vmatpush.msrb.mxu1 %v5659_v20  ;;  %v523_v37 = vsel %vm370_vm6, %v522_v34, %v521_v35 }
  0x49   : > { %1261 = vmatpush.msrb.mxu2 %v5659_v20  ;;  %1404 = vmatpush.msrb.mxu3 %v5659_v20  ;;  %v525_v38 = vsel %vm373_vm7, %v524_v36, %v523_v37 }
  0x4a   : > { %976 = vmatpush.msrb.mxu0 %v5668_v21  ;;  %1119 = vmatpush.msrb.mxu1 %v5668_v21 }
  0x4b   : > { %1262 = vmatpush.msrb.mxu2 %v5668_v21  ;;  %1405 = vmatpush.msrb.mxu3 %v5668_v21 }
  0x4c   : > { %977 = vmatpush.msrb.mxu0 %v5677_v22  ;;  %1120 = vmatpush.msrb.mxu1 %v5677_v22 }
  0x4d   : > { %1263 = vmatpush.msrb.mxu2 %v5677_v22  ;;  %1406 = vmatpush.msrb.mxu3 %v5677_v22 }
  0x4e   : > { %978 = vmatpush.msrb.mxu0 %v5693_v23  ;;  %1121 = vmatpush.msrb.mxu1 %v5693_v23 }
  0x4f   : > { %1264 = vmatpush.msrb.mxu2 %v5693_v23  ;;  %1407 = vmatpush.msrb.mxu3 %v5693_v23 }
  0xac   : > { %v378_v47 = vpop.permute.xlu0 %377 }
  0xad   : > { %v381_v48 = vsel %vm7763_vm8, %v374_v46, %v378_v47 }
  0xae   : > { %5138 = vmatmul.msk.f32.vlgmr.msra.gmra.mxu0 %vm7762_vm9, %v381_v48 }
  0xaf   : > { %1545 = vmatpush.msra.mxu0 %v5648_v18 }
  0xb1   : > { %1546 = vmatpush.msra.mxu0 %v5653_v19 }
  0xb3   : > { %1547 = vmatpush.msra.mxu0 %v5659_v20 }
  0xb5   : > { %1548 = vmatpush.msra.mxu0 %v5668_v21  ;;  %v428_v4 = vpop.permute.xlu1 %427 }
  0xb7   : > { %1549 = vmatpush.msra.mxu0 %v5677_v22 }
  0xb9   : > { %1550 = vmatpush.msra.mxu0 %v5693_v23 }
 0x12b   : > { %v403_v50 = vpop.f32.mrf.mxu0 }
 0x12c   : > { %v404_v51 = vadd.f32 %v5750_v49, %v403_v50 }
 0x12e   : > { %5241 = vtanh.f32 %v404_v51  ;;  %v5139_v53 = vmul.f32 -1.442695, %v404_v51 }
 0x130   : > { %5243 = vpow2.f32 %v5139_v53 }
 0x134   : > { %v5242_v52 = vpop.eup %5241 }
 0x135   : > { %432 = vrot.lane.b32.xlu0 %v5242_v52, %s5545_s9 }
 0x136   : > { %v5244_v54 = vpop.eup %5243 }
 0x137   : > { %v409_v55 = vadd.f32 1.0, %v5244_v54 }
 0x139   : > { %5245 = vrcp.f32 %v409_v55  ;;  %v421_v61 = vand.u32 2147483648, %v409_v55  ;;  %vm415_vm11 = vweird.f32 %v409_v55  ;;  %v419_v62 = vand.u32 2147483647, %v409_v55 }
 0x13b   : > { %v422_v0 = vor.u32 1.1754944e-38, %v421_v61  ;;  %vm420_vm13 = vcmp.eq.f32.partialorder %v419_v62, 8.507059e+37 }
 0x13f   : > { %v5246_v56 = vpop.eup %5245 }
 0x140   : > { %v411_v57 = vmul.f32 %v5246_v56, %v409_v55  ;;  %vm416_vm10 = vweird.f32 %v5246_v56 }
 0x141   : > { %vm417_vm12 = vmor %vm415_vm11, %vm416_vm10 }
 0x142   : > { %v412_v58 = vsub.f32 1.0, %v411_v57 }
 0x144   : > { %v413_v59 = vmul.f32 %v5246_v56, %v412_v58 }
 0x146   : > { %v414_v60 = vadd.f32 %v5246_v56, %v413_v59 }
 0x148   : > { %v418_v63 = vsel %vm417_vm12, %v5246_v56, %v414_v60 }
 0x149   : > { %v423_v1 = vsel %vm420_vm13, %v422_v0, %v418_v63 }
 0x14a   : > { %v430_v5 = vmul.f32 %v428_v4, %v423_v1 }
 0x1a7   : > { %v433_v2 = vpop.permute.xlu0 %432 }
 0x1a8   : > { %v435_v3 = vmul.f32 %v433_v2, %v423_v1  ;;  %v640_v2 = vld [vmem:[%s5640_s11 + $0x12] sm:$0x1] }
 0x1a9   : > { %v655_v4 = vrot.slane %v640_v2, 7  ;;  %v786_v2 = vld [vmem:[%s5640_s11 + $0x43] sm:$0x1] }
 0x1aa   : > { %437 = vrot.lane.b32.xlu1 %v435_v3, %s5544_s6  ;;  %v641_v3 = vld [vmem:[%s5640_s11 + $0x22] sm:$0x1] }
 0x21c   : > { %v438_v6 = vpop.permute.xlu1 %437 }
 0x21d   : > { %v5755_v7 = vadd.f32 %v438_v6, %v430_v5  ;;  %v639_v5 = vld [vmem:[%s5640_s11 + $0x2] sm:$0x1]  ;;  %v642_v6 = vld [vmem:[%s5640_s11 + $0x32] sm:$0x1] }
 0x21e   : > { %v659_v11 = vrot.slane %v642_v6, 5  ;;  %v804_v6 = vrot.slane %v786_v2, 4  ;;  %v931_v2 = vld [vmem:[%s5640_s11 + $0x64] sm:$0x1] }
 0x21f   : > { %5247 = vtanh.f32 %v5755_v7 }
 0x225   : > { %v5248_v8 = vpop.eup %5247 }
 0x226   : > { %443 = vrot.lane.b32.xlu2 %v5248_v8, %s5545_s9  ;;  %v656_v8 = vsel %vm355_vm1, %v655_v4, %v639_v5  ;;  %v787_v5 = vld [vmem:[%s5640_s11 + $0x53] sm:$0x1] }
 0x280   : > { %v444_v9 = vpop.permute.xlu2 %443 }
 0x281   : > { %v5759_v10 = vmul.f32 %v444_v9, %v423_v1  ;;  %v643_v9 = vld [vmem:[%s5640_s11 + $0x42] sm:$0x1] }
 0x282   : > { %v661_v14 = vrot.slane %v643_v9, 4  ;;  %v806_v9 = vrot.slane %v787_v5, 3  ;;  %v932_v5 = vld [vmem:[%s5640_s11 + $0x74] sm:$0x1] }
 0x283   : > { %527 = vrot.lane.b32.xlu2 %v5759_v10, %s5546_s10 }
 0x2dd   : > { %v528_v39 = vpop.permute.xlu2 %527 }
 0x2de   : > { %v530_v40 = vsel %vm7763_vm8, %v525_v38, %v528_v39 }
 0x2df   : > { %5140 = vmatmul.msk.f32.vlgmr.msra.gmra.mxu1 %vm7762_vm9, %v530_v40 }
 0x2e0   : > { %1688 = vmatpush.msra.mxu1 %v5648_v18 }
 0x2e2   : > { %1689 = vmatpush.msra.mxu1 %v5653_v19 }
 0x2e4   : > { %1690 = vmatpush.msra.mxu1 %v5659_v20 }
 0x2e6   : > { %1691 = vmatpush.msra.mxu1 %v5668_v21 }
 0x2e8   : > { %1692 = vmatpush.msra.mxu1 %v5677_v22 }
 0x2ea   : > { %1693 = vmatpush.msra.mxu1 %v5693_v23 }
 0x35c   : > { %v551_v41 = vpop.f32.mrf.mxu1 }
 0x35d   : > { %v552_v42 = vadd.f32 %v5750_v49, %v551_v41 }
 0x35f   : > { %5249 = vtanh.f32 %v552_v42  ;;  %v5141_v44 = vmul.f32 -1.442695, %v552_v42 }
 0x361   : > { %5251 = vpow2.f32 %v5141_v44 }
 0x365   : > { %v5250_v43 = vpop.eup %5249 }
 0x366   : > { %576 = vrot.lane.b32.xlu0 %v5250_v43, %s5545_s9 }
 0x367   : > { %v5252_v45 = vpop.eup %5251 }
 0x368   : > { %v557_v46 = vadd.f32 1.0, %v5252_v45 }
 0x36a   : > { %5253 = vrcp.f32 %v557_v46  ;;  %v569_v53 = vand.u32 2147483648, %v557_v46  ;;  %vm563_vm15 = vweird.f32 %v557_v46  ;;  %v567_v54 = vand.u32 2147483647, %v557_v46 }
 0x36c   : > { %v570_v56 = vor.u32 1.1754944e-38, %v569_v53  ;;  %vm568_vm10 = vcmp.eq.f32.partialorder %v567_v54, 8.507059e+37 }
 0x370   : > { %v5254_v47 = vpop.eup %5253 }
 0x371   : > { %v559_v48 = vmul.f32 %v5254_v47, %v557_v46  ;;  %vm564_vm14 = vweird.f32 %v5254_v47 }
 0x372   : > { %vm565_vm0 = vmor %vm563_vm15, %vm564_vm14 }
 0x373   : > { %v560_v50 = vsub.f32 1.0, %v559_v48 }
 0x375   : > { %v561_v51 = vmul.f32 %v5254_v47, %v560_v50 }
 0x377   : > { %v562_v52 = vadd.f32 %v5254_v47, %v561_v51 }
 0x379   : > { %v566_v55 = vsel %vm565_vm0, %v5254_v47, %v562_v52 }
 0x37a   : > { %v571_v58 = vsel %vm568_vm10, %v570_v56, %v566_v55 }
 0x37b   : > { %v574_v60 = vmul.f32 %v571_v58, %v5755_v7  ;;  %v657_v7 = vrot.slane %v641_v3, 6 }
 0x37d   : > { %v658_v12 = vsel %vm358_vm2, %v657_v7, %v656_v8  ;;  %v788_v8 = vld [vmem:[%s5640_s11 + $0x63] sm:$0x1] }
 0x37e   : > { %v660_v15 = vsel %vm361_vm3, %v659_v11, %v658_v12  ;;  %v789_v12 = vld [vmem:[%s5640_s11 + $0x73] sm:$0x1]  ;;  %v808_v13 = vrot.slane %v788_v8, 2  ;;  %v953_v8 = vrot.slane %v932_v5, 1 }
 0x37f   : > { %v662_v24 = vsel %vm364_vm4, %v661_v14, %v660_v15  ;;  %v810_v15 = vrot.slane %v789_v12, 1 }
 0x380   : > { %v664_v27 = vsel %vm367_vm5, %v663_v17, %v662_v24 }
 0x381   : > { %v666_v29 = vsel %vm370_vm6, %v665_v26, %v664_v27 }
 0x382   : > { %v668_v30 = vsel %vm373_vm7, %v667_v28, %v666_v29 }
 0x3d8   : > { %v577_v57 = vpop.permute.xlu0 %576 }
 0x3d9   : > { %v579_v59 = vmul.f32 %v577_v57, %v571_v58 }
 0x3db   : > { %581 = vrot.lane.b32.xlu1 %v579_v59, %s5544_s6  ;;  %v784_v59 = vld [vmem:[%s5640_s11 + $0x23] sm:$0x1] }
 0x44d   : > { %v582_v61 = vpop.permute.xlu1 %581 }
 0x44e   : > { %v5790_v62 = vadd.f32 %v582_v61, %v574_v60  ;;  %v782_v61 = vld [vmem:[%s5640_s11 + $0x3] sm:$0x1] }
 0x450   : > { %5255 = vtanh.f32 %v5790_v62 }
 0x456   : > { %v5256_v63 = vpop.eup %5255 }
 0x457   : > { %587 = vrot.lane.b32.xlu2 %v5256_v63, %s5545_s9  ;;  %v800_v63 = vrot.slane %v784_v59, 6  ;;  %v929_v59 = vld [vmem:[%s5640_s11 + $0x44] sm:$0x1] }
 0x4b1   : > { %v588_v0 = vpop.permute.xlu2 %587 }
 0x4b2   : > { %v5794_v1 = vmul.f32 %v588_v0, %v571_v58  ;;  %v783_v58 = vld [vmem:[%s5640_s11 + $0x13] sm:$0x1] }
 0x4b3   : > { %v798_v60 = vrot.slane %v783_v58, 7 }
 0x4b4   : > { %670 = vrot.lane.b32.xlu0 %v5794_v1, %s5546_s10 }
 0x4b5   : > { %v799_v0 = vsel %vm355_vm1, %v798_v60, %v782_v61 }
 0x4b6   : > { %v801_v4 = vsel %vm358_vm2, %v800_v63, %v799_v0  ;;  %v947_v63 = vrot.slane %v929_v59, 4 }
 0x526   : > { %v671_v31 = vpop.permute.xlu0 %670 }
 0x527   : > { %v673_v32 = vsel %vm7763_vm8, %v668_v30, %v671_v31 }
 0x528   : > { %5142 = vmatmul.msk.f32.vlgmr.msra.gmra.mxu2 %vm7762_vm9, %v673_v32 }
 0x529   : > { %1831 = vmatpush.msra.mxu2 %v5648_v18 }
 0x52b   : > { %1832 = vmatpush.msra.mxu2 %v5653_v19 }
 0x52d   : > { %1833 = vmatpush.msra.mxu2 %v5659_v20 }
 0x52f   : > { %1834 = vmatpush.msra.mxu2 %v5668_v21 }
 0x531   : > { %1835 = vmatpush.msra.mxu2 %v5677_v22 }
 0x533   : > { %1836 = vmatpush.msra.mxu2 %v5693_v23 }
 0x5ab   : > { %v694_v33 = vpop.f32.mrf.mxu2 }
 0x5ac   : > { %v695_v34 = vadd.f32 %v5750_v49, %v694_v33 }
 0x5ae   : > { %5257 = vtanh.f32 %v695_v34  ;;  %v5143_v36 = vmul.f32 -1.442695, %v695_v34 }
 0x5b0   : > { %5259 = vpow2.f32 %v5143_v36 }
 0x5b4   : > { %v5258_v35 = vpop.eup %5257 }
 0x5b5   : > { %719 = vrot.lane.b32.xlu1 %v5258_v35, %s5545_s9 }
 0x5b6   : > { %v5260_v37 = vpop.eup %5259 }
 0x5b7   : > { %v700_v38 = vadd.f32 1.0, %v5260_v37 }
 0x5b9   : > { %5261 = vrcp.f32 %v700_v38  ;;  %v712_v44 = vand.u32 2147483648, %v700_v38  ;;  %vm706_vm12 = vweird.f32 %v700_v38  ;;  %v710_v45 = vand.u32 2147483647, %v700_v38 }
 0x5bb   : > { %v713_v47 = vor.u32 1.1754944e-38, %v712_v44  ;;  %vm711_vm14 = vcmp.eq.f32.partialorder %v710_v45, 8.507059e+37 }
 0x5bf   : > { %v5262_v39 = vpop.eup %5261 }
 0x5c0   : > { %v702_v40 = vmul.f32 %v5262_v39, %v700_v38  ;;  %vm707_vm11 = vweird.f32 %v5262_v39 }
 0x5c1   : > { %vm708_vm13 = vmor %vm706_vm12, %vm707_vm11 }
 0x5c2   : > { %v703_v41 = vsub.f32 1.0, %v702_v40 }
 0x5c4   : > { %v704_v42 = vmul.f32 %v5262_v39, %v703_v41 }
 0x5c6   : > { %v705_v43 = vadd.f32 %v5262_v39, %v704_v42 }
 0x5c8   : > { %v709_v46 = vsel %vm708_vm13, %v5262_v39, %v705_v43 }
 0x5c9   : > { %v714_v50 = vsel %vm711_vm14, %v713_v47, %v709_v46 }
 0x5ca   : > { %v717_v52 = vmul.f32 %v714_v50, %v5790_v62  ;;  %v785_v62 = vld [vmem:[%s5640_s11 + $0x33] sm:$0x1] }
 0x5cb   : > { %v802_v3 = vrot.slane %v785_v62, 5  ;;  %v930_v62 = vld [vmem:[%s5640_s11 + $0x54] sm:$0x1] }
 0x5cd   : > { %v803_v7 = vsel %vm361_vm3, %v802_v3, %v801_v4  ;;  %v949_v3 = vrot.slane %v930_v62, 3 }
 0x5ce   : > { %v805_v11 = vsel %vm364_vm4, %v804_v6, %v803_v7  ;;  %v951_v6 = vrot.slane %v931_v2, 2 }
 0x5cf   : > { %v807_v14 = vsel %vm367_vm5, %v806_v9, %v805_v11 }
 0x5d0   : > { %v809_v16 = vsel %vm370_vm6, %v808_v13, %v807_v14 }
 0x5d1   : > { %v811_v17 = vsel %vm373_vm7, %v810_v15, %v809_v16 }
 0x627   : > { %v720_v48 = vpop.permute.xlu1 %719 }
 0x628   : > { %v722_v51 = vmul.f32 %v720_v48, %v714_v50 }
 0x62a   : > { %724 = vrot.lane.b32.xlu2 %v722_v51, %s5544_s6  ;;  %v926_v51 = vld [vmem:[%s5640_s11 + $0x14] sm:$0x1] }
 0x684   : > { %v725_v53 = vpop.permute.xlu2 %724 }
 0x685   : > { %v5825_v54 = vadd.f32 %v725_v53, %v717_v52  ;;  %v927_v52 = vld [vmem:[%s5640_s11 + $0x24] sm:$0x1]  ;;  %v941_v53 = vrot.slane %v926_v51, 7 }
 0x687   : > { %5263 = vtanh.f32 %v5825_v54 }
 0x68d   : > { %v5264_v55 = vpop.eup %5263 }
 0x68e   : > { %730 = vrot.lane.b32.xlu0 %v5264_v55, %s5545_s9  ;;  %v928_v55 = vld [vmem:[%s5640_s11 + $0x34] sm:$0x1] }
 0x68f   : > { %v945_v60 = vrot.slane %v928_v55, 5 }
 0x700   : > { %v731_v56 = vpop.permute.xlu0 %730 }
 0x701   : > { %v5829_v57 = vmul.f32 %v731_v56, %v714_v50  ;;  %v943_v56 = vrot.slane %v927_v52, 6 }
 0x703   : > { %813 = vrot.lane.b32.xlu1 %v5829_v57, %s5546_s10 }
 0x775   : > { %v814_v24 = vpop.permute.xlu1 %813 }
 0x776   : > { %v816_v25 = vsel %vm7763_vm8, %v811_v17, %v814_v24 }
 0x777   : > { %5144 = vmatmul.msk.f32.vlgmr.msra.gmra.mxu3 %vm7762_vm9, %v816_v25 }
 0x778   : > { %1974 = vmatpush.msra.mxu3 %v5648_v18 }
 0x77a   : > { %1975 = vmatpush.msra.mxu3 %v5653_v19 }
 0x77c   : > { %1976 = vmatpush.msra.mxu3 %v5659_v20 }
 0x77e   : > { %1977 = vmatpush.msra.mxu3 %v5668_v21 }
 0x780   : > { %1978 = vmatpush.msra.mxu3 %v5677_v22 }
 0x782   : > { %1979 = vmatpush.msra.mxu3 %v5693_v23 }
 0x7fa   : > { %v837_v26 = vpop.f32.mrf.mxu3 }
 0x7fb   : > { %v838_v27 = vadd.f32 %v5750_v49, %v837_v26 }
 0x7fd   : > { %5265 = vtanh.f32 %v838_v27  ;;  %v5145_v29 = vmul.f32 -1.442695, %v838_v27 }
 0x7ff   : > { %5267 = vpow2.f32 %v5145_v29 }
 0x803   : > { %v5266_v28 = vpop.eup %5265 }
 0x804   : > { %862 = vrot.lane.b32.xlu2 %v5266_v28, %s5545_s9 }
 0x805   : > { %v5268_v30 = vpop.eup %5267 }
 0x806   : > { %v843_v31 = vadd.f32 1.0, %v5268_v30 }
 0x808   : > { %5269 = vrcp.f32 %v843_v31  ;;  %v855_v37 = vand.u32 2147483648, %v843_v31  ;;  %vm849_vm0 = vweird.f32 %v843_v31  ;;  %v853_v38 = vand.u32 2147483647, %v843_v31 }
 0x80a   : > { %v856_v40 = vor.u32 1.1754944e-38, %v855_v37  ;;  %vm854_vm11 = vcmp.eq.f32.partialorder %v853_v38, 8.507059e+37 }
 0x80e   : > { %v5270_v32 = vpop.eup %5269 }
 0x80f   : > { %v845_v33 = vmul.f32 %v5270_v32, %v843_v31  ;;  %vm850_vm15 = vweird.f32 %v5270_v32 }
 0x810   : > { %vm851_vm10 = vmor %vm849_vm0, %vm850_vm15 }
 0x811   : > { %v846_v34 = vsub.f32 1.0, %v845_v33 }
 0x813   : > { %v847_v35 = vmul.f32 %v5270_v32, %v846_v34 }
 0x815   : > { %v848_v36 = vadd.f32 %v5270_v32, %v847_v35 }
 0x817   : > { %v852_v39 = vsel %vm851_vm10, %v5270_v32, %v848_v36 }
 0x818   : > { %v857_v42 = vsel %vm854_vm11, %v856_v40, %v852_v39 }
 0x819   : > { %v860_v44 = vmul.f32 %v857_v42, %v5825_v54  ;;  %v925_v54 = vld [vmem:[%s5640_s11 + $0x4] sm:$0x1] }
 0x81a   : > { %v942_v58 = vsel %vm355_vm1, %v941_v53, %v925_v54  ;;  %v1072_v53 = vld [vmem:[%s5640_s11 + $0x45] sm:$0x1] }
 0x81b   : > { %v944_v61 = vsel %vm358_vm2, %v943_v56, %v942_v58  ;;  %v1073_v56 = vld [vmem:[%s5640_s11 + $0x55] sm:$0x1]  ;;  %v1090_v58 = vrot.slane %v1072_v53, 4 }
 0x81c   : > { %v946_v0 = vsel %vm361_vm3, %v945_v60, %v944_v61  ;;  %v1074_v60 = vld [vmem:[%s5640_s11 + $0x65] sm:$0x1]  ;;  %v1092_v61 = vrot.slane %v1073_v56, 3 }
 0x81d   : > { %v948_v4 = vsel %vm364_vm4, %v947_v63, %v946_v0  ;;  %v1075_v63 = vld [vmem:[%s5640_s11 + $0x75] sm:$0x1]  ;;  %v1094_v0 = vrot.slane %v1074_v60, 2 }
 0x81e   : > { %v950_v7 = vsel %vm367_vm5, %v949_v3, %v948_v4  ;;  %v1096_v3 = vrot.slane %v1075_v63, 1 }
 0x81f   : > { %v952_v9 = vsel %vm370_vm6, %v951_v6, %v950_v7 }
 0x820   : > { %v954_v11 = vsel %vm373_vm7, %v953_v8, %v952_v9 }
 0x85e   : > { %v863_v41 = vpop.permute.xlu2 %862 }
 0x85f   : > { %v865_v43 = vmul.f32 %v863_v41, %v857_v42 }
 0x861   : > { %867 = vrot.lane.b32.xlu0 %v865_v43, %s5544_s6 }
 0x8d3   : > { %v868_v45 = vpop.permute.xlu0 %867 }
 0x8d4   : > { %v5860_v46 = vadd.f32 %v868_v45, %v860_v44  ;;  %v1069_v44 = vld [vmem:[%s5640_s11 + $0x15] sm:$0x1]  ;;  %v1070_v45 = vld [vmem:[%s5640_s11 + $0x25] sm:$0x1] }
 0x8d5   : > { %v1086_v51 = vrot.slane %v1070_v45, 6 }
 0x8d6   : > { %5271 = vtanh.f32 %v5860_v46 }
 0x8dc   : > { %v5272_v47 = vpop.eup %5271 }
 0x8dd   : > { %873 = vrot.lane.b32.xlu1 %v5272_v47, %s5545_s9  ;;  %v1068_v47 = vld [vmem:[%s5640_s11 + $0x5] sm:$0x1] }
 0x94f   : > { %v874_v48 = vpop.permute.xlu1 %873 }
 0x950   : > { %v5864_v50 = vmul.f32 %v874_v48, %v857_v42  ;;  %v1071_v48 = vld [vmem:[%s5640_s11 + $0x35] sm:$0x1] }
 0x951   : > { %v1088_v54 = vrot.slane %v1071_v48, 5 }
 0x952   : > { %956 = vrot.lane.b32.xlu2 %v5864_v50, %s5546_s10 }
 0x9ac   : > { %v957_v12 = vpop.permute.xlu2 %956 }
 0x9ad   : > { %v959_v13 = vsel %vm7763_vm8, %v954_v11, %v957_v12 }
 0x9ae   : > { %5146 = vmatmul.msk.f32.vlgmr.msrb.gmra.mxu0 %vm7762_vm9, %v959_v13 }
 0x9af   : > { %2117 = vmatpush.msrb.mxu0 %v5648_v18 }
 0x9b1   : > { %2118 = vmatpush.msrb.mxu0 %v5653_v19 }
 0x9b3   : > { %2119 = vmatpush.msrb.mxu0 %v5659_v20 }
 0x9b5   : > { %2120 = vmatpush.msrb.mxu0 %v5668_v21 }
 0x9b7   : > { %2121 = vmatpush.msrb.mxu0 %v5677_v22 }
 0x9b9   : > { %2122 = vmatpush.msrb.mxu0 %v5693_v23 }
 0xa2b   : > { %v980_v14 = vpop.f32.mrf.mxu0 }
 0xa2c   : > { %v981_v15 = vadd.f32 %v5750_v49, %v980_v14 }
 0xa2e   : > { %5273 = vtanh.f32 %v981_v15  ;;  %v5147_v17 = vmul.f32 -1.442695, %v981_v15 }
 0xa30   : > { %5275 = vpow2.f32 %v5147_v17 }
 0xa34   : > { %v5274_v16 = vpop.eup %5273 }
 0xa35   : > { %1005 = vrot.lane.b32.xlu0 %v5274_v16, %s5545_s9 }
 0xa36   : > { %v5276_v24 = vpop.eup %5275 }
 0xa37   : > { %v986_v25 = vadd.f32 1.0, %v5276_v24 }
 0xa39   : > { %5277 = vrcp.f32 %v986_v25  ;;  %v998_v31 = vand.u32 2147483648, %v986_v25  ;;  %vm992_vm13 = vweird.f32 %v986_v25  ;;  %v996_v32 = vand.u32 2147483647, %v986_v25 }
 0xa3b   : > { %v999_v34 = vor.u32 1.1754944e-38, %v998_v31  ;;  %vm997_vm15 = vcmp.eq.f32.partialorder %v996_v32, 8.507059e+37 }
 0xa3f   : > { %v5278_v26 = vpop.eup %5277 }
 0xa40   : > { %v988_v27 = vmul.f32 %v5278_v26, %v986_v25  ;;  %vm993_vm12 = vweird.f32 %v5278_v26 }
 0xa41   : > { %vm994_vm14 = vmor %vm992_vm13, %vm993_vm12 }
 0xa42   : > { %v989_v28 = vsub.f32 1.0, %v988_v27 }
 0xa44   : > { %v990_v29 = vmul.f32 %v5278_v26, %v989_v28 }
 0xa46   : > { %v991_v30 = vadd.f32 %v5278_v26, %v990_v29 }
 0xa48   : > { %v995_v33 = vsel %vm994_vm14, %v5278_v26, %v991_v30 }
 0xa49   : > { %v1000_v36 = vsel %vm997_vm15, %v999_v34, %v995_v33 }
 0xa4a   : > { %v1003_v38 = vmul.f32 %v1000_v36, %v5860_v46  ;;  %v1084_v46 = vrot.slane %v1069_v44, 7  ;;  %v1214_v44 = vld [vmem:[%s5640_s11 + $0x36] sm:$0x1] }
 0xa4b   : > { %v1231_v48 = vrot.slane %v1214_v44, 5  ;;  %v1360_v44 = vld [vmem:[%s5640_s11 + $0x67] sm:$0x1] }
 0xa4c   : > { %v1085_v52 = vsel %vm355_vm1, %v1084_v46, %v1068_v47  ;;  %v1215_v47 = vld [vmem:[%s5640_s11 + $0x46] sm:$0x1] }
 0xa4d   : > { %v1087_v55 = vsel %vm358_vm2, %v1086_v51, %v1085_v52  ;;  %v1216_v52 = vld [vmem:[%s5640_s11 + $0x56] sm:$0x1]  ;;  %v1233_v53 = vrot.slane %v1215_v47, 4  ;;  %v1361_v47 = vld [vmem:[%s5640_s11 + $0x77] sm:$0x1] }
 0xa4e   : > { %v1089_v59 = vsel %vm361_vm3, %v1088_v54, %v1087_v55  ;;  %v1217_v55 = vld [vmem:[%s5640_s11 + $0x66] sm:$0x1]  ;;  %v1235_v56 = vrot.slane %v1216_v52, 3  ;;  %v1382_v52 = vrot.slane %v1361_v47, 1 }
 0xa4f   : > { %v1091_v62 = vsel %vm364_vm4, %v1090_v58, %v1089_v59  ;;  %v1218_v59 = vld [vmem:[%s5640_s11 + $0x76] sm:$0x1]  ;;  %v1237_v60 = vrot.slane %v1217_v55, 2 }
 0xa50   : > { %v1093_v2 = vsel %vm367_vm5, %v1092_v61, %v1091_v62  ;;  %v1239_v62 = vrot.slane %v1218_v59, 1  ;;  %v5498_v59 = vld [vmem:[%s7755_s1 + $0x20] sm:$0xff] }
 0xa51   : > { %v1095_v4 = vsel %vm370_vm6, %v1094_v0, %v1093_v2 }
 0xa52   : > { %v1097_v5 = vsel %vm373_vm7, %v1096_v3, %v1095_v4 }
 0xaa7   : > { %v1006_v35 = vpop.permute.xlu0 %1005 }
 0xaa8   : > { %v1008_v37 = vmul.f32 %v1006_v35, %v1000_v36 }
 0xaaa   : > { %1010 = vrot.lane.b32.xlu1 %v1008_v37, %s5544_s6 }
 0xb1c   : > { %v1011_v39 = vpop.permute.xlu1 %1010 }
 0xb1d   : > { %v5895_v40 = vadd.f32 %v1011_v39, %v1003_v38  ;;  %v1212_v39 = vld [vmem:[%s5640_s11 + $0x16] sm:$0x1] }
 0xb1f   : > { %5279 = vtanh.f32 %v5895_v40 }
 0xb25   : > { %v5280_v41 = vpop.eup %5279 }
 0xb26   : > { %1016 = vrot.lane.b32.xlu2 %v5280_v41, %s5545_s9  ;;  %v1227_v41 = vrot.slane %v1212_v39, 7 }
 0xb80   : > { %v1017_v42 = vpop.permute.xlu2 %1016 }
 0xb81   : > { %v5899_v43 = vmul.f32 %v1017_v42, %v1000_v36  ;;  %v1211_v42 = vld [vmem:[%s5640_s11 + $0x6] sm:$0x1] }
 0xb82   : > { %v1228_v46 = vsel %vm355_vm1, %v1227_v41, %v1211_v42 }
 0xb83   : > { %1099 = vrot.lane.b32.xlu0 %v5899_v43, %s5546_s10 }
 0xbf5   : > { %v1100_v6 = vpop.permute.xlu0 %1099 }
 0xbf6   : > { %v1102_v7 = vsel %vm7763_vm8, %v1097_v5, %v1100_v6 }
 0xbf7   : > { %5148 = vmatmul.msk.f32.vlgmr.msrb.gmra.mxu1 %vm7762_vm9, %v1102_v7 }
 0xbf8   : > { %2260 = vmatpush.msrb.mxu1 %v5648_v18 }
 0xbfa   : > { %2261 = vmatpush.msrb.mxu1 %v5653_v19 }
 0xbfc   : > { %2262 = vmatpush.msrb.mxu1 %v5659_v20 }
 0xbfe   : > { %2263 = vmatpush.msrb.mxu1 %v5668_v21 }
 0xc00   : > { %2264 = vmatpush.msrb.mxu1 %v5677_v22 }
 0xc02   : > { %2265 = vmatpush.msrb.mxu1 %v5693_v23 }
 0xc74   : > { %v1123_v8 = vpop.f32.mrf.mxu1 }
 0xc75   : > { %v1124_v9 = vadd.f32 %v5750_v49, %v1123_v8 }
 0xc77   : > { %5281 = vtanh.f32 %v1124_v9  ;;  %v5149_v12 = vmul.f32 -1.442695, %v1124_v9 }
 0xc79   : > { %5283 = vpow2.f32 %v5149_v12 }
 0xc7d   : > { %v5282_v11 = vpop.eup %5281 }
 0xc7e   : > { %1148 = vrot.lane.b32.xlu1 %v5282_v11, %s5545_s9 }
 0xc7f   : > { %v5284_v13 = vpop.eup %5283 }
 0xc80   : > { %v1129_v14 = vadd.f32 1.0, %v5284_v13 }
 0xc82   : > { %5285 = vrcp.f32 %v1129_v14  ;;  %v1141_v26 = vand.u32 2147483648, %v1129_v14  ;;  %vm1135_vm10 = vweird.f32 %v1129_v14  ;;  %v1139_v27 = vand.u32 2147483647, %v1129_v14 }
 0xc84   : > { %v1142_v29 = vor.u32 1.1754944e-38, %v1141_v26  ;;  %vm1140_vm12 = vcmp.eq.f32.partialorder %v1139_v27, 8.507059e+37 }
 0xc88   : > { %v5286_v15 = vpop.eup %5285 }
 0xc89   : > { %v1131_v16 = vmul.f32 %v5286_v15, %v1129_v14  ;;  %vm1136_vm0 = vweird.f32 %v5286_v15 }
 0xc8a   : > { %vm1137_vm11 = vmor %vm1135_vm10, %vm1136_vm0 }
 0xc8b   : > { %v1132_v17 = vsub.f32 1.0, %v1131_v16 }
 0xc8d   : > { %v1133_v24 = vmul.f32 %v5286_v15, %v1132_v17 }
 0xc8f   : > { %v1134_v25 = vadd.f32 %v5286_v15, %v1133_v24 }
 0xc91   : > { %v1138_v28 = vsel %vm1137_vm11, %v5286_v15, %v1134_v25 }
 0xc92   : > { %v1143_v31 = vsel %vm1140_vm12, %v1142_v29, %v1138_v28  ;;  %v1355_v29 = vld [vmem:[%s5640_s11 + $0x17] sm:$0x1] }
 0xc93   : > { %v1146_v33 = vmul.f32 %v1143_v31, %v5895_v40  ;;  %v1213_v40 = vld [vmem:[%s5640_s11 + $0x26] sm:$0x1] }
 0xc94   : > { %v1229_v45 = vrot.slane %v1213_v40, 6  ;;  %v1359_v40 = vld [vmem:[%s5640_s11 + $0x57] sm:$0x1] }
 0xc96   : > { %v1230_v51 = vsel %vm358_vm2, %v1229_v45, %v1228_v46  ;;  %v1378_v45 = vrot.slane %v1359_v40, 3  ;;  %v1503_v40 = vld [vmem:[%s5640_s11 + $0x68] sm:$0x1] }
 0xc97   : > { %v1232_v54 = vsel %vm361_vm3, %v1231_v48, %v1230_v51  ;;  %v1380_v48 = vrot.slane %v1360_v44, 2  ;;  %v1504_v44 = vld [vmem:[%s5640_s11 + $0x78] sm:$0x1] }
 0xc98   : > { %v1234_v58 = vsel %vm364_vm4, %v1233_v53, %v1232_v54  ;;  %v1525_v47 = vrot.slane %v1504_v44, 1 }
 0xc99   : > { %v1236_v61 = vsel %vm367_vm5, %v1235_v56, %v1234_v58  ;;  %v5497_v58 = vld [vmem:[%s7755_s1 + $0x28] sm:$0xff] }
 0xc9a   : > { %v1238_v63 = vsel %vm370_vm6, %v1237_v60, %v1236_v61  ;;  %v5499_v60 = vld [vmem:[%s7755_s1 + $0x18] sm:$0xff]  ;;  %v5500_v61 = vld [vmem:[%s7755_s1 + $0x10] sm:$0xff] }
 0xc9b   : > { %v1240_v0 = vsel %vm373_vm7, %v1239_v62, %v1238_v63  ;;  %v5501_v62 = vld [vmem:[%s7755_s1 + $0x8] sm:$0xff]  ;;  %v5502_v63 = vld [vmem:[%s7755_s1] sm:$0xff] }
 0xcf0   : > { %v1149_v30 = vpop.permute.xlu1 %1148 }
 0xcf1   : > { %v1151_v32 = vmul.f32 %v1149_v30, %v1143_v31  ;;  %v1356_v30 = vld [vmem:[%s5640_s11 + $0x27] sm:$0x1] }
 0xcf3   : > { %1153 = vrot.lane.b32.xlu2 %v1151_v32, %s5544_s6  ;;  %v1354_v32 = vld [vmem:[%s5640_s11 + $0x7] sm:$0x1] }
 0xd4d   : > { %v1154_v34 = vpop.permute.xlu2 %1153 }
 0xd4e   : > { %v5930_v35 = vadd.f32 %v1154_v34, %v1146_v33  ;;  %v1357_v33 = vld [vmem:[%s5640_s11 + $0x37] sm:$0x1]  ;;  %v1372_v34 = vrot.slane %v1356_v30, 6  ;;  %v1500_v30 = vld [vmem:[%s5640_s11 + $0x38] sm:$0x1] }
 0xd50   : > { %5287 = vtanh.f32 %v5930_v35 }
 0xd56   : > { %v5288_v36 = vpop.eup %5287 }
 0xd57   : > { %1159 = vrot.lane.b32.xlu0 %v5288_v36, %s5545_s9  ;;  %v1358_v36 = vld [vmem:[%s5640_s11 + $0x47] sm:$0x1] }
 0xd58   : > { %v1376_v41 = vrot.slane %v1358_v36, 4  ;;  %v1502_v36 = vld [vmem:[%s5640_s11 + $0x58] sm:$0x1] }
 0xdc9   : > { %v1160_v37 = vpop.permute.xlu0 %1159 }
 0xdca   : > { %v5934_v38 = vmul.f32 %v1160_v37, %v1143_v31  ;;  %v1370_v31 = vrot.slane %v1355_v29, 7  ;;  %v1374_v37 = vrot.slane %v1357_v33, 5  ;;  %v1501_v33 = vld [vmem:[%s5640_s11 + $0x48] sm:$0x1] }
 0xdcc   : > { %1242 = vrot.lane.b32.xlu1 %v5934_v38, %s5546_s10 }
 0xe3e   : > { %v1243_v2 = vpop.permute.xlu1 %1242 }
 0xe3f   : > { %v1245_v3 = vsel %vm7763_vm8, %v1240_v0, %v1243_v2 }
 0xe40   : > { %5150 = vmatmul.msk.f32.vlgmr.msrb.gmra.mxu2 %vm7762_vm9, %v1245_v3 }
 0xe41   : > { %2403 = vmatpush.msrb.mxu2 %v5648_v18 }
 0xe43   : > { %2404 = vmatpush.msrb.mxu2 %v5653_v19 }
 0xe45   : > { %2405 = vmatpush.msrb.mxu2 %v5659_v20 }
 0xe47   : > { %2406 = vmatpush.msrb.mxu2 %v5668_v21 }
 0xe49   : > { %2407 = vmatpush.msrb.mxu2 %v5677_v22 }
 0xe4b   : > { %2408 = vmatpush.msrb.mxu2 %v5693_v23 }
 0xec3   : > { %v1266_v4 = vpop.f32.mrf.mxu2 }
 0xec4   : > { %v1267_v5 = vadd.f32 %v5750_v49, %v1266_v4 }
 0xec6   : > { %5289 = vtanh.f32 %v1267_v5  ;;  %v5151_v7 = vmul.f32 -1.442695, %v1267_v5 }
 0xec8   : > { %5291 = vpow2.f32 %v5151_v7 }
 0xecc   : > { %v5290_v6 = vpop.eup %5289 }
 0xecd   : > { %1291 = vrot.lane.b32.xlu2 %v5290_v6, %s5545_s9 }
 0xece   : > { %v5292_v18 = vpop.eup %5291 }
 0xecf   : > { %v1272_v8 = vadd.f32 1.0, %v5292_v18 }
 0xed1   : > { %5293 = vrcp.f32 %v1272_v8  ;;  %v1284_v22 = vand.u32 2147483648, %v1272_v8  ;;  %vm1278_vm14 = vweird.f32 %v1272_v8  ;;  %v1282_v23 = vand.u32 2147483647, %v1272_v8 }
 0xed3   : > { %v1285_v13 = vor.u32 1.1754944e-38, %v1284_v22  ;;  %vm1283_vm0 = vcmp.eq.f32.partialorder %v1282_v23, 8.507059e+37 }
 0xed7   : > { %v5294_v19 = vpop.eup %5293 }
 0xed8   : > { %v1274_v20 = vmul.f32 %v5294_v19, %v1272_v8  ;;  %vm1279_vm13 = vweird.f32 %v5294_v19 }
 0xed9   : > { %vm1280_vm15 = vmor %vm1278_vm14, %vm1279_vm13 }
 0xeda   : > { %v1275_v9 = vsub.f32 1.0, %v1274_v20 }
 0xedc   : > { %v1276_v21 = vmul.f32 %v5294_v19, %v1275_v9 }
 0xede   : > { %v1277_v11 = vadd.f32 %v5294_v19, %v1276_v21 }
 0xee0   : > { %v1281_v12 = vsel %vm1280_vm15, %v5294_v19, %v1277_v11 }
 0xee1   : > { %v1286_v15 = vsel %vm1283_vm0, %v1285_v13, %v1281_v12 }
 0xee2   : > { %v1289_v17 = vmul.f32 %v1286_v15, %v5930_v35  ;;  %v1371_v35 = vsel %vm355_vm1, %v1370_v31, %v1354_v32 }
 0xee3   : > { %v1373_v39 = vsel %vm358_vm2, %v1372_v34, %v1371_v35  ;;  %v1517_v34 = vrot.slane %v1500_v30, 5 }
 0xee4   : > { %v1375_v42 = vsel %vm361_vm3, %v1374_v37, %v1373_v39  ;;  %v1519_v37 = vrot.slane %v1501_v33, 4 }
 0xee5   : > { %v1377_v46 = vsel %vm364_vm4, %v1376_v41, %v1375_v42  ;;  %v1521_v41 = vrot.slane %v1502_v36, 3 }
 0xee6   : > { %v1379_v51 = vsel %vm367_vm5, %v1378_v45, %v1377_v46  ;;  %v1523_v45 = vrot.slane %v1503_v40, 2 }
 0xee7   : > { %v1381_v53 = vsel %vm370_vm6, %v1380_v48, %v1379_v51 }
 0xee8   : > { %v1383_v54 = vsel %vm373_vm7, %v1382_v52, %v1381_v53 }
 0xf27   : > { %v1292_v14 = vpop.permute.xlu2 %1291 }
 0xf28   : > { %v1294_v16 = vmul.f32 %v1292_v14, %v1286_v15 }
 0xf2a   : > { %1296 = vrot.lane.b32.xlu0 %v1294_v16, %s5544_s6 }
 0xf9c   : > { %v1297_v24 = vpop.permute.xlu0 %1296 }
 0xf9d   : > { %v5965_v25 = vadd.f32 %v1297_v24, %v1289_v17 }
 0xf9f   : > { %5295 = vtanh.f32 %v5965_v25 }
 0xfa5   : > { %v5296_v26 = vpop.eup %5295 }
 0xfa6   : > { %1302 = vrot.lane.b32.xlu1 %v5296_v26, %s5545_s9  ;;  %v1498_v26 = vld [vmem:[%s5640_s11 + $0x18] sm:$0x1] }
 0xfa7   : > { %v1513_v29 = vrot.slane %v1498_v26, 7  ;;  %v1644_v26 = vld [vmem:[%s5640_s11 + $0x49] sm:$0x1] }
 0xfa8   : > { %v1662_v30 = vrot.slane %v1644_v26, 4  ;;  %v1789_v26 = vld [vmem:[%s5640_s11 + $0x6a] sm:$0x1] }
0x1018   : > { %v1303_v27 = vpop.permute.xlu1 %1302 }
0x1019   : > { %v5969_v28 = vmul.f32 %v1303_v27, %v1286_v15  ;;  %v1499_v27 = vld [vmem:[%s5640_s11 + $0x28] sm:$0x1] }
0x101a   : > { %v1515_v31 = vrot.slane %v1499_v27, 6 }
0x101b   : > { %1385 = vrot.lane.b32.xlu2 %v5969_v28, %s5546_s10 }
0x1075   : > { %v1386_v55 = vpop.permute.xlu2 %1385 }
0x1076   : > { %v1388_v56 = vsel %vm7763_vm8, %v1383_v54, %v1386_v55  ;;  %v6037_v55 = vld [vmem:[%s7756_s2] ss:$0 sm:$0xff] }
0x1077   : > { %5152 = vmatmul.msk.f32.vlgmr.msrb.gmra.mxu3 %vm7762_vm9, %v1388_v56 }
0x1078   : > { %2546 = vmatpush.msrb.mxu3 %v5497_v58 }
0x107a   : > { %2547 = vmatpush.msrb.mxu3 %v5498_v59 }
0x107c   : > { %2548 = vmatpush.msrb.mxu3 %v5499_v60 }
0x107e   : > { %2549 = vmatpush.msrb.mxu3 %v5500_v61 }
0x1080   : > { %2550 = vmatpush.msrb.mxu3 %v5501_v62 }
0x1082   : > { %2551 = vmatpush.msrb.mxu3 %v5502_v63 }
0x10fa   : > { %v1409_v0 = vpop.f32.mrf.mxu3 }
0x10fb   : > { %v1410_v2 = vadd.f32 %v5750_v49, %v1409_v0 }
0x10fd   : > { %5297 = vtanh.f32 %v1410_v2  ;;  %v5153_v4 = vmul.f32 -1.442695, %v1410_v2 }
0x10ff   : > { %5299 = vpow2.f32 %v5153_v4 }
0x1103   : > { %v5298_v3 = vpop.eup %5297 }
0x1104   : > { %1434 = vrot.lane.b32.xlu0 %v5298_v3, %s5545_s9 }
0x1105   : > { %v5300_v5 = vpop.eup %5299 }
0x1106   : > { %v1415_v6 = vadd.f32 1.0, %v5300_v5 }
0x1108   : > { %5301 = vrcp.f32 %v1415_v6  ;;  %v1427_v9 = vand.u32 2147483648, %v1415_v6  ;;  %vm1421_vm11 = vweird.f32 %v1415_v6  ;;  %v1425_v21 = vand.u32 2147483647, %v1415_v6 }
0x110a   : > { %v1428_v11 = vor.u32 1.1754944e-38, %v1427_v9  ;;  %vm1426_vm13 = vcmp.eq.f32.partialorder %v1425_v21, 8.507059e+37 }
0x110e   : > { %v5302_v7 = vpop.eup %5301 }
0x110f   : > { %v1417_v18 = vmul.f32 %v5302_v7, %v1415_v6  ;;  %vm1422_vm10 = vweird.f32 %v5302_v7 }
0x1110   : > { %vm1423_vm12 = vmor %vm1421_vm11, %vm1422_vm10 }
0x1111   : > { %v1418_v8 = vsub.f32 1.0, %v1417_v18 }
0x1113   : > { %v1419_v19 = vmul.f32 %v5302_v7, %v1418_v8 }
0x1115   : > { %v1420_v20 = vadd.f32 %v5302_v7, %v1419_v19 }
0x1117   : > { %v1424_v49 = vsel %vm1423_vm12, %v5302_v7, %v1420_v20 }
0x1118   : > { %v1429_v23 = vsel %vm1426_vm13, %v1428_v11, %v1424_v49 }
0x1119   : > { %v1432_v13 = vmul.f32 %v1429_v23, %v5965_v25  ;;  %v1497_v25 = vld [vmem:[%s5640_s11 + $0x8] sm:$0x1] }
0x111a   : > { %v1514_v32 = vsel %vm355_vm1, %v1513_v29, %v1497_v25  ;;  %v1645_v25 = vld [vmem:[%s5640_s11 + $0x59] sm:$0x1] }
0x111b   : > { %v1516_v35 = vsel %vm358_vm2, %v1515_v31, %v1514_v32  ;;  %v1646_v32 = vld [vmem:[%s5640_s11 + $0x69] sm:$0x1]  ;;  %v1664_v33 = vrot.slane %v1645_v25, 3  ;;  %v1790_v25 = vld [vmem:[%s5640_s11 + $0x7a] sm:$0x1] }
0x111c   : > { %v1518_v39 = vsel %vm361_vm3, %v1517_v34, %v1516_v35  ;;  %v1647_v35 = vld [vmem:[%s5640_s11 + $0x79] sm:$0x1]  ;;  %v1666_v36 = vrot.slane %v1646_v32, 2  ;;  %v1811_v32 = vrot.slane %v1790_v25, 1 }
0x111d   : > { %v1520_v42 = vsel %vm364_vm4, %v1519_v37, %v1518_v39  ;;  %v1668_v39 = vrot.slane %v1647_v35, 1 }
0x111e   : > { %v1522_v46 = vsel %vm367_vm5, %v1521_v41, %v1520_v42 }
0x111f   : > { %v1524_v48 = vsel %vm370_vm6, %v1523_v45, %v1522_v46 }
0x1120   : > { %v1526_v51 = vsel %vm373_vm7, %v1525_v47, %v1524_v48 }
0x1176   : > { %v1435_v22 = vpop.permute.xlu0 %1434 }
0x1177   : > { %v1437_v12 = vmul.f32 %v1435_v22, %v1429_v23 }
0x1179   : > { %1439 = vrot.lane.b32.xlu1 %v1437_v12, %s5544_s6  ;;  %v1642_v12 = vld [vmem:[%s5640_s11 + $0x29] sm:$0x1] }
0x11eb   : > { %v1440_v14 = vpop.permute.xlu1 %1439 }
0x11ec   : > { %v1442_v15 = vadd.f32 %v1440_v14, %v1432_v13  ;;  %v1640_v14 = vld [vmem:[%s5640_s11 + $0x9] sm:$0x1] }
0x11ee   : > { %5303 = vtanh.f32 %v1442_v15 }
0x11f4   : > { %v5304_v16 = vpop.eup %5303 }
0x11f5   : > { %1445 = vrot.lane.b32.xlu2 %v5304_v16, %s5545_s9  ;;  %v1658_v16 = vrot.slane %v1642_v12, 6  ;;  %v1787_v12 = vld [vmem:[%s5640_s11 + $0x4a] sm:$0x1] }
0x124f   : > { %v1446_v17 = vpop.permute.xlu2 %1445 }
0x1250   : > { %v6013_v24 = vmul.f32 %v1446_v17, %v1429_v23  ;;  %v1641_v23 = vld [vmem:[%s5640_s11 + $0x19] sm:$0x1] }
0x1251   : > { %v1656_v13 = vrot.slane %v1641_v23, 7 }
0x1252   : > { %1528 = vrot.lane.b32.xlu0 %v6013_v24, %s5546_s10 }
0x1253   : > { %v1657_v17 = vsel %vm355_vm1, %v1656_v13, %v1640_v14 }
0x1254   : > { %v1659_v29 = vsel %vm358_vm2, %v1658_v16, %v1657_v17  ;;  %v1805_v16 = vrot.slane %v1787_v12, 4 }
0x12c4   : > { %v1529_v52 = vpop.permute.xlu0 %1528 }
0x12c5   : > { %v1531_v53 = vsel %vm7763_vm8, %v1526_v51, %v1529_v52 }
0x12c6   : > { %5154 = vmatmul.msk.f32.vlgmr.msra.gmra.mxu0 %vm7762_vm9, %v1531_v53 }
0x1343   : > { %v1552_v54 = vpop.f32.mrf.mxu0 }
0x1344   : > { %v1553_v56 = vadd.f32 %v6037_v55, %v1552_v54 }
0x1346   : > { %5305 = vtanh.f32 %v1553_v56  ;;  %v5155_v59 = vmul.f32 -1.442695, %v1553_v56 }
0x1348   : > { %5307 = vpow2.f32 %v5155_v59 }
0x134c   : > { %v5306_v58 = vpop.eup %5305 }
0x134d   : > { %1577 = vrot.lane.b32.xlu1 %v5306_v58, %s5545_s9 }
0x134e   : > { %v5308_v60 = vpop.eup %5307 }
0x134f   : > { %v1558_v61 = vadd.f32 1.0, %v5308_v60 }
0x1351   : > { %5309 = vrcp.f32 %v1558_v61  ;;  %v1570_v4 = vand.u32 2147483648, %v1558_v61  ;;  %vm1564_vm15 = vweird.f32 %v1558_v61  ;;  %v1568_v5 = vand.u32 2147483647, %v1558_v61 }
0x1353   : > { %v1571_v7 = vor.u32 1.1754944e-38, %v1570_v4  ;;  %vm1569_vm10 = vcmp.eq.f32.partialorder %v1568_v5, 8.507059e+37 }
0x1357   : > { %v5310_v62 = vpop.eup %5309 }
0x1358   : > { %v1560_v63 = vmul.f32 %v5310_v62, %v1558_v61  ;;  %vm1565_vm14 = vweird.f32 %v5310_v62 }
0x1359   : > { %vm1566_vm0 = vmor %vm1564_vm15, %vm1565_vm14 }
0x135a   : > { %v1561_v0 = vsub.f32 1.0, %v1560_v63 }
0x135c   : > { %v1562_v2 = vmul.f32 %v5310_v62, %v1561_v0 }
0x135e   : > { %v1563_v3 = vadd.f32 %v5310_v62, %v1562_v2 }
0x1360   : > { %v1567_v6 = vsel %vm1566_vm0, %v5310_v62, %v1563_v3 }
0x1361   : > { %v1572_v8 = vsel %vm1569_vm10, %v1571_v7, %v1567_v6 }
0x1362   : > { %v1575_v20 = vmul.f32 %v1572_v8, %v1442_v15  ;;  %v1643_v15 = vld [vmem:[%s5640_s11 + $0x39] sm:$0x1] }
0x1363   : > { %v1660_v27 = vrot.slane %v1643_v15, 5  ;;  %v1788_v15 = vld [vmem:[%s5640_s11 + $0x5a] sm:$0x1] }
0x1365   : > { %v1661_v31 = vsel %vm361_vm3, %v1660_v27, %v1659_v29  ;;  %v1807_v27 = vrot.slane %v1788_v15, 3 }
0x1366   : > { %v1663_v34 = vsel %vm364_vm4, %v1662_v30, %v1661_v31  ;;  %v1809_v30 = vrot.slane %v1789_v26, 2 }
0x1367   : > { %v1665_v37 = vsel %vm367_vm5, %v1664_v33, %v1663_v34 }
0x1368   : > { %v1667_v40 = vsel %vm370_vm6, %v1666_v36, %v1665_v37 }
0x1369   : > { %v1669_v41 = vsel %vm373_vm7, %v1668_v39, %v1667_v40 }
0x13bf   : > { %v1578_v18 = vpop.permute.xlu1 %1577 }
0x13c0   : > { %v1580_v19 = vmul.f32 %v1578_v18, %v1572_v8 }
0x13c2   : > { %1582 = vrot.lane.b32.xlu2 %v1580_v19, %s5544_s6  ;;  %v1784_v19 = vld [vmem:[%s5640_s11 + $0x1a] sm:$0x1] }
0x141c   : > { %v1583_v9 = vpop.permute.xlu2 %1582 }
0x141d   : > { %v1585_v21 = vadd.f32 %v1583_v9, %v1575_v20  ;;  %v1785_v20 = vld [vmem:[%s5640_s11 + $0x2a] sm:$0x1]  ;;  %v1799_v9 = vrot.slane %v1784_v19, 7 }
0x141f   : > { %5311 = vtanh.f32 %v1585_v21 }
0x1425   : > { %v5312_v49 = vpop.eup %5311 }
0x1426   : > { %1588 = vrot.lane.b32.xlu0 %v5312_v49, %s5545_s9  ;;  %v1786_v49 = vld [vmem:[%s5640_s11 + $0x3a] sm:$0x1] }
0x1427   : > { %v1803_v13 = vrot.slane %v1786_v49, 5 }
0x1498   : > { %v1589_v11 = vpop.permute.xlu0 %1588 }
0x1499   : > { %v6043_v22 = vmul.f32 %v1589_v11, %v1572_v8  ;;  %v1801_v11 = vrot.slane %v1785_v20, 6 }
0x149b   : > { %1671 = vrot.lane.b32.xlu1 %v6043_v22, %s5546_s10 }
0x150d   : > { %v1672_v42 = vpop.permute.xlu1 %1671 }
0x150e   : > { %v1674_v44 = vsel %vm7763_vm8, %v1669_v41, %v1672_v42 }
0x150f   : > { %5156 = vmatmul.msk.f32.vlgmr.msra.gmra.mxu1 %vm7762_vm9, %v1674_v44 }
0x158c   : > { %v1695_v45 = vpop.f32.mrf.mxu1 }
0x158d   : > { %v1696_v46 = vadd.f32 %v6037_v55, %v1695_v45 }
0x158f   : > { %5313 = vtanh.f32 %v1696_v46  ;;  %v5157_v48 = vmul.f32 -1.442695, %v1696_v46 }
0x1591   : > { %5315 = vpow2.f32 %v5157_v48 }
0x1595   : > { %v5314_v47 = vpop.eup %5313 }
0x1596   : > { %1720 = vrot.lane.b32.xlu2 %v5314_v47, %s5545_s9 }
0x1597   : > { %v5316_v51 = vpop.eup %5315 }
0x1598   : > { %v1701_v52 = vadd.f32 1.0, %v5316_v51 }
0x159a   : > { %5317 = vrcp.f32 %v1701_v52  ;;  %v1713_v60 = vand.u32 2147483648, %v1701_v52  ;;  %vm1707_vm12 = vweird.f32 %v1701_v52  ;;  %v1711_v61 = vand.u32 2147483647, %v1701_v52 }
0x159c   : > { %v1714_v63 = vor.u32 1.1754944e-38, %v1713_v60  ;;  %vm1712_vm14 = vcmp.eq.f32.partialorder %v1711_v61, 8.507059e+37 }
0x15a0   : > { %v5318_v53 = vpop.eup %5317 }
0x15a1   : > { %v1703_v54 = vmul.f32 %v5318_v53, %v1701_v52  ;;  %vm1708_vm11 = vweird.f32 %v5318_v53 }
0x15a2   : > { %vm1709_vm13 = vmor %vm1707_vm12, %vm1708_vm11 }
0x15a3   : > { %v1704_v56 = vsub.f32 1.0, %v1703_v54 }
0x15a5   : > { %v1705_v58 = vmul.f32 %v5318_v53, %v1704_v56 }
0x15a7   : > { %v1706_v59 = vadd.f32 %v5318_v53, %v1705_v58 }
0x15a9   : > { %v1710_v62 = vsel %vm1709_vm13, %v5318_v53, %v1706_v59 }
0x15aa   : > { %v1715_v2 = vsel %vm1712_vm14, %v1714_v63, %v1710_v62 }
0x15ab   : > { %v1718_v4 = vmul.f32 %v1715_v2, %v1585_v21  ;;  %v1783_v21 = vld [vmem:[%s5640_s11 + $0xa] sm:$0x1] }
0x15ac   : > { %v1800_v23 = vsel %vm355_vm1, %v1799_v9, %v1783_v21  ;;  %v1930_v9 = vld [vmem:[%s5640_s11 + $0x4b] sm:$0x1] }
0x15ad   : > { %v1802_v14 = vsel %vm358_vm2, %v1801_v11, %v1800_v23  ;;  %v1931_v11 = vld [vmem:[%s5640_s11 + $0x5b] sm:$0x1]  ;;  %v1948_v23 = vrot.slane %v1930_v9, 4 }
0x15ae   : > { %v1804_v17 = vsel %vm361_vm3, %v1803_v13, %v1802_v14  ;;  %v1932_v13 = vld [vmem:[%s5640_s11 + $0x6b] sm:$0x1]  ;;  %v1950_v14 = vrot.slane %v1931_v11, 3 }
0x15af   : > { %v1806_v29 = vsel %vm364_vm4, %v1805_v16, %v1804_v17  ;;  %v1933_v16 = vld [vmem:[%s5640_s11 + $0x7b] sm:$0x1]  ;;  %v1952_v17 = vrot.slane %v1932_v13, 2  ;;  %v455_v13 = vperm.slane %v5759_v10, 0 }
0x15b0   : > { %v1808_v31 = vsel %vm367_vm5, %v1807_v27, %v1806_v29  ;;  %v1954_v27 = vrot.slane %v1933_v16, 1  ;;  %v6151_v16 = vld [vmem:[%s7757_s3 + $0x38] sm:$0xff] }
0x15b1   : > { %v1810_v33 = vsel %vm370_vm6, %v1809_v30, %v1808_v31  ;;  %2713 = vmatpush.msra.mxu0 %v6151_v16  ;;  %2860 = vmatpush.msra.mxu1 %v6151_v16 }
0x15b2   : > { %v1812_v34 = vsel %vm373_vm7, %v1811_v32, %v1810_v33 }
0x15f0   : > { %v1721_v0 = vpop.permute.xlu2 %1720 }
0x15f1   : > { %v1723_v3 = vmul.f32 %v1721_v0, %v1715_v2 }
0x15f3   : > { %1725 = vrot.lane.b32.xlu0 %v1723_v3, %s5544_s6 }
0x1665   : > { %v1726_v5 = vpop.permute.xlu0 %1725 }
0x1666   : > { %v1728_v6 = vadd.f32 %v1726_v5, %v1718_v4  ;;  %v1927_v4 = vld [vmem:[%s5640_s11 + $0x1b] sm:$0x1]  ;;  %v1928_v5 = vld [vmem:[%s5640_s11 + $0x2b] sm:$0x1] }
0x1667   : > { %v1944_v19 = vrot.slane %v1928_v5, 6 }
0x1668   : > { %5319 = vtanh.f32 %v1728_v6 }
0x166e   : > { %v5320_v7 = vpop.eup %5319 }
0x166f   : > { %1731 = vrot.lane.b32.xlu1 %v5320_v7, %s5545_s9  ;;  %v1926_v7 = vld [vmem:[%s5640_s11 + $0xb] sm:$0x1] }
0x16e1   : > { %v1732_v18 = vpop.permute.xlu1 %1731 }
0x16e2   : > { %v6068_v8 = vmul.f32 %v1732_v18, %v1715_v2  ;;  %v1929_v18 = vld [vmem:[%s5640_s11 + $0x3b] sm:$0x1] }
0x16e3   : > { %v1946_v21 = vrot.slane %v1929_v18, 5 }
0x16e4   : > { %1814 = vrot.lane.b32.xlu2 %v6068_v8, %s5546_s10 }
0x173e   : > { %v1815_v35 = vpop.permute.xlu2 %1814 }
0x173f   : > { %v1817_v36 = vsel %vm7763_vm8, %v1812_v34, %v1815_v35  ;;  %v448_v35 = vrot.slane %v5759_v10, 1 }
0x1740   : > { %5158 = vmatmul.msk.f32.vlgmr.msra.gmra.mxu2 %vm7762_vm9, %v1817_v36 }
0x1741   : > { %v456_v36 = vperm.slane %v448_v35, 0  ;;  %3003 = vmatpush.msra.mxu2 %v6151_v16  ;;  %v6215_v35 = vld [vmem:[%s7757_s3] sm:$0xff] }
0x17c3   : > { %v1838_v37 = vpop.f32.mrf.mxu2 }
0x17c4   : > { %v1839_v39 = vadd.f32 %v6037_v55, %v1838_v37  ;;  %v450_v37 = vrot.slane %v5759_v10, 3 }
0x17c6   : > { %5321 = vtanh.f32 %v1839_v39  ;;  %v5159_v41 = vmul.f32 -1.442695, %v1839_v39  ;;  %v458_v39 = vperm.slane %v450_v37, 0 }
0x17c8   : > { %5323 = vpow2.f32 %v5159_v41 }
0x17cc   : > { %v5322_v40 = vpop.eup %5321 }
0x17cd   : > { %1863 = vrot.lane.b32.xlu0 %v5322_v40, %s5545_s9  ;;  %v453_v40 = vrot.slane %v5759_v10, 6 }
0x17ce   : > { %v5324_v42 = vpop.eup %5323 }
0x17cf   : > { %v1844_v44 = vadd.f32 1.0, %v5324_v42  ;;  %v461_v41 = vperm.slane %v453_v40, 0  ;;  %v2072_v40 = vld [vmem:[%s5640_s11 + $0x3c] sm:$0x1] }
0x17d1   : > { %5325 = vrcp.f32 %v1844_v44  ;;  %v1856_v52 = vand.u32 2147483648, %v1844_v44  ;;  %vm1850_vm0 = vweird.f32 %v1844_v44  ;;  %v1854_v53 = vand.u32 2147483647, %v1844_v44 }
0x17d3   : > { %v1857_v56 = vor.u32 1.1754944e-38, %v1856_v52  ;;  %vm1855_vm11 = vcmp.eq.f32.partialorder %v1854_v53, 8.507059e+37 }
0x17d7   : > { %v5326_v45 = vpop.eup %5325 }
0x17d8   : > { %v1846_v46 = vmul.f32 %v5326_v45, %v1844_v44  ;;  %vm1851_vm15 = vweird.f32 %v5326_v45 }
0x17d9   : > { %vm1852_vm10 = vmor %vm1850_vm0, %vm1851_vm15  ;;  %vm487_vm0 = vcmask 253952  }
0x17da   : > { %v1847_v47 = vsub.f32 1.0, %v1846_v46 }
0x17dc   : > { %v1848_v48 = vmul.f32 %v5326_v45, %v1847_v47 }
0x17de   : > { %v1849_v51 = vadd.f32 %v5326_v45, %v1848_v48 }
0x17e0   : > { %v1853_v54 = vsel %vm1852_vm10, %v5326_v45, %v1849_v51  ;;  %vm7761_vm10 = vcmask 261120  }
0x17e1   : > { %v1858_v59 = vsel %vm1855_vm11, %v1857_v56, %v1853_v54  ;;  %vm7760_vm11 = vcmask 523264  }
0x17e2   : > { %v1861_v61 = vmul.f32 %v1858_v59, %v1728_v6  ;;  %v1942_v6 = vrot.slane %v1927_v4, 7  ;;  %v451_v4 = vrot.slane %v5759_v10, 4 }
0x17e4   : > { %v1943_v20 = vsel %vm355_vm1, %v1942_v6, %v1926_v7  ;;  %v459_v6 = vperm.slane %v451_v4, 0  ;;  %v454_v7 = vrot.slane %v5759_v10, 7 }
0x17e5   : > { %v1945_v49 = vsel %vm358_vm2, %v1944_v19, %v1943_v20  ;;  %v2663_v20 = vld [vmem:[#allocation5] sm:$0xff] }
0x17e6   : > { %v1947_v12 = vsel %vm361_vm3, %v1946_v21, %v1945_v49  ;;  %v462_v19 = vperm.slane %v454_v7, 0 }
0x17e7   : > { %v1949_v15 = vsel %vm364_vm4, %v1948_v23, %v1947_v12 }
0x17e8   : > { %v1951_v26 = vsel %vm367_vm5, %v1950_v14, %v1949_v15 }
0x17e9   : > { %v1953_v29 = vsel %vm370_vm6, %v1952_v17, %v1951_v26  ;;  %v6156_v17 = vld [vmem:[%s7757_s3 + $0x30] sm:$0xff]  ;;  %v6163_v26 = vld [vmem:[%s7757_s3 + $0x28] sm:$0xff] }
0x17ea   : > { %v1955_v25 = vsel %vm373_vm7, %v1954_v27, %v1953_v29  ;;  %2714 = vmatpush.msra.mxu0 %v6156_v17  ;;  %2861 = vmatpush.msra.mxu1 %v6156_v17 }
0x17eb   : > { %3004 = vmatpush.msra.mxu2 %v6156_v17 }
0x17ec   : > { %2715 = vmatpush.msra.mxu0 %v6163_v26  ;;  %2862 = vmatpush.msra.mxu1 %v6163_v26 }
0x17ed   : > { %3005 = vmatpush.msra.mxu2 %v6163_v26 }
0x183f   : > { %v1864_v58 = vpop.permute.xlu0 %1863 }
0x1840   : > { %v1866_v60 = vmul.f32 %v1864_v58, %v1858_v59 }
0x1842   : > { %1868 = vrot.lane.b32.xlu1 %v1866_v60, %s5544_s6 }
0x18b4   : > { %v1869_v62 = vpop.permute.xlu1 %1868 }
0x18b5   : > { %v6092_v63 = vadd.f32 %v1869_v62, %v1861_v61  ;;  %v449_v62 = vrot.slane %v5759_v10, 2 }
0x18b7   : > { %5327 = vtanh.f32 %v6092_v63 }
0x18bd   : > { %v5328_v0 = vpop.eup %5327 }
0x18be   : > { %1874 = vrot.lane.b32.xlu2 %v5328_v0, %s5545_s9 }
0x1918   : > { %v1875_v2 = vpop.permute.xlu2 %1874 }
0x1919   : > { %v6096_v3 = vmul.f32 %v1875_v2, %v1858_v59  ;;  %v457_v2 = vperm.slane %v449_v62, 0 }
0x191b   : > { %1957 = vrot.lane.b32.xlu0 %v6096_v3, %s5546_s10 }
0x198d   : > { %v1958_v30 = vpop.permute.xlu0 %1957 }
0x198e   : > { %v1960_v31 = vsel %vm7763_vm8, %v1955_v25, %v1958_v30  ;;  %v6184_v30 = vld [vmem:[%s7757_s3 + $0x20] sm:$0xff] }
0x198f   : > { %5160 = vmatmul.msk.f32.vlgmr.msra.gmra.mxu3 %vm7762_vm9, %v1960_v31  ;;  %2716 = vmatpush.msra.mxu0 %v6184_v30  ;;  %v6190_v31 = vld [vmem:[%s7757_s3 + $0x18] sm:$0xff] }
0x1990   : > { %3146 = vmatpush.msra.mxu3 %v6151_v16  ;;  %2863 = vmatpush.msra.mxu1 %v6184_v30 }
0x1991   : > { %3006 = vmatpush.msra.mxu2 %v6184_v30  ;;  %2717 = vmatpush.msra.mxu0 %v6190_v31 }
0x1992   : > { %3147 = vmatpush.msra.mxu3 %v6156_v17  ;;  %2864 = vmatpush.msra.mxu1 %v6190_v31 }
0x1993   : > { %3007 = vmatpush.msra.mxu2 %v6190_v31 }
0x1994   : > { %3148 = vmatpush.msra.mxu3 %v6163_v26 }
0x1996   : > { %3149 = vmatpush.msra.mxu3 %v6184_v30 }
0x1998   : > { %3150 = vmatpush.msra.mxu3 %v6190_v31 }
0x1a12   : > { %v1981_v32 = vpop.f32.mrf.mxu3 }
0x1a13   : > { %v1982_v33 = vadd.f32 %v6037_v55, %v1981_v32  ;;  %v6196_v32 = vld [vmem:[%s7757_s3 + $0x10] sm:$0xff] }
0x1a14   : > { %2718 = vmatpush.msra.mxu0 %v6196_v32  ;;  %2865 = vmatpush.msra.mxu1 %v6196_v32 }
0x1a15   : > { %5329 = vtanh.f32 %v1982_v33  ;;  %v5161_v42 = vmul.f32 -1.442695, %v1982_v33  ;;  %v2070_v33 = vld [vmem:[%s5640_s11 + $0x1c] sm:$0x1]  ;;  %3008 = vmatpush.msra.mxu2 %v6196_v32  ;;  %3151 = vmatpush.msra.mxu3 %v6196_v32 }
0x1a16   : > { %v2085_v37 = vrot.slane %v2070_v33, 7 }
0x1a17   : > { %5331 = vpow2.f32 %v5161_v42 }
0x1a1b   : > { %v5330_v34 = vpop.eup %5329 }
0x1a1c   : > { %2006 = vrot.lane.b32.xlu1 %v5330_v34, %s5545_s9  ;;  %v6206_v34 = vld [vmem:[%s7757_s3 + $0x8] sm:$0xff] }
0x1a1d   : > { %v5332_v44 = vpop.eup %5331  ;;  %2719 = vmatpush.msra.mxu0 %v6206_v34  ;;  %2866 = vmatpush.msra.mxu1 %v6206_v34 }
0x1a1e   : > { %v1987_v45 = vadd.f32 1.0, %v5332_v44  ;;  %3009 = vmatpush.msra.mxu2 %v6206_v34  ;;  %3152 = vmatpush.msra.mxu3 %v6206_v34  ;;  %v2073_v44 = vld [vmem:[%s5640_s11 + $0x4c] sm:$0x1] }
0x1a1f   : > { %2720 = vmatpush.msra.mxu0 %v6215_v35  ;;  %2867 = vmatpush.msra.mxu1 %v6215_v35 }
0x1a20   : > { %5333 = vrcp.f32 %v1987_v45  ;;  %v1999_v53 = vand.u32 2147483648, %v1987_v45  ;;  %vm1993_vm13 = vweird.f32 %v1987_v45  ;;  %v1997_v54 = vand.u32 2147483647, %v1987_v45  ;;  %3010 = vmatpush.msra.mxu2 %v6215_v35  ;;  %3153 = vmatpush.msra.mxu3 %v6215_v35 }
0x1a22   : > { %v2000_v58 = vor.u32 1.1754944e-38, %v1999_v53  ;;  %vm1998_vm15 = vcmp.eq.f32.partialorder %v1997_v54, 8.507059e+37 }
0x1a24   : > { %465 = vrot.lane.b32.xlu1 %v456_v36, %s5544_s6  ;;  %v2071_v36 = vld [vmem:[%s5640_s11 + $0x2c] sm:$0x1] }
0x1a26   : > { %v5334_v46 = vpop.eup %5333 }
0x1a27   : > { %v1989_v47 = vmul.f32 %v5334_v46, %v1987_v45  ;;  %vm1994_vm12 = vweird.f32 %v5334_v46  ;;  %v2089_v45 = vrot.slane %v2072_v40, 5 }
0x1a28   : > { %vm1995_vm14 = vmor %vm1993_vm13, %vm1994_vm12 }
0x1a29   : > { %v1990_v48 = vsub.f32 1.0, %v1989_v47 }
0x1a2b   : > { %v1991_v51 = vmul.f32 %v5334_v46, %v1990_v48  ;;  %v2074_v48 = vld [vmem:[%s5640_s11 + $0x5c] sm:$0x1] }
0x1a2c   : > { %469 = vrot.lane.b32.xlu1 %v458_v39, %s5544_s6  ;;  %v2069_v39 = vld [vmem:[%s5640_s11 + $0xc] sm:$0x1] }
0x1a2d   : > { %v1992_v52 = vadd.f32 %v5334_v46, %v1991_v51  ;;  %v2086_v42 = vsel %vm355_vm1, %v2085_v37, %v2069_v39  ;;  %v2091_v51 = vrot.slane %v2073_v44, 4  ;;  %v6272_v44 = vld [vmem:[%s7758_s4] ss:$0 sm:$0xff] }
0x1a2f   : > { %v1996_v56 = vsel %vm1995_vm14, %v5334_v46, %v1992_v52 }
0x1a30   : > { %v2001_v60 = vsel %vm1998_vm15, %v2000_v58, %v1996_v56  ;;  %v2075_v58 = vld [vmem:[%s5640_s11 + $0x6c] sm:$0x1] }
0x1a31   : > { %v2004_v9 = vmul.f32 %v2001_v60, %v6092_v63  ;;  %v452_v63 = vrot.slane %v5759_v10, 5  ;;  %v2095_v4 = vrot.slane %v2075_v58, 2 }
0x1a33   : > { %v460_v15 = vperm.slane %v452_v63, 0 }
0x1a34   : > { %475 = vrot.lane.b32.xlu1 %v461_v41, %s5544_s6  ;;  %v2087_v41 = vrot.slane %v2071_v36, 6 }
0x1a36   : > { %v2088_v46 = vsel %vm358_vm2, %v2087_v41, %v2086_v42 }
0x1a37   : > { %v2090_v52 = vsel %vm361_vm3, %v2089_v45, %v2088_v46 }
0x1a3c   : > { %2697 = vrot.lane.b32.xlu1 %v2663_v20, %s5544_s6 }
0x1a8e   : > { %v2007_v59 = vpop.permute.xlu1 %2006 }
0x1a8f   : > { %v2009_v61 = vmul.f32 %v2007_v59, %v2001_v60  ;;  %v2093_v59 = vrot.slane %v2074_v48, 3  ;;  %v2664_v48 = vld [vmem:[#allocation6] sm:$0xff] }
0x1a91   : > { %2011 = vrot.lane.b32.xlu2 %v2009_v61, %s5544_s6 }
0x1a96   : > { %v466_v0 = vpop.permute.xlu1 %465 }
0x1a97   : > { %489 = vst.msk [vmem:[#allocation2 + $0x10] sm:$0x1] %vm487_vm0, %v466_v0 }
0x1a99   : > { %467 = vrot.lane.b32.xlu2 %v457_v2, %s5544_s6  ;;  %v2076_v2 = vld [vmem:[%s5640_s11 + $0x7c] sm:$0x1] }
0x1a9a   : > { %v2097_v20 = vrot.slane %v2076_v2, 1 }
0x1a9e   : > { %v470_v5 = vpop.permute.xlu1 %469  ;;  %v2666_v47 = vld [vmem:[#allocation2 + $0x10] sm:$0x1] }
0x1a9f   : > { %491 = vst.msk [vmem:[#allocation2 + $0x30] sm:$0x1] %vm487_vm0, %v470_v5  ;;  %v2681_v56 = vrot.slane %v2666_v47, 7 }
0x1aa1   : > { %471 = vrot.lane.b32.xlu2 %v459_v6, %s5544_s6 }
0x1aa6   : > { %v476_v18 = vpop.permute.xlu1 %475  ;;  %v2668_v62 = vld [vmem:[#allocation2 + $0x30] sm:$0x1] }
0x1aa7   : > { %494 = vst.msk [vmem:[#allocation2 + $0x60] sm:$0x1] %vm487_vm0, %v476_v18 }
0x1aa9   : > { %477 = vrot.lane.b32.xlu2 %v462_v19, %s5544_s6  ;;  %v2685_v19 = vrot.slane %v2668_v62, 5 }
0x1aae   : > { %v2698_v39 = vpop.permute.xlu1 %2697 }
0x1aeb   : > { %v2012_v21 = vpop.permute.xlu2 %2011 }
0x1aec   : > { %v6137_v49 = vadd.f32 %v2012_v21, %v2004_v9 }
0x1aee   : > { %5335 = vtanh.f32 %v6137_v49 }
0x1af3   : > { %v468_v11 = vpop.permute.xlu2 %467 }
0x1af4   : > { %v5336_v23 = vpop.eup %5335  ;;  %490 = vst.msk [vmem:[#allocation2 + $0x20] sm:$0x1] %vm487_vm0, %v468_v11 }
0x1af5   : > { %2017 = vrot.lane.b32.xlu0 %v5336_v23, %s5545_s9 }
0x1afb   : > { %v472_v12 = vpop.permute.xlu2 %471  ;;  %v2667_v54 = vld [vmem:[#allocation2 + $0x20] sm:$0x1] }
0x1afc   : > { %492 = vst.msk [vmem:[#allocation2 + $0x40] sm:$0x1] %vm487_vm0, %v472_v12  ;;  %v2683_v0 = vrot.slane %v2667_v54, 6  ;;  %v2671_v12 = vld [vmem:[#allocation2 + $0x60] sm:$0x1] }
0x1afd   : > { %463 = vrot.lane.b32.xlu0 %v455_v13, %s5544_s6 }
0x1b03   : > { %v478_v14 = vpop.permute.xlu2 %477  ;;  %v2669_v18 = vld [vmem:[#allocation2 + $0x40] sm:$0x1] }
0x1b04   : > { %495 = vst.msk [vmem:[#allocation2 + $0x70] sm:$0x1] %vm487_vm0, %v478_v14  ;;  %v2687_v23 = vrot.slane %v2669_v18, 4 }
0x1b05   : > { %473 = vrot.lane.b32.xlu0 %v460_v15, %s5544_s6 }
0x1b67   : > { %v2018_v10 = vpop.permute.xlu0 %2017 }
0x1b68   : > { %v6167_v27 = vmul.f32 %v2018_v10, %v2001_v60  ;;  %v2092_v60 = vsel %vm364_vm4, %v2091_v51, %v2090_v52  ;;  %v2672_v10 = vld [vmem:[#allocation2 + $0x70] sm:$0x1] }
0x1b69   : > { %v2094_v5 = vsel %vm367_vm5, %v2093_v59, %v2092_v60  ;;  %v2693_v36 = vrot.slane %v2672_v10, 1 }
0x1b6a   : > { %2100 = vrot.lane.b32.xlu0 %v6167_v27, %s5546_s10  ;;  %v2096_v9 = vsel %vm370_vm6, %v2095_v4, %v2094_v5 }
0x1b6b   : > { %v2098_v13 = vsel %vm373_vm7, %v2097_v20, %v2096_v9 }
0x1b6f   : > { %v464_v29 = vpop.permute.xlu0 %463 }
0x1b70   : > { %488 = vst.msk [vmem:[#allocation2] sm:$0x1] %vm487_vm0, %v464_v29  ;;  %v2691_v29 = vrot.slane %v2671_v12, 2 }
0x1b77   : > { %v474_v25 = vpop.permute.xlu0 %473  ;;  %v2665_v53 = vld [vmem:[#allocation2] sm:$0x1] }
0x1b78   : > { %493 = vst.msk [vmem:[#allocation2 + $0x50] sm:$0x1] %vm487_vm0, %v474_v25  ;;  %v2682_v61 = vsel %vm355_vm1, %v2681_v56, %v2665_v53 }
0x1b79   : > { %v2684_v7 = vsel %vm358_vm2, %v2683_v0, %v2682_v61 }
0x1b7a   : > { %v2686_v21 = vsel %vm361_vm3, %v2685_v19, %v2684_v7 }
0x1b7b   : > { %v2688_v63 = vsel %vm364_vm4, %v2687_v23, %v2686_v21 }
0x1b7f   : > { %v2670_v6 = vld [vmem:[#allocation2 + $0x50] sm:$0x1] }
0x1b80   : > { %v2689_v11 = vrot.slane %v2670_v6, 3 }
0x1b82   : > { %v2690_v14 = vsel %vm367_vm5, %v2689_v11, %v2688_v63 }
0x1b83   : > { %v2692_v33 = vsel %vm370_vm6, %v2691_v29, %v2690_v14 }
0x1b84   : > { %v2694_v37 = vsel %vm373_vm7, %v2693_v36, %v2692_v33  ;;  %v594_v36 = vrot.slane %v5794_v1, 3 }
0x1b85   : > { %v2700_v40 = vsel %vm7761_vm10, %v2694_v37, %v2698_v39  ;;  %v597_v39 = vrot.slane %v5794_v1, 6 }
0x1b86   : > { %v602_v37 = vperm.slane %v594_v36, 0 }
0x1bdc   : > { %v2101_v15 = vpop.permute.xlu0 %2100 }
0x1bdd   : > { %v2103_v25 = vsel %vm7763_vm8, %v2098_v13, %v2101_v15 }
0x1bde   : > { %5162 = vmatmul.msk.f32.vlgmr.msrb.gmra.mxu0 %vm7762_vm9, %v2103_v25  ;;  %v592_v25 = vrot.slane %v5794_v1, 1 }
0x1bdf   : > { %3289 = vmatpush.msrb.mxu0 %v6151_v16 }
0x1be0   : > { %v600_v33 = vperm.slane %v592_v25, 0 }
0x1be1   : > { %3290 = vmatpush.msrb.mxu0 %v6156_v17 }
0x1be3   : > { %3291 = vmatpush.msrb.mxu0 %v6163_v26 }
0x1be5   : > { %3292 = vmatpush.msrb.mxu0 %v6184_v30 }
0x1be6   : > { %5170 = vmatmul.msk.f32.vlgmr.msra.gmra.mxu0 %vm7760_vm11, %v2700_v40  ;;  %v605_v40 = vperm.slane %v597_v39, 0  ;;  %v2218_v39 = vld [vmem:[%s5640_s11 + $0x6d] sm:$0x1] }
0x1be7   : > { %3293 = vmatpush.msrb.mxu0 %v6190_v31 }
0x1be9   : > { %3294 = vmatpush.msrb.mxu0 %v6196_v32 }
0x1beb   : > { %3295 = vmatpush.msrb.mxu0 %v6206_v34 }
0x1bed   : > { %3296 = vmatpush.msrb.mxu0 %v6215_v35 }
0x1bef   : > { %3861 = vmatpush.msra.mxu0 %v6151_v16 }
0x1bf1   : > { %3862 = vmatpush.msra.mxu0 %v6156_v17 }
0x1bf3   : > { %3863 = vmatpush.msra.mxu0 %v6163_v26 }
0x1bf5   : > { %3864 = vmatpush.msra.mxu0 %v6184_v30 }
0x1bf7   : > { %3865 = vmatpush.msra.mxu0 %v6190_v31 }
0x1bf9   : > { %3866 = vmatpush.msra.mxu0 %v6196_v32 }
0x1bfb   : > { %3867 = vmatpush.msra.mxu0 %v6206_v34 }
0x1bfd   : > { %3868 = vmatpush.msra.mxu0 %v6215_v35 }
0x1c5b   : > { %v2124_v41 = vpop.f32.mrf.mxu0 }
0x1c5c   : > { %v2125_v42 = vadd.f32 %v6037_v55, %v2124_v41 }
0x1c5e   : > { %5337 = vtanh.f32 %v2125_v42  ;;  %v5163_v55 = vmul.f32 -1.442695, %v2125_v42 }
0x1c63   : > { %v2722_v45 = vpop.f32.mrf.mxu0 }
0x1c64   : > { %v5338_v46 = vpop.eup %5337  ;;  %v2723_v47 = vadd.f32 %v6272_v44, %v2722_v45 }
0x1c65   : > { %2149 = vrot.lane.b32.xlu2 %v5338_v46, %s5545_s9 }
0x1c66   : > { %5339 = vtanh.f32 %v2723_v47  ;;  %v5171_v59 = vmul.f32 -1.442695, %v2723_v47  ;;  %v593_v47 = vrot.slane %v5794_v1, 2 }
0x1c67   : > { %5341 = vpow2.f32 %v5163_v55 }
0x1c6c   : > { %v5340_v51 = vpop.eup %5339 }
0x1c6d   : > { %2746 = vrot.lane.b32.xlu2 %v2664_v48, %s5544_s6  ;;  %2751 = vrot.lane.b32.xlu0 %v5340_v51, %s5545_s9  ;;  %v5342_v52 = vpop.eup %5341  ;;  %v601_v48 = vperm.slane %v593_v47, 0  ;;  %v595_v51 = vrot.slane %v5794_v1, 4 }
0x1c6e   : > { %v2130_v53 = vadd.f32 1.0, %v5342_v52 }
0x1c6f   : > { %v603_v55 = vperm.slane %v595_v51, 0 }
0x1c70   : > { %5343 = vrcp.f32 %v2130_v53  ;;  %v2142_v62 = vand.u32 2147483648, %v2130_v53  ;;  %vm2136_vm13 = vweird.f32 %v2130_v53  ;;  %v2140_v0 = vand.u32 2147483647, %v2130_v53 }
0x1c71   : > { %5345 = vpow2.f32 %v5171_v59 }
0x1c72   : > { %v2143_v5 = vor.u32 1.1754944e-38, %v2142_v62  ;;  %vm2141_vm15 = vcmp.eq.f32.partialorder %v2140_v0, 8.507059e+37  ;;  %v599_v62 = vperm.slane %v5794_v1, 0  ;;  %v596_v0 = vrot.slane %v5794_v1, 5 }
0x1c76   : > { %v5344_v54 = vpop.eup %5343 }
0x1c77   : > { %v2132_v56 = vmul.f32 %v5344_v54, %v2130_v53  ;;  %vm2137_vm12 = vweird.f32 %v5344_v54  ;;  %v5346_v2 = vpop.eup %5345 }
0x1c78   : > { %vm2138_vm14 = vmor %vm2136_vm13, %vm2137_vm12  ;;  %v2728_v6 = vadd.f32 1.0, %v5346_v2 }
0x1c79   : > { %v2133_v58 = vsub.f32 1.0, %v2132_v56 }
0x1c7a   : > { %5347 = vrcp.f32 %v2728_v6  ;;  %v2740_v12 = vand.u32 2147483648, %v2728_v6  ;;  %vm2734_vm12 = vweird.f32 %v2728_v6  ;;  %v2738_v13 = vand.u32 2147483647, %v2728_v6 }
0x1c7b   : > { %v2134_v60 = vmul.f32 %v5344_v54, %v2133_v58 }
0x1c7c   : > { %v2741_v14 = vor.u32 1.1754944e-38, %v2740_v12 }
0x1c7d   : > { %v2135_v61 = vadd.f32 %v5344_v54, %v2134_v60 }
0x1c7f   : > { %v2139_v4 = vsel %vm2138_vm14, %v5344_v54, %v2135_v61  ;;  %vm2739_vm14 = vcmp.eq.f32.partialorder %v2738_v13, 8.507059e+37  ;;  %v2212_v13 = vld [vmem:[%s5640_s11 + $0xd] sm:$0x1] }
0x1c80   : > { %v6278_v7 = vsel %vm2141_vm15, %v2143_v5, %v2139_v4  ;;  %v5348_v20 = vpop.eup %5347  ;;  %v604_v4 = vperm.slane %v596_v0, 0 }
0x1c81   : > { %v2730_v9 = vmul.f32 %v5348_v20, %v2728_v6  ;;  %vm2735_vm11 = vweird.f32 %v5348_v20  ;;  %v2147_v41 = vmul.f32 %v6278_v7, %v6137_v49  ;;  %v598_v49 = vrot.slane %v5794_v1, 7 }
0x1c82   : > { %vm2736_vm13 = vmor %vm2734_vm12, %vm2735_vm11  ;;  %vm7765_vm11 = vcmask 523264  }
0x1c83   : > { %v2731_v21 = vsub.f32 1.0, %v2730_v9  ;;  %v606_v56 = vperm.slane %v598_v49, 0 }
0x1c85   : > { %v2732_v11 = vmul.f32 %v5348_v20, %v2731_v21 }
0x1c87   : > { %v2733_v23 = vadd.f32 %v5348_v20, %v2732_v11  ;;  %v2213_v11 = vld [vmem:[%s5640_s11 + $0x1d] sm:$0x1] }
0x1c88   : > { %v2228_v12 = vrot.slane %v2213_v11, 7 }
0x1c89   : > { %v2737_v63 = vsel %vm2736_vm13, %v5348_v20, %v2733_v23  ;;  %v2214_v23 = vld [vmem:[%s5640_s11 + $0x2d] sm:$0x1] }
0x1c8a   : > { %v2742_v15 = vsel %vm2739_vm14, %v2741_v14, %v2737_v63  ;;  %v2215_v63 = vld [vmem:[%s5640_s11 + $0x3d] sm:$0x1]  ;;  %v2230_v14 = vrot.slane %v2214_v23, 6 }
0x1cbf   : > { %v2150_v18 = vpop.permute.xlu2 %2149 }
0x1cc0   : > { %v2152_v19 = vmul.f32 %v2150_v18, %v6278_v7 }
0x1cc2   : > { %2154 = vrot.lane.b32.xlu1 %v2152_v19, %s5544_s6 }
0x1cc7   : > { %v2747_v52 = vpop.permute.xlu2 %2746 }
0x1cc8   : > { %v2749_v53 = vmul.f32 %v2747_v52, %v2742_v15 }
0x1cdf   : > { %v2752_v10 = vpop.permute.xlu0 %2751 }
0x1ce0   : > { %v2754_v29 = vmul.f32 %v2752_v10, %v2742_v15  ;;  %v2216_v10 = vld [vmem:[%s5640_s11 + $0x4d] sm:$0x1] }
0x1ce1   : > { %v2234_v36 = vrot.slane %v2216_v10, 4 }
0x1ce2   : > { %2756 = vrot.lane.b32.xlu0 %v2754_v29, %s5544_s6  ;;  %v2232_v29 = vrot.slane %v2215_v63, 5 }
0x1cea   : > { %609 = vrot.lane.b32.xlu0 %v600_v33, %s5544_s6  ;;  %v2217_v33 = vld [vmem:[%s5640_s11 + $0x5d] sm:$0x1] }
0x1cf2   : > { %613 = vrot.lane.b32.xlu0 %v602_v37, %s5544_s6 }
0x1cfa   : > { %619 = vrot.lane.b32.xlu0 %v605_v40, %s5544_s6  ;;  %v2236_v40 = vrot.slane %v2217_v33, 3 }
0x1d34   : > { %v2155_v42 = vpop.permute.xlu1 %2154 }
0x1d35   : > { %v6291_v45 = vadd.f32 %v2155_v42, %v2147_v41  ;;  %v2219_v42 = vld [vmem:[%s5640_s11 + $0x7d] sm:$0x1] }
0x1d37   : > { %5349 = vtanh.f32 %v6291_v45 }
0x1d3d   : > { %v5350_v46 = vpop.eup %5349 }
0x1d3e   : > { %2160 = vrot.lane.b32.xlu1 %v5350_v46, %s5545_s9  ;;  %v2238_v46 = vrot.slane %v2218_v39, 2 }
0x1d46   : > { %611 = vrot.lane.b32.xlu1 %v601_v48, %s5544_s6  ;;  %v2240_v48 = vrot.slane %v2219_v42, 1 }
0x1d4e   : > { %615 = vrot.lane.b32.xlu1 %v603_v55, %s5544_s6 }
0x1d54   : > { %v2757_v54 = vpop.permute.xlu0 %2756 }
0x1d55   : > { %v6300_v58 = vadd.f32 %v2757_v54, %v2749_v53 }
0x1d56   : > { %621 = vrot.lane.b32.xlu1 %v606_v56, %s5544_s6 }
0x1d57   : > { %5351 = vtanh.f32 %v6300_v58 }
0x1d5c   : > { %v610_v59 = vpop.permute.xlu0 %609 }
0x1d5d   : > { %v5352_v60 = vpop.eup %5351  ;;  %632 = vst.msk [vmem:[#allocation2 + $0x11] sm:$0x1] %vm487_vm0, %v610_v59 }
0x1d5e   : > { %2762 = vrot.lane.b32.xlu2 %v5352_v60, %s5545_s9 }
0x1d64   : > { %v614_v61 = vpop.permute.xlu0 %613  ;;  %v2815_v53 = vld [vmem:[#allocation2 + $0x11] sm:$0x1] }
0x1d65   : > { %634 = vst.msk [vmem:[#allocation2 + $0x31] sm:$0x1] %vm487_vm0, %v614_v61  ;;  %v2830_v56 = vrot.slane %v2815_v53, 7 }
0x1d66   : > { %607 = vrot.lane.b32.xlu2 %v599_v62, %s5544_s6 }
0x1d6c   : > { %v620_v2 = vpop.permute.xlu0 %619  ;;  %v2817_v61 = vld [vmem:[#allocation2 + $0x31] sm:$0x1] }
0x1d6d   : > { %637 = vst.msk [vmem:[#allocation2 + $0x61] sm:$0x1] %vm487_vm0, %v620_v2 }
0x1d6e   : > { %617 = vrot.lane.b32.xlu2 %v604_v4, %s5544_s6 }
0x1db0   : > { %v2161_v5 = vpop.permute.xlu1 %2160 }
0x1db1   : > { %v6313_v6 = vmul.f32 %v2161_v5, %v6278_v7  ;;  %v2834_v5 = vrot.slane %v2817_v61, 5 }
0x1db3   : > { %2243 = vrot.lane.b32.xlu2 %v6313_v6, %s5546_s10 }
0x1db8   : > { %v2763_v18 = vpop.permute.xlu2 %2762  ;;  %v612_v19 = vpop.permute.xlu1 %611 }
0x1db9   : > { %v6317_v1 = vmul.f32 %v2763_v18, %v2742_v15  ;;  %633 = vst.msk [vmem:[#allocation2 + $0x21] sm:$0x1] %vm487_vm0, %v612_v19  ;;  %v2229_v15 = vsel %vm355_vm1, %v2228_v12, %v2212_v13 }
0x1dba   : > { %v2231_v25 = vsel %vm358_vm2, %v2230_v14, %v2229_v15 }
0x1dbb   : > { %2845 = vrot.lane.b32.xlu0 %v6317_v1, %s5545_s9  ;;  %v2233_v37 = vsel %vm361_vm3, %v2232_v29, %v2231_v25  ;;  %v6371_v29 = vld [vmem:[%s7756_s2] ss:$0 sm:$0xff] }
0x1dbc   : > { %v2235_v41 = vsel %vm364_vm4, %v2234_v36, %v2233_v37 }
0x1dbd   : > { %v2237_v47 = vsel %vm367_vm5, %v2236_v40, %v2235_v41 }
0x1dbe   : > { %v2239_v51 = vsel %vm370_vm6, %v2238_v46, %v2237_v47 }
0x1dbf   : > { %v2241_v55 = vsel %vm373_vm7, %v2240_v48, %v2239_v51 }
0x1dc0   : > { %v608_v20 = vpop.permute.xlu2 %607  ;;  %v616_v9 = vpop.permute.xlu1 %615  ;;  %v2816_v59 = vld [vmem:[#allocation2 + $0x21] sm:$0x1] }
0x1dc1   : > { %631 = vst.msk [vmem:[#allocation2 + $0x1] sm:$0x1] %vm487_vm0, %v608_v20  ;;  %v2832_v62 = vrot.slane %v2816_v59, 6 }
0x1dc2   : > { %635 = vst.msk [vmem:[#allocation2 + $0x41] sm:$0x1] %vm487_vm0, %v616_v9  ;;  %v2820_v9 = vld [vmem:[#allocation2 + $0x61] sm:$0x1] }
0x1dc3   : > { %v2840_v11 = vrot.slane %v2820_v9, 2 }
0x1dc8   : > { %v618_v7 = vpop.permute.xlu2 %617  ;;  %v622_v21 = vpop.permute.xlu1 %621  ;;  %v2814_v54 = vld [vmem:[#allocation2 + $0x1] sm:$0x1] }
0x1dc9   : > { %636 = vst.msk [vmem:[#allocation2 + $0x51] sm:$0x1] %vm487_vm0, %v618_v7  ;;  %v2831_v60 = vsel %vm355_vm1, %v2830_v56, %v2814_v54  ;;  %v2818_v0 = vld [vmem:[#allocation2 + $0x41] sm:$0x1] }
0x1dca   : > { %638 = vst.msk [vmem:[#allocation2 + $0x71] sm:$0x1] %vm487_vm0, %v622_v21  ;;  %v2833_v4 = vsel %vm358_vm2, %v2832_v62, %v2831_v60  ;;  %v2836_v18 = vrot.slane %v2818_v0, 4 }
0x1dcb   : > { %v2835_v19 = vsel %vm361_vm3, %v2834_v5, %v2833_v4 }
0x1dcc   : > { %v2837_v7 = vsel %vm364_vm4, %v2836_v18, %v2835_v19 }
0x1dd0   : > { %v2819_v2 = vld [vmem:[#allocation2 + $0x51] sm:$0x1] }
0x1dd1   : > { %v2838_v20 = vrot.slane %v2819_v2, 3  ;;  %v2821_v23 = vld [vmem:[#allocation2 + $0x71] sm:$0x1] }
0x1dd2   : > { %v2842_v13 = vrot.slane %v2821_v23, 1 }
0x1dd3   : > { %v2839_v21 = vsel %vm367_vm5, %v2838_v20, %v2837_v7 }
0x1dd4   : > { %v2841_v12 = vsel %vm370_vm6, %v2840_v11, %v2839_v21 }
0x1dd5   : > { %v2843_v14 = vsel %vm373_vm7, %v2842_v13, %v2841_v12  ;;  %v735_v13 = vrot.slane %v5829_v57, 1 }
0x1e0d   : > { %v2244_v52 = vpop.permute.xlu2 %2243 }
0x1e0e   : > { %v2246_v49 = vsel %vm7763_vm8, %v2241_v55, %v2244_v52 }
0x1e0f   : > { %5164 = vmatmul.msk.f32.vlgmr.msrb.gmra.mxu1 %vm7762_vm9, %v2246_v49 }
0x1e10   : > { %3432 = vmatpush.msrb.mxu1 %v6151_v16 }
0x1e12   : > { %3433 = vmatpush.msrb.mxu1 %v6156_v17 }
0x1e14   : > { %3434 = vmatpush.msrb.mxu1 %v6163_v26 }
0x1e16   : > { %3435 = vmatpush.msrb.mxu1 %v6184_v30 }
0x1e18   : > { %3436 = vmatpush.msrb.mxu1 %v6190_v31 }
0x1e1a   : > { %3437 = vmatpush.msrb.mxu1 %v6196_v32 }
0x1e1c   : > { %3438 = vmatpush.msrb.mxu1 %v6206_v34 }
0x1e1e   : > { %3439 = vmatpush.msrb.mxu1 %v6215_v35 }
0x1e2d   : > { %v2846_v63 = vpop.permute.xlu0 %2845 }
0x1e2e   : > { %v2848_v15 = vsel %vm7761_vm10, %v2843_v14, %v2846_v63  ;;  %v743_v63 = vperm.slane %v735_v13, 0  ;;  %v737_v14 = vrot.slane %v5829_v57, 3 }
0x1e2f   : > { %5172 = vmatmul.msk.f32.vlgmr.msra.gmra.mxu1 %vm7765_vm11, %v2848_v15 }
0x1e30   : > { %4004 = vmatpush.msra.mxu1 %v6151_v16  ;;  %v745_v15 = vperm.slane %v737_v14, 0  ;;  %v2360_v14 = vld [vmem:[%s5640_s11 + $0x5e] sm:$0x1] }
0x1e32   : > { %4005 = vmatpush.msra.mxu1 %v6156_v17 }
0x1e34   : > { %4006 = vmatpush.msra.mxu1 %v6163_v26 }
0x1e36   : > { %4007 = vmatpush.msra.mxu1 %v6184_v30 }
0x1e38   : > { %4008 = vmatpush.msra.mxu1 %v6190_v31 }
0x1e3a   : > { %4009 = vmatpush.msra.mxu1 %v6196_v32 }
0x1e3c   : > { %4010 = vmatpush.msra.mxu1 %v6206_v34 }
0x1e3e   : > { %4011 = vmatpush.msra.mxu1 %v6215_v35 }
0x1e8c   : > { %v2267_v10 = vpop.f32.mrf.mxu1 }
0x1e8d   : > { %v2268_v25 = vadd.f32 %v6371_v29, %v2267_v10  ;;  %v740_v10 = vrot.slane %v5829_v57, 6 }
0x1e8f   : > { %5353 = vtanh.f32 %v2268_v25  ;;  %v5165_v40 = vmul.f32 -1.442695, %v2268_v25  ;;  %v748_v25 = vperm.slane %v740_v10, 0 }
0x1e95   : > { %v5354_v33 = vpop.eup %5353 }
0x1e96   : > { %2292 = vrot.lane.b32.xlu1 %v5354_v33, %s5545_s9 }
0x1eac   : > { %v2869_v36 = vpop.f32.mrf.mxu1 }
0x1ead   : > { %v2870_v37 = vadd.f32 %v6272_v44, %v2869_v36 }
0x1eaf   : > { %5355 = vtanh.f32 %v2870_v37  ;;  %v5173_v41 = vmul.f32 -1.442695, %v2870_v37 }
0x1eb0   : > { %5357 = vpow2.f32 %v5165_v40 }
0x1eb1   : > { %5359 = vpow2.f32 %v5173_v41 }
0x1eb5   : > { %v5356_v39 = vpop.eup %5355 }
0x1eb6   : > { %2894 = vrot.lane.b32.xlu2 %v5356_v39, %s5545_s9  ;;  %v5358_v42 = vpop.eup %5357 }
0x1eb7   : > { %v2273_v46 = vadd.f32 1.0, %v5358_v42  ;;  %v5360_v47 = vpop.eup %5359 }
0x1eb8   : > { %v2875_v48 = vadd.f32 1.0, %v5360_v47 }
0x1eb9   : > { %5361 = vrcp.f32 %v2273_v46  ;;  %v2285_v60 = vand.u32 2147483648, %v2273_v46  ;;  %vm2279_vm12 = vweird.f32 %v2273_v46  ;;  %v2283_v61 = vand.u32 2147483647, %v2273_v46 }
0x1eba   : > { %5363 = vrcp.f32 %v2875_v48  ;;  %v2887_v20 = vand.u32 2147483648, %v2875_v48  ;;  %vm2881_vm10 = vweird.f32 %v2875_v48  ;;  %v2885_v9 = vand.u32 2147483647, %v2875_v48 }
0x1ebb   : > { %v2286_v2 = vor.u32 1.1754944e-38, %v2285_v60  ;;  %vm2284_vm14 = vcmp.eq.f32.partialorder %v2283_v61, 8.507059e+37 }
0x1ebc   : > { %v2888_v21 = vor.u32 1.1754944e-38, %v2887_v20  ;;  %vm2886_vm8 = vcmp.eq.f32.partialorder %v2885_v9, 8.507059e+37  ;;  %v2357_v20 = vld [vmem:[%s5640_s11 + $0x2e] sm:$0x1] }
0x1ebf   : > { %v5362_v51 = vpop.eup %5361 }
0x1ec0   : > { %v2275_v55 = vmul.f32 %v5362_v51, %v2273_v46  ;;  %v5364_v49 = vpop.eup %5363  ;;  %vm2280_vm15 = vweird.f32 %v5362_v51  ;;  %v736_v46 = vrot.slane %v5829_v57, 2 }
0x1ec1   : > { %v2877_v54 = vmul.f32 %v5364_v49, %v2875_v48  ;;  %vm2281_vm13 = vmor %vm2279_vm12, %vm2280_vm15  ;;  %vm2882_vm11 = vweird.f32 %v5364_v49  ;;  %vm7769_vm15 = vcmask 523264  }
0x1ec2   : > { %v2276_v52 = vsub.f32 1.0, %v2275_v55  ;;  %vm2883_vm9 = vmor %vm2881_vm10, %vm2882_vm11  ;;  %v744_v48 = vperm.slane %v736_v46, 0  ;;  %vm7768_vm10 = vcmask 261120  }
0x1ec3   : > { %v2878_v59 = vsub.f32 1.0, %v2877_v54 }
0x1ec4   : > { %v2277_v53 = vmul.f32 %v5362_v51, %v2276_v52  ;;  %v742_v52 = vperm.slane %v5829_v57, 0 }
0x1ec5   : > { %v2879_v0 = vmul.f32 %v5364_v49, %v2878_v59 }
0x1ec6   : > { %v2278_v56 = vadd.f32 %v5362_v51, %v2277_v53  ;;  %v739_v53 = vrot.slane %v5829_v57, 5 }
0x1ec7   : > { %v2880_v19 = vadd.f32 %v5364_v49, %v2879_v0 }
0x1ec8   : > { %v2282_v62 = vsel %vm2281_vm13, %v5362_v51, %v2278_v56  ;;  %v747_v59 = vperm.slane %v739_v53, 0 }
0x1ec9   : > { %v2287_v4 = vsel %vm2284_vm14, %v2286_v2, %v2282_v62  ;;  %v2884_v7 = vsel %vm2883_vm9, %v5364_v49, %v2880_v19  ;;  %v741_v49 = vrot.slane %v5829_v57, 7  ;;  %v2356_v19 = vld [vmem:[%s5640_s11 + $0x1e] sm:$0x1]  ;;  %vm7767_vm9 = vcmask 392192  }
0x1eca   : > { %v2889_v23 = vsel %vm2886_vm8, %v2888_v21, %v2884_v7  ;;  %v2290_v33 = vmul.f32 %v2287_v4, %v6291_v45  ;;  %v2371_v9 = vrot.slane %v2356_v19, 7  ;;  %v2355_v7 = vld [vmem:[%s5640_s11 + $0xe] sm:$0x1]  ;;  %v2358_v21 = vld [vmem:[%s5640_s11 + $0x3e] sm:$0x1]  ;;  %vm7766_vm8 = vcmask 130048  }
0x1ecb   : > { %v2892_v39 = vmul.f32 %v2889_v23, %v6300_v58  ;;  %v738_v58 = vrot.slane %v5829_v57, 4  ;;  %v749_v56 = vperm.slane %v741_v49, 0  ;;  %v2375_v13 = vrot.slane %v2358_v21, 5 }
0x1ecd   : > { %v746_v55 = vperm.slane %v738_v58, 0 }
0x1f08   : > { %v2293_v5 = vpop.permute.xlu1 %2292 }
0x1f09   : > { %v2295_v18 = vmul.f32 %v2293_v5, %v2287_v4 }
0x1f0b   : > { %2297 = vrot.lane.b32.xlu0 %v2295_v18, %s5544_s6 }
0x1f10   : > { %v2895_v11 = vpop.permute.xlu2 %2894 }
0x1f11   : > { %v2897_v12 = vmul.f32 %v2895_v11, %v2889_v23  ;;  %v2373_v11 = vrot.slane %v2357_v20, 6 }
0x1f13   : > { %2899 = vrot.lane.b32.xlu1 %v2897_v12, %s5544_s6  ;;  %v2359_v12 = vld [vmem:[%s5640_s11 + $0x4e] sm:$0x1] }
0x1f1b   : > { %752 = vrot.lane.b32.xlu1 %v743_v63, %s5544_s6 }
0x1f23   : > { %756 = vrot.lane.b32.xlu1 %v745_v15, %s5544_s6  ;;  %v2377_v15 = vrot.slane %v2359_v12, 4 }
0x1f2b   : > { %762 = vrot.lane.b32.xlu1 %v748_v25, %s5544_s6  ;;  %v2361_v25 = vld [vmem:[%s5640_s11 + $0x6e] sm:$0x1] }
0x1f7d   : > { %v2298_v36 = vpop.permute.xlu0 %2297 }
0x1f7e   : > { %v6386_v37 = vadd.f32 %v2298_v36, %v2290_v33  ;;  %v2379_v33 = vrot.slane %v2360_v14, 3 }
0x1f80   : > { %5365 = vtanh.f32 %v6386_v37 }
0x1f85   : > { %v2900_v40 = vpop.permute.xlu1 %2899 }
0x1f86   : > { %v5366_v41 = vpop.eup %5365  ;;  %v6390_v42 = vadd.f32 %v2900_v40, %v2892_v39  ;;  %v2362_v39 = vld [vmem:[%s5640_s11 + $0x7e] sm:$0x1]  ;;  %v2381_v40 = vrot.slane %v2361_v25, 2 }
0x1f87   : > { %2303 = vrot.lane.b32.xlu2 %v5366_v41, %s5545_s9  ;;  %v2383_v46 = vrot.slane %v2362_v39, 1 }
0x1f88   : > { %5367 = vtanh.f32 %v6390_v42 }
0x1f8d   : > { %v753_v47 = vpop.permute.xlu1 %752 }
0x1f8e   : > { %v5368_v45 = vpop.eup %5367  ;;  %775 = vst.msk [vmem:[#allocation2 + $0x12] sm:$0x1] %vm487_vm0, %v753_v47 }
0x1f8f   : > { %754 = vrot.lane.b32.xlu2 %v744_v48, %s5544_s6  ;;  %2905 = vrot.lane.b32.xlu0 %v5368_v45, %s5545_s9 }
0x1f95   : > { %v757_v51 = vpop.permute.xlu1 %756 }
0x1f96   : > { %777 = vst.msk [vmem:[#allocation2 + $0x32] sm:$0x1] %vm487_vm0, %v757_v51  ;;  %v2958_v51 = vld [vmem:[#allocation2 + $0x12] sm:$0x1] }
0x1f97   : > { %758 = vrot.lane.b32.xlu2 %v746_v55, %s5544_s6  ;;  %750 = vrot.lane.b32.xlu0 %v742_v52, %s5544_s6  ;;  %v2973_v49 = vrot.slane %v2958_v51, 7 }
0x1f9d   : > { %v763_v54 = vpop.permute.xlu1 %762 }
0x1f9e   : > { %780 = vst.msk [vmem:[#allocation2 + $0x62] sm:$0x1] %vm487_vm0, %v763_v54  ;;  %v2960_v54 = vld [vmem:[#allocation2 + $0x32] sm:$0x1] }
0x1f9f   : > { %764 = vrot.lane.b32.xlu2 %v749_v56, %s5544_s6  ;;  %760 = vrot.lane.b32.xlu0 %v747_v59, %s5544_s6 }
0x1fe1   : > { %v2304_v60 = vpop.permute.xlu2 %2303 }
0x1fe2   : > { %v6408_v61 = vmul.f32 %v2304_v60, %v2287_v4 }
0x1fe4   : > { %2386 = vrot.lane.b32.xlu0 %v6408_v61, %s5546_s10 }
0x1fe9   : > { %v755_v62 = vpop.permute.xlu2 %754 }
0x1fea   : > { %776 = vst.msk [vmem:[#allocation2 + $0x22] sm:$0x1] %vm487_vm0, %v755_v62 }
0x1ff1   : > { %v759_v57 = vpop.permute.xlu2 %758  ;;  %v2959_v52 = vld [vmem:[#allocation2 + $0x22] sm:$0x1] }
0x1ff2   : > { %778 = vst.msk [vmem:[#allocation2 + $0x42] sm:$0x1] %vm487_vm0, %v759_v57  ;;  %v2975_v56 = vrot.slane %v2959_v52, 6  ;;  %v2977_v57 = vrot.slane %v2960_v54, 5 }
0x1ff9   : > { %v765_v0 = vpop.permute.xlu2 %764  ;;  %v2961_v62 = vld [vmem:[#allocation2 + $0x42] sm:$0x1] }
0x1ffa   : > { %781 = vst.msk [vmem:[#allocation2 + $0x72] sm:$0x1] %vm487_vm0, %v765_v0 }
0x2001   : > { %v2906_v2 = vpop.permute.xlu0 %2905 }
0x2002   : > { %v6415_v5 = vmul.f32 %v2906_v2, %v2889_v23  ;;  %v2372_v23 = vsel %vm355_vm1, %v2371_v9, %v2355_v7  ;;  %v2964_v9 = vld [vmem:[#allocation2 + $0x72] sm:$0x1] }
0x2003   : > { %v2374_v63 = vsel %vm358_vm2, %v2373_v11, %v2372_v23  ;;  %v2985_v11 = vrot.slane %v2964_v9, 1 }
0x2004   : > { %2988 = vrot.lane.b32.xlu1 %v6415_v5, %s5545_s9  ;;  %v2376_v10 = vsel %vm361_vm3, %v2375_v13, %v2374_v63 }
0x2005   : > { %v2378_v36 = vsel %vm364_vm4, %v2377_v15, %v2376_v10 }
0x2006   : > { %v2380_v41 = vsel %vm367_vm5, %v2379_v33, %v2378_v36 }
0x2007   : > { %v2382_v47 = vsel %vm370_vm6, %v2381_v40, %v2380_v41 }
0x2008   : > { %v2384_v48 = vsel %vm373_vm7, %v2383_v46, %v2382_v47 }
0x2009   : > { %v751_v4 = vpop.permute.xlu0 %750 }
0x200a   : > { %774 = vst.msk [vmem:[#allocation2 + $0x2] sm:$0x1] %vm487_vm0, %v751_v4  ;;  %v2979_v4 = vrot.slane %v2961_v62, 4 }
0x2011   : > { %v761_v18 = vpop.permute.xlu0 %760  ;;  %v2957_v55 = vld [vmem:[#allocation2 + $0x2] sm:$0x1] }
0x2012   : > { %779 = vst.msk [vmem:[#allocation2 + $0x52] sm:$0x1] %vm487_vm0, %v761_v18  ;;  %v2974_v53 = vsel %vm355_vm1, %v2973_v49, %v2957_v55  ;;  %v2963_v18 = vld [vmem:[#allocation2 + $0x62] sm:$0x1] }
0x2013   : > { %v2976_v60 = vsel %vm358_vm2, %v2975_v56, %v2974_v53  ;;  %v2983_v7 = vrot.slane %v2963_v18, 2 }
0x2014   : > { %v2978_v0 = vsel %vm361_vm3, %v2977_v57, %v2976_v60 }
0x2015   : > { %v2980_v19 = vsel %vm364_vm4, %v2979_v4, %v2978_v0  ;;  %v878_v0 = vrot.slane %v5864_v50, 1  ;;  %v880_v4 = vrot.slane %v5864_v50, 3 }
0x2017   : > { %v888_v18 = vperm.slane %v880_v4, 0 }
0x2019   : > { %v2962_v59 = vld [vmem:[#allocation2 + $0x52] sm:$0x1] }
0x201a   : > { %v2981_v2 = vrot.slane %v2962_v59, 3 }
0x201c   : > { %v2982_v20 = vsel %vm367_vm5, %v2981_v2, %v2980_v19  ;;  %v886_v2 = vperm.slane %v878_v0, 0  ;;  %v883_v19 = vrot.slane %v5864_v50, 6 }
0x201d   : > { %v2984_v21 = vsel %vm370_vm6, %v2983_v7, %v2982_v20 }
0x201e   : > { %v2986_v23 = vsel %vm373_vm7, %v2985_v11, %v2984_v21  ;;  %v891_v20 = vperm.slane %v883_v19, 0 }
0x2056   : > { %v2387_v45 = vpop.permute.xlu0 %2386 }
0x2057   : > { %v2389_v58 = vsel %vm7766_vm8, %v2384_v48, %v2387_v45 }
0x2058   : > { %5166 = vmatmul.msk.f32.vlgmr.msrb.gmra.mxu2 %vm7767_vm9, %v2389_v58 }
0x2059   : > { %3575 = vmatpush.msrb.mxu2 %v6151_v16 }
0x205b   : > { %3576 = vmatpush.msrb.mxu2 %v6156_v17 }
0x205d   : > { %3577 = vmatpush.msrb.mxu2 %v6163_v26 }
0x205f   : > { %3578 = vmatpush.msrb.mxu2 %v6184_v30 }
0x2061   : > { %3579 = vmatpush.msrb.mxu2 %v6190_v31 }
0x2063   : > { %3580 = vmatpush.msrb.mxu2 %v6196_v32 }
0x2065   : > { %3581 = vmatpush.msrb.mxu2 %v6206_v34 }
0x2067   : > { %3582 = vmatpush.msrb.mxu2 %v6215_v35 }
0x2076   : > { %v2989_v12 = vpop.permute.xlu1 %2988 }
0x2077   : > { %v2991_v13 = vsel %vm7768_vm10, %v2986_v23, %v2989_v12  ;;  %v879_v23 = vrot.slane %v5864_v50, 2 }
0x2078   : > { %5174 = vmatmul.msk.f32.vlgmr.msra.gmra.mxu2 %vm7769_vm15, %v2991_v13  ;;  %v881_v13 = vrot.slane %v5864_v50, 4 }
0x2079   : > { %4147 = vmatpush.msra.mxu2 %v6151_v16  ;;  %v887_v12 = vperm.slane %v879_v23, 0 }
0x207b   : > { %4148 = vmatpush.msra.mxu2 %v6156_v17 }
0x207d   : > { %4149 = vmatpush.msra.mxu2 %v6163_v26 }
0x207f   : > { %4150 = vmatpush.msra.mxu2 %v6184_v30 }
0x2081   : > { %4151 = vmatpush.msra.mxu2 %v6190_v31 }
0x2083   : > { %4152 = vmatpush.msra.mxu2 %v6196_v32 }
0x2085   : > { %4153 = vmatpush.msra.mxu2 %v6206_v34 }
0x2087   : > { %4154 = vmatpush.msra.mxu2 %v6215_v35 }
0x20db   : > { %v2410_v63 = vpop.f32.mrf.mxu2 }
0x20dc   : > { %v2411_v14 = vadd.f32 %v6371_v29, %v2410_v63  ;;  %v889_v63 = vperm.slane %v881_v13, 0 }
0x20de   : > { %5369 = vtanh.f32 %v2411_v14  ;;  %v5167_v30 = vmul.f32 -1.442695, %v2411_v14 }
0x20e4   : > { %v5370_v15 = vpop.eup %5369 }
0x20e5   : > { %2435 = vrot.lane.b32.xlu2 %v5370_v15, %s5545_s9 }
0x20fb   : > { %v3012_v16 = vpop.f32.mrf.mxu2 }
0x20fc   : > { %v3013_v17 = vadd.f32 %v6272_v44, %v3012_v16 }
0x20fe   : > { %5371 = vtanh.f32 %v3013_v17  ;;  %v5175_v47 = vmul.f32 -1.442695, %v3013_v17 }
0x20ff   : > { %5373 = vpow2.f32 %v5167_v30 }
0x2104   : > { %v5372_v26 = vpop.eup %5371 }
0x2105   : > { %3037 = vrot.lane.b32.xlu0 %v5372_v26, %s5545_s9  ;;  %v5374_v31 = vpop.eup %5373 }
0x2106   : > { %v2416_v32 = vadd.f32 1.0, %v5374_v31 }
0x2108   : > { %5375 = vrcp.f32 %v2416_v32  ;;  %v2428_v33 = vand.u32 2147483648, %v2416_v32  ;;  %vm2422_vm13 = vweird.f32 %v2416_v32  ;;  %v2426_v36 = vand.u32 2147483647, %v2416_v32 }
0x2109   : > { %5377 = vpow2.f32 %v5175_v47 }
0x210a   : > { %v2429_v39 = vor.u32 1.1754944e-38, %v2428_v33  ;;  %vm2427_vm11 = vcmp.eq.f32.partialorder %v2426_v36, 8.507059e+37 }
0x210e   : > { %v5376_v34 = vpop.eup %5375 }
0x210f   : > { %v2418_v35 = vmul.f32 %v5376_v34, %v2416_v32  ;;  %vm2423_vm12 = vweird.f32 %v5376_v34  ;;  %v5378_v48 = vpop.eup %5377  ;;  %v885_v32 = vperm.slane %v5864_v50, 0 }
0x2110   : > { %vm2424_vm14 = vmor %vm2422_vm13, %vm2423_vm12  ;;  %v3018_v45 = vadd.f32 1.0, %v5378_v48  ;;  %v2498_v48 = vld [vmem:[%s5640_s11 + $0xf] sm:$0x1]  ;;  %vm7770_vm12 = vcmask 130048   ;;  %vm7771_vm13 = vcmask 392192  }
0x2111   : > { %v2419_v10 = vsub.f32 1.0, %v2418_v35 }
0x2112   : > { %5379 = vrcp.f32 %v3018_v45  ;;  %v3030_v53 = vand.u32 2147483648, %v3018_v45  ;;  %vm3024_vm9 = vweird.f32 %v3018_v45  ;;  %v3028_v54 = vand.u32 2147483647, %v3018_v45 }
0x2113   : > { %v2420_v29 = vmul.f32 %v5376_v34, %v2419_v10 }
0x2114   : > { %v3031_v59 = vor.u32 1.1754944e-38, %v3030_v53  ;;  %vm3029_vm15 = vcmp.eq.f32.partialorder %v3028_v54, 8.507059e+37  ;;  %v2503_v53 = vld [vmem:[%s5640_s11 + $0x5f] sm:$0x1] }
0x2115   : > { %v2421_v25 = vadd.f32 %v5376_v34, %v2420_v29 }
0x2117   : > { %v2425_v44 = vsel %vm2424_vm14, %v5376_v34, %v2421_v25  ;;  %vm7772_vm14 = vcmask 261120  }
0x2118   : > { %v6467_v41 = vsel %vm2427_vm11, %v2429_v39, %v2425_v44  ;;  %v5380_v58 = vpop.eup %5379  ;;  %vm7773_vm11 = vcmask 523264  }
0x2119   : > { %v3020_v51 = vmul.f32 %v5380_v58, %v3018_v45  ;;  %vm3025_vm8 = vweird.f32 %v5380_v58  ;;  %v2433_v9 = vmul.f32 %v6467_v41, %v6386_v37  ;;  %v884_v37 = vrot.slane %v5864_v50, 7  ;;  %v2501_v45 = vld [vmem:[%s5640_s11 + $0x3f] sm:$0x1] }
0x211a   : > { %vm3026_vm10 = vmor %vm3024_vm9, %vm3025_vm8 }
0x211b   : > { %v3021_v55 = vsub.f32 1.0, %v3020_v51  ;;  %v892_v16 = vperm.slane %v884_v37, 0 }
0x211d   : > { %v3022_v52 = vmul.f32 %v5380_v58, %v3021_v55  ;;  %v2502_v55 = vld [vmem:[%s5640_s11 + $0x4f] sm:$0x1] }
0x211e   : > { %v2520_v54 = vrot.slane %v2502_v55, 4  ;;  %v6587_v55 = vld [vmem:[%s7757_s3] sm:$0xff] }
0x211f   : > { %v3023_v49 = vadd.f32 %v5380_v58, %v3022_v52  ;;  %v2518_v52 = vrot.slane %v2501_v45, 5  ;;  %v6569_v45 = vld [vmem:[%s7757_s3 + $0x18] sm:$0xff] }
0x2121   : > { %v3027_v56 = vsel %vm3026_vm10, %v5380_v58, %v3023_v49 }
0x2122   : > { %v3032_v62 = vsel %vm3029_vm15, %v3031_v59, %v3027_v56 }
0x2123   : > { %v3035_v14 = vmul.f32 %v3032_v62, %v6390_v42  ;;  %v882_v42 = vrot.slane %v5864_v50, 5 }
0x2125   : > { %v890_v35 = vperm.slane %v882_v42, 0 }
0x213f   : > { %v2436_v40 = vpop.permute.xlu2 %2435 }
0x2140   : > { %v2438_v46 = vmul.f32 %v2436_v40, %v6467_v41 }
0x2142   : > { %2440 = vrot.lane.b32.xlu1 %v2438_v46, %s5544_s6  ;;  %v2500_v46 = vld [vmem:[%s5640_s11 + $0x2f] sm:$0x1] }
0x2143   : > { %v2516_v58 = vrot.slane %v2500_v46, 6 }
0x2177   : > { %v3038_v60 = vpop.permute.xlu0 %3037 }
0x2178   : > { %v3040_v57 = vmul.f32 %v3038_v60, %v3032_v62  ;;  %v2504_v60 = vld [vmem:[%s5640_s11 + $0x6f] sm:$0x1] }
0x2179   : > { %v2524_v19 = vrot.slane %v2504_v60, 2 }
0x217a   : > { %3042 = vrot.lane.b32.xlu2 %v3040_v57, %s5544_s6 }
0x2182   : > { %895 = vrot.lane.b32.xlu2 %v886_v2, %s5544_s6 }
0x218a   : > { %899 = vrot.lane.b32.xlu2 %v888_v18, %s5544_s6  ;;  %v2505_v18 = vld [vmem:[%s5640_s11 + $0x7f] sm:$0x1] }
0x218b   : > { %v2526_v23 = vrot.slane %v2505_v18, 1 }
0x2192   : > { %905 = vrot.lane.b32.xlu2 %v891_v20, %s5544_s6 }
0x21b4   : > { %v2441_v7 = vpop.permute.xlu1 %2440 }
0x21b5   : > { %v6480_v21 = vadd.f32 %v2441_v7, %v2433_v9 }
0x21b7   : > { %5381 = vtanh.f32 %v6480_v21 }
0x21bd   : > { %v5382_v11 = vpop.eup %5381 }
0x21be   : > { %2446 = vrot.lane.b32.xlu0 %v5382_v11, %s5545_s9 }
0x21c6   : > { %897 = vrot.lane.b32.xlu0 %v887_v12, %s5544_s6 }
0x21ce   : > { %901 = vrot.lane.b32.xlu0 %v889_v63, %s5544_s6 }
0x21d4   : > { %v3043_v15 = vpop.permute.xlu2 %3042 }
0x21d5   : > { %v6490_v17 = vadd.f32 %v3043_v15, %v3035_v14 }
0x21d6   : > { %907 = vrot.lane.b32.xlu0 %v892_v16, %s5544_s6 }
0x21d7   : > { %5383 = vtanh.f32 %v6490_v17 }
0x21dc   : > { %v896_v26 = vpop.permute.xlu2 %895 }
0x21dd   : > { %v5384_v30 = vpop.eup %5383  ;;  %918 = vst.msk [vmem:[#allocation2 + $0x13] sm:$0x1] %vm487_vm0, %v896_v26 }
0x21de   : > { %3048 = vrot.lane.b32.xlu1 %v5384_v30, %s5545_s9 }
0x21e4   : > { %v900_v31 = vpop.permute.xlu2 %899  ;;  %v3101_v59 = vld [vmem:[#allocation2 + $0x13] sm:$0x1] }
0x21e5   : > { %920 = vst.msk [vmem:[#allocation2 + $0x33] sm:$0x1] %vm487_vm0, %v900_v31  ;;  %v3116_v4 = vrot.slane %v3101_v59, 7  ;;  %v1021_v59 = vrot.slane %v5899_v43, 1 }
0x21e6   : > { %893 = vrot.lane.b32.xlu1 %v885_v32, %s5544_s6 }
0x21e7   : > { %v1029_v60 = vperm.slane %v1021_v59, 0 }
0x21ec   : > { %v906_v34 = vpop.permute.xlu2 %905  ;;  %v3103_v7 = vld [vmem:[#allocation2 + $0x33] sm:$0x1] }
0x21ed   : > { %923 = vst.msk [vmem:[#allocation2 + $0x63] sm:$0x1] %vm487_vm0, %v906_v34  ;;  %v3120_v14 = vrot.slane %v3103_v7, 5 }
0x21ee   : > { %903 = vrot.lane.b32.xlu1 %v890_v35, %s5544_s6 }
0x21f4   : > { %v3106_v32 = vld [vmem:[#allocation2 + $0x63] sm:$0x1] }
0x2230   : > { %v2447_v10 = vpop.permute.xlu0 %2446 }
0x2231   : > { %v6503_v29 = vmul.f32 %v2447_v10, %v6467_v41  ;;  %v2499_v41 = vld [vmem:[%s5640_s11 + $0x1f] sm:$0x1] }
0x2232   : > { %v2514_v47 = vrot.slane %v2499_v41, 7 }
0x2233   : > { %2529 = vrot.lane.b32.xlu1 %v6503_v29, %s5546_s10 }
0x2234   : > { %v2515_v51 = vsel %vm355_vm1, %v2514_v47, %v2498_v48  ;;  %v6562_v48 = vld [vmem:[%s7757_s3 + $0x20] sm:$0xff] }
0x2235   : > { %v2517_v49 = vsel %vm358_vm2, %v2516_v58, %v2515_v51  ;;  %v6575_v58 = vld [vmem:[%s7757_s3 + $0x10] sm:$0xff]  ;;  %v6581_v51 = vld [vmem:[%s7757_s3 + $0x8] sm:$0xff] }
0x2236   : > { %v2519_v56 = vsel %vm361_vm3, %v2518_v52, %v2517_v49 }
0x2237   : > { %v2521_v57 = vsel %vm364_vm4, %v2520_v54, %v2519_v56 }
0x2238   : > { %v898_v25 = vpop.permute.xlu0 %897 }
0x2239   : > { %919 = vst.msk [vmem:[#allocation2 + $0x23] sm:$0x1] %vm487_vm0, %v898_v25  ;;  %v3126_v25 = vrot.slane %v3106_v32, 2  ;;  %v1024_v32 = vrot.slane %v5899_v43, 4 }
0x2240   : > { %v902_v50 = vpop.permute.xlu0 %901  ;;  %v3102_v2 = vld [vmem:[#allocation2 + $0x23] sm:$0x1] }
0x2241   : > { %921 = vst.msk [vmem:[#allocation2 + $0x43] sm:$0x1] %vm487_vm0, %v902_v50  ;;  %v3118_v11 = vrot.slane %v3102_v2, 6  ;;  %v6541_v50 = vld [vmem:[%s7757_s3 + $0x38] sm:$0xff] }
0x2248   : > { %v908_v33 = vpop.permute.xlu0 %907  ;;  %v3104_v37 = vld [vmem:[#allocation2 + $0x43] sm:$0x1] }
0x2249   : > { %924 = vst.msk [vmem:[#allocation2 + $0x73] sm:$0x1] %vm487_vm0, %v908_v33  ;;  %v3122_v30 = vrot.slane %v3104_v37, 4 }
0x2250   : > { %v3049_v36 = vpop.permute.xlu1 %3048  ;;  %v3107_v10 = vld [vmem:[#allocation2 + $0x73] sm:$0x1] }
0x2251   : > { %v6510_v44 = vmul.f32 %v3049_v36, %v3032_v62  ;;  %v2522_v62 = vrot.slane %v2503_v53, 3  ;;  %v6548_v36 = vld [vmem:[%s7757_s3 + $0x30] sm:$0xff]  ;;  %v6603_v53 = vld [vmem:[%s7758_s4] ss:$0 sm:$0xff] }
0x2253   : > { %3131 = vrot.lane.b32.xlu2 %v6510_v44, %s5545_s9  ;;  %v2523_v20 = vsel %vm367_vm5, %v2522_v62, %v2521_v57  ;;  %v1023_v62 = vrot.slane %v5899_v43, 3 }
0x2254   : > { %v2525_v12 = vsel %vm370_vm6, %v2524_v19, %v2523_v20 }
0x2255   : > { %v2527_v15 = vsel %vm373_vm7, %v2526_v23, %v2525_v12  ;;  %v1031_v57 = vperm.slane %v1023_v62, 0 }
0x2258   : > { %v894_v39 = vpop.permute.xlu1 %893 }
0x2259   : > { %917 = vst.msk [vmem:[#allocation2 + $0x3] sm:$0x1] %vm487_vm0, %v894_v39  ;;  %v3128_v39 = vrot.slane %v3107_v10, 1 }
0x2260   : > { %v904_v40 = vpop.permute.xlu1 %903  ;;  %v3100_v0 = vld [vmem:[#allocation2 + $0x3] sm:$0x1] }
0x2261   : > { %922 = vst.msk [vmem:[#allocation2 + $0x53] sm:$0x1] %vm487_vm0, %v904_v40  ;;  %v3117_v9 = vsel %vm355_vm1, %v3116_v4, %v3100_v0  ;;  %v6554_v40 = vld [vmem:[%s7757_s3 + $0x28] sm:$0xff]  ;;  %v1026_v0 = vrot.slane %v5899_v43, 6 }
0x2262   : > { %v3119_v63 = vsel %vm358_vm2, %v3118_v11, %v3117_v9 }
0x2263   : > { %v3121_v16 = vsel %vm361_vm3, %v3120_v14, %v3119_v63  ;;  %v1034_v2 = vperm.slane %v1026_v0, 0 }
0x2264   : > { %v3123_v34 = vsel %vm364_vm4, %v3122_v30, %v3121_v16 }
0x2268   : > { %v3105_v13 = vld [vmem:[#allocation2 + $0x53] sm:$0x1] }
0x2269   : > { %v3124_v26 = vrot.slane %v3105_v13, 3 }
0x226b   : > { %v3125_v35 = vsel %vm367_vm5, %v3124_v26, %v3123_v34  ;;  %v1022_v26 = vrot.slane %v5899_v43, 2  ;;  %v1032_v34 = vperm.slane %v1024_v32, 0 }
0x226c   : > { %v3127_v33 = vsel %vm370_vm6, %v3126_v25, %v3125_v35  ;;  %v1027_v35 = vrot.slane %v5899_v43, 7 }
0x226d   : > { %v3129_v46 = vsel %vm373_vm7, %v3128_v39, %v3127_v33 }
0x226e   : > { %v1035_v25 = vperm.slane %v1027_v35, 0 }
0x22a5   : > { %v2530_v31 = vpop.permute.xlu1 %2529 }
0x22a6   : > { %v2532_v42 = vsel %vm7770_vm12, %v2527_v15, %v2530_v31  ;;  %v1030_v31 = vperm.slane %v1022_v26, 0  ;;  %vm7774_vm12 = vmmov %vm7772_vm14 }
0x22a7   : > { %5168 = vmatmul.msk.f32.vlgmr.msrb.gmra.mxu3 %vm7771_vm13, %v2532_v42  ;;  %vm7775_vm13 = vmmov %vm7773_vm11 }
0x22a8   : > { %3718 = vmatpush.msrb.mxu3 %v6541_v50 }
0x22aa   : > { %3719 = vmatpush.msrb.mxu3 %v6548_v36 }
0x22ac   : > { %3720 = vmatpush.msrb.mxu3 %v6554_v40 }
0x22ad   : > { %v3132_v41 = vpop.permute.xlu2 %3131 }
0x22ae   : > { %v3134_v47 = vsel %vm7772_vm14, %v3129_v46, %v3132_v41  ;;  %3721 = vmatpush.msrb.mxu3 %v6562_v48 }
0x22af   : > { %5176 = vmatmul.msk.f32.vlgmr.msra.gmra.mxu3 %vm7773_vm11, %v3134_v47 }
0x22b0   : > { %3722 = vmatpush.msrb.mxu3 %v6569_v45 }
0x22b2   : > { %3723 = vmatpush.msrb.mxu3 %v6575_v58 }
0x22b4   : > { %3724 = vmatpush.msrb.mxu3 %v6581_v51 }
0x22b6   : > { %3725 = vmatpush.msrb.mxu3 %v6587_v55 }
0x22b8   : > { %4290 = vmatpush.msra.mxu3 %v6541_v50 }
0x22ba   : > { %4291 = vmatpush.msra.mxu3 %v6548_v36 }
0x22bc   : > { %4292 = vmatpush.msra.mxu3 %v6554_v40 }
0x22be   : > { %4293 = vmatpush.msra.mxu3 %v6562_v48 }
0x22c0   : > { %4294 = vmatpush.msra.mxu3 %v6569_v45 }
0x22c2   : > { %4295 = vmatpush.msra.mxu3 %v6575_v58 }
0x22c4   : > { %4296 = vmatpush.msra.mxu3 %v6581_v51 }
0x22c6   : > { %4297 = vmatpush.msra.mxu3 %v6587_v55 }
0x232a   : > { %v6598_v52 = vpop.f32.mrf.mxu3 }
0x2332   : > { %v3155_v49 = vpop.f32.mrf.mxu3 }
0x2333   : > { %v3156_v54 = vadd.f32 %v6603_v53, %v3155_v49 }
0x2335   : > { %5385 = vtanh.f32 %v3156_v54  ;;  %v5177_v4 = vmul.f32 -1.442695, %v3156_v54  ;;  %v1028_v54 = vperm.slane %v5899_v43, 0 }
0x2337   : > { %5387 = vpow2.f32 %v5177_v4 }
0x233b   : > { %v5386_v56 = vpop.eup %5385 }
0x233c   : > { %3180 = vrot.lane.b32.xlu0 %v5386_v56, %s5545_s9 }
0x233d   : > { %v5388_v18 = vpop.eup %5387 }
0x233e   : > { %v3161_v19 = vadd.f32 1.0, %v5388_v18 }
0x2340   : > { %5389 = vrcp.f32 %v3161_v19  ;;  %v3173_v12 = vand.u32 2147483648, %v3161_v19  ;;  %vm3167_vm9 = vweird.f32 %v3161_v19  ;;  %v3171_v13 = vand.u32 2147483647, %v3161_v19 }
0x2342   : > { %v3174_v37 = vor.u32 1.1754944e-38, %v3173_v12  ;;  %vm3172_vm15 = vcmp.eq.f32.partialorder %v3171_v13, 8.507059e+37 }
0x2344   : > { %1038 = vrot.lane.b32.xlu0 %v1029_v60, %s5544_s6 }
0x2346   : > { %v5390_v20 = vpop.eup %5389 }
0x2347   : > { %v3163_v9 = vmul.f32 %v5390_v20, %v3161_v19  ;;  %vm3168_vm8 = vweird.f32 %v5390_v20 }
0x2348   : > { %vm3169_vm10 = vmor %vm3167_vm9, %vm3168_vm8 }
0x2349   : > { %v3164_v7 = vsub.f32 1.0, %v3163_v9 }
0x234b   : > { %v3165_v11 = vmul.f32 %v5390_v20, %v3164_v7 }
0x234c   : > { %1042 = vrot.lane.b32.xlu0 %v1031_v57, %s5544_s6 }
0x234d   : > { %v3166_v23 = vadd.f32 %v5390_v20, %v3165_v11 }
0x234f   : > { %v3170_v63 = vsel %vm3169_vm10, %v5390_v20, %v3166_v23  ;;  %vm7776_vm10 = vmmov %vm7774_vm12 }
0x2350   : > { %v3175_v15 = vsel %vm3172_vm15, %v3174_v37, %v3170_v63  ;;  %vm7777_vm15 = vmmov %vm7775_vm13 }
0x2351   : > { %v3178_v33 = vmul.f32 %v3175_v15, %v6490_v17  ;;  %v1025_v17 = vrot.slane %v5899_v43, 5 }
0x2353   : > { %v1033_v59 = vperm.slane %v1025_v17, 0 }
0x2354   : > { %1048 = vrot.lane.b32.xlu0 %v1034_v2, %s5544_s6 }
0x23ae   : > { %v3181_v14 = vpop.permute.xlu0 %3180 }
0x23af   : > { %v3183_v16 = vmul.f32 %v3181_v14, %v3175_v15 }
0x23b1   : > { %3185 = vrot.lane.b32.xlu1 %v3183_v16, %s5544_s6 }
0x23b6   : > { %v1039_v30 = vpop.permute.xlu0 %1038 }
0x23b7   : > { %1061 = vst.msk [vmem:[#allocation2 + $0x14] sm:$0x1] %vm487_vm0, %v1039_v30 }
0x23b9   : > { %1040 = vrot.lane.b32.xlu1 %v1030_v31, %s5544_s6 }
0x23be   : > { %v1043_v42 = vpop.permute.xlu0 %1042  ;;  %v3244_v2 = vld [vmem:[#allocation2 + $0x14] sm:$0x1] }
0x23bf   : > { %1063 = vst.msk [vmem:[#allocation2 + $0x34] sm:$0x1] %vm487_vm0, %v1043_v42  ;;  %v3259_v18 = vrot.slane %v3244_v2, 7 }
0x23c1   : > { %1044 = vrot.lane.b32.xlu1 %v1032_v34, %s5544_s6 }
0x23c6   : > { %v1049_v10 = vpop.permute.xlu0 %1048  ;;  %v3246_v20 = vld [vmem:[#allocation2 + $0x34] sm:$0x1] }
0x23c7   : > { %1066 = vst.msk [vmem:[#allocation2 + $0x64] sm:$0x1] %vm487_vm0, %v1049_v10  ;;  %v3263_v12 = vrot.slane %v3246_v20, 5 }
0x23c9   : > { %1050 = vrot.lane.b32.xlu1 %v1035_v25, %s5544_s6 }
0x23ce   : > { %v3249_v14 = vld [vmem:[#allocation2 + $0x64] sm:$0x1] }
0x23cf   : > { %v3269_v30 = vrot.slane %v3249_v14, 2 }
0x2423   : > { %v3186_v39 = vpop.permute.xlu1 %3185 }
0x2424   : > { %v6624_v41 = vadd.f32 %v3186_v39, %v3178_v33  ;;  %v1164_v39 = vrot.slane %v5934_v38, 1 }
0x2426   : > { %5391 = vtanh.f32 %v6624_v41 }
0x242b   : > { %v1041_v46 = vpop.permute.xlu1 %1040 }
0x242c   : > { %v5392_v47 = vpop.eup %5391  ;;  %1062 = vst.msk [vmem:[#allocation2 + $0x24] sm:$0x1] %vm487_vm0, %v1041_v46  ;;  %v1172_v46 = vperm.slane %v1164_v39, 0 }
0x242d   : > { %3191 = vrot.lane.b32.xlu2 %v5392_v47, %s5545_s9  ;;  %v1166_v47 = vrot.slane %v5934_v38, 3 }
0x2433   : > { %v1045_v49 = vpop.permute.xlu1 %1044  ;;  %v3245_v4 = vld [vmem:[#allocation2 + $0x24] sm:$0x1] }
0x2434   : > { %1064 = vst.msk [vmem:[#allocation2 + $0x44] sm:$0x1] %vm487_vm0, %v1045_v49  ;;  %v3261_v9 = vrot.slane %v3245_v4, 6  ;;  %v1174_v49 = vperm.slane %v1166_v47, 0 }
0x2435   : > { %1036 = vrot.lane.b32.xlu2 %v1028_v54, %s5544_s6  ;;  %v1169_v54 = vrot.slane %v5934_v38, 6 }
0x2437   : > { %v1177_v17 = vperm.slane %v1169_v54, 0 }
0x243b   : > { %v1051_v56 = vpop.permute.xlu1 %1050  ;;  %v3247_v23 = vld [vmem:[#allocation2 + $0x44] sm:$0x1] }
0x243c   : > { %1067 = vst.msk [vmem:[#allocation2 + $0x74] sm:$0x1] %vm487_vm0, %v1051_v56  ;;  %v3265_v37 = vrot.slane %v3247_v23, 4 }
0x243d   : > { %1046 = vrot.lane.b32.xlu2 %v1033_v59, %s5544_s6 }
0x2443   : > { %v3250_v26 = vld [vmem:[#allocation2 + $0x74] sm:$0x1] }
0x2444   : > { %v3271_v32 = vrot.slane %v3250_v26, 1 }
0x2487   : > { %v3192_v60 = vpop.permute.xlu2 %3191 }
0x2488   : > { %v6635_v62 = vmul.f32 %v3192_v60, %v3175_v15 }
0x248a   : > { %3274 = vrot.lane.b32.xlu2 %v6635_v62, %s5545_s9 }
0x248f   : > { %v1037_v57 = vpop.permute.xlu2 %1036 }
0x2490   : > { %1060 = vst.msk [vmem:[#allocation2 + $0x4] sm:$0x1] %vm487_vm0, %v1037_v57 }
0x2497   : > { %v1047_v0 = vpop.permute.xlu2 %1046  ;;  %v3243_v43 = vld [vmem:[#allocation2 + $0x4] sm:$0x1] }
0x2498   : > { %1065 = vst.msk [vmem:[#allocation2 + $0x54] sm:$0x1] %vm487_vm0, %v1047_v0  ;;  %v3260_v19 = vsel %vm355_vm1, %v3259_v18, %v3243_v43 }
0x2499   : > { %v3262_v11 = vsel %vm358_vm2, %v3261_v9, %v3260_v19 }
0x249a   : > { %v3264_v13 = vsel %vm361_vm3, %v3263_v12, %v3262_v11  ;;  %v1165_v12 = vrot.slane %v5934_v38, 2 }
0x249b   : > { %v3266_v15 = vsel %vm364_vm4, %v3265_v37, %v3264_v13  ;;  %v1167_v37 = vrot.slane %v5934_v38, 4 }
0x249f   : > { %v3248_v7 = vld [vmem:[#allocation2 + $0x54] sm:$0x1] }
0x24a0   : > { %v3267_v63 = vrot.slane %v3248_v7, 3 }
0x24a2   : > { %v3268_v16 = vsel %vm367_vm5, %v3267_v63, %v3266_v15  ;;  %v1173_v63 = vperm.slane %v1165_v12, 0  ;;  %v1175_v15 = vperm.slane %v1167_v37, 0 }
0x24a3   : > { %v3270_v31 = vsel %vm370_vm6, %v3269_v30, %v3268_v16  ;;  %v1170_v16 = vrot.slane %v5934_v38, 7 }
0x24a4   : > { %v3272_v42 = vsel %vm373_vm7, %v3271_v32, %v3270_v31 }
0x24a5   : > { %v1178_v30 = vperm.slane %v1170_v16, 0 }
0x24e4   : > { %v3275_v34 = vpop.permute.xlu2 %3274 }
0x24e5   : > { %v3277_v35 = vsel %vm7774_vm12, %v3272_v42, %v3275_v34 }
0x24e6   : > { %5178 = vmatmul.msk.f32.vlgmr.msrb.gmra.mxu0 %vm7775_vm13, %v3277_v35 }
0x24e7   : > { %4433 = vmatpush.msrb.mxu0 %v6541_v50 }
0x24e9   : > { %4434 = vmatpush.msrb.mxu0 %v6548_v36 }
0x24eb   : > { %4435 = vmatpush.msrb.mxu0 %v6554_v40 }
0x24ed   : > { %4436 = vmatpush.msrb.mxu0 %v6562_v48 }
0x24ef   : > { %4437 = vmatpush.msrb.mxu0 %v6569_v45 }
0x24f1   : > { %4438 = vmatpush.msrb.mxu0 %v6575_v58 }
0x24f3   : > { %4439 = vmatpush.msrb.mxu0 %v6581_v51 }
0x24f5   : > { %4440 = vmatpush.msrb.mxu0 %v6587_v55 }
0x2563   : > { %v3298_v10 = vpop.f32.mrf.mxu0 }
0x2564   : > { %v3299_v25 = vadd.f32 %v6603_v53, %v3298_v10 }
0x2566   : > { %5393 = vtanh.f32 %v3299_v25  ;;  %v5179_v56 = vmul.f32 -1.442695, %v3299_v25  ;;  %v1171_v25 = vperm.slane %v5934_v38, 0 }
0x2568   : > { %5395 = vpow2.f32 %v5179_v56 }
0x256c   : > { %v5394_v33 = vpop.eup %5393 }
0x256d   : > { %3323 = vrot.lane.b32.xlu0 %v5394_v33, %s5545_s9 }
0x256e   : > { %v5396_v59 = vpop.eup %5395 }
0x256f   : > { %v3304_v60 = vadd.f32 1.0, %v5396_v59 }
0x2571   : > { %5397 = vrcp.f32 %v3304_v60  ;;  %v3316_v18 = vand.u32 2147483648, %v3304_v60  ;;  %vm3310_vm11 = vweird.f32 %v3304_v60  ;;  %v3314_v19 = vand.u32 2147483647, %v3304_v60 }
0x2573   : > { %v3317_v9 = vor.u32 1.1754944e-38, %v3316_v18  ;;  %vm3315_vm9 = vcmp.eq.f32.partialorder %v3314_v19, 8.507059e+37 }
0x2575   : > { %1181 = vrot.lane.b32.xlu0 %v1172_v46, %s5544_s6 }
0x2577   : > { %v5398_v57 = vpop.eup %5397 }
0x2578   : > { %v3306_v0 = vmul.f32 %v5398_v57, %v3304_v60  ;;  %vm3311_vm14 = vweird.f32 %v5398_v57 }
0x2579   : > { %vm3312_vm8 = vmor %vm3310_vm11, %vm3311_vm14 }
0x257a   : > { %v3307_v2 = vsub.f32 1.0, %v3306_v0 }
0x257c   : > { %v3308_v43 = vmul.f32 %v5398_v57, %v3307_v2 }
0x257d   : > { %1185 = vrot.lane.b32.xlu0 %v1174_v49, %s5544_s6 }
0x257e   : > { %v3309_v4 = vadd.f32 %v5398_v57, %v3308_v43 }
0x2580   : > { %v3313_v20 = vsel %vm3312_vm8, %v5398_v57, %v3309_v4  ;;  %vm7778_vm8 = vmmov %vm7776_vm10 }
0x2581   : > { %v3318_v11 = vsel %vm3315_vm9, %v3317_v9, %v3313_v20  ;;  %vm7779_vm9 = vmmov %vm7777_vm15 }
0x2582   : > { %v3321_v31 = vmul.f32 %v3318_v11, %v6624_v41  ;;  %v1168_v41 = vrot.slane %v5934_v38, 5 }
0x2584   : > { %v1176_v39 = vperm.slane %v1168_v41, 0 }
0x2585   : > { %1191 = vrot.lane.b32.xlu0 %v1177_v17, %s5544_s6 }
0x25df   : > { %v3324_v7 = vpop.permute.xlu0 %3323 }
0x25e0   : > { %v3326_v23 = vmul.f32 %v3324_v7, %v3318_v11 }
0x25e2   : > { %3328 = vrot.lane.b32.xlu1 %v3326_v23, %s5544_s6 }
0x25e7   : > { %v1182_v13 = vpop.permute.xlu0 %1181 }
0x25e8   : > { %1204 = vst.msk [vmem:[#allocation2 + $0x15] sm:$0x1] %vm487_vm0, %v1182_v13 }
0x25ea   : > { %1183 = vrot.lane.b32.xlu1 %v1173_v63, %s5544_s6 }
0x25ef   : > { %v1186_v14 = vpop.permute.xlu0 %1185  ;;  %v3387_v17 = vld [vmem:[#allocation2 + $0x15] sm:$0x1] }
0x25f0   : > { %1206 = vst.msk [vmem:[#allocation2 + $0x35] sm:$0x1] %vm487_vm0, %v1186_v14  ;;  %v3402_v59 = vrot.slane %v3387_v17, 7 }
0x25f2   : > { %1187 = vrot.lane.b32.xlu1 %v1175_v15, %s5544_s6 }
0x25f7   : > { %v1192_v26 = vpop.permute.xlu0 %1191  ;;  %v3389_v57 = vld [vmem:[#allocation2 + $0x35] sm:$0x1] }
0x25f8   : > { %1209 = vst.msk [vmem:[#allocation2 + $0x65] sm:$0x1] %vm487_vm0, %v1192_v26  ;;  %v3406_v18 = vrot.slane %v3389_v57, 5 }
0x25fa   : > { %1193 = vrot.lane.b32.xlu1 %v1178_v30, %s5544_s6 }
0x25ff   : > { %v3392_v7 = vld [vmem:[#allocation2 + $0x65] sm:$0x1] }
0x2600   : > { %v3412_v13 = vrot.slane %v3392_v7, 2 }
0x2654   : > { %v3329_v32 = vpop.permute.xlu1 %3328 }
0x2655   : > { %v6677_v42 = vadd.f32 %v3329_v32, %v3321_v31  ;;  %v1307_v32 = vrot.slane %v5969_v28, 1 }
0x2657   : > { %5399 = vtanh.f32 %v6677_v42 }
0x265c   : > { %v1184_v34 = vpop.permute.xlu1 %1183 }
0x265d   : > { %v5400_v35 = vpop.eup %5399  ;;  %1205 = vst.msk [vmem:[#allocation2 + $0x25] sm:$0x1] %vm487_vm0, %v1184_v34  ;;  %v1315_v34 = vperm.slane %v1307_v32, 0 }
0x265e   : > { %3334 = vrot.lane.b32.xlu2 %v5400_v35, %s5545_s9  ;;  %v1309_v35 = vrot.slane %v5969_v28, 3 }
0x2664   : > { %v1188_v10 = vpop.permute.xlu1 %1187  ;;  %v3388_v56 = vld [vmem:[#allocation2 + $0x25] sm:$0x1] }
0x2665   : > { %1207 = vst.msk [vmem:[#allocation2 + $0x45] sm:$0x1] %vm487_vm0, %v1188_v10  ;;  %v3404_v0 = vrot.slane %v3388_v56, 6  ;;  %v1317_v10 = vperm.slane %v1309_v35, 0 }
0x2666   : > { %1179 = vrot.lane.b32.xlu2 %v1171_v25, %s5544_s6  ;;  %v1312_v25 = vrot.slane %v5969_v28, 6 }
0x2668   : > { %v1320_v41 = vperm.slane %v1312_v25, 0 }
0x266c   : > { %v1194_v33 = vpop.permute.xlu1 %1193  ;;  %v3390_v4 = vld [vmem:[#allocation2 + $0x45] sm:$0x1] }
0x266d   : > { %1210 = vst.msk [vmem:[#allocation2 + $0x75] sm:$0x1] %vm487_vm0, %v1194_v33  ;;  %v3408_v9 = vrot.slane %v3390_v4, 4 }
0x266e   : > { %1189 = vrot.lane.b32.xlu2 %v1176_v39, %s5544_s6 }
0x2674   : > { %v3393_v12 = vld [vmem:[#allocation2 + $0x75] sm:$0x1] }
0x2675   : > { %v3414_v37 = vrot.slane %v3393_v12, 1 }
0x26b8   : > { %v3335_v46 = vpop.permute.xlu2 %3334 }
0x26b9   : > { %v6688_v47 = vmul.f32 %v3335_v46, %v3318_v11 }
0x26bb   : > { %3417 = vrot.lane.b32.xlu2 %v6688_v47, %s5545_s9 }
0x26c0   : > { %v1180_v49 = vpop.permute.xlu2 %1179 }
0x26c1   : > { %1203 = vst.msk [vmem:[#allocation2 + $0x5] sm:$0x1] %vm487_vm0, %v1180_v49 }
0x26c8   : > { %v1190_v54 = vpop.permute.xlu2 %1189  ;;  %v3386_v38 = vld [vmem:[#allocation2 + $0x5] sm:$0x1] }
0x26c9   : > { %1208 = vst.msk [vmem:[#allocation2 + $0x55] sm:$0x1] %vm487_vm0, %v1190_v54  ;;  %v3403_v60 = vsel %vm355_vm1, %v3402_v59, %v3386_v38 }
0x26ca   : > { %v3405_v43 = vsel %vm358_vm2, %v3404_v0, %v3403_v60 }
0x26cb   : > { %v3407_v19 = vsel %vm361_vm3, %v3406_v18, %v3405_v43  ;;  %v1308_v18 = vrot.slane %v5969_v28, 2 }
0x26cc   : > { %v3409_v11 = vsel %vm364_vm4, %v3408_v9, %v3407_v19  ;;  %v1310_v9 = vrot.slane %v5969_v28, 4 }
0x26d0   : > { %v3391_v2 = vld [vmem:[#allocation2 + $0x55] sm:$0x1] }
0x26d1   : > { %v3410_v20 = vrot.slane %v3391_v2, 3 }
0x26d3   : > { %v3411_v23 = vsel %vm367_vm5, %v3410_v20, %v3409_v11  ;;  %v1316_v20 = vperm.slane %v1308_v18, 0  ;;  %v1318_v11 = vperm.slane %v1310_v9, 0 }
0x26d4   : > { %v3413_v63 = vsel %vm370_vm6, %v3412_v13, %v3411_v23  ;;  %v1313_v23 = vrot.slane %v5969_v28, 7 }
0x26d5   : > { %v3415_v14 = vsel %vm373_vm7, %v3414_v37, %v3413_v63 }
0x26d6   : > { %v1321_v13 = vperm.slane %v1313_v23, 0 }
0x2715   : > { %v3418_v15 = vpop.permute.xlu2 %3417 }
0x2716   : > { %v3420_v16 = vsel %vm7776_vm10, %v3415_v14, %v3418_v15 }
0x2717   : > { %5180 = vmatmul.msk.f32.vlgmr.msrb.gmra.mxu1 %vm7777_vm15, %v3420_v16 }
0x2718   : > { %4576 = vmatpush.msrb.mxu1 %v6541_v50 }
0x271a   : > { %4577 = vmatpush.msrb.mxu1 %v6548_v36 }
0x271c   : > { %4578 = vmatpush.msrb.mxu1 %v6554_v40 }
0x271e   : > { %4579 = vmatpush.msrb.mxu1 %v6562_v48 }
0x2720   : > { %4580 = vmatpush.msrb.mxu1 %v6569_v45 }
0x2722   : > { %4581 = vmatpush.msrb.mxu1 %v6575_v58 }
0x2724   : > { %4582 = vmatpush.msrb.mxu1 %v6581_v51 }
0x2726   : > { %4583 = vmatpush.msrb.mxu1 %v6587_v55 }
0x2794   : > { %v3441_v26 = vpop.f32.mrf.mxu1 }
0x2795   : > { %v3442_v30 = vadd.f32 %v6603_v53, %v3441_v26 }
0x2797   : > { %5401 = vtanh.f32 %v3442_v30  ;;  %v5181_v33 = vmul.f32 -1.442695, %v3442_v30  ;;  %v1314_v30 = vperm.slane %v5969_v28, 0 }
0x2799   : > { %5403 = vpow2.f32 %v5181_v33 }
0x279d   : > { %v5402_v31 = vpop.eup %5401 }
0x279e   : > { %3466 = vrot.lane.b32.xlu0 %v5402_v31, %s5545_s9 }
0x279f   : > { %v5404_v39 = vpop.eup %5403 }
0x27a0   : > { %v3447_v46 = vadd.f32 1.0, %v5404_v39 }
0x27a2   : > { %5405 = vrcp.f32 %v3447_v46  ;;  %v3459_v59 = vand.u32 2147483648, %v3447_v46  ;;  %vm3453_vm13 = vweird.f32 %v3447_v46  ;;  %v3457_v60 = vand.u32 2147483647, %v3447_v46 }
0x27a4   : > { %v3460_v0 = vor.u32 1.1754944e-38, %v3459_v59  ;;  %vm3458_vm11 = vcmp.eq.f32.partialorder %v3457_v60, 8.507059e+37 }
0x27a6   : > { %1324 = vrot.lane.b32.xlu0 %v1315_v34, %s5544_s6 }
0x27a8   : > { %v5406_v49 = vpop.eup %5405 }
0x27a9   : > { %v3449_v54 = vmul.f32 %v5406_v49, %v3447_v46  ;;  %vm3454_vm12 = vweird.f32 %v5406_v49 }
0x27aa   : > { %vm3455_vm14 = vmor %vm3453_vm13, %vm3454_vm12 }
0x27ab   : > { %v3450_v17 = vsub.f32 1.0, %v3449_v54 }
0x27ad   : > { %v3451_v38 = vmul.f32 %v5406_v49, %v3450_v17 }
0x27ae   : > { %1328 = vrot.lane.b32.xlu0 %v1317_v10, %s5544_s6 }
0x27af   : > { %v3452_v56 = vadd.f32 %v5406_v49, %v3451_v38 }
0x27b1   : > { %v3456_v57 = vsel %vm3455_vm14, %v5406_v49, %v3452_v56  ;;  %vm7780_vm14 = vmmov %vm7778_vm8 }
0x27b2   : > { %v3461_v43 = vsel %vm3458_vm11, %v3460_v0, %v3456_v57  ;;  %vm7781_vm11 = vmmov %vm7779_vm9 }
0x27b3   : > { %v3464_v63 = vmul.f32 %v3461_v43, %v6677_v42  ;;  %v1311_v42 = vrot.slane %v5969_v28, 5 }
0x27b5   : > { %v1319_v32 = vperm.slane %v1311_v42, 0 }
0x27b6   : > { %1334 = vrot.lane.b32.xlu0 %v1320_v41, %s5544_s6 }
0x2810   : > { %v3467_v2 = vpop.permute.xlu0 %3466 }
0x2811   : > { %v3469_v4 = vmul.f32 %v3467_v2, %v3461_v43 }
0x2813   : > { %3471 = vrot.lane.b32.xlu1 %v3469_v4, %s5544_s6 }
0x2818   : > { %v1325_v19 = vpop.permute.xlu0 %1324 }
0x2819   : > { %1347 = vst.msk [vmem:[#allocation2 + $0x16] sm:$0x1] %vm487_vm0, %v1325_v19 }
0x281b   : > { %1326 = vrot.lane.b32.xlu1 %v1316_v20, %s5544_s6 }
0x2820   : > { %v1329_v7 = vpop.permute.xlu0 %1328  ;;  %v3530_v41 = vld [vmem:[#allocation2 + $0x16] sm:$0x1] }
0x2821   : > { %1349 = vst.msk [vmem:[#allocation2 + $0x36] sm:$0x1] %vm487_vm0, %v1329_v7  ;;  %v3545_v39 = vrot.slane %v3530_v41, 7 }
0x2823   : > { %1330 = vrot.lane.b32.xlu1 %v1318_v11, %s5544_s6 }
0x2828   : > { %v1335_v12 = vpop.permute.xlu0 %1334  ;;  %v3532_v49 = vld [vmem:[#allocation2 + $0x36] sm:$0x1] }
0x2829   : > { %1352 = vst.msk [vmem:[#allocation2 + $0x66] sm:$0x1] %vm487_vm0, %v1335_v12  ;;  %v3549_v59 = vrot.slane %v3532_v49, 5 }
0x282b   : > { %1336 = vrot.lane.b32.xlu1 %v1321_v13, %s5544_s6 }
0x2830   : > { %v3535_v2 = vld [vmem:[#allocation2 + $0x66] sm:$0x1] }
0x2831   : > { %v3555_v19 = vrot.slane %v3535_v2, 2 }
0x2885   : > { %v3472_v37 = vpop.permute.xlu1 %3471 }
0x2886   : > { %v6730_v14 = vadd.f32 %v3472_v37, %v3464_v63  ;;  %v1450_v37 = vrot.slane %v6013_v24, 1 }
0x2888   : > { %5407 = vtanh.f32 %v6730_v14 }
0x288d   : > { %v1327_v15 = vpop.permute.xlu1 %1326 }
0x288e   : > { %v5408_v16 = vpop.eup %5407  ;;  %1348 = vst.msk [vmem:[#allocation2 + $0x26] sm:$0x1] %vm487_vm0, %v1327_v15  ;;  %v1458_v15 = vperm.slane %v1450_v37, 0 }
0x288f   : > { %3477 = vrot.lane.b32.xlu2 %v5408_v16, %s5545_s9  ;;  %v1452_v16 = vrot.slane %v6013_v24, 3 }
0x2895   : > { %v1331_v26 = vpop.permute.xlu1 %1330  ;;  %v3531_v33 = vld [vmem:[#allocation2 + $0x26] sm:$0x1] }
0x2896   : > { %1350 = vst.msk [vmem:[#allocation2 + $0x46] sm:$0x1] %vm487_vm0, %v1331_v26  ;;  %v3547_v54 = vrot.slane %v3531_v33, 6  ;;  %v1460_v26 = vperm.slane %v1452_v16, 0 }
0x2897   : > { %1322 = vrot.lane.b32.xlu2 %v1314_v30, %s5544_s6  ;;  %v1455_v30 = vrot.slane %v6013_v24, 6 }
0x2899   : > { %v1463_v42 = vperm.slane %v1455_v30, 0 }
0x289d   : > { %v1337_v31 = vpop.permute.xlu1 %1336  ;;  %v3533_v56 = vld [vmem:[#allocation2 + $0x46] sm:$0x1] }
0x289e   : > { %1353 = vst.msk [vmem:[#allocation2 + $0x76] sm:$0x1] %vm487_vm0, %v1337_v31  ;;  %v3551_v0 = vrot.slane %v3533_v56, 4 }
0x289f   : > { %1332 = vrot.lane.b32.xlu2 %v1319_v32, %s5544_s6 }
0x28a5   : > { %v3536_v18 = vld [vmem:[#allocation2 + $0x76] sm:$0x1] }
0x28a6   : > { %v3557_v9 = vrot.slane %v3536_v18, 1 }
0x28e9   : > { %v3478_v34 = vpop.permute.xlu2 %3477 }
0x28ea   : > { %v6741_v35 = vmul.f32 %v3478_v34, %v3461_v43 }
0x28ec   : > { %3560 = vrot.lane.b32.xlu2 %v6741_v35, %s5545_s9 }
0x28f1   : > { %v1323_v10 = vpop.permute.xlu2 %1322 }
0x28f2   : > { %1346 = vst.msk [vmem:[#allocation2 + $0x6] sm:$0x1] %vm487_vm0, %v1323_v10 }
0x28f9   : > { %v1333_v25 = vpop.permute.xlu2 %1332  ;;  %v3529_v28 = vld [vmem:[#allocation2 + $0x6] sm:$0x1] }
0x28fa   : > { %1351 = vst.msk [vmem:[#allocation2 + $0x56] sm:$0x1] %vm487_vm0, %v1333_v25  ;;  %v3546_v46 = vsel %vm355_vm1, %v3545_v39, %v3529_v28 }
0x28fb   : > { %v3548_v38 = vsel %vm358_vm2, %v3547_v54, %v3546_v46 }
0x28fc   : > { %v3550_v60 = vsel %vm361_vm3, %v3549_v59, %v3548_v38  ;;  %v1451_v59 = vrot.slane %v6013_v24, 2 }
0x28fd   : > { %v3552_v43 = vsel %vm364_vm4, %v3551_v0, %v3550_v60  ;;  %v1453_v0 = vrot.slane %v6013_v24, 4 }
0x2901   : > { %v3534_v17 = vld [vmem:[#allocation2 + $0x56] sm:$0x1] }
0x2902   : > { %v3553_v57 = vrot.slane %v3534_v17, 3 }
0x2904   : > { %v3554_v4 = vsel %vm367_vm5, %v3553_v57, %v3552_v43  ;;  %v1459_v57 = vperm.slane %v1451_v59, 0  ;;  %v1461_v43 = vperm.slane %v1453_v0, 0 }
0x2905   : > { %v3556_v20 = vsel %vm370_vm6, %v3555_v19, %v3554_v4  ;;  %v1456_v4 = vrot.slane %v6013_v24, 7 }
0x2906   : > { %v3558_v7 = vsel %vm373_vm7, %v3557_v9, %v3556_v20 }
0x2907   : > { %v1464_v19 = vperm.slane %v1456_v4, 0 }
0x2946   : > { %v3561_v11 = vpop.permute.xlu2 %3560 }
0x2947   : > { %v3563_v23 = vsel %vm7778_vm8, %v3558_v7, %v3561_v11 }
0x2948   : > { %5182 = vmatmul.msk.f32.vlgmr.msrb.gmra.mxu2 %vm7779_vm9, %v3563_v23 }
0x2949   : > { %4719 = vmatpush.msrb.mxu2 %v6541_v50 }
0x294b   : > { %4720 = vmatpush.msrb.mxu2 %v6548_v36 }
0x294d   : > { %4721 = vmatpush.msrb.mxu2 %v6554_v40 }
0x294f   : > { %4722 = vmatpush.msrb.mxu2 %v6562_v48 }
0x2951   : > { %4723 = vmatpush.msrb.mxu2 %v6569_v45 }
0x2953   : > { %4724 = vmatpush.msrb.mxu2 %v6575_v58 }
0x2955   : > { %4725 = vmatpush.msrb.mxu2 %v6581_v51 }
0x2957   : > { %4726 = vmatpush.msrb.mxu2 %v6587_v55 }
0x29cb   : > { %v3584_v12 = vpop.f32.mrf.mxu2 }
0x29cc   : > { %v3585_v13 = vadd.f32 %v6603_v53, %v3584_v12 }
0x29ce   : > { %5409 = vtanh.f32 %v3585_v13  ;;  %v5183_v31 = vmul.f32 -1.442695, %v3585_v13  ;;  %v1457_v13 = vperm.slane %v6013_v24, 0 }
0x29d0   : > { %5411 = vpow2.f32 %v5183_v31 }
0x29d4   : > { %v5410_v63 = vpop.eup %5409 }
0x29d5   : > { %3609 = vrot.lane.b32.xlu0 %v5410_v63, %s5545_s9 }
0x29d6   : > { %v5412_v32 = vpop.eup %5411 }
0x29d7   : > { %v3590_v34 = vadd.f32 1.0, %v5412_v32 }
0x29d9   : > { %5413 = vrcp.f32 %v3590_v34  ;;  %v3602_v39 = vand.u32 2147483648, %v3590_v34  ;;  %vm3596_vm15 = vweird.f32 %v3590_v34  ;;  %v3600_v46 = vand.u32 2147483647, %v3590_v34 }
0x29db   : > { %v3603_v54 = vor.u32 1.1754944e-38, %v3602_v39  ;;  %vm3601_vm13 = vcmp.eq.f32.partialorder %v3600_v46, 8.507059e+37 }
0x29dd   : > { %1467 = vrot.lane.b32.xlu0 %v1458_v15, %s5544_s6 }
0x29df   : > { %v5414_v10 = vpop.eup %5413 }
0x29e0   : > { %v3592_v25 = vmul.f32 %v5414_v10, %v3590_v34  ;;  %vm3597_vm10 = vweird.f32 %v5414_v10 }
0x29e1   : > { %vm3598_vm12 = vmor %vm3596_vm15, %vm3597_vm10 }
0x29e2   : > { %v3593_v41 = vsub.f32 1.0, %v3592_v25 }
0x29e4   : > { %v3594_v28 = vmul.f32 %v5414_v10, %v3593_v41 }
0x29e5   : > { %1471 = vrot.lane.b32.xlu0 %v1460_v26, %s5544_s6 }
0x29e6   : > { %v3595_v33 = vadd.f32 %v5414_v10, %v3594_v28 }
0x29e8   : > { %v3599_v49 = vsel %vm3598_vm12, %v5414_v10, %v3595_v33  ;;  %vm7782_vm12 = vmmov %vm7780_vm14 }
0x29e9   : > { %v3604_v38 = vsel %vm3601_vm13, %v3603_v54, %v3599_v49  ;;  %vm7783_vm13 = vmmov %vm7781_vm11 }
0x29ea   : > { %v3607_v20 = vmul.f32 %v3604_v38, %v6730_v14  ;;  %v1454_v14 = vrot.slane %v6013_v24, 5 }
0x29ec   : > { %v1462_v37 = vperm.slane %v1454_v14, 0 }
0x29ed   : > { %1477 = vrot.lane.b32.xlu0 %v1463_v42, %s5544_s6 }
0x2a47   : > { %v3610_v17 = vpop.permute.xlu0 %3609 }
0x2a48   : > { %v3612_v56 = vmul.f32 %v3610_v17, %v3604_v38 }
0x2a4a   : > { %3614 = vrot.lane.b32.xlu1 %v3612_v56, %s5544_s6 }
0x2a4f   : > { %v1468_v60 = vpop.permute.xlu0 %1467 }
0x2a50   : > { %1490 = vst.msk [vmem:[#allocation2 + $0x17] sm:$0x1] %vm487_vm0, %v1468_v60 }
0x2a52   : > { %1469 = vrot.lane.b32.xlu1 %v1459_v57, %s5544_s6 }
0x2a57   : > { %v1472_v2 = vpop.permute.xlu0 %1471  ;;  %v3673_v42 = vld [vmem:[#allocation2 + $0x17] sm:$0x1] }
0x2a58   : > { %1492 = vst.msk [vmem:[#allocation2 + $0x37] sm:$0x1] %vm487_vm0, %v1472_v2  ;;  %v3688_v32 = vrot.slane %v3673_v42, 7 }
0x2a5a   : > { %1473 = vrot.lane.b32.xlu1 %v1461_v43, %s5544_s6 }
0x2a5f   : > { %v1478_v18 = vpop.permute.xlu0 %1477  ;;  %v3675_v10 = vld [vmem:[#allocation2 + $0x37] sm:$0x1] }
0x2a60   : > { %1495 = vst.msk [vmem:[#allocation2 + $0x67] sm:$0x1] %vm487_vm0, %v1478_v18  ;;  %v3692_v39 = vrot.slane %v3675_v10, 5 }
0x2a62   : > { %1479 = vrot.lane.b32.xlu1 %v1464_v19, %s5544_s6 }
0x2a67   : > { %v3678_v17 = vld [vmem:[#allocation2 + $0x67] sm:$0x1] }
0x2a68   : > { %v3698_v60 = vrot.slane %v3678_v17, 2 }
0x2abc   : > { %v3615_v9 = vpop.permute.xlu1 %3614 }
0x2abd   : > { %v6783_v7 = vadd.f32 %v3615_v9, %v3607_v20 }
0x2abf   : > { %5415 = vtanh.f32 %v6783_v7 }
0x2ac4   : > { %v1470_v11 = vpop.permute.xlu1 %1469 }
0x2ac5   : > { %v5416_v23 = vpop.eup %5415  ;;  %1491 = vst.msk [vmem:[#allocation2 + $0x27] sm:$0x1] %vm487_vm0, %v1470_v11 }
0x2ac6   : > { %3620 = vrot.lane.b32.xlu2 %v5416_v23, %s5545_s9 }
0x2acc   : > { %v1474_v12 = vpop.permute.xlu1 %1473  ;;  %v3674_v31 = vld [vmem:[#allocation2 + $0x27] sm:$0x1] }
0x2acd   : > { %1493 = vst.msk [vmem:[#allocation2 + $0x47] sm:$0x1] %vm487_vm0, %v1474_v12  ;;  %v3690_v25 = vrot.slane %v3674_v31, 6 }
0x2ace   : > { %1465 = vrot.lane.b32.xlu2 %v1457_v13, %s5544_s6 }
0x2ad4   : > { %v1480_v63 = vpop.permute.xlu1 %1479  ;;  %v3676_v33 = vld [vmem:[#allocation2 + $0x47] sm:$0x1] }
0x2ad5   : > { %1496 = vst.msk [vmem:[#allocation2 + $0x77] sm:$0x1] %vm487_vm0, %v1480_v63  ;;  %v3694_v54 = vrot.slane %v3676_v33, 4 }
0x2ad6   : > { %1475 = vrot.lane.b32.xlu2 %v1462_v37, %s5544_s6 }
0x2adc   : > { %v3679_v59 = vld [vmem:[#allocation2 + $0x77] sm:$0x1] }
0x2add   : > { %v3700_v0 = vrot.slane %v3679_v59, 1 }
0x2b20   : > { %v3621_v15 = vpop.permute.xlu2 %3620 }
0x2b21   : > { %v6794_v16 = vmul.f32 %v3621_v15, %v3604_v38 }
0x2b23   : > { %3703 = vrot.lane.b32.xlu2 %v6794_v16, %s5545_s9 }
0x2b28   : > { %v1466_v26 = vpop.permute.xlu2 %1465 }
0x2b29   : > { %1489 = vst.msk [vmem:[#allocation2 + $0x7] sm:$0x1] %vm487_vm0, %v1466_v26 }
0x2b30   : > { %v1476_v30 = vpop.permute.xlu2 %1475  ;;  %v3672_v24 = vld [vmem:[#allocation2 + $0x7] sm:$0x1] }
0x2b31   : > { %1494 = vst.msk [vmem:[#allocation2 + $0x57] sm:$0x1] %vm487_vm0, %v1476_v30  ;;  %v3689_v34 = vsel %vm355_vm1, %v3688_v32, %v3672_v24  ;;  %v1594_v24 = vrot.slane %v6043_v22, 2 }
0x2b32   : > { %v3691_v28 = vsel %vm358_vm2, %v3690_v25, %v3689_v34  ;;  %v1596_v34 = vrot.slane %v6043_v22, 4 }
0x2b33   : > { %v3693_v46 = vsel %vm361_vm3, %v3692_v39, %v3691_v28  ;;  %v1602_v32 = vperm.slane %v1594_v24, 0 }
0x2b34   : > { %v3695_v38 = vsel %vm364_vm4, %v3694_v54, %v3693_v46  ;;  %v1604_v25 = vperm.slane %v1596_v34, 0 }
0x2b38   : > { %v3677_v41 = vld [vmem:[#allocation2 + $0x57] sm:$0x1] }
0x2b39   : > { %v3696_v49 = vrot.slane %v3677_v41, 3  ;;  %v1599_v41 = vrot.slane %v6043_v22, 7 }
0x2b3b   : > { %v3697_v56 = vsel %vm367_vm5, %v3696_v49, %v3695_v38  ;;  %v1607_v33 = vperm.slane %v1599_v41, 0  ;;  %v1741_v41 = vrot.slane %v6068_v8, 6 }
0x2b3c   : > { %v3699_v57 = vsel %vm370_vm6, %v3698_v60, %v3697_v56  ;;  %v1600_v56 = vperm.slane %v6043_v22, 0 }
0x2b3d   : > { %v3701_v2 = vsel %vm373_vm7, %v3700_v0, %v3699_v57 }
0x2b7d   : > { %v3704_v43 = vpop.permute.xlu2 %3703 }
0x2b7e   : > { %v3706_v4 = vsel %vm7780_vm14, %v3701_v2, %v3704_v43 }
0x2b7f   : > { %5184 = vmatmul.msk.f32.vlgmr.msrb.gmra.mxu3 %vm7781_vm11, %v3706_v4 }
0x2b80   : > { %4862 = vmatpush.msrb.mxu3 %v6541_v50  ;;  %v1593_v50 = vrot.slane %v6043_v22, 1 }
0x2b82   : > { %4863 = vmatpush.msrb.mxu3 %v6548_v36  ;;  %v1601_v36 = vperm.slane %v1593_v50, 0 }
0x2b84   : > { %4864 = vmatpush.msrb.mxu3 %v6554_v40  ;;  %v1595_v40 = vrot.slane %v6043_v22, 3 }
0x2b86   : > { %4865 = vmatpush.msrb.mxu3 %v6562_v48  ;;  %v1603_v48 = vperm.slane %v1595_v40, 0 }
0x2b88   : > { %4866 = vmatpush.msrb.mxu3 %v6569_v45  ;;  %v1598_v45 = vrot.slane %v6043_v22, 6 }
0x2b8a   : > { %4867 = vmatpush.msrb.mxu3 %v6575_v58  ;;  %v1606_v58 = vperm.slane %v1598_v45, 0 }
0x2b8c   : > { %4868 = vmatpush.msrb.mxu3 %v6581_v51 }
0x2b8e   : > { %4869 = vmatpush.msrb.mxu3 %v6587_v55 }
0x2c02   : > { %v3727_v18 = vpop.f32.mrf.mxu3 }
0x2c03   : > { %v3728_v19 = vadd.f32 %v6603_v53, %v3727_v18 }
0x2c05   : > { %5417 = vtanh.f32 %v3728_v19  ;;  %v5185_v51 = vmul.f32 -1.442695, %v3728_v19 }
0x2c07   : > { %5419 = vpow2.f32 %v5185_v51 }
0x2c0b   : > { %v5418_v20 = vpop.eup %5417 }
0x2c0c   : > { %3752 = vrot.lane.b32.xlu0 %v5418_v20, %s5545_s9 }
0x2c0d   : > { %v5420_v55 = vpop.eup %5419 }
0x2c0e   : > { %v3733_v53 = vadd.f32 1.0, %v5420_v55 }
0x2c10   : > { %5421 = vrcp.f32 %v3733_v53  ;;  %v3745_v14 = vand.u32 2147483648, %v3733_v53  ;;  %vm3739_vm9 = vweird.f32 %v3733_v53  ;;  %v3743_v63 = vand.u32 2147483647, %v3733_v53 }
0x2c12   : > { %v3746_v15 = vor.u32 1.1754944e-38, %v3745_v14  ;;  %vm3744_vm15 = vcmp.eq.f32.partialorder %v3743_v63, 8.507059e+37 }
0x2c14   : > { %1610 = vrot.lane.b32.xlu0 %v1601_v36, %s5544_s6 }
0x2c16   : > { %v5422_v9 = vpop.eup %5421 }
0x2c17   : > { %v3735_v11 = vmul.f32 %v5422_v9, %v3733_v53  ;;  %vm3740_vm8 = vweird.f32 %v5422_v9 }
0x2c18   : > { %vm3741_vm10 = vmor %vm3739_vm9, %vm3740_vm8 }
0x2c19   : > { %v3736_v23 = vsub.f32 1.0, %v3735_v11 }
0x2c1b   : > { %v3737_v12 = vmul.f32 %v5422_v9, %v3736_v23 }
0x2c1c   : > { %1614 = vrot.lane.b32.xlu0 %v1603_v48, %s5544_s6 }
0x2c1d   : > { %v3738_v13 = vadd.f32 %v5422_v9, %v3737_v12 }
0x2c1f   : > { %v3742_v37 = vsel %vm3741_vm10, %v5422_v9, %v3738_v13  ;;  %vm7784_vm10 = vmmov %vm7782_vm12 }
0x2c20   : > { %v3747_v30 = vsel %vm3744_vm15, %v3746_v15, %v3742_v37  ;;  %vm7785_vm15 = vmmov %vm7783_vm13 }
0x2c21   : > { %v3750_v39 = vmul.f32 %v3747_v30, %v6783_v7  ;;  %v1597_v7 = vrot.slane %v6043_v22, 5 }
0x2c23   : > { %v1605_v60 = vperm.slane %v1597_v7, 0 }
0x2c24   : > { %1620 = vrot.lane.b32.xlu0 %v1606_v58, %s5544_s6 }
0x2c7e   : > { %v3753_v26 = vpop.permute.xlu0 %3752 }
0x2c7f   : > { %v3755_v42 = vmul.f32 %v3753_v26, %v3747_v30 }
0x2c81   : > { %3757 = vrot.lane.b32.xlu1 %v3755_v42, %s5544_s6  ;;  %v6865_v42 = vld [vmem:[%s7758_s4] ss:$0 sm:$0xff] }
0x2c86   : > { %v1611_v31 = vpop.permute.xlu0 %1610 }
0x2c87   : > { %1633 = vst.msk [vmem:[#allocation2 + $0x18] sm:$0x1] %vm487_vm0, %v1611_v31 }
0x2c89   : > { %1612 = vrot.lane.b32.xlu1 %v1602_v32, %s5544_s6  ;;  %v1736_v32 = vrot.slane %v6068_v8, 1 }
0x2c8b   : > { %v1744_v34 = vperm.slane %v1736_v32, 0 }
0x2c8e   : > { %v1615_v10 = vpop.permute.xlu0 %1614  ;;  %v3816_v4 = vld [vmem:[#allocation2 + $0x18] sm:$0x1] }
0x2c8f   : > { %1635 = vst.msk [vmem:[#allocation2 + $0x38] sm:$0x1] %vm487_vm0, %v1615_v10  ;;  %v3831_v19 = vrot.slane %v3816_v4, 7  ;;  %v1738_v10 = vrot.slane %v6068_v8, 3 }
0x2c91   : > { %1616 = vrot.lane.b32.xlu1 %v1604_v25, %s5544_s6  ;;  %v1746_v25 = vperm.slane %v1738_v10, 0 }
0x2c96   : > { %v1621_v28 = vpop.permute.xlu0 %1620  ;;  %v3818_v50 = vld [vmem:[#allocation2 + $0x38] sm:$0x1] }
0x2c97   : > { %1638 = vst.msk [vmem:[#allocation2 + $0x68] sm:$0x1] %vm487_vm0, %v1621_v28  ;;  %v3835_v58 = vrot.slane %v3818_v50, 5  ;;  %v1749_v28 = vperm.slane %v1741_v41, 0  ;;  %v1739_v50 = vrot.slane %v6068_v8, 4 }
0x2c99   : > { %1622 = vrot.lane.b32.xlu1 %v1607_v33, %s5544_s6 }
0x2c9e   : > { %v3821_v9 = vld [vmem:[#allocation2 + $0x68] sm:$0x1] }
0x2c9f   : > { %v3841_v13 = vrot.slane %v3821_v9, 2 }
0x2cf3   : > { %v3758_v46 = vpop.permute.xlu1 %3757 }
0x2cf4   : > { %v6836_v49 = vadd.f32 %v3758_v46, %v3750_v39 }
0x2cf6   : > { %5423 = vtanh.f32 %v6836_v49 }
0x2cfb   : > { %v1613_v54 = vpop.permute.xlu1 %1612 }
0x2cfc   : > { %v5424_v17 = vpop.eup %5423  ;;  %1634 = vst.msk [vmem:[#allocation2 + $0x28] sm:$0x1] %vm487_vm0, %v1613_v54 }
0x2cfd   : > { %3763 = vrot.lane.b32.xlu2 %v5424_v17, %s5545_s9 }
0x2d03   : > { %v1617_v38 = vpop.permute.xlu1 %1616  ;;  %v3817_v18 = vld [vmem:[#allocation2 + $0x28] sm:$0x1] }
0x2d04   : > { %1636 = vst.msk [vmem:[#allocation2 + $0x48] sm:$0x1] %vm487_vm0, %v1617_v38  ;;  %v3833_v36 = vrot.slane %v3817_v18, 6  ;;  %v1737_v18 = vrot.slane %v6068_v8, 2 }
0x2d05   : > { %1608 = vrot.lane.b32.xlu2 %v1600_v56, %s5544_s6 }
0x2d0b   : > { %v1623_v59 = vpop.permute.xlu1 %1622  ;;  %v3819_v45 = vld [vmem:[#allocation2 + $0x48] sm:$0x1] }
0x2d0c   : > { %1639 = vst.msk [vmem:[#allocation2 + $0x78] sm:$0x1] %vm487_vm0, %v1623_v59  ;;  %v3837_v53 = vrot.slane %v3819_v45, 4 }
0x2d0d   : > { %1618 = vrot.lane.b32.xlu2 %v1605_v60, %s5544_s6 }
0x2d13   : > { %v3822_v12 = vld [vmem:[#allocation2 + $0x78] sm:$0x1] }
0x2d14   : > { %v3843_v63 = vrot.slane %v3822_v12, 1  ;;  %v1743_v12 = vperm.slane %v6068_v8, 0 }
0x2d57   : > { %v3764_v57 = vpop.permute.xlu2 %3763 }
0x2d58   : > { %v6847_v0 = vmul.f32 %v3764_v57, %v3747_v30 }
0x2d5a   : > { %3846 = vrot.lane.b32.xlu2 %v6847_v0, %s5545_s9 }
0x2d5f   : > { %v1609_v2 = vpop.permute.xlu2 %1608 }
0x2d60   : > { %1632 = vst.msk [vmem:[#allocation2 + $0x8] sm:$0x1] %vm487_vm0, %v1609_v2 }
0x2d67   : > { %v1619_v43 = vpop.permute.xlu2 %1618  ;;  %v3815_v22 = vld [vmem:[#allocation2 + $0x8] sm:$0x1] }
0x2d68   : > { %1637 = vst.msk [vmem:[#allocation2 + $0x58] sm:$0x1] %vm487_vm0, %v1619_v43  ;;  %v3832_v20 = vsel %vm355_vm1, %v3831_v19, %v3815_v22 }
0x2d69   : > { %v3834_v48 = vsel %vm358_vm2, %v3833_v36, %v3832_v20  ;;  %v1745_v20 = vperm.slane %v1737_v18, 0 }
0x2d6a   : > { %v3836_v51 = vsel %vm361_vm3, %v3835_v58, %v3834_v48  ;;  %v1742_v48 = vrot.slane %v6068_v8, 7 }
0x2d6b   : > { %v3838_v11 = vsel %vm364_vm4, %v3837_v53, %v3836_v51 }
0x2d6c   : > { %v1750_v58 = vperm.slane %v1742_v48, 0  ;;  %v1884_v48 = vrot.slane %v6096_v3, 6 }
0x2d6f   : > { %v3820_v40 = vld [vmem:[#allocation2 + $0x58] sm:$0x1] }
0x2d70   : > { %v3839_v55 = vrot.slane %v3820_v40, 3  ;;  %v1747_v40 = vperm.slane %v1739_v50, 0 }
0x2d72   : > { %v3840_v23 = vsel %vm367_vm5, %v3839_v55, %v3838_v11 }
0x2d73   : > { %v3842_v14 = vsel %vm370_vm6, %v3841_v13, %v3840_v23 }
0x2d74   : > { %v3844_v37 = vsel %vm373_vm7, %v3843_v63, %v3842_v14 }
0x2db4   : > { %v3847_v15 = vpop.permute.xlu2 %3846 }
0x2db5   : > { %v3849_v26 = vsel %vm7782_vm12, %v3844_v37, %v3847_v15 }
0x2db6   : > { %5186 = vmatmul.msk.f32.vlgmr.msra.gmra.mxu0 %vm7783_vm13, %v3849_v26 }
0x2e33   : > { %v3870_v30 = vpop.f32.mrf.mxu0 }
0x2e34   : > { %v3871_v24 = vadd.f32 %v6865_v42, %v3870_v30 }
0x2e36   : > { %5425 = vtanh.f32 %v3871_v24  ;;  %v5187_v33 = vmul.f32 -1.442695, %v3871_v24 }
0x2e38   : > { %5427 = vpow2.f32 %v5187_v33 }
0x2e3c   : > { %v5426_v31 = vpop.eup %5425 }
0x2e3d   : > { %3895 = vrot.lane.b32.xlu0 %v5426_v31, %s5545_s9 }
0x2e3e   : > { %v5428_v39 = vpop.eup %5427 }
0x2e3f   : > { %v3876_v46 = vadd.f32 1.0, %v5428_v39 }
0x2e41   : > { %5429 = vrcp.f32 %v3876_v46  ;;  %v3888_v59 = vand.u32 2147483648, %v3876_v46  ;;  %vm3882_vm11 = vweird.f32 %v3876_v46  ;;  %v3886_v60 = vand.u32 2147483647, %v3876_v46 }
0x2e43   : > { %v3889_v2 = vor.u32 1.1754944e-38, %v3888_v59  ;;  %vm3887_vm9 = vcmp.eq.f32.partialorder %v3886_v60, 8.507059e+37 }
0x2e45   : > { %1753 = vrot.lane.b32.xlu0 %v1744_v34, %s5544_s6 }
0x2e47   : > { %v5430_v54 = vpop.eup %5429 }
0x2e48   : > { %v3878_v17 = vmul.f32 %v5430_v54, %v3876_v46  ;;  %vm3883_vm14 = vweird.f32 %v5430_v54 }
0x2e49   : > { %vm3884_vm8 = vmor %vm3882_vm11, %vm3883_vm14 }
0x2e4a   : > { %v3879_v38 = vsub.f32 1.0, %v3878_v17 }
0x2e4c   : > { %v3880_v56 = vmul.f32 %v5430_v54, %v3879_v38 }
0x2e4d   : > { %1757 = vrot.lane.b32.xlu0 %v1746_v25, %s5544_s6 }
0x2e4e   : > { %v3881_v7 = vadd.f32 %v5430_v54, %v3880_v56 }
0x2e50   : > { %v3885_v57 = vsel %vm3884_vm8, %v5430_v54, %v3881_v7  ;;  %vm7786_vm8 = vmmov %vm7784_vm10 }
0x2e51   : > { %v3890_v4 = vsel %vm3887_vm9, %v3889_v2, %v3885_v57  ;;  %vm7787_vm9 = vmmov %vm7785_vm15 }
0x2e52   : > { %v3893_v51 = vmul.f32 %v3890_v4, %v6836_v49  ;;  %v1740_v49 = vrot.slane %v6068_v8, 5 }
0x2e54   : > { %v1748_v14 = vperm.slane %v1740_v49, 0 }
0x2e55   : > { %1763 = vrot.lane.b32.xlu0 %v1749_v28, %s5544_s6 }
0x2eaf   : > { %v3896_v43 = vpop.permute.xlu0 %3895 }
0x2eb0   : > { %v3898_v22 = vmul.f32 %v3896_v43, %v3890_v4 }
0x2eb2   : > { %3900 = vrot.lane.b32.xlu1 %v3898_v22, %s5544_s6 }
0x2eb7   : > { %v1754_v19 = vpop.permute.xlu0 %1753 }
0x2eb8   : > { %1776 = vst.msk [vmem:[#allocation2 + $0x19] sm:$0x1] %vm487_vm0, %v1754_v19 }
0x2eba   : > { %1755 = vrot.lane.b32.xlu1 %v1745_v20, %s5544_s6  ;;  %v1879_v20 = vrot.slane %v6096_v3, 1 }
0x2ebc   : > { %v1887_v50 = vperm.slane %v1879_v20, 0 }
0x2ebf   : > { %v1758_v36 = vpop.permute.xlu0 %1757  ;;  %v3959_v30 = vld [vmem:[#allocation2 + $0x19] sm:$0x1] }
0x2ec0   : > { %1778 = vst.msk [vmem:[#allocation2 + $0x39] sm:$0x1] %vm487_vm0, %v1758_v36  ;;  %v3974_v31 = vrot.slane %v3959_v30, 7  ;;  %v1881_v36 = vrot.slane %v6096_v3, 3 }
0x2ec2   : > { %1759 = vrot.lane.b32.xlu1 %v1747_v40, %s5544_s6  ;;  %v1889_v40 = vperm.slane %v1881_v36, 0 }
0x2ec7   : > { %v1764_v45 = vpop.permute.xlu0 %1763  ;;  %v3961_v34 = vld [vmem:[#allocation2 + $0x39] sm:$0x1] }
0x2ec8   : > { %1781 = vst.msk [vmem:[#allocation2 + $0x69] sm:$0x1] %vm487_vm0, %v1764_v45  ;;  %v3978_v33 = vrot.slane %v3961_v34, 5  ;;  %v1892_v45 = vperm.slane %v1884_v48, 0  ;;  %v1882_v34 = vrot.slane %v6096_v3, 4 }
0x2eca   : > { %1765 = vrot.lane.b32.xlu1 %v1750_v58, %s5544_s6 }
0x2ecf   : > { %v3964_v17 = vld [vmem:[#allocation2 + $0x69] sm:$0x1] }
0x2ed0   : > { %v3984_v59 = vrot.slane %v3964_v17, 2 }
0x2f24   : > { %v3901_v55 = vpop.permute.xlu1 %3900 }
0x2f25   : > { %v6886_v53 = vadd.f32 %v3901_v55, %v3893_v51 }
0x2f27   : > { %5431 = vtanh.f32 %v6886_v53 }
0x2f2c   : > { %v1756_v9 = vpop.permute.xlu1 %1755 }
0x2f2d   : > { %v5432_v11 = vpop.eup %5431  ;;  %1777 = vst.msk [vmem:[#allocation2 + $0x29] sm:$0x1] %vm487_vm0, %v1756_v9 }
0x2f2e   : > { %3906 = vrot.lane.b32.xlu2 %v5432_v11, %s5545_s9 }
0x2f34   : > { %v1760_v23 = vpop.permute.xlu1 %1759  ;;  %v3960_v24 = vld [vmem:[#allocation2 + $0x29] sm:$0x1] }
0x2f35   : > { %1779 = vst.msk [vmem:[#allocation2 + $0x49] sm:$0x1] %vm487_vm0, %v1760_v23  ;;  %v3976_v10 = vrot.slane %v3960_v24, 6  ;;  %v1880_v24 = vrot.slane %v6096_v3, 2 }
0x2f36   : > { %1751 = vrot.lane.b32.xlu2 %v1743_v12, %s5544_s6 }
0x2f3c   : > { %v1766_v13 = vpop.permute.xlu1 %1765  ;;  %v3962_v28 = vld [vmem:[#allocation2 + $0x49] sm:$0x1] }
0x2f3d   : > { %1782 = vst.msk [vmem:[#allocation2 + $0x79] sm:$0x1] %vm487_vm0, %v1766_v13  ;;  %v3980_v54 = vrot.slane %v3962_v28, 4 }
0x2f3e   : > { %1761 = vrot.lane.b32.xlu2 %v1748_v14, %s5544_s6 }
0x2f44   : > { %v3965_v7 = vld [vmem:[#allocation2 + $0x79] sm:$0x1] }
0x2f45   : > { %v3986_v57 = vrot.slane %v3965_v7, 1  ;;  %v1886_v7 = vperm.slane %v6096_v3, 0 }
0x2f88   : > { %v3907_v63 = vpop.permute.xlu2 %3906 }
0x2f89   : > { %v6897_v37 = vmul.f32 %v3907_v63, %v3890_v4 }
0x2f8b   : > { %3989 = vrot.lane.b32.xlu2 %v6897_v37, %s5545_s9 }
0x2f90   : > { %v1752_v15 = vpop.permute.xlu2 %1751 }
0x2f91   : > { %1775 = vst.msk [vmem:[#allocation2 + $0x9] sm:$0x1] %vm487_vm0, %v1752_v15 }
0x2f98   : > { %v1762_v26 = vpop.permute.xlu2 %1761  ;;  %v3958_v8 = vld [vmem:[#allocation2 + $0x9] sm:$0x1] }
0x2f99   : > { %1780 = vst.msk [vmem:[#allocation2 + $0x59] sm:$0x1] %vm487_vm0, %v1762_v26  ;;  %v3975_v32 = vsel %vm355_vm1, %v3974_v31, %v3958_v8 }
0x2f9a   : > { %v3977_v41 = vsel %vm358_vm2, %v3976_v10, %v3975_v32  ;;  %v1888_v32 = vperm.slane %v1880_v24, 0 }
0x2f9b   : > { %v3979_v39 = vsel %vm361_vm3, %v3978_v33, %v3977_v41  ;;  %v1885_v41 = vrot.slane %v6096_v3, 7 }
0x2f9c   : > { %v3981_v38 = vsel %vm364_vm4, %v3980_v54, %v3979_v39 }
0x2f9d   : > { %v1893_v33 = vperm.slane %v1885_v41, 0  ;;  %v2027_v41 = vrot.slane %v6167_v27, 6 }
0x2fa0   : > { %v3963_v25 = vld [vmem:[#allocation2 + $0x59] sm:$0x1] }
0x2fa1   : > { %v3982_v46 = vrot.slane %v3963_v25, 3  ;;  %v1890_v25 = vperm.slane %v1882_v34, 0 }
0x2fa3   : > { %v3983_v56 = vsel %vm367_vm5, %v3982_v46, %v3981_v38 }
0x2fa4   : > { %v3985_v60 = vsel %vm370_vm6, %v3984_v59, %v3983_v56 }
0x2fa5   : > { %v3987_v2 = vsel %vm373_vm7, %v3986_v57, %v3985_v60 }
0x2fe5   : > { %v3990_v43 = vpop.permute.xlu2 %3989 }
0x2fe6   : > { %v3992_v4 = vsel %vm7784_vm10, %v3987_v2, %v3990_v43 }
0x2fe7   : > { %5188 = vmatmul.msk.f32.vlgmr.msra.gmra.mxu1 %vm7785_vm15, %v3992_v4 }
0x3064   : > { %v4013_v22 = vpop.f32.mrf.mxu1 }
0x3065   : > { %v4014_v18 = vadd.f32 %v6865_v42, %v4013_v22 }
0x3067   : > { %5433 = vtanh.f32 %v4014_v18  ;;  %v5189_v58 = vmul.f32 -1.442695, %v4014_v18 }
0x3069   : > { %5435 = vpow2.f32 %v5189_v58 }
0x306d   : > { %v5434_v19 = vpop.eup %5433 }
0x306e   : > { %4038 = vrot.lane.b32.xlu0 %v5434_v19, %s5545_s9 }
0x306f   : > { %v5436_v51 = vpop.eup %5435 }
0x3070   : > { %v4019_v55 = vadd.f32 1.0, %v5436_v51 }
0x3072   : > { %5437 = vrcp.f32 %v4019_v55  ;;  %v4031_v13 = vand.u32 2147483648, %v4019_v55  ;;  %vm4025_vm13 = vweird.f32 %v4019_v55  ;;  %v4029_v14 = vand.u32 2147483647, %v4019_v55 }
0x3074   : > { %v4032_v15 = vor.u32 1.1754944e-38, %v4031_v13  ;;  %vm4030_vm11 = vcmp.eq.f32.partialorder %v4029_v14, 8.507059e+37 }
0x3076   : > { %1896 = vrot.lane.b32.xlu0 %v1887_v50, %s5544_s6 }
0x3078   : > { %v5438_v9 = vpop.eup %5437 }
0x3079   : > { %v4021_v11 = vmul.f32 %v5438_v9, %v4019_v55  ;;  %vm4026_vm12 = vweird.f32 %v5438_v9 }
0x307a   : > { %vm4027_vm14 = vmor %vm4025_vm13, %vm4026_vm12 }
0x307b   : > { %v4022_v23 = vsub.f32 1.0, %v4021_v11 }
0x307d   : > { %v4023_v12 = vmul.f32 %v5438_v9, %v4022_v23 }
0x307e   : > { %1900 = vrot.lane.b32.xlu0 %v1889_v40, %s5544_s6 }
0x307f   : > { %v4024_v49 = vadd.f32 %v5438_v9, %v4023_v12 }
0x3081   : > { %v4028_v63 = vsel %vm4027_vm14, %v5438_v9, %v4024_v49  ;;  %vm7788_vm14 = vmmov %vm7786_vm8 }
0x3082   : > { %v4033_v30 = vsel %vm4030_vm11, %v4032_v15, %v4028_v63  ;;  %vm7789_vm11 = vmmov %vm7787_vm9 }
0x3083   : > { %v4036_v39 = vmul.f32 %v4033_v30, %v6886_v53  ;;  %v1883_v53 = vrot.slane %v6096_v3, 5 }
0x3085   : > { %v1891_v60 = vperm.slane %v1883_v53, 0 }
0x3086   : > { %1906 = vrot.lane.b32.xlu0 %v1892_v45, %s5544_s6 }
0x30e0   : > { %v4039_v26 = vpop.permute.xlu0 %4038 }
0x30e1   : > { %v4041_v8 = vmul.f32 %v4039_v26, %v4033_v30 }
0x30e3   : > { %4043 = vrot.lane.b32.xlu1 %v4041_v8, %s5544_s6 }
0x30e8   : > { %v1897_v31 = vpop.permute.xlu0 %1896 }
0x30e9   : > { %1919 = vst.msk [vmem:[#allocation2 + $0x1a] sm:$0x1] %vm487_vm0, %v1897_v31 }
0x30eb   : > { %1898 = vrot.lane.b32.xlu1 %v1888_v32, %s5544_s6  ;;  %v2022_v32 = vrot.slane %v6167_v27, 1 }
0x30ed   : > { %v2030_v34 = vperm.slane %v2022_v32, 0 }
0x30f0   : > { %v1901_v10 = vpop.permute.xlu0 %1900  ;;  %v4102_v22 = vld [vmem:[#allocation2 + $0x1a] sm:$0x1] }
0x30f1   : > { %1921 = vst.msk [vmem:[#allocation2 + $0x3a] sm:$0x1] %vm487_vm0, %v1901_v10  ;;  %v4117_v19 = vrot.slane %v4102_v22, 7  ;;  %v2024_v10 = vrot.slane %v6167_v27, 3 }
0x30f3   : > { %1902 = vrot.lane.b32.xlu1 %v1890_v25, %s5544_s6  ;;  %v2032_v25 = vperm.slane %v2024_v10, 0 }
0x30f8   : > { %v1907_v28 = vpop.permute.xlu0 %1906  ;;  %v4104_v50 = vld [vmem:[#allocation2 + $0x3a] sm:$0x1] }
0x30f9   : > { %1924 = vst.msk [vmem:[#allocation2 + $0x6a] sm:$0x1] %vm487_vm0, %v1907_v28  ;;  %v4121_v58 = vrot.slane %v4104_v50, 5  ;;  %v2035_v28 = vperm.slane %v2027_v41, 0  ;;  %v2025_v50 = vrot.slane %v6167_v27, 4 }
0x30fb   : > { %1908 = vrot.lane.b32.xlu1 %v1893_v33, %s5544_s6 }
0x3100   : > { %v4107_v11 = vld [vmem:[#allocation2 + $0x6a] sm:$0x1] }
0x3101   : > { %v4127_v13 = vrot.slane %v4107_v11, 2 }
0x3155   : > { %v4044_v46 = vpop.permute.xlu1 %4043 }
0x3156   : > { %v6931_v54 = vadd.f32 %v4044_v46, %v4036_v39 }
0x3158   : > { %5439 = vtanh.f32 %v6931_v54 }
0x315d   : > { %v1899_v17 = vpop.permute.xlu1 %1898 }
0x315e   : > { %v5440_v38 = vpop.eup %5439  ;;  %1920 = vst.msk [vmem:[#allocation2 + $0x2a] sm:$0x1] %vm487_vm0, %v1899_v17 }
0x315f   : > { %4049 = vrot.lane.b32.xlu2 %v5440_v38, %s5545_s9 }
0x3165   : > { %v1903_v56 = vpop.permute.xlu1 %1902  ;;  %v4103_v18 = vld [vmem:[#allocation2 + $0x2a] sm:$0x1] }
0x3166   : > { %1922 = vst.msk [vmem:[#allocation2 + $0x4a] sm:$0x1] %vm487_vm0, %v1903_v56  ;;  %v4119_v36 = vrot.slane %v4103_v18, 6  ;;  %v2023_v18 = vrot.slane %v6167_v27, 2 }
0x3167   : > { %1894 = vrot.lane.b32.xlu2 %v1886_v7, %s5544_s6 }
0x316d   : > { %v1909_v59 = vpop.permute.xlu1 %1908  ;;  %v4105_v45 = vld [vmem:[#allocation2 + $0x4a] sm:$0x1] }
0x316e   : > { %1925 = vst.msk [vmem:[#allocation2 + $0x7a] sm:$0x1] %vm487_vm0, %v1909_v59  ;;  %v4123_v9 = vrot.slane %v4105_v45, 4 }
0x316f   : > { %1904 = vrot.lane.b32.xlu2 %v1891_v60, %s5544_s6 }
0x3175   : > { %v4108_v49 = vld [vmem:[#allocation2 + $0x7a] sm:$0x1] }
0x3176   : > { %v4129_v63 = vrot.slane %v4108_v49, 1  ;;  %v2029_v49 = vperm.slane %v6167_v27, 0 }
0x31b9   : > { %v4050_v57 = vpop.permute.xlu2 %4049 }
0x31ba   : > { %v6942_v2 = vmul.f32 %v4050_v57, %v4033_v30 }
0x31bc   : > { %4132 = vrot.lane.b32.xlu2 %v6942_v2, %s5545_s9 }
0x31c1   : > { %v1895_v43 = vpop.permute.xlu2 %1894 }
0x31c2   : > { %1918 = vst.msk [vmem:[#allocation2 + $0xa] sm:$0x1] %vm487_vm0, %v1895_v43 }
0x31c9   : > { %v1905_v4 = vpop.permute.xlu2 %1904  ;;  %v4101_v3 = vld [vmem:[#allocation2 + $0xa] sm:$0x1] }
0x31ca   : > { %1923 = vst.msk [vmem:[#allocation2 + $0x5a] sm:$0x1] %vm487_vm0, %v1905_v4  ;;  %v4118_v20 = vsel %vm355_vm1, %v4117_v19, %v4101_v3 }
0x31cb   : > { %v4120_v48 = vsel %vm358_vm2, %v4119_v36, %v4118_v20  ;;  %v2031_v20 = vperm.slane %v2023_v18, 0 }
0x31cc   : > { %v4122_v51 = vsel %vm361_vm3, %v4121_v58, %v4120_v48  ;;  %v2028_v48 = vrot.slane %v6167_v27, 7 }
0x31cd   : > { %v4124_v23 = vsel %vm364_vm4, %v4123_v9, %v4122_v51 }
0x31ce   : > { %v2036_v58 = vperm.slane %v2028_v48, 0  ;;  %v2170_v48 = vrot.slane %v6313_v6, 6 }
0x31d1   : > { %v4106_v40 = vld [vmem:[#allocation2 + $0x5a] sm:$0x1] }
0x31d2   : > { %v4125_v55 = vrot.slane %v4106_v40, 3  ;;  %v2033_v40 = vperm.slane %v2025_v50, 0 }
0x31d4   : > { %v4126_v12 = vsel %vm367_vm5, %v4125_v55, %v4124_v23 }
0x31d5   : > { %v4128_v14 = vsel %vm370_vm6, %v4127_v13, %v4126_v12 }
0x31d6   : > { %v4130_v15 = vsel %vm373_vm7, %v4129_v63, %v4128_v14 }
0x3216   : > { %v4133_v26 = vpop.permute.xlu2 %4132 }
0x3217   : > { %v4135_v30 = vsel %vm7786_vm8, %v4130_v15, %v4133_v26 }
0x3218   : > { %5190 = vmatmul.msk.f32.vlgmr.msra.gmra.mxu2 %vm7787_vm9, %v4135_v30 }
0x329b   : > { %v4156_v8 = vpop.f32.mrf.mxu2 }
0x329c   : > { %v4157_v24 = vadd.f32 %v6865_v42, %v4156_v8 }
0x329e   : > { %5441 = vtanh.f32 %v4157_v24  ;;  %v5191_v33 = vmul.f32 -1.442695, %v4157_v24 }
0x32a0   : > { %5443 = vpow2.f32 %v5191_v33 }
0x32a4   : > { %v5442_v31 = vpop.eup %5441 }
0x32a5   : > { %4181 = vrot.lane.b32.xlu0 %v5442_v31, %s5545_s9 }
0x32a6   : > { %v5444_v39 = vpop.eup %5443 }
0x32a7   : > { %v4162_v46 = vadd.f32 1.0, %v5444_v39 }
0x32a9   : > { %5445 = vrcp.f32 %v4162_v46  ;;  %v4174_v59 = vand.u32 2147483648, %v4162_v46  ;;  %vm4168_vm15 = vweird.f32 %v4162_v46  ;;  %v4172_v60 = vand.u32 2147483647, %v4162_v46 }
0x32ab   : > { %v4175_v43 = vor.u32 1.1754944e-38, %v4174_v59  ;;  %vm4173_vm13 = vcmp.eq.f32.partialorder %v4172_v60, 8.507059e+37 }
0x32ad   : > { %2039 = vrot.lane.b32.xlu0 %v2030_v34, %s5544_s6 }
0x32af   : > { %v5446_v17 = vpop.eup %5445 }
0x32b0   : > { %v4164_v38 = vmul.f32 %v5446_v17, %v4162_v46  ;;  %vm4169_vm10 = vweird.f32 %v5446_v17 }
0x32b1   : > { %vm4170_vm12 = vmor %vm4168_vm15, %vm4169_vm10 }
0x32b2   : > { %v4165_v56 = vsub.f32 1.0, %v4164_v38 }
0x32b4   : > { %v4166_v7 = vmul.f32 %v5446_v17, %v4165_v56 }
0x32b5   : > { %2043 = vrot.lane.b32.xlu0 %v2032_v25, %s5544_s6 }
0x32b6   : > { %v4167_v53 = vadd.f32 %v5446_v17, %v4166_v7 }
0x32b8   : > { %v4171_v57 = vsel %vm4170_vm12, %v5446_v17, %v4167_v53  ;;  %vm7790_vm12 = vmmov %vm7788_vm14 }
0x32b9   : > { %v4176_v22 = vsel %vm4173_vm13, %v4175_v43, %v4171_v57  ;;  %vm7791_vm13 = vmmov %vm7789_vm11 }
0x32ba   : > { %v4179_v51 = vmul.f32 %v4176_v22, %v6931_v54  ;;  %v2026_v54 = vrot.slane %v6167_v27, 5 }
0x32bc   : > { %v2034_v14 = vperm.slane %v2026_v54, 0 }
0x32bd   : > { %2049 = vrot.lane.b32.xlu0 %v2035_v28, %s5544_s6 }
0x3317   : > { %v4182_v4 = vpop.permute.xlu0 %4181 }
0x3318   : > { %v4184_v3 = vmul.f32 %v4182_v4, %v4176_v22 }
0x331a   : > { %4186 = vrot.lane.b32.xlu1 %v4184_v3, %s5544_s6 }
0x331f   : > { %v2040_v19 = vpop.permute.xlu0 %2039 }
0x3320   : > { %2062 = vst.msk [vmem:[#allocation2 + $0x1b] sm:$0x1] %vm487_vm0, %v2040_v19 }
0x3322   : > { %2041 = vrot.lane.b32.xlu1 %v2031_v20, %s5544_s6  ;;  %v2165_v20 = vrot.slane %v6313_v6, 1 }
0x3324   : > { %v2173_v50 = vperm.slane %v2165_v20, 0 }
0x3327   : > { %v2044_v36 = vpop.permute.xlu0 %2043  ;;  %v4245_v8 = vld [vmem:[#allocation2 + $0x1b] sm:$0x1] }
0x3328   : > { %2064 = vst.msk [vmem:[#allocation2 + $0x3b] sm:$0x1] %vm487_vm0, %v2044_v36  ;;  %v4260_v31 = vrot.slane %v4245_v8, 7  ;;  %v2167_v36 = vrot.slane %v6313_v6, 3 }
0x332a   : > { %2045 = vrot.lane.b32.xlu1 %v2033_v40, %s5544_s6  ;;  %v2175_v40 = vperm.slane %v2167_v36, 0 }
0x332f   : > { %v2050_v45 = vpop.permute.xlu0 %2049  ;;  %v4247_v34 = vld [vmem:[#allocation2 + $0x3b] sm:$0x1] }
0x3330   : > { %2067 = vst.msk [vmem:[#allocation2 + $0x6b] sm:$0x1] %vm487_vm0, %v2050_v45  ;;  %v4264_v33 = vrot.slane %v4247_v34, 5  ;;  %v2178_v45 = vperm.slane %v2170_v48, 0  ;;  %v2168_v34 = vrot.slane %v6313_v6, 4 }
0x3332   : > { %2051 = vrot.lane.b32.xlu1 %v2036_v58, %s5544_s6 }
0x3337   : > { %v4250_v38 = vld [vmem:[#allocation2 + $0x6b] sm:$0x1] }
0x3338   : > { %v4270_v59 = vrot.slane %v4250_v38, 2 }
0x338c   : > { %v4187_v55 = vpop.permute.xlu1 %4186 }
0x338d   : > { %v6976_v9 = vadd.f32 %v4187_v55, %v4179_v51 }
0x338f   : > { %5447 = vtanh.f32 %v6976_v9 }
0x3394   : > { %v2042_v11 = vpop.permute.xlu1 %2041 }
0x3395   : > { %v5448_v23 = vpop.eup %5447  ;;  %2063 = vst.msk [vmem:[#allocation2 + $0x2b] sm:$0x1] %vm487_vm0, %v2042_v11 }
0x3396   : > { %4192 = vrot.lane.b32.xlu2 %v5448_v23, %s5545_s9 }
0x339c   : > { %v2046_v12 = vpop.permute.xlu1 %2045  ;;  %v4246_v24 = vld [vmem:[#allocation2 + $0x2b] sm:$0x1] }
0x339d   : > { %2065 = vst.msk [vmem:[#allocation2 + $0x4b] sm:$0x1] %vm487_vm0, %v2046_v12  ;;  %v4262_v10 = vrot.slane %v4246_v24, 6  ;;  %v2166_v24 = vrot.slane %v6313_v6, 2 }
0x339e   : > { %2037 = vrot.lane.b32.xlu2 %v2029_v49, %s5544_s6 }
0x33a4   : > { %v2052_v13 = vpop.permute.xlu1 %2051  ;;  %v4248_v28 = vld [vmem:[#allocation2 + $0x4b] sm:$0x1] }
0x33a5   : > { %2068 = vst.msk [vmem:[#allocation2 + $0x7b] sm:$0x1] %vm487_vm0, %v2052_v13  ;;  %v4266_v17 = vrot.slane %v4248_v28, 4 }
0x33a6   : > { %2047 = vrot.lane.b32.xlu2 %v2034_v14, %s5544_s6 }
0x33ac   : > { %v4251_v53 = vld [vmem:[#allocation2 + $0x7b] sm:$0x1] }
0x33ad   : > { %v4272_v57 = vrot.slane %v4251_v53, 1  ;;  %v2172_v53 = vperm.slane %v6313_v6, 0 }
0x33f0   : > { %v4193_v63 = vpop.permute.xlu2 %4192 }
0x33f1   : > { %v6987_v15 = vmul.f32 %v4193_v63, %v4176_v22 }
0x33f3   : > { %4275 = vrot.lane.b32.xlu2 %v6987_v15, %s5545_s9 }
0x33f8   : > { %v2038_v26 = vpop.permute.xlu2 %2037 }
0x33f9   : > { %2061 = vst.msk [vmem:[#allocation2 + $0xb] sm:$0x1] %vm487_vm0, %v2038_v26 }
0x3400   : > { %v2048_v30 = vpop.permute.xlu2 %2047  ;;  %v4244_v27 = vld [vmem:[#allocation2 + $0xb] sm:$0x1] }
0x3401   : > { %2066 = vst.msk [vmem:[#allocation2 + $0x5b] sm:$0x1] %vm487_vm0, %v2048_v30  ;;  %v4261_v32 = vsel %vm355_vm1, %v4260_v31, %v4244_v27 }
0x3402   : > { %v4263_v41 = vsel %vm358_vm2, %v4262_v10, %v4261_v32  ;;  %v2174_v32 = vperm.slane %v2166_v24, 0 }
0x3403   : > { %v4265_v39 = vsel %vm361_vm3, %v4264_v33, %v4263_v41  ;;  %v2171_v41 = vrot.slane %v6313_v6, 7 }
0x3404   : > { %v4267_v56 = vsel %vm364_vm4, %v4266_v17, %v4265_v39 }
0x3405   : > { %v2179_v33 = vperm.slane %v2171_v41, 0  ;;  %v2313_v41 = vrot.slane %v6408_v61, 6 }
0x3408   : > { %v4249_v25 = vld [vmem:[#allocation2 + $0x5b] sm:$0x1] }
0x3409   : > { %v4268_v46 = vrot.slane %v4249_v25, 3  ;;  %v2176_v25 = vperm.slane %v2168_v34, 0 }
0x340b   : > { %v4269_v7 = vsel %vm367_vm5, %v4268_v46, %v4267_v56 }
0x340c   : > { %v4271_v60 = vsel %vm370_vm6, %v4270_v59, %v4269_v7 }
0x340d   : > { %v4273_v43 = vsel %vm373_vm7, %v4272_v57, %v4271_v60 }
0x344d   : > { %v4276_v4 = vpop.permute.xlu2 %4275 }
0x344e   : > { %v4278_v22 = vsel %vm7788_vm14, %v4273_v43, %v4276_v4 }
0x344f   : > { %5192 = vmatmul.msk.f32.vlgmr.msra.gmra.mxu3 %vm7789_vm11, %v4278_v22 }
0x34d2   : > { %v4299_v3 = vpop.f32.mrf.mxu3 }
0x34d3   : > { %v4300_v18 = vadd.f32 %v6865_v42, %v4299_v3 }
0x34d5   : > { %5449 = vtanh.f32 %v4300_v18  ;;  %v5193_v58 = vmul.f32 -1.442695, %v4300_v18 }
0x34d7   : > { %5451 = vpow2.f32 %v5193_v58 }
0x34db   : > { %v5450_v19 = vpop.eup %5449 }
0x34dc   : > { %4324 = vrot.lane.b32.xlu0 %v5450_v19, %s5545_s9 }
0x34dd   : > { %v5452_v51 = vpop.eup %5451 }
0x34de   : > { %v4305_v55 = vadd.f32 1.0, %v5452_v51 }
0x34e0   : > { %5453 = vrcp.f32 %v4305_v55  ;;  %v4317_v13 = vand.u32 2147483648, %v4305_v55  ;;  %vm4311_vm9 = vweird.f32 %v4305_v55  ;;  %v4315_v14 = vand.u32 2147483647, %v4305_v55 }
0x34e2   : > { %v4318_v26 = vor.u32 1.1754944e-38, %v4317_v13  ;;  %vm4316_vm15 = vcmp.eq.f32.partialorder %v4315_v14, 8.507059e+37 }
0x34e4   : > { %2182 = vrot.lane.b32.xlu0 %v2173_v50, %s5544_s6 }
0x34e6   : > { %v5454_v11 = vpop.eup %5453 }
0x34e7   : > { %v4307_v23 = vmul.f32 %v5454_v11, %v4305_v55  ;;  %vm4312_vm8 = vweird.f32 %v5454_v11 }
0x34e8   : > { %vm4313_vm10 = vmor %vm4311_vm9, %vm4312_vm8 }
0x34e9   : > { %v4308_v12 = vsub.f32 1.0, %v4307_v23 }
0x34eb   : > { %v4309_v49 = vmul.f32 %v5454_v11, %v4308_v12 }
0x34ec   : > { %2186 = vrot.lane.b32.xlu0 %v2175_v40, %s5544_s6 }
0x34ed   : > { %v4310_v54 = vadd.f32 %v5454_v11, %v4309_v49 }
0x34ef   : > { %v4314_v63 = vsel %vm4313_vm10, %v5454_v11, %v4310_v54  ;;  %vm7792_vm10 = vmmov %vm7790_vm12 }
0x34f0   : > { %v4319_v8 = vsel %vm4316_vm15, %v4318_v26, %v4314_v63  ;;  %vm7793_vm15 = vmmov %vm7791_vm13 }
0x34f1   : > { %v4322_v39 = vmul.f32 %v4319_v8, %v6976_v9  ;;  %v2169_v9 = vrot.slane %v6313_v6, 5 }
0x34f3   : > { %v2177_v60 = vperm.slane %v2169_v9, 0 }
0x34f4   : > { %2192 = vrot.lane.b32.xlu0 %v2178_v45, %s5544_s6 }
0x354e   : > { %v4325_v30 = vpop.permute.xlu0 %4324 }
0x354f   : > { %v4327_v27 = vmul.f32 %v4325_v30, %v4319_v8 }
0x3551   : > { %4329 = vrot.lane.b32.xlu1 %v4327_v27, %s5544_s6 }
0x3556   : > { %v2183_v31 = vpop.permute.xlu0 %2182 }
0x3557   : > { %2205 = vst.msk [vmem:[#allocation2 + $0x1c] sm:$0x1] %vm487_vm0, %v2183_v31 }
0x3559   : > { %2184 = vrot.lane.b32.xlu1 %v2174_v32, %s5544_s6  ;;  %v2308_v32 = vrot.slane %v6408_v61, 1 }
0x355b   : > { %v2316_v34 = vperm.slane %v2308_v32, 0 }
0x355e   : > { %v2187_v10 = vpop.permute.xlu0 %2186  ;;  %v4388_v3 = vld [vmem:[#allocation2 + $0x1c] sm:$0x1] }
0x355f   : > { %2207 = vst.msk [vmem:[#allocation2 + $0x3c] sm:$0x1] %vm487_vm0, %v2187_v10  ;;  %v4403_v19 = vrot.slane %v4388_v3, 7  ;;  %v2310_v10 = vrot.slane %v6408_v61, 3 }
0x3561   : > { %2188 = vrot.lane.b32.xlu1 %v2176_v25, %s5544_s6  ;;  %v2318_v25 = vperm.slane %v2310_v10, 0 }
0x3566   : > { %v2193_v28 = vpop.permute.xlu0 %2192  ;;  %v4390_v50 = vld [vmem:[#allocation2 + $0x3c] sm:$0x1] }
0x3567   : > { %2210 = vst.msk [vmem:[#allocation2 + $0x6c] sm:$0x1] %vm487_vm0, %v2193_v28  ;;  %v4407_v58 = vrot.slane %v4390_v50, 5  ;;  %v2321_v28 = vperm.slane %v2313_v41, 0  ;;  %v2311_v50 = vrot.slane %v6408_v61, 4 }
0x3569   : > { %2194 = vrot.lane.b32.xlu1 %v2179_v33, %s5544_s6 }
0x356e   : > { %v4393_v23 = vld [vmem:[#allocation2 + $0x6c] sm:$0x1] }
0x356f   : > { %v4413_v13 = vrot.slane %v4393_v23, 2 }
0x35c3   : > { %v4330_v46 = vpop.permute.xlu1 %4329 }
0x35c4   : > { %v7021_v17 = vadd.f32 %v4330_v46, %v4322_v39 }
0x35c6   : > { %5455 = vtanh.f32 %v7021_v17 }
0x35cb   : > { %v2185_v38 = vpop.permute.xlu1 %2184 }
0x35cc   : > { %v5456_v56 = vpop.eup %5455  ;;  %2206 = vst.msk [vmem:[#allocation2 + $0x2c] sm:$0x1] %vm487_vm0, %v2185_v38 }
0x35cd   : > { %4335 = vrot.lane.b32.xlu2 %v5456_v56, %s5545_s9 }
0x35d3   : > { %v2189_v7 = vpop.permute.xlu1 %2188  ;;  %v4389_v18 = vld [vmem:[#allocation2 + $0x2c] sm:$0x1] }
0x35d4   : > { %2208 = vst.msk [vmem:[#allocation2 + $0x4c] sm:$0x1] %vm487_vm0, %v2189_v7  ;;  %v4405_v36 = vrot.slane %v4389_v18, 6  ;;  %v2309_v18 = vrot.slane %v6408_v61, 2 }
0x35d5   : > { %2180 = vrot.lane.b32.xlu2 %v2172_v53, %s5544_s6 }
0x35db   : > { %v2195_v59 = vpop.permute.xlu1 %2194  ;;  %v4391_v45 = vld [vmem:[#allocation2 + $0x4c] sm:$0x1] }
0x35dc   : > { %2211 = vst.msk [vmem:[#allocation2 + $0x7c] sm:$0x1] %vm487_vm0, %v2195_v59  ;;  %v4409_v11 = vrot.slane %v4391_v45, 4 }
0x35dd   : > { %2190 = vrot.lane.b32.xlu2 %v2177_v60, %s5544_s6 }
0x35e3   : > { %v4394_v54 = vld [vmem:[#allocation2 + $0x7c] sm:$0x1] }
0x35e4   : > { %v4415_v63 = vrot.slane %v4394_v54, 1  ;;  %v2315_v54 = vperm.slane %v6408_v61, 0 }
0x3627   : > { %v4336_v57 = vpop.permute.xlu2 %4335 }
0x3628   : > { %v7032_v43 = vmul.f32 %v4336_v57, %v4319_v8 }
0x362a   : > { %4418 = vrot.lane.b32.xlu2 %v7032_v43, %s5545_s9 }
0x362f   : > { %v2181_v4 = vpop.permute.xlu2 %2180 }
0x3630   : > { %2204 = vst.msk [vmem:[#allocation2 + $0xc] sm:$0x1] %vm487_vm0, %v2181_v4 }
0x3637   : > { %v2191_v22 = vpop.permute.xlu2 %2190  ;;  %v4387_v6 = vld [vmem:[#allocation2 + $0xc] sm:$0x1] }
0x3638   : > { %2209 = vst.msk [vmem:[#allocation2 + $0x5c] sm:$0x1] %vm487_vm0, %v2191_v22  ;;  %v4404_v20 = vsel %vm355_vm1, %v4403_v19, %v4387_v6 }
0x3639   : > { %v4406_v48 = vsel %vm358_vm2, %v4405_v36, %v4404_v20  ;;  %v2317_v20 = vperm.slane %v2309_v18, 0 }
0x363a   : > { %v4408_v51 = vsel %vm361_vm3, %v4407_v58, %v4406_v48  ;;  %v2314_v48 = vrot.slane %v6408_v61, 7 }
0x363b   : > { %v4410_v12 = vsel %vm364_vm4, %v4409_v11, %v4408_v51 }
0x363c   : > { %v2322_v58 = vperm.slane %v2314_v48, 0  ;;  %v2456_v48 = vrot.slane %v6503_v29, 6 }
0x363f   : > { %v4392_v40 = vld [vmem:[#allocation2 + $0x5c] sm:$0x1] }
0x3640   : > { %v4411_v55 = vrot.slane %v4392_v40, 3  ;;  %v2319_v40 = vperm.slane %v2311_v50, 0 }
0x3642   : > { %v4412_v49 = vsel %vm367_vm5, %v4411_v55, %v4410_v12 }
0x3643   : > { %v4414_v14 = vsel %vm370_vm6, %v4413_v13, %v4412_v49 }
0x3644   : > { %v4416_v26 = vsel %vm373_vm7, %v4415_v63, %v4414_v14 }
0x3684   : > { %v4419_v30 = vpop.permute.xlu2 %4418 }
0x3685   : > { %v4421_v8 = vsel %vm7790_vm12, %v4416_v26, %v4419_v30 }
0x3686   : > { %5194 = vmatmul.msk.f32.vlgmr.msrb.gmra.mxu0 %vm7791_vm13, %v4421_v8 }
0x3703   : > { %v4442_v27 = vpop.f32.mrf.mxu0 }
0x3704   : > { %v4443_v24 = vadd.f32 %v6865_v42, %v4442_v27 }
0x3706   : > { %5457 = vtanh.f32 %v4443_v24  ;;  %v5195_v33 = vmul.f32 -1.442695, %v4443_v24 }
0x3708   : > { %5459 = vpow2.f32 %v5195_v33 }
0x370c   : > { %v5458_v31 = vpop.eup %5457 }
0x370d   : > { %4467 = vrot.lane.b32.xlu0 %v5458_v31, %s5545_s9 }
0x370e   : > { %v5460_v39 = vpop.eup %5459 }
0x370f   : > { %v4448_v46 = vadd.f32 1.0, %v5460_v39 }
0x3711   : > { %5461 = vrcp.f32 %v4448_v46  ;;  %v4460_v59 = vand.u32 2147483648, %v4448_v46  ;;  %vm4454_vm11 = vweird.f32 %v4448_v46  ;;  %v4458_v60 = vand.u32 2147483647, %v4448_v46 }
0x3713   : > { %v4461_v4 = vor.u32 1.1754944e-38, %v4460_v59  ;;  %vm4459_vm9 = vcmp.eq.f32.partialorder %v4458_v60, 8.507059e+37 }
0x3715   : > { %2325 = vrot.lane.b32.xlu0 %v2316_v34, %s5544_s6 }
0x3717   : > { %v5462_v38 = vpop.eup %5461 }
0x3718   : > { %v4450_v56 = vmul.f32 %v5462_v38, %v4448_v46  ;;  %vm4455_vm14 = vweird.f32 %v5462_v38 }
0x3719   : > { %vm4456_vm8 = vmor %vm4454_vm11, %vm4455_vm14 }
0x371a   : > { %v4451_v7 = vsub.f32 1.0, %v4450_v56 }
0x371c   : > { %v4452_v53 = vmul.f32 %v5462_v38, %v4451_v7 }
0x371d   : > { %2329 = vrot.lane.b32.xlu0 %v2318_v25, %s5544_s6 }
0x371e   : > { %v4453_v9 = vadd.f32 %v5462_v38, %v4452_v53 }
0x3720   : > { %v4457_v57 = vsel %vm4456_vm8, %v5462_v38, %v4453_v9 }
0x3721   : > { %v4462_v3 = vsel %vm4459_vm9, %v4461_v4, %v4457_v57 }
0x3722   : > { %v4465_v51 = vmul.f32 %v4462_v3, %v7021_v17  ;;  %v2312_v17 = vrot.slane %v6408_v61, 5 }
0x3724   : > { %v2320_v14 = vperm.slane %v2312_v17, 0 }
0x3725   : > { %2335 = vrot.lane.b32.xlu0 %v2321_v28, %s5544_s6 }
0x377f   : > { %v4468_v22 = vpop.permute.xlu0 %4467 }
0x3780   : > { %v4470_v6 = vmul.f32 %v4468_v22, %v4462_v3 }
0x3782   : > { %4472 = vrot.lane.b32.xlu1 %v4470_v6, %s5544_s6 }
0x3787   : > { %v2326_v19 = vpop.permute.xlu0 %2325 }
0x3788   : > { %2348 = vst.msk [vmem:[#allocation2 + $0x1d] sm:$0x1] %vm487_vm0, %v2326_v19 }
0x378a   : > { %2327 = vrot.lane.b32.xlu1 %v2317_v20, %s5544_s6  ;;  %v2451_v20 = vrot.slane %v6503_v29, 1 }
0x378c   : > { %v2459_v50 = vperm.slane %v2451_v20, 0 }
0x378f   : > { %v2330_v36 = vpop.permute.xlu0 %2329  ;;  %v4531_v27 = vld [vmem:[#allocation2 + $0x1d] sm:$0x1] }
0x3790   : > { %2350 = vst.msk [vmem:[#allocation2 + $0x3d] sm:$0x1] %vm487_vm0, %v2330_v36  ;;  %v4546_v31 = vrot.slane %v4531_v27, 7  ;;  %v2453_v36 = vrot.slane %v6503_v29, 3 }
0x3792   : > { %2331 = vrot.lane.b32.xlu1 %v2319_v40, %s5544_s6  ;;  %v2461_v40 = vperm.slane %v2453_v36, 0 }
0x3797   : > { %v2336_v45 = vpop.permute.xlu0 %2335  ;;  %v4533_v34 = vld [vmem:[#allocation2 + $0x3d] sm:$0x1] }
0x3798   : > { %2353 = vst.msk [vmem:[#allocation2 + $0x6d] sm:$0x1] %vm487_vm0, %v2336_v45  ;;  %v4550_v33 = vrot.slane %v4533_v34, 5 }
0x379a   : > { %2337 = vrot.lane.b32.xlu1 %v2322_v58, %s5544_s6  ;;  %v2464_v58 = vperm.slane %v2456_v48, 0 }
0x379f   : > { %v4536_v56 = vld [vmem:[#allocation2 + $0x6d] sm:$0x1] }
0x37a0   : > { %v4556_v59 = vrot.slane %v4536_v56, 2 }
0x37f4   : > { %v4473_v55 = vpop.permute.xlu1 %4472 }
0x37f5   : > { %v7066_v11 = vadd.f32 %v4473_v55, %v4465_v51 }
0x37f7   : > { %5463 = vtanh.f32 %v7066_v11 }
0x37fc   : > { %v2328_v23 = vpop.permute.xlu1 %2327 }
0x37fd   : > { %v5464_v12 = vpop.eup %5463  ;;  %2349 = vst.msk [vmem:[#allocation2 + $0x2d] sm:$0x1] %vm487_vm0, %v2328_v23 }
0x37fe   : > { %4478 = vrot.lane.b32.xlu2 %v5464_v12, %s5545_s9 }
0x3804   : > { %v2332_v49 = vpop.permute.xlu1 %2331  ;;  %v4532_v24 = vld [vmem:[#allocation2 + $0x2d] sm:$0x1] }
0x3805   : > { %2351 = vst.msk [vmem:[#allocation2 + $0x4d] sm:$0x1] %vm487_vm0, %v2332_v49  ;;  %v4548_v10 = vrot.slane %v4532_v24, 6 }
0x3806   : > { %2323 = vrot.lane.b32.xlu2 %v2315_v54, %s5544_s6 }
0x380c   : > { %v2338_v13 = vpop.permute.xlu1 %2337  ;;  %v4534_v28 = vld [vmem:[#allocation2 + $0x4d] sm:$0x1] }
0x380d   : > { %2354 = vst.msk [vmem:[#allocation2 + $0x7d] sm:$0x1] %vm487_vm0, %v2338_v13  ;;  %v4552_v38 = vrot.slane %v4534_v28, 4  ;;  %v2457_v28 = vrot.slane %v6503_v29, 7 }
0x380e   : > { %2333 = vrot.lane.b32.xlu2 %v2320_v14, %s5544_s6 }
0x3814   : > { %v4537_v9 = vld [vmem:[#allocation2 + $0x7d] sm:$0x1] }
0x3815   : > { %v4558_v57 = vrot.slane %v4537_v9, 1 }
0x3858   : > { %v4479_v63 = vpop.permute.xlu2 %4478 }
0x3859   : > { %v7077_v26 = vmul.f32 %v4479_v63, %v4462_v3 }
0x385b   : > { %4561 = vrot.lane.b32.xlu2 %v7077_v26, %s5545_s9 }
0x3860   : > { %v2324_v30 = vpop.permute.xlu2 %2323 }
0x3861   : > { %2347 = vst.msk [vmem:[#allocation2 + $0xd] sm:$0x1] %vm487_vm0, %v2324_v30 }
0x3868   : > { %v2334_v8 = vpop.permute.xlu2 %2333  ;;  %v4530_v61 = vld [vmem:[#allocation2 + $0xd] sm:$0x1] }
0x3869   : > { %2352 = vst.msk [vmem:[#allocation2 + $0x5d] sm:$0x1] %vm487_vm0, %v2334_v8  ;;  %v4547_v32 = vsel %vm355_vm1, %v4546_v31, %v4530_v61  ;;  %v2452_v31 = vrot.slane %v6503_v29, 2 }
0x386a   : > { %v4549_v41 = vsel %vm358_vm2, %v4548_v10, %v4547_v32  ;;  %v2454_v10 = vrot.slane %v6503_v29, 4 }
0x386b   : > { %v4551_v39 = vsel %vm361_vm3, %v4550_v33, %v4549_v41  ;;  %v2460_v34 = vperm.slane %v2452_v31, 0 }
0x386c   : > { %v4553_v7 = vsel %vm364_vm4, %v4552_v38, %v4551_v39  ;;  %v2462_v41 = vperm.slane %v2454_v10, 0  ;;  %v2465_v39 = vperm.slane %v2457_v28, 0 }
0x3870   : > { %v4535_v25 = vld [vmem:[#allocation2 + $0x5d] sm:$0x1] }
0x3871   : > { %v4554_v46 = vrot.slane %v4535_v25, 3 }
0x3873   : > { %v4555_v53 = vsel %vm367_vm5, %v4554_v46, %v4553_v7 }
0x3874   : > { %v4557_v60 = vsel %vm370_vm6, %v4556_v59, %v4555_v53  ;;  %v2458_v59 = vperm.slane %v6503_v29, 0 }
0x3875   : > { %v4559_v4 = vsel %vm373_vm7, %v4558_v57, %v4557_v60 }
0x38b5   : > { %v4562_v22 = vpop.permute.xlu2 %4561 }
0x38b6   : > { %v4564_v3 = vsel %vm7792_vm10, %v4559_v4, %v4562_v22 }
0x38b7   : > { %5196 = vmatmul.msk.f32.vlgmr.msrb.gmra.mxu1 %vm7793_vm15, %v4564_v3 }
0x3934   : > { %v4585_v6 = vpop.f32.mrf.mxu1 }
0x3935   : > { %v4586_v18 = vadd.f32 %v6865_v42, %v4585_v6  ;;  %v5515_v42 = vld [vmem:[%s7756_s2] ss:$0 sm:$0xff] }
0x3936   : > { %v2554_v45 = vadd.f32 %v5515_v42, %v6598_v52 }
0x3937   : > { %5465 = vtanh.f32 %v4586_v18  ;;  %v5197_v55 = vmul.f32 -1.442695, %v4586_v18 }
0x3938   : > { %5467 = vtanh.f32 %v2554_v45  ;;  %v5169_v4 = vmul.f32 -1.442695, %v2554_v45 }
0x3939   : > { %5469 = vpow2.f32 %v5197_v55 }
0x393d   : > { %v5466_v19 = vpop.eup %5465 }
0x393e   : > { %4610 = vrot.lane.b32.xlu0 %v5466_v19, %s5545_s9  ;;  %v5468_v51 = vpop.eup %5467 }
0x393f   : > { %v5470_v23 = vpop.eup %5469 }
0x3940   : > { %v4591_v12 = vadd.f32 1.0, %v5470_v23 }
0x3942   : > { %5471 = vrcp.f32 %v4591_v12  ;;  %v4603_v63 = vand.u32 2147483648, %v4591_v12  ;;  %vm4597_vm13 = vweird.f32 %v4591_v12  ;;  %v4601_v52 = vand.u32 2147483647, %v4591_v12 }
0x3944   : > { %v4604_v8 = vor.u32 1.1754944e-38, %v4603_v63  ;;  %vm4602_vm11 = vcmp.eq.f32.partialorder %v4601_v52, 8.507059e+37 }
0x3946   : > { %2468 = vrot.lane.b32.xlu0 %v2459_v50, %s5544_s6 }
0x3948   : > { %v5472_v49 = vpop.eup %5471 }
0x3949   : > { %v4593_v54 = vmul.f32 %v5472_v49, %v4591_v12  ;;  %vm4598_vm12 = vweird.f32 %v5472_v49 }
0x394a   : > { %vm4599_vm14 = vmor %vm4597_vm13, %vm4598_vm12  ;;  %vm7794_vm12 = vcmask 261120   ;;  %vm7795_vm13 = vcmask 523264  }
0x394b   : > { %v4594_v17 = vsub.f32 1.0, %v4593_v54 }
0x394d   : > { %v4595_v13 = vmul.f32 %v5472_v49, %v4594_v17 }
0x394e   : > { %2472 = vrot.lane.b32.xlu0 %v2461_v40, %s5544_s6 }
0x394f   : > { %v4596_v14 = vadd.f32 %v5472_v49, %v4595_v13 }
0x3951   : > { %v4600_v30 = vsel %vm4599_vm14, %v5472_v49, %v4596_v14 }
0x3952   : > { %v4605_v61 = vsel %vm4602_vm11, %v4604_v8, %v4600_v30 }
0x3953   : > { %v4608_v46 = vmul.f32 %v4605_v61, %v7066_v11  ;;  %v2455_v11 = vrot.slane %v6503_v29, 5 }
0x3955   : > { %v2463_v57 = vperm.slane %v2455_v11, 0 }
0x3956   : > { %2478 = vrot.lane.b32.xlu0 %v2464_v58, %s5544_s6 }
0x395e   : > { %2578 = vrot.lane.b32.xlu0 %v5468_v51, %s5545_s9 }
0x39b0   : > { %v4611_v27 = vpop.permute.xlu0 %4610 }
0x39b1   : > { %v4613_v24 = vmul.f32 %v4611_v27, %v4605_v61 }
0x39b3   : > { %4615 = vrot.lane.b32.xlu1 %v4613_v24, %s5544_s6 }
0x39b8   : > { %v2469_v32 = vpop.permute.xlu0 %2468 }
0x39b9   : > { %2491 = vst.msk [vmem:[#allocation2 + $0x1e] sm:$0x1] %vm487_vm0, %v2469_v32 }
0x39bb   : > { %2470 = vrot.lane.b32.xlu1 %v2460_v34, %s5544_s6 }
0x39c0   : > { %v2473_v25 = vpop.permute.xlu0 %2472  ;;  %v4674_v49 = vld [vmem:[#allocation2 + $0x1e] sm:$0x1] }
0x39c1   : > { %2493 = vst.msk [vmem:[#allocation2 + $0x3e] sm:$0x1] %vm487_vm0, %v2473_v25  ;;  %v4689_v13 = vrot.slane %v4674_v49, 7 }
0x39c3   : > { %2474 = vrot.lane.b32.xlu1 %v2462_v41, %s5544_s6 }
0x39c8   : > { %v2479_v33 = vpop.permute.xlu0 %2478  ;;  %v4676_v63 = vld [vmem:[#allocation2 + $0x3e] sm:$0x1] }
0x39c9   : > { %2496 = vst.msk [vmem:[#allocation2 + $0x6e] sm:$0x1] %vm487_vm0, %v2479_v33 }
0x39cb   : > { %2480 = vrot.lane.b32.xlu1 %v2465_v39, %s5544_s6 }
0x39d0   : > { %v2579_v45 = vpop.permute.xlu0 %2578  ;;  %v4679_v34 = vld [vmem:[#allocation2 + $0x6e] sm:$0x1] }
0x39d1   : > { %v4699_v28 = vrot.slane %v4679_v34, 2 }
0x3a25   : > { %v4616_v38 = vpop.permute.xlu1 %4615 }
0x3a26   : > { %v7116_v56 = vadd.f32 %v4616_v38, %v4608_v46 }
0x3a28   : > { %5473 = vtanh.f32 %v7116_v56 }
0x3a29   : > { %5475 = vpow2.f32 %v5169_v4 }
0x3a2d   : > { %v2471_v7 = vpop.permute.xlu1 %2470 }
0x3a2e   : > { %v5474_v53 = vpop.eup %5473  ;;  %2492 = vst.msk [vmem:[#allocation2 + $0x2e] sm:$0x1] %vm487_vm0, %v2471_v7 }
0x3a2f   : > { %4621 = vrot.lane.b32.xlu2 %v5474_v53, %s5545_s9  ;;  %v5476_v22 = vpop.eup %5475 }
0x3a30   : > { %v2559_v3 = vadd.f32 1.0, %v5476_v22 }
0x3a32   : > { %5477 = vrcp.f32 %v2559_v3  ;;  %v2571_v29 = vand.u32 2147483648, %v2559_v3  ;;  %vm2565_vm9 = vweird.f32 %v2559_v3  ;;  %v2569_v48 = vand.u32 2147483647, %v2559_v3 }
0x3a34   : > { %v2572_v58 = vor.u32 1.1754944e-38, %v2571_v29  ;;  %vm2570_vm15 = vcmp.eq.f32.partialorder %v2569_v48, 8.507059e+37 }
0x3a35   : > { %v2475_v9 = vpop.permute.xlu1 %2474  ;;  %v4675_v17 = vld [vmem:[#allocation2 + $0x2e] sm:$0x1] }
0x3a36   : > { %2494 = vst.msk [vmem:[#allocation2 + $0x4e] sm:$0x1] %vm487_vm0, %v2475_v9  ;;  %v4691_v52 = vrot.slane %v4675_v17, 6  ;;  %v5516_v9 = vld [vmem:[%s7758_s4] ss:$0 sm:$0xff] }
0x3a37   : > { %2466 = vrot.lane.b32.xlu2 %v2458_v59, %s5544_s6 }
0x3a38   : > { %v5478_v6 = vpop.eup %5477 }
0x3a39   : > { %v2561_v18 = vmul.f32 %v5478_v6, %v2559_v3  ;;  %vm2566_vm8 = vweird.f32 %v5478_v6 }
0x3a3a   : > { %vm2567_vm10 = vmor %vm2565_vm9, %vm2566_vm8 }
0x3a3b   : > { %v2562_v19 = vsub.f32 1.0, %v2561_v18 }
0x3a3d   : > { %v2481_v60 = vpop.permute.xlu1 %2480  ;;  %v2563_v20 = vmul.f32 %v5478_v6, %v2562_v19  ;;  %v4677_v27 = vld [vmem:[#allocation2 + $0x4e] sm:$0x1] }
0x3a3e   : > { %2497 = vst.msk [vmem:[#allocation2 + $0x7e] sm:$0x1] %vm487_vm0, %v2481_v60  ;;  %v4695_v32 = vrot.slane %v4677_v27, 4 }
0x3a3f   : > { %2476 = vrot.lane.b32.xlu2 %v2463_v57, %s5544_s6  ;;  %v2564_v36 = vadd.f32 %v5478_v6, %v2563_v20 }
0x3a41   : > { %v2568_v42 = vsel %vm2567_vm10, %v5478_v6, %v2564_v36  ;;  %vm7796_vm10 = vmmov %vm7794_vm12 }
0x3a42   : > { %v7131_v51 = vsel %vm2570_vm15, %v2572_v58, %v2568_v42  ;;  %vm7797_vm15 = vmmov %vm7796_vm10 }
0x3a43   : > { %v2581_v23 = vmul.f32 %v2579_v45, %v7131_v51  ;;  %v2576_v60 = vmul.f32 %v7131_v51, %v6480_v21 }
0x3a45   : > { %v4680_v41 = vld [vmem:[#allocation2 + $0x7e] sm:$0x1] }
0x3a46   : > { %v4701_v39 = vrot.slane %v4680_v41, 1  ;;  %v2774_v41 = vperm.slane %v6317_v1, 0 }
0x3a89   : > { %v4622_v50 = vpop.permute.xlu2 %4621 }
0x3a8a   : > { %v7127_v40 = vmul.f32 %v4622_v50, %v4605_v61  ;;  %v4693_v61 = vrot.slane %v4676_v63, 5 }
0x3a8c   : > { %4704 = vrot.lane.b32.xlu2 %v7127_v40, %s5545_s9 }
0x3a91   : > { %v2467_v55 = vpop.permute.xlu2 %2466 }
0x3a92   : > { %2490 = vst.msk [vmem:[#allocation2 + $0xe] sm:$0x1] %vm487_vm0, %v2467_v55 }
0x3a94   : > { %2583 = vrot.lane.b32.xlu2 %v2581_v23, %s5544_s6 }
0x3a99   : > { %v2477_v12 = vpop.permute.xlu2 %2476  ;;  %v4673_v54 = vld [vmem:[#allocation2 + $0xe] sm:$0x1] }
0x3a9a   : > { %2495 = vst.msk [vmem:[#allocation2 + $0x5e] sm:$0x1] %vm487_vm0, %v2477_v12  ;;  %v4690_v14 = vsel %vm355_vm1, %v4689_v13, %v4673_v54 }
0x3a9b   : > { %v4692_v8 = vsel %vm358_vm2, %v4691_v52, %v4690_v14 }
0x3a9c   : > { %v4694_v24 = vsel %vm361_vm3, %v4693_v61, %v4692_v8 }
0x3a9d   : > { %v4696_v10 = vsel %vm364_vm4, %v4695_v32, %v4694_v24 }
0x3aa1   : > { %v4678_v30 = vld [vmem:[#allocation2 + $0x5e] sm:$0x1] }
0x3aa2   : > { %v4697_v31 = vrot.slane %v4678_v30, 3 }
0x3aa4   : > { %v4698_v25 = vsel %vm367_vm5, %v4697_v31, %v4696_v10  ;;  %v2767_v10 = vrot.slane %v6317_v1, 1 }
0x3aa5   : > { %v4700_v33 = vsel %vm370_vm6, %v4699_v28, %v4698_v25  ;;  %v2768_v28 = vrot.slane %v6317_v1, 2 }
0x3aa6   : > { %v4702_v46 = vsel %vm373_vm7, %v4701_v39, %v4700_v33  ;;  %v2775_v25 = vperm.slane %v2767_v10, 0  ;;  %v2769_v33 = vrot.slane %v6317_v1, 3 }
0x3aa7   : > { %v2776_v39 = vperm.slane %v2768_v28, 0 }
0x3ae6   : > { %v4705_v38 = vpop.permute.xlu2 %4704 }
0x3ae7   : > { %v4707_v7 = vsel %vm7794_vm12, %v4702_v46, %v4705_v38  ;;  %v2777_v46 = vperm.slane %v2769_v33, 0  ;;  %v2770_v38 = vrot.slane %v6317_v1, 4 }
0x3ae8   : > { %5198 = vmatmul.msk.f32.vlgmr.msrb.gmra.mxu2 %vm7795_vm13, %v4707_v7  ;;  %v2771_v7 = vrot.slane %v6317_v1, 5 }
0x3aee   : > { %v2584_v11 = vpop.permute.xlu2 %2583 }
0x3aef   : > { %v2586_v57 = vadd.f32 %v2584_v11, %v2576_v60  ;;  %v2917_v60 = vperm.slane %v6415_v5, 0 }
0x3b6b   : > { %v4728_v53 = vpop.f32.mrf.mxu2 }
0x3b6c   : > { %v4729_v59 = vadd.f32 %v5516_v9, %v4728_v53  ;;  %v2778_v53 = vperm.slane %v2770_v38, 0  ;;  %v2779_v9 = vperm.slane %v2771_v7, 0  ;;  %v2913_v38 = vrot.slane %v6415_v5, 4 }
0x3b6e   : > { %5479 = vtanh.f32 %v4729_v59  ;;  %v5199_v3 = vmul.f32 -1.442695, %v4729_v59  ;;  %v2773_v59 = vrot.slane %v6317_v1, 7  ;;  %v2921_v7 = vperm.slane %v2913_v38, 0 }
0x3b6f   : > { %5481 = vtanh.f32 %v2586_v57 }
0x3b70   : > { %5483 = vpow2.f32 %v5199_v3  ;;  %v2781_v11 = vperm.slane %v2773_v59, 0 }
0x3b74   : > { %v5480_v4 = vpop.eup %5479 }
0x3b75   : > { %4753 = vrot.lane.b32.xlu1 %v5480_v4, %s5545_s9  ;;  %v5482_v22 = vpop.eup %5481  ;;  %v2912_v4 = vrot.slane %v6415_v5, 3 }
0x3b76   : > { %v5484_v6 = vpop.eup %5483 }
0x3b77   : > { %v4734_v18 = vadd.f32 1.0, %v5484_v6  ;;  %v2920_v3 = vperm.slane %v2912_v4, 0  ;;  %v2914_v6 = vrot.slane %v6415_v5, 5 }
0x3b79   : > { %5485 = vrcp.f32 %v4734_v18  ;;  %v4746_v21 = vand.u32 2147483648, %v4734_v18  ;;  %vm4740_vm11 = vweird.f32 %v4734_v18  ;;  %v4744_v48 = vand.u32 2147483647, %v4734_v18 }
0x3b7b   : > { %v4747_v45 = vor.u32 1.1754944e-38, %v4746_v21  ;;  %vm4745_vm9 = vcmp.eq.f32.partialorder %v4744_v48, 8.507059e+37  ;;  %v3058_v21 = vrot.slane %v6510_v44, 6 }
0x3b7d   : > { %2589 = vrot.lane.b32.xlu1 %v5482_v22, %s5545_s9  ;;  %v3066_v48 = vperm.slane %v3058_v21, 0  ;;  %v3625_v21 = vrot.slane %v6794_v16, 1 }
0x3b7f   : > { %v5486_v19 = vpop.eup %5485 }
0x3b80   : > { %v4736_v20 = vmul.f32 %v5486_v19, %v4734_v18  ;;  %vm4741_vm14 = vweird.f32 %v5486_v19  ;;  %v2915_v18 = vrot.slane %v6415_v5, 6 }
0x3b81   : > { %vm4742_vm8 = vmor %vm4740_vm11, %vm4741_vm14 }
0x3b82   : > { %v4737_v50 = vsub.f32 1.0, %v4736_v20  ;;  %v2923_v20 = vperm.slane %v2915_v18, 0  ;;  %v3487_v18 = vrot.slane %v6741_v35, 6 }
0x3b84   : > { %v4738_v36 = vmul.f32 %v5486_v19, %v4737_v50  ;;  %v3060_v50 = vperm.slane %v6510_v44, 0 }
0x3b86   : > { %v4739_v29 = vadd.f32 %v5486_v19, %v4738_v36  ;;  %v3055_v36 = vrot.slane %v6510_v44, 3 }
0x3b88   : > { %v4743_v42 = vsel %vm4742_vm8, %v5486_v19, %v4739_v29  ;;  %v2922_v19 = vperm.slane %v2914_v6, 0  ;;  %v3063_v29 = vperm.slane %v3055_v36, 0 }
0x3b89   : > { %v7153_v55 = vsel %vm4745_vm9, %v4747_v45, %v4743_v42  ;;  %v3196_v45 = vrot.slane %v6635_v62, 1 }
0x3be7   : > { %v4754_v58 = vpop.permute.xlu1 %4753 }
0x3be8   : > { %v4756_v23 = vmul.f32 %v4754_v58, %v7153_v55  ;;  %v3204_v58 = vperm.slane %v3196_v45, 0 }
0x3bea   : > { %4758 = vrot.lane.b32.xlu0 %v4756_v23, %s5544_s6 }
0x3bef   : > { %v2590_v12 = vpop.permute.xlu1 %2589 }
0x3bf0   : > { %v2592_v49 = vmul.f32 %v2590_v12, %v7131_v51  ;;  %v3199_v12 = vrot.slane %v6635_v62, 4 }
0x3bf2   : > { %v2601_v54 = vperm.slane %v2592_v49, 0  ;;  %v2595_v17 = vrot.slane %v2592_v49, 2  ;;  %v2594_v13 = vrot.slane %v2592_v49, 1  ;;  %v2596_v52 = vrot.slane %v2592_v49, 3 }
0x3bf3   : > { %v2598_v30 = vrot.slane %v2592_v49, 5  ;;  %v2597_v8 = vrot.slane %v2592_v49, 4  ;;  %v2599_v51 = vrot.slane %v2592_v49, 6  ;;  %v2600_v31 = vrot.slane %v2592_v49, 7 }
0x3bf4   : > { %2609 = vrot.lane.b32.xlu2 %v2601_v54, %s5544_s6  ;;  %v2603_v14 = vperm.slane %v2595_v17, 0  ;;  %v2602_v63 = vperm.slane %v2594_v13, 0  ;;  %v2604_v27 = vperm.slane %v2596_v52, 0  ;;  %v3207_v17 = vperm.slane %v3199_v12, 0 }
0x3bf5   : > { %v2606_v61 = vperm.slane %v2598_v30, 0  ;;  %v2605_v24 = vperm.slane %v2597_v8, 0  ;;  %v2607_v32 = vperm.slane %v2599_v51, 0  ;;  %v2608_v34 = vperm.slane %v2600_v31, 0 }
0x3bf6   : > { %2613 = vrot.lane.b32.xlu1 %v2603_v14, %s5544_s6  ;;  %2611 = vrot.lane.b32.xlu0 %v2602_v63, %s5544_s6  ;;  %v3202_v63 = vrot.slane %v6635_v62, 7 }
0x3bf8   : > { %v3210_v52 = vperm.slane %v3202_v63, 0 }
0x3bfc   : > { %2615 = vrot.lane.b32.xlu2 %v2604_v27, %s5544_s6 }
0x3bfe   : > { %2619 = vrot.lane.b32.xlu1 %v2606_v61, %s5544_s6  ;;  %2617 = vrot.lane.b32.xlu0 %v2605_v24, %s5544_s6  ;;  %v2772_v61 = vrot.slane %v6317_v1, 6  ;;  %v3340_v24 = vrot.slane %v6688_v47, 2  ;;  %v2910_v1 = vrot.slane %v6415_v5, 1 }
0x3c00   : > { %v2780_v51 = vperm.slane %v2772_v61, 0  ;;  %v3348_v31 = vperm.slane %v3340_v24, 0 }
0x3c04   : > { %2621 = vrot.lane.b32.xlu2 %v2607_v32, %s5544_s6 }
0x3c06   : > { %2641 = vrot.lane.b32.xlu1 %v2592_v49, %s5544_s6  ;;  %2623 = vrot.lane.b32.xlu0 %v2608_v34, %s5544_s6  ;;  %v4751_v49 = vmul.f32 %v7153_v55, %v7116_v56 }
0x3c0c   : > { %2647 = vrot.lane.b32.xlu2 %v2586_v57, %s5547_s27  ;;  %v2911_v57 = vrot.slane %v6415_v5, 2 }
0x3c0e   : > { %2784 = vrot.lane.b32.xlu1 %v2775_v25, %s5544_s6  ;;  %2782 = vrot.lane.b32.xlu0 %v2774_v41, %s5544_s6  ;;  %v2919_v22 = vperm.slane %v2911_v57, 0  ;;  %v3343_v25 = vrot.slane %v6688_v47, 5  ;;  %v2918_v41 = vperm.slane %v2910_v1, 0  ;;  %v3484_v57 = vrot.slane %v6741_v35, 3 }
0x3c10   : > { %v3351_v28 = vperm.slane %v3343_v25, 0  ;;  %v3918_v25 = vperm.slane %v6897_v37, 0 }
0x3c14   : > { %2786 = vrot.lane.b32.xlu2 %v2776_v39, %s5544_s6 }
0x3c16   : > { %2788 = vrot.lane.b32.xlu0 %v2777_v46, %s5544_s6 }
0x3c1c   : > { %2790 = vrot.lane.b32.xlu2 %v2778_v53, %s5544_s6  ;;  %v3489_v53 = vperm.slane %v6741_v35, 0 }
0x3c1e   : > { %2792 = vrot.lane.b32.xlu0 %v2779_v9, %s5544_s6 }
0x3c24   : > { %2796 = vrot.lane.b32.xlu2 %v2781_v11, %s5544_s6 }
0x3c26   : > { %2925 = vrot.lane.b32.xlu0 %v2917_v60, %s5544_s6  ;;  %v2916_v60 = vrot.slane %v6415_v5, 7  ;;  %v3053_v5 = vrot.slane %v6510_v44, 1 }
0x3c28   : > { %v2924_v4 = vperm.slane %v2916_v60, 0  ;;  %v3485_v60 = vrot.slane %v6741_v35, 4 }
0x3c2c   : > { %2929 = vrot.lane.b32.xlu2 %v2919_v22, %s5544_s6  ;;  %v3492_v22 = vperm.slane %v3484_v57, 0  ;;  %v4054_v57 = vrot.slane %v6942_v2, 1 }
0x3c2e   : > { %2931 = vrot.lane.b32.xlu0 %v2920_v3, %s5544_s6 }
0x3c34   : > { %2935 = vrot.lane.b32.xlu2 %v2922_v19, %s5544_s6  ;;  %v3061_v19 = vperm.slane %v3053_v5, 0  ;;  %v3488_v5 = vrot.slane %v6741_v35, 7 }
0x3c36   : > { %2937 = vrot.lane.b32.xlu0 %v2923_v20, %s5544_s6  ;;  %v3495_v20 = vperm.slane %v3487_v18, 0  ;;  %v4059_v18 = vrot.slane %v6942_v2, 6 }
0x3c3e   : > { %3068 = vrot.lane.b32.xlu0 %v3060_v50, %s5544_s6 }
0x3c46   : > { %3074 = vrot.lane.b32.xlu0 %v3063_v29, %s5544_s6  ;;  %v3056_v29 = vrot.slane %v6510_v44, 4 }
0x3c4e   : > { %v2610_v42 = vpop.permute.xlu2 %2609  ;;  %3080 = vrot.lane.b32.xlu0 %v3066_v48, %s5544_s6  ;;  %v3064_v48 = vperm.slane %v3056_v29, 0 }
0x3c4f   : > { %2633 = vst.msk [vmem:[#allocation2 + $0xf] sm:$0x1] %vm487_vm0, %v2610_v42  ;;  %v3633_v42 = vperm.slane %v3625_v21, 0 }
0x3c56   : > { %v2616_v23 = vpop.permute.xlu2 %2615  ;;  %3213 = vrot.lane.b32.xlu0 %v3204_v58, %s5544_s6  ;;  %v3059_v58 = vrot.slane %v6510_v44, 7 }
0x3c57   : > { %2636 = vst.msk [vmem:[#allocation2 + $0x3f] sm:$0x1] %vm487_vm0, %v2616_v23  ;;  %v3628_v23 = vrot.slane %v6794_v16, 4 }
0x3c58   : > { %v3067_v12 = vperm.slane %v3059_v58, 0 }
0x3c5c   : > { %v4759_v54 = vpop.permute.xlu0 %4758 }
0x3c5d   : > { %v7205_v13 = vadd.f32 %v4759_v54, %v4751_v49  ;;  %v3636_v49 = vperm.slane %v3628_v23, 0 }
0x3c5e   : > { %v2622_v14 = vpop.permute.xlu2 %2621  ;;  %3219 = vrot.lane.b32.xlu0 %v3207_v17, %s5544_s6  ;;  %v3197_v17 = vrot.slane %v6635_v62, 2 }
0x3c5f   : > { %5487 = vtanh.f32 %v7205_v13  ;;  %2639 = vst.msk [vmem:[#allocation2 + $0x6f] sm:$0x1] %vm487_vm0, %v2622_v14  ;;  %v3631_v14 = vrot.slane %v6794_v16, 7 }
0x3c60   : > { %v3205_v63 = vperm.slane %v3197_v17, 0 }
0x3c65   : > { %v5488_v30 = vpop.eup %5487 }
0x3c66   : > { %v2648_v8 = vpop.permute.xlu2 %2647  ;;  %4764 = vrot.lane.b32.xlu1 %v5488_v30, %s5545_s9  ;;  %3225 = vrot.lane.b32.xlu0 %v3210_v52, %s5544_s6  ;;  %v3639_v52 = vperm.slane %v3631_v14, 0  ;;  %v3203_v14 = vperm.slane %v6635_v62, 0 }
0x3c67   : > { %2650 = vst.msk [vmem:[#allocation4] sm:$0xff] %vm7796_vm10, %v2648_v8  ;;  %v3200_v8 = vrot.slane %v6635_v62, 5 }
0x3c68   : > { %v2614_v56 = vpop.permute.xlu1 %2613  ;;  %v2612_v27 = vpop.permute.xlu0 %2611 }
0x3c69   : > { %2635 = vst.msk [vmem:[#allocation2 + $0x2f] sm:$0x1] %vm487_vm0, %v2614_v56  ;;  %v3769_v56 = vrot.slane %v6847_v0, 2 }
0x3c6a   : > { %2634 = vst.msk [vmem:[#allocation2 + $0x1f] sm:$0x1] %vm487_vm0, %v2612_v27  ;;  %v3208_v27 = vperm.slane %v3200_v8, 0 }
0x3c6b   : > { %v3777_v61 = vperm.slane %v3769_v56, 0  ;;  %v3770_v56 = vrot.slane %v6847_v0, 3 }
0x3c6e   : > { %v2787_v32 = vpop.permute.xlu2 %2786  ;;  %2794 = vrot.lane.b32.xlu1 %v2780_v51, %s5544_s6  ;;  %3358 = vrot.lane.b32.xlu0 %v3348_v31, %s5544_s6  ;;  %v3772_v51 = vrot.slane %v6847_v0, 5  ;;  %v3346_v31 = vperm.slane %v6688_v47, 0 }
0x3c6f   : > { %2808 = vst.msk [vmem:[%s5642_s12 + $0x20] sm:$0x1] %vm487_vm0, %v2787_v32 }
0x3c70   : > { %v2620_v34 = vpop.permute.xlu1 %2619  ;;  %v2618_v10 = vpop.permute.xlu0 %2617  ;;  %v3780_v32 = vperm.slane %v3772_v51, 0 }
0x3c71   : > { %2638 = vst.msk [vmem:[#allocation2 + $0x5f] sm:$0x1] %vm487_vm0, %v2620_v34 }
0x3c72   : > { %2637 = vst.msk [vmem:[#allocation2 + $0x4f] sm:$0x1] %vm487_vm0, %v2618_v10  ;;  %v3341_v10 = vrot.slane %v6688_v47, 3 }
0x3c74   : > { %v3349_v1 = vperm.slane %v3341_v10, 0 }
0x3c76   : > { %v2791_v33 = vpop.permute.xlu2 %2790  ;;  %2927 = vrot.lane.b32.xlu1 %v2918_v41, %s5544_s6  ;;  %3364 = vrot.lane.b32.xlu0 %v3351_v28, %s5544_s6  ;;  %v3344_v28 = vrot.slane %v6688_v47, 6 }
0x3c77   : > { %2810 = vst.msk [vmem:[%s5642_s12 + $0x40] sm:$0x1] %vm487_vm0, %v2791_v33  ;;  %v3913_v33 = vrot.slane %v6897_v37, 3 }
0x3c78   : > { %v2642_v39 = vpop.permute.xlu1 %2641  ;;  %v2624_v46 = vpop.permute.xlu0 %2623 }
0x3c79   : > { %2645 = vst.msk [vmem:[#allocation3] sm:$0xff] %vm7797_vm15, %v2642_v39  ;;  %v3352_v39 = vperm.slane %v3344_v28, 0 }
0x3c7a   : > { %2640 = vst.msk [vmem:[#allocation2 + $0x7f] sm:$0x1] %vm487_vm0, %v2624_v46  ;;  %v3921_v46 = vperm.slane %v3913_v33, 0 }
0x3c7e   : > { %v2797_v9 = vpop.permute.xlu2 %2796  ;;  %2933 = vrot.lane.b32.xlu1 %v2921_v7, %s5544_s6  ;;  %3497 = vrot.lane.b32.xlu0 %v3489_v53, %s5544_s6  ;;  %v3482_v7 = vrot.slane %v6741_v35, 1  ;;  %v3916_v53 = vrot.slane %v6897_v37, 6 }
0x3c7f   : > { %2813 = vst.msk [vmem:[%s5642_s12 + $0x70] sm:$0x1] %vm487_vm0, %v2797_v9 }
0x3c80   : > { %v2785_v59 = vpop.permute.xlu1 %2784  ;;  %v2783_v11 = vpop.permute.xlu0 %2782  ;;  %v3490_v9 = vperm.slane %v3482_v7, 0  ;;  %v3914_v7 = vrot.slane %v6897_v37, 4 }
0x3c81   : > { %2807 = vst.msk [vmem:[%s5642_s12 + $0x10] sm:$0x1] %vm487_vm0, %v2785_v59  ;;  %v3924_v59 = vperm.slane %v3916_v53, 0 }
0x3c82   : > { %2806 = vst.msk [vmem:[%s5642_s12] sm:$0x1] %vm487_vm0, %v2783_v11 }
0x3c86   : > { %v2930_v3 = vpop.permute.xlu2 %2929  ;;  %2939 = vrot.lane.b32.xlu1 %v2924_v4, %s5544_s6  ;;  %3503 = vrot.lane.b32.xlu0 %v3492_v22, %s5544_s6  ;;  %v3493_v4 = vperm.slane %v3485_v60, 0  ;;  %v4062_v22 = vperm.slane %v4054_v57, 0  ;;  %v3917_v57 = vrot.slane %v6897_v37, 7 }
0x3c87   : > { %2951 = vst.msk [vmem:[%s5642_s12 + $0x21] sm:$0x1] %vm487_vm0, %v2930_v3 }
0x3c88   : > { %v2789_v6 = vpop.permute.xlu0 %2788 }
0x3c89   : > { %2809 = vst.msk [vmem:[%s5642_s12 + $0x30] sm:$0x1] %vm487_vm0, %v2789_v6 }
0x3c8e   : > { %v2936_v50 = vpop.permute.xlu2 %2935  ;;  %3070 = vrot.lane.b32.xlu1 %v3061_v19, %s5544_s6  ;;  %3509 = vrot.lane.b32.xlu0 %v3495_v20, %s5544_s6  ;;  %v3496_v20 = vperm.slane %v3488_v5, 0  ;;  %v4055_v5 = vrot.slane %v6942_v2, 2 }
0x3c8f   : > { %2954 = vst.msk [vmem:[%s5642_s12 + $0x51] sm:$0x1] %vm487_vm0, %v2936_v50  ;;  %v4067_v50 = vperm.slane %v4059_v18, 0  ;;  %v4817_v18 = vld [vmem:[#allocation2 + $0x1f] sm:$0x1] }
0x3c90   : > { %v2793_v36 = vpop.permute.xlu0 %2792 }
0x3c91   : > { %2811 = vst.msk [vmem:[%s5642_s12 + $0x50] sm:$0x1] %vm487_vm0, %v2793_v36  ;;  %v3054_v36 = vrot.slane %v6510_v44, 2 }
0x3c96   : > { %3076 = vrot.lane.b32.xlu1 %v3064_v48, %s5544_s6  ;;  %3642 = vrot.lane.b32.xlu0 %v3633_v42, %s5544_s6  ;;  %v3062_v48 = vperm.slane %v3054_v36, 0  ;;  %v4832_v36 = vrot.slane %v4817_v18, 7 }
0x3c98   : > { %v2926_v45 = vpop.permute.xlu0 %2925 }
0x3c99   : > { %2949 = vst.msk [vmem:[%s5642_s12 + $0x1] sm:$0x1] %vm487_vm0, %v2926_v45  ;;  %v3057_v45 = vrot.slane %v6510_v44, 5 }
0x3c9e   : > { %3082 = vrot.lane.b32.xlu1 %v3067_v12, %s5544_s6  ;;  %3648 = vrot.lane.b32.xlu0 %v3636_v49, %s5544_s6  ;;  %v3629_v12 = vrot.slane %v6794_v16, 5  ;;  %v3065_v49 = vperm.slane %v3057_v45, 0 }
0x3ca0   : > { %v2932_v54 = vpop.permute.xlu0 %2931 }
0x3ca1   : > { %2952 = vst.msk [vmem:[%s5642_s12 + $0x31] sm:$0x1] %vm487_vm0, %v2932_v54  ;;  %v3637_v54 = vperm.slane %v3629_v12, 0  ;;  %v4057_v12 = vrot.slane %v6942_v2, 4 }
0x3ca6   : > { %3215 = vrot.lane.b32.xlu1 %v3205_v63, %s5544_s6  ;;  %3654 = vrot.lane.b32.xlu0 %v3639_v52, %s5544_s6  ;;  %v3775_v63 = vperm.slane %v6847_v0, 0  ;;  %v3198_v52 = vrot.slane %v6635_v62, 3 }
0x3ca8   : > { %v2938_v30 = vpop.permute.xlu0 %2937 }
0x3ca9   : > { %2955 = vst.msk [vmem:[%s5642_s12 + $0x61] sm:$0x1] %vm487_vm0, %v2938_v30 }
0x3cae   : > { %3221 = vrot.lane.b32.xlu1 %v3208_v27, %s5544_s6  ;;  %3787 = vrot.lane.b32.xlu0 %v3777_v61, %s5544_s6  ;;  %v3206_v27 = vperm.slane %v3198_v52, 0  ;;  %v3778_v61 = vperm.slane %v3770_v56, 0 }
0x3cb0   : > { %v3069_v24 = vpop.permute.xlu0 %3068 }
0x3cb1   : > { %3092 = vst.msk [vmem:[%s5642_s12 + $0x2] sm:$0x1] %vm487_vm0, %v3069_v24  ;;  %v3201_v24 = vrot.slane %v6635_v62, 6 }
0x3cb6   : > { %3354 = vrot.lane.b32.xlu1 %v3346_v31, %s5544_s6  ;;  %3793 = vrot.lane.b32.xlu0 %v3780_v32, %s5544_s6  ;;  %v3773_v32 = vrot.slane %v6847_v0, 6 }
0x3cb8   : > { %v3075_v34 = vpop.permute.xlu0 %3074  ;;  %v3781_v10 = vperm.slane %v3773_v32, 0 }
0x3cb9   : > { %3095 = vst.msk [vmem:[%s5642_s12 + $0x32] sm:$0x1] %vm487_vm0, %v3075_v34  ;;  %v3209_v34 = vperm.slane %v3201_v24, 0 }
0x3cbe   : > { %3360 = vrot.lane.b32.xlu1 %v3349_v1, %s5544_s6  ;;  %3926 = vrot.lane.b32.xlu0 %v3918_v25, %s5544_s6  ;;  %v3339_v1 = vrot.slane %v6688_v47, 1 }
0x3cc0   : > { %v3081_v41 = vpop.permute.xlu0 %3080  ;;  %v3347_v28 = vperm.slane %v3339_v1, 0 }
0x3cc1   : > { %3098 = vst.msk [vmem:[%s5642_s12 + $0x62] sm:$0x1] %vm487_vm0, %v3081_v41  ;;  %v3911_v41 = vrot.slane %v6897_v37, 1 }
0x3cc3   : > { %v3919_v33 = vperm.slane %v3911_v41, 0 }
0x3cc6   : > { %3366 = vrot.lane.b32.xlu1 %v3352_v39, %s5544_s6  ;;  %3932 = vrot.lane.b32.xlu0 %v3921_v46, %s5544_s6  ;;  %v3342_v39 = vrot.slane %v6688_v47, 4 }
0x3cc8   : > { %v3214_v38 = vpop.permute.xlu0 %3213  ;;  %v3350_v53 = vperm.slane %v3342_v39, 0 }
0x3cc9   : > { %3236 = vst.msk [vmem:[%s5642_s12 + $0x13] sm:$0x1] %vm487_vm0, %v3214_v38 }
0x3cce   : > { %3499 = vrot.lane.b32.xlu1 %v3490_v9, %s5544_s6  ;;  %3938 = vrot.lane.b32.xlu0 %v3924_v59, %s5544_s6  ;;  %v3922_v9 = vperm.slane %v3914_v7, 0  ;;  %v3345_v59 = vrot.slane %v6688_v47, 7 }
0x3cd0   : > { %v3220_v11 = vpop.permute.xlu0 %3219 }
0x3cd1   : > { %3239 = vst.msk [vmem:[%s5642_s12 + $0x43] sm:$0x1] %vm487_vm0, %v3220_v11 }
0x3cd6   : > { %3505 = vrot.lane.b32.xlu1 %v3493_v4, %s5544_s6  ;;  %4071 = vrot.lane.b32.xlu0 %v4062_v22, %s5544_s6  ;;  %v3353_v4 = vperm.slane %v3345_v59, 0  ;;  %v3925_v22 = vperm.slane %v3917_v57, 0  ;;  %v3630_v59 = vrot.slane %v6794_v16, 6  ;;  %v4201_v57 = vrot.slane %v6987_v15, 5 }
0x3cd8   : > { %v4765_v3 = vpop.permute.xlu1 %4764  ;;  %v3226_v6 = vpop.permute.xlu0 %3225 }
0x3cd9   : > { %v7313_v19 = vmul.f32 %v4765_v3, %v7153_v55  ;;  %3242 = vst.msk [vmem:[%s5642_s12 + $0x73] sm:$0x1] %vm487_vm0, %v3226_v6  ;;  %v3626_v55 = vrot.slane %v6794_v16, 2  ;;  %v3483_v3 = vrot.slane %v6741_v35, 2 }
0x3cdb   : > { %4847 = vrot.lane.b32.xlu2 %v7313_v19, %s5545_s9  ;;  %v3634_v42 = vperm.slane %v3626_v55, 0  ;;  %v4816_v55 = vld [vmem:[#allocation2 + $0xf] sm:$0x1] }
0x3cdc   : > { %v4833_v45 = vsel %vm355_vm1, %v4832_v36, %v4816_v55  ;;  %vm7798_vm1 = vmmov %vm7796_vm10  ;;  %v3771_v36 = vrot.slane %v6847_v0, 4  ;;  %v4344_v55 = vrot.slane %v7032_v43, 5 }
0x3cdd   : > { %vm7801_vm12 = vmmov %vm7798_vm1 }
0x3cde   : > { %3511 = vrot.lane.b32.xlu1 %v3496_v20, %s5544_s6  ;;  %4081 = vrot.lane.b32.xlu0 %v4067_v50, %s5544_s6  ;;  %v3491_v20 = vperm.slane %v3483_v3, 0  ;;  %v4818_v50 = vld [vmem:[#allocation2 + $0x2f] sm:$0x1]  ;;  %v3768_v3 = vrot.slane %v6847_v0, 1 }
0x3ce0   : > { %v2795_v29 = vpop.permute.xlu1 %2794  ;;  %v3359_v21 = vpop.permute.xlu0 %3358  ;;  %v3776_v18 = vperm.slane %v3768_v3, 0 }
0x3ce1   : > { %2812 = vst.msk [vmem:[%s5642_s12 + $0x60] sm:$0x1] %vm487_vm0, %v2795_v29  ;;  %v4063_v29 = vperm.slane %v4055_v5, 0  ;;  %v4341_v5 = vrot.slane %v7032_v43, 2 }
0x3ce2   : > { %3380 = vst.msk [vmem:[%s5642_s12 + $0x24] sm:$0x1] %vm487_vm0, %v3359_v21  ;;  %v3486_v21 = vrot.slane %v6741_v35, 5 }
0x3ce3   : > { %3072 = vrot.lane.b32.xlu2 %v3062_v48, %s5544_s6  ;;  %v4834_v48 = vrot.slane %v4818_v50, 6 }
0x3ce5   : > { %v4835_v35 = vsel %vm358_vm2, %v4834_v48, %v4833_v45  ;;  %vm7799_vm2 = vmmov %vm7795_vm13  ;;  %v3779_v48 = vperm.slane %v3771_v36, 0 }
0x3ce6   : > { %3644 = vrot.lane.b32.xlu1 %v3634_v42, %s5544_s6  ;;  %v4820_v42 = vld [vmem:[#allocation2 + $0x4f] sm:$0x1] }
0x3ce8   : > { %v2928_v58 = vpop.permute.xlu1 %2927  ;;  %v3365_v23 = vpop.permute.xlu0 %3364 }
0x3ce9   : > { %2950 = vst.msk [vmem:[%s5642_s12 + $0x11] sm:$0x1] %vm487_vm0, %v2928_v58 }
0x3cea   : > { %3383 = vst.msk [vmem:[%s5642_s12 + $0x54] sm:$0x1] %vm487_vm0, %v3365_v23 }
0x3ceb   : > { %3078 = vrot.lane.b32.xlu2 %v3065_v49, %s5544_s6  ;;  %v4819_v49 = vld [vmem:[#allocation2 + $0x3f] sm:$0x1] }
0x3cee   : > { %3650 = vrot.lane.b32.xlu1 %v3637_v54, %s5544_s6  ;;  %v3494_v54 = vperm.slane %v3486_v21, 0 }
0x3cf0   : > { %v2934_v17 = vpop.permute.xlu1 %2933  ;;  %v3498_v44 = vpop.permute.xlu0 %3497 }
0x3cf1   : > { %2953 = vst.msk [vmem:[%s5642_s12 + $0x41] sm:$0x1] %vm487_vm0, %v2934_v17  ;;  %v4821_v17 = vld [vmem:[#allocation2 + $0x5f] sm:$0x1] }
0x3cf2   : > { %3521 = vst.msk [vmem:[%s5642_s12 + $0x5] sm:$0x1] %vm487_vm0, %v3498_v44  ;;  %v4838_v44 = vrot.slane %v4820_v42, 4  ;;  %v4840_v52 = vrot.slane %v4821_v17, 3  ;;  %v4352_v42 = vperm.slane %v4344_v55, 0 }
0x3cf3   : > { %3211 = vrot.lane.b32.xlu2 %v3203_v14, %s5544_s6  ;;  %v4836_v14 = vrot.slane %v4819_v49, 5 }
0x3cf6   : > { %3783 = vrot.lane.b32.xlu1 %v3775_v63, %s5544_s6  ;;  %v4065_v63 = vperm.slane %v4057_v12, 0 }
0x3cf8   : > { %v2940_v30 = vpop.permute.xlu1 %2939  ;;  %v3504_v8 = vpop.permute.xlu0 %3503 }
0x3cf9   : > { %2956 = vst.msk [vmem:[%s5642_s12 + $0x71] sm:$0x1] %vm487_vm0, %v2940_v30  ;;  %v4837_v30 = vsel %vm361_vm3, %v4836_v14, %v4835_v35 }
0x3cfa   : > { %3524 = vst.msk [vmem:[%s5642_s12 + $0x35] sm:$0x1] %vm487_vm0, %v3504_v8  ;;  %v4823_v8 = vld [vmem:[#allocation2 + $0x7f] sm:$0x1]  ;;  %v4839_v56 = vsel %vm364_vm4, %v4838_v44, %v4837_v30  ;;  %v3915_v44 = vrot.slane %v6897_v37, 5 }
0x3cfb   : > { %3217 = vrot.lane.b32.xlu2 %v3206_v27, %s5544_s6  ;;  %v4822_v27 = vld [vmem:[#allocation2 + $0x6f] sm:$0x1]  ;;  %v4841_v32 = vsel %vm367_vm5, %v4840_v52, %v4839_v56  ;;  %v4056_v56 = vrot.slane %v6942_v2, 3 }
0x3cfe   : > { %3789 = vrot.lane.b32.xlu1 %v3778_v61, %s5544_s6 }
0x3d00   : > { %v3071_v51 = vpop.permute.xlu1 %3070  ;;  %v3510_v31 = vpop.permute.xlu0 %3509 }
0x3d01   : > { %3093 = vst.msk [vmem:[%s5642_s12 + $0x12] sm:$0x1] %vm487_vm0, %v3071_v51  ;;  %v4060_v51 = vrot.slane %v6942_v2, 7 }
0x3d02   : > { %3527 = vst.msk [vmem:[%s5642_s12 + $0x65] sm:$0x1] %vm487_vm0, %v3510_v31  ;;  %v3632_v31 = vperm.slane %v6794_v16, 0 }
0x3d03   : > { %3223 = vrot.lane.b32.xlu2 %v3209_v34, %s5544_s6  ;;  %v4844_v34 = vrot.slane %v4823_v8, 1  ;;  %v4061_v8 = vperm.slane %v6942_v2, 0 }
0x3d06   : > { %3795 = vrot.lane.b32.xlu1 %v3781_v10, %s5544_s6  ;;  %v4842_v10 = vrot.slane %v4822_v27, 2 }
0x3d08   : > { %v3077_v62 = vpop.permute.xlu1 %3076  ;;  %v3643_v25 = vpop.permute.xlu0 %3642  ;;  %v4843_v1 = vsel %vm370_vm6, %v4842_v10, %v4841_v32 }
0x3d09   : > { %3096 = vst.msk [vmem:[%s5642_s12 + $0x42] sm:$0x1] %vm487_vm0, %v3077_v62  ;;  %v4068_v62 = vperm.slane %v4060_v51, 0  ;;  %v4845_v41 = vsel %vm373_vm7, %v4844_v34, %v4843_v1  ;;  %v4058_v51 = vrot.slane %v6942_v2, 5  ;;  %v4204_v1 = vperm.slane %v6987_v15, 0  ;;  %vm7800_vm7 = vmmov %vm7798_vm1 }
0x3d0a   : > { %3665 = vst.msk [vmem:[%s5642_s12 + $0x16] sm:$0x1] %vm487_vm0, %v3643_v25 }
0x3d0b   : > { %3356 = vrot.lane.b32.xlu2 %v3347_v28, %s5544_s6  ;;  %v3627_v28 = vrot.slane %v6794_v16, 3  ;;  %v4066_v32 = vperm.slane %v4058_v51, 0 }
0x3d0d   : > { %v3635_v7 = vperm.slane %v3627_v28, 0 }
0x3d0e   : > { %3928 = vrot.lane.b32.xlu1 %v3919_v33, %s5544_s6 }
0x3d10   : > { %v3083_v46 = vpop.permute.xlu1 %3082  ;;  %v3649_v38 = vpop.permute.xlu0 %3648 }
0x3d11   : > { %3099 = vst.msk [vmem:[%s5642_s12 + $0x72] sm:$0x1] %vm487_vm0, %v3083_v46 }
0x3d12   : > { %3668 = vst.msk [vmem:[%s5642_s12 + $0x46] sm:$0x1] %vm487_vm0, %v3649_v38  ;;  %v4198_v38 = vrot.slane %v6987_v15, 2 }
0x3d13   : > { %3362 = vrot.lane.b32.xlu2 %v3350_v53, %s5544_s6 }
0x3d14   : > { %v4206_v53 = vperm.slane %v4198_v38, 0 }
0x3d16   : > { %3934 = vrot.lane.b32.xlu1 %v3922_v9, %s5544_s6 }
0x3d18   : > { %v3216_v11 = vpop.permute.xlu1 %3215  ;;  %v3655_v60 = vpop.permute.xlu0 %3654 }
0x3d19   : > { %3237 = vst.msk [vmem:[%s5642_s12 + $0x23] sm:$0x1] %vm487_vm0, %v3216_v11 }
0x3d1a   : > { %3671 = vst.msk [vmem:[%s5642_s12 + $0x76] sm:$0x1] %vm487_vm0, %v3655_v60 }
0x3d1b   : > { %3368 = vrot.lane.b32.xlu2 %v3353_v4, %s5544_s6  ;;  %v3638_v4 = vperm.slane %v3630_v59, 0  ;;  %v4342_v59 = vrot.slane %v7032_v43, 3 }
0x3d1e   : > { %3940 = vrot.lane.b32.xlu1 %v3925_v22, %s5544_s6  ;;  %v4209_v22 = vperm.slane %v4201_v57, 0 }
0x3d20   : > { %v3222_v47 = vpop.permute.xlu1 %3221  ;;  %v3788_v6 = vpop.permute.xlu0 %3787 }
0x3d21   : > { %3240 = vst.msk [vmem:[%s5642_s12 + $0x53] sm:$0x1] %vm487_vm0, %v3222_v47 }
0x3d22   : > { %3809 = vst.msk [vmem:[%s5642_s12 + $0x27] sm:$0x1] %vm487_vm0, %v3788_v6 }
0x3d23   : > { %3501 = vrot.lane.b32.xlu2 %v3491_v20, %s5544_s6  ;;  %v4349_v20 = vperm.slane %v4341_v5, 0 }
0x3d26   : > { %4073 = vrot.lane.b32.xlu1 %v4063_v29, %s5544_s6 }
0x3d28   : > { %v3355_v58 = vpop.permute.xlu1 %3354  ;;  %v3794_v23 = vpop.permute.xlu0 %3793 }
0x3d29   : > { %3378 = vst.msk [vmem:[%s5642_s12 + $0x4] sm:$0x1] %vm487_vm0, %v3355_v58  ;;  %v3774_v58 = vrot.slane %v6847_v0, 7 }
0x3d2a   : > { %3812 = vst.msk [vmem:[%s5642_s12 + $0x57] sm:$0x1] %vm487_vm0, %v3794_v23 }
0x3d2b   : > { %3507 = vrot.lane.b32.xlu2 %v3494_v54, %s5544_s6  ;;  %v3782_v12 = vperm.slane %v3774_v58, 0  ;;  %v3912_v54 = vrot.slane %v6897_v37, 2  ;;  %v4197_v58 = vrot.slane %v6987_v15, 1 }
0x3d2d   : > { %v3920_v17 = vperm.slane %v3912_v54, 0 }
0x3d2e   : > { %4077 = vrot.lane.b32.xlu1 %v4065_v63, %s5544_s6  ;;  %v3923_v63 = vperm.slane %v3915_v44, 0 }
0x3d30   : > { %v3361_v61 = vpop.permute.xlu1 %3360  ;;  %v3927_v24 = vpop.permute.xlu0 %3926 }
0x3d31   : > { %3381 = vst.msk [vmem:[%s5642_s12 + $0x34] sm:$0x1] %vm487_vm0, %v3361_v61  ;;  %v4064_v61 = vperm.slane %v4056_v56, 0  ;;  %v4340_v56 = vrot.slane %v7032_v43, 1 }
0x3d32   : > { %3950 = vst.msk [vmem:[%s5642_s12 + $0x8] sm:$0x1] %vm487_vm0, %v3927_v24 }
0x3d33   : > { %3640 = vrot.lane.b32.xlu2 %v3632_v31, %s5544_s6 }
0x3d35   : > { %v4848_v25 = vpop.permute.xlu2 %4847 }
0x3d36   : > { %v4850_v33 = vsel %vm7798_vm1, %v4845_v41, %v4848_v25  ;;  %4083 = vrot.lane.b32.xlu1 %v4068_v62, %s5544_s6  ;;  %v4199_v62 = vrot.slane %v6987_v15, 3 }
0x3d37   : > { %5200 = vmatmul.msk.f32.vlgmr.msrb.gmra.mxu3 %vm7799_vm2, %v4850_v33  ;;  %v4202_v33 = vrot.slane %v6987_v15, 6 }
0x3d38   : > { %v3367_v39 = vpop.permute.xlu1 %3366  ;;  %v3933_v46 = vpop.permute.xlu0 %3932  ;;  %v4207_v41 = vperm.slane %v4199_v62, 0  ;;  %v4487_v62 = vrot.slane %v7077_v26, 5 }
0x3d39   : > { %3384 = vst.msk [vmem:[%s5642_s12 + $0x64] sm:$0x1] %vm487_vm0, %v3367_v39 }
0x3d3a   : > { %3953 = vst.msk [vmem:[%s5642_s12 + $0x38] sm:$0x1] %vm487_vm0, %v3933_v46  ;;  %v4210_v46 = vperm.slane %v4202_v33, 0 }
0x3d3b   : > { %3646 = vrot.lane.b32.xlu2 %v3635_v7, %s5544_s6 }
0x3d3d   : > { %v3073_v9 = vpop.permute.xlu2 %3072 }
0x3d3e   : > { %3094 = vst.msk [vmem:[%s5642_s12 + $0x22] sm:$0x1] %vm487_vm0, %v3073_v9  ;;  %4216 = vrot.lane.b32.xlu1 %v4206_v53, %s5544_s6  ;;  %v4347_v53 = vperm.slane %v7032_v43, 0 }
0x3d40   : > { %v3500_v11 = vpop.permute.xlu1 %3499  ;;  %v3939_v60 = vpop.permute.xlu0 %3938 }
0x3d41   : > { %3522 = vst.msk [vmem:[%s5642_s12 + $0x15] sm:$0x1] %vm487_vm0, %v3500_v11 }
0x3d42   : > { %3956 = vst.msk [vmem:[%s5642_s12 + $0x68] sm:$0x1] %vm487_vm0, %v3939_v60  ;;  %v4350_v60 = vperm.slane %v4342_v59, 0  ;;  %v4630_v59 = vrot.slane %v7127_v40, 5 }
0x3d43   : > { %3652 = vrot.lane.b32.xlu2 %v3638_v4, %s5544_s6  ;;  %v4345_v4 = vrot.slane %v7032_v43, 6 }
0x3d45   : > { %v3079_v16 = vpop.permute.xlu2 %3078 }
0x3d46   : > { %3097 = vst.msk [vmem:[%s5642_s12 + $0x52] sm:$0x1] %vm487_vm0, %v3079_v16  ;;  %4222 = vrot.lane.b32.xlu1 %v4209_v22, %s5544_s6  ;;  %v4353_v16 = vperm.slane %v4345_v4, 0  ;;  %v4776_v4 = vperm.slane %v7313_v19, 0 }
0x3d48   : > { %v3506_v47 = vpop.permute.xlu1 %3505  ;;  %v4072_v6 = vpop.permute.xlu0 %4071 }
0x3d49   : > { %3525 = vst.msk [vmem:[%s5642_s12 + $0x45] sm:$0x1] %vm487_vm0, %v3506_v47  ;;  %v4483_v47 = vrot.slane %v7077_v26, 1 }
0x3d4a   : > { %4094 = vst.msk [vmem:[%s5642_s12 + $0x19] sm:$0x1] %vm487_vm0, %v4072_v6 }
0x3d4b   : > { %3785 = vrot.lane.b32.xlu2 %v3776_v18, %s5544_s6  ;;  %v4491_v5 = vperm.slane %v4483_v47, 0 }
0x3d4d   : > { %v3212_v50 = vpop.permute.xlu2 %3211 }
0x3d4e   : > { %3235 = vst.msk [vmem:[%s5642_s12 + $0x3] sm:$0x1] %vm487_vm0, %v3212_v50  ;;  %4359 = vrot.lane.b32.xlu1 %v4349_v20, %s5544_s6  ;;  %v5517_v20 = vld [vmem:[%s7758_s4] ss:$0 sm:$0xff] }
0x3d50   : > { %v3512_v29 = vpop.permute.xlu1 %3511  ;;  %v4082_v21 = vpop.permute.xlu0 %4081 }
0x3d51   : > { %3528 = vst.msk [vmem:[%s5642_s12 + $0x75] sm:$0x1] %vm487_vm0, %v3512_v29  ;;  %v4486_v29 = vrot.slane %v7077_v26, 4 }
0x3d52   : > { %4099 = vst.msk [vmem:[%s5642_s12 + $0x69] sm:$0x1] %vm487_vm0, %v4082_v21 }
0x3d53   : > { %3791 = vrot.lane.b32.xlu2 %v3779_v48, %s5544_s6  ;;  %v4494_v55 = vperm.slane %v4486_v29, 0 }
0x3d55   : > { %v3218_v45 = vpop.permute.xlu2 %3217 }
0x3d56   : > { %3238 = vst.msk [vmem:[%s5642_s12 + $0x33] sm:$0x1] %vm487_vm0, %v3218_v45  ;;  %4365 = vrot.lane.b32.xlu1 %v4352_v42, %s5544_s6  ;;  %v4626_v45 = vrot.slane %v7127_v40, 1 }
0x3d58   : > { %v3645_v23 = vpop.permute.xlu1 %3644 }
0x3d59   : > { %3666 = vst.msk [vmem:[%s5642_s12 + $0x26] sm:$0x1] %vm487_vm0, %v3645_v23 }
0x3d5b   : > { %3797 = vrot.lane.b32.xlu2 %v3782_v12, %s5544_s6  ;;  %v4634_v12 = vperm.slane %v4626_v45, 0 }
0x3d5d   : > { %v3224_v49 = vpop.permute.xlu2 %3223 }
0x3d5e   : > { %3241 = vst.msk [vmem:[%s5642_s12 + $0x63] sm:$0x1] %vm487_vm0, %v3224_v49  ;;  %v4205_v49 = vperm.slane %v4197_v58, 0 }
0x3d60   : > { %v3651_v0 = vpop.permute.xlu1 %3650 }
0x3d61   : > { %3669 = vst.msk [vmem:[%s5642_s12 + $0x56] sm:$0x1] %vm487_vm0, %v3651_v0  ;;  %v4629_v0 = vrot.slane %v7127_v40, 4 }
0x3d63   : > { %3930 = vrot.lane.b32.xlu2 %v3920_v17, %s5544_s6  ;;  %v4200_v17 = vrot.slane %v6987_v15, 4 }
0x3d65   : > { %v3357_v35 = vpop.permute.xlu2 %3356  ;;  %v4208_v44 = vperm.slane %v4200_v17, 0 }
0x3d66   : > { %3379 = vst.msk [vmem:[%s5642_s12 + $0x14] sm:$0x1] %vm487_vm0, %v3357_v35  ;;  %v4637_v35 = vperm.slane %v4629_v0, 0 }
0x3d68   : > { %v3784_v14 = vpop.permute.xlu1 %3783 }
0x3d69   : > { %3807 = vst.msk [vmem:[%s5642_s12 + $0x7] sm:$0x1] %vm487_vm0, %v3784_v14 }
0x3d6b   : > { %3936 = vrot.lane.b32.xlu2 %v3923_v63, %s5544_s6  ;;  %v4632_v63 = vrot.slane %v7127_v40, 7 }
0x3d6d   : > { %v3363_v52 = vpop.permute.xlu2 %3362 }
0x3d6e   : > { %3382 = vst.msk [vmem:[%s5642_s12 + $0x44] sm:$0x1] %vm487_vm0, %v3363_v52  ;;  %v4203_v52 = vrot.slane %v6987_v15, 7  ;;  %v4343_v15 = vrot.slane %v7032_v43, 4 }
0x3d70   : > { %v3790_v30 = vpop.permute.xlu1 %3789 }
0x3d71   : > { %3810 = vst.msk [vmem:[%s5642_s12 + $0x37] sm:$0x1] %vm487_vm0, %v3790_v30  ;;  %v4640_v30 = vperm.slane %v4632_v63, 0 }
0x3d73   : > { %4069 = vrot.lane.b32.xlu2 %v4061_v8, %s5544_s6  ;;  %v4211_v8 = vperm.slane %v4203_v52, 0  ;;  %v4633_v52 = vperm.slane %v7127_v40, 0 }
0x3d75   : > { %v3369_v37 = vpop.permute.xlu2 %3368 }
0x3d76   : > { %3385 = vst.msk [vmem:[%s5642_s12 + $0x74] sm:$0x1] %vm487_vm0, %v3369_v37 }
0x3d78   : > { %v3796_v27 = vpop.permute.xlu1 %3795 }
0x3d79   : > { %3813 = vst.msk [vmem:[%s5642_s12 + $0x67] sm:$0x1] %vm487_vm0, %v3796_v27  ;;  %v4348_v27 = vperm.slane %v4340_v56, 0 }
0x3d7b   : > { %4075 = vrot.lane.b32.xlu2 %v4064_v61, %s5544_s6 }
0x3d7d   : > { %v3502_v24 = vpop.permute.xlu2 %3501 }
0x3d7e   : > { %3523 = vst.msk [vmem:[%s5642_s12 + $0x25] sm:$0x1] %vm487_vm0, %v3502_v24  ;;  %v4351_v24 = vperm.slane %v4343_v15, 0 }
0x3d80   : > { %v3929_v31 = vpop.permute.xlu1 %3928 }
0x3d81   : > { %3951 = vst.msk [vmem:[%s5642_s12 + $0x18] sm:$0x1] %vm487_vm0, %v3929_v31  ;;  %v4346_v31 = vrot.slane %v7032_v43, 7 }
0x3d83   : > { %4079 = vrot.lane.b32.xlu2 %v4066_v32, %s5544_s6  ;;  %v4354_v32 = vperm.slane %v4346_v31, 0 }
0x3d85   : > { %v3508_v34 = vpop.permute.xlu2 %3507 }
0x3d86   : > { %3526 = vst.msk [vmem:[%s5642_s12 + $0x55] sm:$0x1] %vm487_vm0, %v3508_v34 }
0x3d88   : > { %v3935_v10 = vpop.permute.xlu1 %3934 }
0x3d89   : > { %3954 = vst.msk [vmem:[%s5642_s12 + $0x48] sm:$0x1] %vm487_vm0, %v3935_v10  ;;  %v4484_v10 = vrot.slane %v7077_v26, 2 }
0x3d8b   : > { %4212 = vrot.lane.b32.xlu2 %v4204_v1, %s5544_s6  ;;  %v4492_v1 = vperm.slane %v4484_v10, 0 }
0x3d8d   : > { %v3641_v2 = vpop.permute.xlu2 %3640 }
0x3d8e   : > { %3664 = vst.msk [vmem:[%s5642_s12 + $0x6] sm:$0x1] %vm487_vm0, %v3641_v2 }
0x3d90   : > { %v3941_v25 = vpop.permute.xlu1 %3940 }
0x3d91   : > { %3957 = vst.msk [vmem:[%s5642_s12 + $0x78] sm:$0x1] %vm487_vm0, %v3941_v25  ;;  %v4495_v25 = vperm.slane %v4487_v62, 0 }
0x3d93   : > { %4218 = vrot.lane.b32.xlu2 %v4207_v41, %s5544_s6  ;;  %v4489_v41 = vrot.slane %v7077_v26, 7 }
0x3d95   : > { %v3647_v28 = vpop.permute.xlu2 %3646  ;;  %v4497_v33 = vperm.slane %v4489_v41, 0 }
0x3d96   : > { %3667 = vst.msk [vmem:[%s5642_s12 + $0x36] sm:$0x1] %vm487_vm0, %v3647_v28 }
0x3d98   : > { %v4074_v39 = vpop.permute.xlu1 %4073 }
0x3d99   : > { %4095 = vst.msk [vmem:[%s5642_s12 + $0x29] sm:$0x1] %vm487_vm0, %v4074_v39 }
0x3d9b   : > { %4224 = vrot.lane.b32.xlu2 %v4210_v46, %s5544_s6  ;;  %v4627_v46 = vrot.slane %v7127_v40, 2 }
0x3d9d   : > { %v3653_v38 = vpop.permute.xlu2 %3652 }
0x3d9e   : > { %3670 = vst.msk [vmem:[%s5642_s12 + $0x66] sm:$0x1] %vm487_vm0, %v3653_v38  ;;  %v4635_v38 = vperm.slane %v4627_v46, 0 }
0x3da0   : > { %v4078_v7 = vpop.permute.xlu1 %4077 }
0x3da1   : > { %4097 = vst.msk [vmem:[%s5642_s12 + $0x49] sm:$0x1] %vm487_vm0, %v4078_v7 }
0x3da3   : > { %4355 = vrot.lane.b32.xlu2 %v4347_v53, %s5544_s6 }
0x3da5   : > { %v3786_v9 = vpop.permute.xlu2 %3785 }
0x3da6   : > { %3808 = vst.msk [vmem:[%s5642_s12 + $0x17] sm:$0x1] %vm487_vm0, %v3786_v9 }
0x3da8   : > { %v4084_v11 = vpop.permute.xlu1 %4083 }
0x3da9   : > { %4100 = vst.msk [vmem:[%s5642_s12 + $0x79] sm:$0x1] %vm487_vm0, %v4084_v11  ;;  %v4638_v11 = vperm.slane %v4630_v59, 0 }
0x3dab   : > { %4361 = vrot.lane.b32.xlu2 %v4350_v60, %s5544_s6 }
0x3dad   : > { %v3792_v57 = vpop.permute.xlu2 %3791 }
0x3dae   : > { %3811 = vst.msk [vmem:[%s5642_s12 + $0x47] sm:$0x1] %vm487_vm0, %v3792_v57 }
0x3db0   : > { %v4217_v22 = vpop.permute.xlu1 %4216 }
0x3db1   : > { %4238 = vst.msk [vmem:[%s5642_s12 + $0x2a] sm:$0x1] %vm487_vm0, %v4217_v22 }
0x3db3   : > { %4367 = vrot.lane.b32.xlu2 %v4353_v16, %s5544_s6 }
0x3db5   : > { %v3798_v3 = vpop.permute.xlu2 %3797 }
0x3db6   : > { %3814 = vst.msk [vmem:[%s5642_s12 + $0x77] sm:$0x1] %vm487_vm0, %v3798_v3  ;;  %v4771_v3 = vrot.slane %v7313_v19, 3 }
0x3db8   : > { %v4223_v6 = vpop.permute.xlu1 %4222 }
0x3db9   : > { %4241 = vst.msk [vmem:[%s5642_s12 + $0x5a] sm:$0x1] %vm487_vm0, %v4223_v6  ;;  %v4779_v6 = vperm.slane %v4771_v3, 0 }
0x3dba   : > { %v4871_v18 = vpop.f32.mrf.mxu3 }
0x3dbb   : > { %v7536_v50 = vadd.f32 %v5517_v20, %v4871_v18  ;;  %4500 = vrot.lane.b32.xlu2 %v4491_v5, %s5544_s6  ;;  %v4774_v20 = vrot.slane %v7313_v19, 6 }
0x3dbd   : > { %5489 = vtanh.f32 %v7536_v50  ;;  %v3931_v36 = vpop.permute.xlu2 %3930  ;;  %v5201_v28 = vmul.f32 -1.442695, %v7536_v50 }
0x3dbe   : > { %3952 = vst.msk [vmem:[%s5642_s12 + $0x28] sm:$0x1] %vm487_vm0, %v3931_v36 }
0x3dbf   : > { %5491 = vpow2.f32 %v5201_v28 }
0x3dc0   : > { %v4360_v21 = vpop.permute.xlu1 %4359 }
0x3dc1   : > { %4381 = vst.msk [vmem:[%s5642_s12 + $0x2b] sm:$0x1] %vm487_vm0, %v4360_v21  ;;  %v4782_v21 = vperm.slane %v4774_v20, 0 }
0x3dc3   : > { %v5490_v48 = vpop.eup %5489  ;;  %4506 = vrot.lane.b32.xlu2 %v4494_v55, %s5544_s6 }
0x3dc4   : > { %4896 = vrot.lane.b32.xlu0 %v5490_v48, %s5545_s9 }
0x3dc5   : > { %v3937_v42 = vpop.permute.xlu2 %3936  ;;  %v5492_v7 = vpop.eup %5491 }
0x3dc6   : > { %3955 = vst.msk [vmem:[%s5642_s12 + $0x58] sm:$0x1] %vm487_vm0, %v3937_v42  ;;  %v4877_v9 = vadd.f32 1.0, %v5492_v7 }
0x3dc8   : > { %v4366_v23 = vpop.permute.xlu1 %4365  ;;  %5493 = vrcp.f32 %v4877_v9  ;;  %v4889_v36 = vand.u32 2147483648, %v4877_v9  ;;  %vm4883_vm4 = vweird.f32 %v4877_v9  ;;  %v4887_v29 = vand.u32 2147483647, %v4877_v9 }
0x3dc9   : > { %4384 = vst.msk [vmem:[%s5642_s12 + $0x5b] sm:$0x1] %vm487_vm0, %v4366_v23 }
0x3dca   : > { %v4890_v48 = vor.u32 1.1754944e-38, %v4889_v36  ;;  %vm4888_vm6 = vcmp.eq.f32.partialorder %v4887_v29, 8.507059e+37 }
0x3dcb   : > { %4643 = vrot.lane.b32.xlu2 %v4634_v12, %s5544_s6 }
0x3dcc   : > { %4214 = vrot.lane.b32.xlu0 %v4205_v49, %s5544_s6  ;;  %v4490_v49 = vperm.slane %v7077_v26, 0 }
0x3dcd   : > { %v4070_v54 = vpop.permute.xlu2 %4069 }
0x3dce   : > { %4093 = vst.msk [vmem:[%s5642_s12 + $0x9] sm:$0x1] %vm487_vm0, %v4070_v54  ;;  %v5494_v57 = vpop.eup %5493  ;;  %v4485_v54 = vrot.slane %v7077_v26, 3 }
0x3dcf   : > { %v4879_v22 = vmul.f32 %v5494_v57, %v4877_v9  ;;  %vm4884_vm3 = vweird.f32 %v5494_v57 }
0x3dd0   : > { %vm4885_vm5 = vmor %vm4883_vm4, %vm4884_vm3  ;;  %v4493_v17 = vperm.slane %v4485_v54, 0 }
0x3dd1   : > { %v4880_v47 = vsub.f32 1.0, %v4879_v22 }
0x3dd3   : > { %4649 = vrot.lane.b32.xlu2 %v4637_v35, %s5544_s6  ;;  %v4881_v5 = vmul.f32 %v5494_v57, %v4880_v47  ;;  %v4488_v35 = vrot.slane %v7077_v26, 6 }
0x3dd4   : > { %4220 = vrot.lane.b32.xlu0 %v4208_v44, %s5544_s6 }
0x3dd5   : > { %v4076_v14 = vpop.permute.xlu2 %4075  ;;  %v4882_v50 = vadd.f32 %v5494_v57, %v4881_v5 }
0x3dd6   : > { %4096 = vst.msk [vmem:[%s5642_s12 + $0x39] sm:$0x1] %vm487_vm0, %v4076_v14  ;;  %v4496_v14 = vperm.slane %v4488_v35, 0 }
0x3dd7   : > { %v4886_v55 = vsel %vm4885_vm5, %v5494_v57, %v4882_v50 }
0x3dd8   : > { %v7614_v45 = vsel %vm4888_vm6, %v4890_v48, %v4886_v55 }
0x3dd9   : > { %v4894_v41 = vmul.f32 %v7614_v45, %v7205_v13  ;;  %v4773_v13 = vrot.slane %v7313_v19, 5 }
0x3ddb   : > { %4655 = vrot.lane.b32.xlu2 %v4640_v30, %s5544_s6  ;;  %v4628_v30 = vrot.slane %v7127_v40, 3  ;;  %v4781_v59 = vperm.slane %v4773_v13, 0 }
0x3ddc   : > { %4226 = vrot.lane.b32.xlu0 %v4211_v8, %s5544_s6 }
0x3ddd   : > { %v4080_v37 = vpop.permute.xlu2 %4079  ;;  %v4636_v26 = vperm.slane %v4628_v30, 0 }
0x3dde   : > { %4098 = vst.msk [vmem:[%s5642_s12 + $0x59] sm:$0x1] %vm487_vm0, %v4080_v37  ;;  %v4631_v37 = vrot.slane %v7127_v40, 6  ;;  %v4772_v40 = vrot.slane %v7313_v19, 4 }
0x3de0   : > { %v4780_v31 = vperm.slane %v4772_v40, 0 }
0x3de4   : > { %4357 = vrot.lane.b32.xlu0 %v4348_v27, %s5544_s6  ;;  %v4639_v27 = vperm.slane %v4631_v37, 0 }
0x3de5   : > { %v4213_v61 = vpop.permute.xlu2 %4212 }
0x3de6   : > { %4236 = vst.msk [vmem:[%s5642_s12 + $0xa] sm:$0x1] %vm487_vm0, %v4213_v61  ;;  %v4769_v61 = vrot.slane %v7313_v19, 1 }
0x3dec   : > { %4363 = vrot.lane.b32.xlu0 %v4351_v24, %s5544_s6  ;;  %v4777_v24 = vperm.slane %v4769_v61, 0  ;;  %v5044_v61 = vld [vmem:[%s5642_s12 + $0x20] sm:$0xff] (%p5609_p5) }
0x3ded   : > { %v4219_v51 = vpop.permute.xlu2 %4218 }
0x3dee   : > { %4239 = vst.msk [vmem:[%s5642_s12 + $0x3a] sm:$0x1] %vm487_vm0, %v4219_v51 }
0x3df4   : > { %4369 = vrot.lane.b32.xlu0 %v4354_v32, %s5544_s6  ;;  %v4775_v32 = vrot.slane %v7313_v19, 7 }
0x3df5   : > { %v4225_v34 = vpop.permute.xlu2 %4224 }
0x3df6   : > { %4242 = vst.msk [vmem:[%s5642_s12 + $0x6a] sm:$0x1] %vm487_vm0, %v4225_v34  ;;  %v4783_v10 = vperm.slane %v4775_v32, 0  ;;  %v5056_v32 = vld [vmem:[%s5642_s12 + $0x50] sm:$0xff] (%p5609_p5) }
0x3dfc   : > { %4502 = vrot.lane.b32.xlu0 %v4492_v1, %s5544_s6 }
0x3dfd   : > { %v4356_v2 = vpop.permute.xlu2 %4355 }
0x3dfe   : > { %4379 = vst.msk [vmem:[%s5642_s12 + $0xb] sm:$0x1] %vm487_vm0, %v4356_v2 }
0x3e04   : > { %4508 = vrot.lane.b32.xlu0 %v4495_v25, %s5544_s6 }
0x3e05   : > { %v4362_v43 = vpop.permute.xlu2 %4361 }
0x3e06   : > { %4382 = vst.msk [vmem:[%s5642_s12 + $0x3b] sm:$0x1] %vm487_vm0, %v4362_v43 }
0x3e0c   : > { %4512 = vrot.lane.b32.xlu0 %v4497_v33, %s5544_s6 }
0x3e0d   : > { %v4368_v39 = vpop.permute.xlu2 %4367 }
0x3e0e   : > { %4385 = vst.msk [vmem:[%s5642_s12 + $0x6b] sm:$0x1] %vm487_vm0, %v4368_v39 }
0x3e14   : > { %4645 = vrot.lane.b32.xlu0 %v4635_v38, %s5544_s6  ;;  %v4770_v38 = vrot.slane %v7313_v19, 2 }
0x3e15   : > { %v4501_v53 = vpop.permute.xlu2 %4500 }
0x3e16   : > { %4523 = vst.msk [vmem:[%s5642_s12 + $0x1c] sm:$0x1] %vm487_vm0, %v4501_v53  ;;  %v4778_v53 = vperm.slane %v4770_v38, 0 }
0x3e1c   : > { %4651 = vrot.lane.b32.xlu0 %v4638_v11, %s5544_s6 }
0x3e1d   : > { %v4507_v60 = vpop.permute.xlu2 %4506 }
0x3e1e   : > { %4526 = vst.msk [vmem:[%s5642_s12 + $0x4c] sm:$0x1] %vm487_vm0, %v4507_v60 }
0x3e24   : > { %4784 = vrot.lane.b32.xlu0 %v4776_v4, %s5544_s6 }
0x3e25   : > { %v4644_v16 = vpop.permute.xlu2 %4643 }
0x3e26   : > { %4666 = vst.msk [vmem:[%s5642_s12 + $0x1d] sm:$0x1] %vm487_vm0, %v4644_v16 }
0x3e2c   : > { %4790 = vrot.lane.b32.xlu0 %v4779_v6, %s5544_s6 }
0x3e2d   : > { %v4650_v18 = vpop.permute.xlu2 %4649 }
0x3e2e   : > { %4669 = vst.msk [vmem:[%s5642_s12 + $0x4d] sm:$0x1] %vm487_vm0, %v4650_v18 }
0x3e34   : > { %4796 = vrot.lane.b32.xlu0 %v4782_v21, %s5544_s6 }
0x3e35   : > { %v4656_v42 = vpop.permute.xlu2 %4655 }
0x3e36   : > { %4672 = vst.msk [vmem:[%s5642_s12 + $0x7d] sm:$0x1] %vm487_vm0, %v4656_v42  ;;  %v4897_v58 = vpop.permute.xlu0 %4896 }
0x3e37   : > { %v4899_v23 = vmul.f32 %v4897_v58, %v7614_v45 }
0x3e39   : > { %4901 = vrot.lane.b32.xlu1 %v4899_v23, %s5544_s6 }
0x3e3e   : > { %v4215_v12 = vpop.permute.xlu0 %4214 }
0x3e3f   : > { %4237 = vst.msk [vmem:[%s5642_s12 + $0x1a] sm:$0x1] %vm487_vm0, %v4215_v12 }
0x3e41   : > { %4498 = vrot.lane.b32.xlu1 %v4490_v49, %s5544_s6 }
0x3e46   : > { %v4221_v0 = vpop.permute.xlu0 %4220 }
0x3e47   : > { %4240 = vst.msk [vmem:[%s5642_s12 + $0x4a] sm:$0x1] %vm487_vm0, %v4221_v0 }
0x3e49   : > { %4504 = vrot.lane.b32.xlu1 %v4493_v17, %s5544_s6 }
0x3e4e   : > { %v4227_v44 = vpop.permute.xlu0 %4226 }
0x3e4f   : > { %4243 = vst.msk [vmem:[%s5642_s12 + $0x7a] sm:$0x1] %vm487_vm0, %v4227_v44 }
0x3e51   : > { %4510 = vrot.lane.b32.xlu1 %v4496_v14, %s5544_s6 }
0x3e56   : > { %v4358_v63 = vpop.permute.xlu0 %4357 }
0x3e57   : > { %4380 = vst.msk [vmem:[%s5642_s12 + $0x1b] sm:$0x1] %vm487_vm0, %v4358_v63 }
0x3e59   : > { %4641 = vrot.lane.b32.xlu1 %v4633_v52, %s5544_s6 }
0x3e5e   : > { %v4364_v8 = vpop.permute.xlu0 %4363 }
0x3e5f   : > { %4383 = vst.msk [vmem:[%s5642_s12 + $0x4b] sm:$0x1] %vm487_vm0, %v4364_v8 }
0x3e61   : > { %4647 = vrot.lane.b32.xlu1 %v4636_v26, %s5544_s6  ;;  %v5036_v26 = vld [vmem:[%s5642_s12] sm:$0xff] (%p5609_p5) }
0x3e66   : > { %v4370_v56 = vpop.permute.xlu0 %4369 }
0x3e67   : > { %4386 = vst.msk [vmem:[%s5642_s12 + $0x7b] sm:$0x1] %vm487_vm0, %v4370_v56  ;;  %v5040_v56 = vld [vmem:[%s5642_s12 + $0x10] sm:$0xff] (%p5609_p5) }
0x3e69   : > { %4653 = vrot.lane.b32.xlu1 %v4639_v27, %s5544_s6 }
0x3e6e   : > { %v4503_v15 = vpop.permute.xlu0 %4502 }
0x3e6f   : > { %4524 = vst.msk [vmem:[%s5642_s12 + $0x2c] sm:$0x1] %vm487_vm0, %v4503_v15 }
0x3e71   : > { %4786 = vrot.lane.b32.xlu1 %v4777_v24, %s5544_s6  ;;  %v5048_v24 = vld [vmem:[%s5642_s12 + $0x30] sm:$0xff] (%p5609_p5) }
0x3e76   : > { %v4509_v51 = vpop.permute.xlu0 %4508 }
0x3e77   : > { %4527 = vst.msk [vmem:[%s5642_s12 + $0x5c] sm:$0x1] %vm487_vm0, %v4509_v51  ;;  %v5052_v51 = vld [vmem:[%s5642_s12 + $0x40] sm:$0xff] (%p5609_p5) }
0x3e79   : > { %4792 = vrot.lane.b32.xlu1 %v4780_v31, %s5544_s6 }
0x3e7e   : > { %v4513_v34 = vpop.permute.xlu0 %4512 }
0x3e7f   : > { %4529 = vst.msk [vmem:[%s5642_s12 + $0x7c] sm:$0x1] %vm487_vm0, %v4513_v34 }
0x3e81   : > { %4798 = vrot.lane.b32.xlu1 %v4783_v10, %s5544_s6  ;;  %v5060_v10 = vld [vmem:[%s5642_s12 + $0x60] sm:$0xff] (%p5609_p5) }
0x3e86   : > { %v4646_v1 = vpop.permute.xlu0 %4645 }
0x3e87   : > { %4667 = vst.msk [vmem:[%s5642_s12 + $0x2d] sm:$0x1] %vm487_vm0, %v4646_v1 }
0x3e8e   : > { %v4652_v2 = vpop.permute.xlu0 %4651 }
0x3e8f   : > { %4670 = vst.msk [vmem:[%s5642_s12 + $0x5d] sm:$0x1] %vm487_vm0, %v4652_v2  ;;  %v5064_v2 = vld [vmem:[%s5642_s12 + $0x70] sm:$0xff] (%p5609_p5) }
0x3e96   : > { %v4785_v62 = vpop.permute.xlu0 %4784 }
0x3e97   : > { %4808 = vst.msk [vmem:[%s5642_s12 + $0xe] sm:$0x1] %vm487_vm0, %v4785_v62 }
0x3e9e   : > { %v4791_v25 = vpop.permute.xlu0 %4790 }
0x3e9f   : > { %4811 = vst.msk [vmem:[%s5642_s12 + $0x3e] sm:$0x1] %vm487_vm0, %v4791_v25 }
0x3ea6   : > { %v4797_v43 = vpop.permute.xlu0 %4796 }
0x3ea7   : > { %4814 = vst.msk [vmem:[%s5642_s12 + $0x6e] sm:$0x1] %vm487_vm0, %v4797_v43 }
0x3eab   : > { %v4902_v28 = vpop.permute.xlu1 %4901 }
0x3eac   : > { %v4904_v33 = vadd.f32 %v4902_v28, %v4894_v41 }
0x3eae   : > { %5495 = vtanh.f32 %v4904_v33 }
0x3eb3   : > { %v4499_v39 = vpop.permute.xlu1 %4498 }
0x3eb4   : > { %v5496_v46 = vpop.eup %5495  ;;  %4522 = vst.msk [vmem:[%s5642_s12 + $0xc] sm:$0x1] %vm487_vm0, %v4499_v39 }
0x3eb5   : > { %4907 = vrot.lane.b32.xlu2 %v5496_v46, %s5545_s9 }
0x3ebb   : > { %v4505_v7 = vpop.permute.xlu1 %4504 }
0x3ebc   : > { %4525 = vst.msk [vmem:[%s5642_s12 + $0x3c] sm:$0x1] %vm487_vm0, %v4505_v7 }
0x3ebd   : > { %4788 = vrot.lane.b32.xlu2 %v4778_v53, %s5544_s6 }
0x3ec3   : > { %v4511_v9 = vpop.permute.xlu1 %4510 }
0x3ec4   : > { %4528 = vst.msk [vmem:[%s5642_s12 + $0x6c] sm:$0x1] %vm487_vm0, %v4511_v9 }
0x3ec5   : > { %4794 = vrot.lane.b32.xlu2 %v4781_v59, %s5544_s6 }
0x3ecb   : > { %v4642_v11 = vpop.permute.xlu1 %4641 }
0x3ecc   : > { %4665 = vst.msk [vmem:[%s5642_s12 + $0xd] sm:$0x1] %vm487_vm0, %v4642_v11 }
0x3ed3   : > { %v4648_v60 = vpop.permute.xlu1 %4647 }
0x3ed4   : > { %4668 = vst.msk [vmem:[%s5642_s12 + $0x3d] sm:$0x1] %vm487_vm0, %v4648_v60 }
0x3edb   : > { %v4654_v57 = vpop.permute.xlu1 %4653 }
0x3edc   : > { %4671 = vst.msk [vmem:[%s5642_s12 + $0x6d] sm:$0x1] %vm487_vm0, %v4654_v57 }
0x3ee3   : > { %v4787_v4 = vpop.permute.xlu1 %4786 }
0x3ee4   : > { %4809 = vst.msk [vmem:[%s5642_s12 + $0x1e] sm:$0x1] %vm487_vm0, %v4787_v4 }
0x3eeb   : > { %v4793_v19 = vpop.permute.xlu1 %4792 }
0x3eec   : > { %4812 = vst.msk [vmem:[%s5642_s12 + $0x4e] sm:$0x1] %vm487_vm0, %v4793_v19 }
0x3ef3   : > { %v4799_v22 = vpop.permute.xlu1 %4798 }
0x3ef4   : > { %4815 = vst.msk [vmem:[%s5642_s12 + $0x7e] sm:$0x1] %vm487_vm0, %v4799_v22 }
0x3f0f   : > { %v4908_v16 = vpop.permute.xlu2 %4907 }
0x3f10   : > { %v4910_v3 = vmul.f32 %v4908_v16, %v7614_v45 }
0x3f12   : > { %v4919_v47 = vperm.slane %v4910_v3, 0  ;;  %v4913_v6 = vrot.slane %v4910_v3, 2  ;;  %v4912_v5 = vrot.slane %v4910_v3, 1  ;;  %v4914_v50 = vrot.slane %v4910_v3, 3 }
0x3f13   : > { %v4916_v29 = vrot.slane %v4910_v3, 5  ;;  %v4915_v21 = vrot.slane %v4910_v3, 4  ;;  %v4917_v45 = vrot.slane %v4910_v3, 6  ;;  %v4918_v23 = vrot.slane %v4910_v3, 7 }
0x3f14   : > { %4927 = vrot.lane.b32.xlu2 %v4919_v47, %s5544_s6  ;;  %v4921_v18 = vperm.slane %v4913_v6, 0  ;;  %v4920_v20 = vperm.slane %v4912_v5, 0  ;;  %v4922_v55 = vperm.slane %v4914_v50, 0 }
0x3f15   : > { %v4924_v48 = vperm.slane %v4916_v29, 0  ;;  %v4923_v42 = vperm.slane %v4915_v21, 0  ;;  %v4925_v12 = vperm.slane %v4917_v45, 0  ;;  %v4926_v49 = vperm.slane %v4918_v23, 0 }
0x3f16   : > { %4931 = vrot.lane.b32.xlu1 %v4921_v18, %s5544_s6  ;;  %4929 = vrot.lane.b32.xlu0 %v4920_v20, %s5544_s6 }
0x3f17   : > { %v4789_v36 = vpop.permute.xlu2 %4788 }
0x3f18   : > { %4810 = vst.msk [vmem:[%s5642_s12 + $0x2e] sm:$0x1] %vm487_vm0, %v4789_v36 }
0x3f1c   : > { %4933 = vrot.lane.b32.xlu2 %v4922_v55, %s5544_s6 }
0x3f1e   : > { %4937 = vrot.lane.b32.xlu1 %v4924_v48, %s5544_s6  ;;  %4935 = vrot.lane.b32.xlu0 %v4923_v42, %s5544_s6 }
0x3f1f   : > { %v4795_v58 = vpop.permute.xlu2 %4794 }
0x3f20   : > { %4813 = vst.msk [vmem:[%s5642_s12 + $0x5e] sm:$0x1] %vm487_vm0, %v4795_v58 }
0x3f24   : > { %4939 = vrot.lane.b32.xlu2 %v4925_v12, %s5544_s6 }
0x3f26   : > { %4959 = vrot.lane.b32.xlu1 %v4910_v3, %s5544_s6  ;;  %4941 = vrot.lane.b32.xlu0 %v4926_v49, %s5544_s6  ;;  %s5208_s6 = sshll.u32 (%p5609_p5), %s5594_s21, 4 }
0x3f27   : > { %s4977_s7 = scalar_lea.vmem (%p5609_p5), %s7759_s5, %s5208_s6 }
0x3f28   : > { %5037 = vst [vmem:[%s4977_s7] sm:$0xff] (%p5609_p5), %v5036_v26 }
0x3f29   : > { %5041 = vst [vmem:[%s4977_s7 + $0x20] sm:$0xff] (%p5609_p5), %v5040_v56 }
0x3f2a   : > { %5045 = vst [vmem:[%s4977_s7 + $0x40] sm:$0xff] (%p5609_p5), %v5044_v61 }
0x3f2b   : > { %5049 = vst [vmem:[%s4977_s7 + $0x60] sm:$0xff] (%p5609_p5), %v5048_v24 }
0x3f2c   : > { %4964 = vrot.lane.b32.xlu2 %v4904_v33, %s5547_s27  ;;  %5053 = vst [vmem:[%s4977_s7 + $0x80] sm:$0xff] (%p5609_p5), %v5052_v51 }
0x3f2d   : > { %5057 = vst [vmem:[%s4977_s7 + $0xa0] sm:$0xff] (%p5609_p5), %v5056_v32 }
0x3f2e   : > { %5061 = vst [vmem:[%s4977_s7 + $0xc0] sm:$0xff] (%p5609_p5), %v5060_v10 }
0x3f2f   : > { %5065 = vst [vmem:[%s4977_s7 + $0xe0] sm:$0xff] (%p5609_p5), %v5064_v2 }
0x3f6e   : > { %v4928_v54 = vpop.permute.xlu2 %4927 }
0x3f6f   : > { %4951 = vst.msk [vmem:[%s5642_s12 + $0xf] sm:$0x1] %vm487_vm0, %v4928_v54 }
0x3f76   : > { %v4934_v0 = vpop.permute.xlu2 %4933  ;;  %v5038_v37 = vld [vmem:[%s5642_s12 + $0x8] sm:$0xff] (%p5609_p5) }
0x3f77   : > { %4954 = vst.msk [vmem:[%s5642_s12 + $0x3f] sm:$0x1] %vm487_vm0, %v4934_v0 }
0x3f78   : > { %5039 = vst [vmem:[%s4977_s7 + $0x8] sm:$0xff] (%p5609_p5), %v5038_v37 }
0x3f7e   : > { %v4940_v17 = vpop.permute.xlu2 %4939  ;;  %v5050_v40 = vld [vmem:[%s5642_s12 + $0x38] sm:$0xff] (%p5609_p5) }
0x3f7f   : > { %4957 = vst.msk [vmem:[%s5642_s12 + $0x6f] sm:$0x1] %vm487_vm0, %v4940_v17 }
0x3f80   : > { %5051 = vst [vmem:[%s4977_s7 + $0x68] sm:$0xff] (%p5609_p5), %v5050_v40 }
0x3f86   : > { %v4965_v35 = vpop.permute.xlu2 %4964  ;;  %v5062_v1 = vld [vmem:[%s5642_s12 + $0x68] sm:$0xff] (%p5609_p5) }
0x3f87   : > { %4967 = vst.msk [vmem:[#allocation6] sm:$0xff] %vm7800_vm7, %v4965_v35 }
0x3f88   : > { %v4932_v44 = vpop.permute.xlu1 %4931  ;;  %v4930_v14 = vpop.permute.xlu0 %4929  ;;  %5063 = vst [vmem:[%s4977_s7 + $0xc8] sm:$0xff] (%p5609_p5), %v5062_v1 }
0x3f89   : > { %4953 = vst.msk [vmem:[%s5642_s12 + $0x2f] sm:$0x1] %vm487_vm0, %v4932_v44 }
0x3f8a   : > { %4952 = vst.msk [vmem:[%s5642_s12 + $0x1f] sm:$0x1] %vm487_vm0, %v4930_v14 }
0x3f90   : > { %v4938_v63 = vpop.permute.xlu1 %4937  ;;  %v4936_v52 = vpop.permute.xlu0 %4935  ;;  %v5046_v15 = vld [vmem:[%s5642_s12 + $0x28] sm:$0xff] (%p5609_p5) }
0x3f91   : > { %4956 = vst.msk [vmem:[%s5642_s12 + $0x5f] sm:$0x1] %vm487_vm0, %v4938_v63  ;;  %v5042_v27 = vld [vmem:[%s5642_s12 + $0x18] sm:$0xff] (%p5609_p5) }
0x3f92   : > { %4955 = vst.msk [vmem:[%s5642_s12 + $0x4f] sm:$0x1] %vm487_vm0, %v4936_v52 }
0x3f93   : > { %5043 = vst [vmem:[%s4977_s7 + $0x28] sm:$0xff] (%p5609_p5), %v5042_v27 }
0x3f94   : > { %5047 = vst [vmem:[%s4977_s7 + $0x48] sm:$0xff] (%p5609_p5), %v5046_v15 }
0x3f96   : > { %4974 = sbr.rel (!%p5609_p5) target bundleno = 16291 (0x3fa3), region = 86 }
0x3f98   : > { %v4960_v30 = vpop.permute.xlu1 %4959  ;;  %v4942_v8 = vpop.permute.xlu0 %4941  ;;  %v5058_v34 = vld [vmem:[%s5642_s12 + $0x58] sm:$0xff] (%p5609_p5) }
0x3f99   : > { %4962 = vst.msk [vmem:[#allocation5] sm:$0xff] %vm7801_vm12, %v4960_v30  ;;  %v5054_v31 = vld [vmem:[%s5642_s12 + $0x48] sm:$0xff] (%p5609_p5) }
0x3f9a   : > { %4958 = vst.msk [vmem:[%s5642_s12 + $0x7f] sm:$0x1] %vm487_vm0, %v4942_v8 }
0x3f9b   : > { %5055 = vst [vmem:[%s4977_s7 + $0x88] sm:$0xff] %v5054_v31 }
0x3f9c   : > { %5059 = vst [vmem:[%s4977_s7 + $0xa8] sm:$0xff] %v5058_v34 }
0x3fa1   : > { %v5066_v62 = vld [vmem:[%s5642_s12 + $0x78] sm:$0xff] }
0x3fa2   : > { %5067 = vst [vmem:[%s4977_s7 + $0xe8] sm:$0xff] %v5066_v62 }
0x3fa3 PF: > { %p12_p11 = scmp.ge.s32.totalorder %s5597_s22, 4   ;;  %s7802_s18 = smov %s5536_s19 }
0x3fa4   : > { %s7803_s19 = smov %s5607_s25  ;;  %s7804_s20 = smov %s5597_s22 }
0x3fa5   :  { %14 = sbr.rel (!%p12_p11) target bundleno = 2 (0x2), region = 155 }

</bundles_post_ra>
